<compile_context>
chip_gen: v5e
topology: v5e:2x2
jax: 0.10.0
libtpu: 0.0.40
codegen_flags: <defaults>
</compile_context>

<pallas_src>
import functools

import jax
import jax.numpy as jnp
from jax.experimental import pallas as pl
from jax.experimental.pallas import tpu as pltpu

_VMEM_LIMIT = 32 * 1024 * 1024


def _round_up(x, m):
    return (x + m - 1) // m * m


# --------------------------------------------------------------------------
# Fused inception block: stride-2 conv computed in-kernel from even/odd phases
# --------------------------------------------------------------------------
def _inception_kernel(xe_ref, xo_ref, w_ref, b_ref, o_ref):
    L_out = o_ref.shape[1]
    # output[t] = sum_{d=0..3} xe[t+d] @ W[2d] + xo[t+d] @ W[2d+1]
    acc = jnp.dot(xe_ref[0, pl.ds(0, L_out), :], w_ref[0],
                  preferred_element_type=jnp.float32)
    acc = acc + jnp.dot(xo_ref[0, pl.ds(0, L_out), :], w_ref[1],
                        preferred_element_type=jnp.float32)
    for d in range(1, 4):
        acc = acc + jnp.dot(xe_ref[0, pl.ds(d, L_out), :], w_ref[2 * d],
                            preferred_element_type=jnp.float32)
        acc = acc + jnp.dot(xo_ref[0, pl.ds(d, L_out), :], w_ref[2 * d + 1],
                            preferred_element_type=jnp.float32)
    o_ref[0] = jnp.maximum(acc + b_ref[...], 0.0).astype(o_ref.dtype)


def inception_block(x_blc, W, b):
    """Fused 3-branch inception block (channels-last).

    x_blc: (B, L, C);  W: (8, C, N=3*C_out) fused k=8/pad=4 window (smaller-kernel
    branches are centered zero-padded subsets);  b: (1, N).
    Returns (B, L_out, N) with L_out = L//2 + 1 (identical to all three PyTorch
    branches).  No im2col materialization: only a 1x even/odd phase split in glue.
    """
    B, L, C = x_blc.shape
    N = W.shape[2]
    L_out = L // 2 + 1
    Lp = L + 8 + (L % 2)                       # pad 4 both sides (+1 to make even)
    xp = jnp.pad(x_blc, ((0, 0), (4, Lp - L - 4), (0, 0)))
    Lh = Lp // 2
    xph = xp.reshape(B, Lh, 2, C)
    xe = xph[:, :, 0, :]                       # xp[2i]   -> taps 0,2,4,6
    xo = xph[:, :, 1, :]                       # xp[2i+1] -> taps 1,3,5,7
    return pl.pallas_call(
        _inception_kernel,
        out_shape=jax.ShapeDtypeStruct((B, L_out, N), jnp.float32),
        grid_spec=pltpu.PrefetchScalarGridSpec(
            num_scalar_prefetch=0,
            grid=(B,),
            in_specs=[
                pl.BlockSpec((1, Lh, C), lambda bi: (bi, 0, 0)),
                pl.BlockSpec((1, Lh, C), lambda bi: (bi, 0, 0)),
                pl.BlockSpec((8, C, N), lambda bi: (0, 0, 0)),
                pl.BlockSpec((1, N), lambda bi: (0, 0)),
            ],
            out_specs=pl.BlockSpec((1, L_out, N), lambda bi: (bi, 0, 0)),
        ),
        compiler_params=pltpu.CompilerParams(
            dimension_semantics=("parallel",),
            vmem_limit_bytes=_VMEM_LIMIT),
    )(xe, xo, W, b)


# --------------------------------------------------------------------------
# Multi-piece dense: y = relu?( sum_i x_i @ w_i + b ), no K/N padding, no concat
# --------------------------------------------------------------------------
def _proj_kernel(*refs, n_pieces, relu):
    x_refs = refs[:n_pieces]
    w_refs = refs[n_pieces:2 * n_pieces]
    b_ref = refs[2 * n_pieces]
    o_ref = refs[2 * n_pieces + 1]
    acc = jnp.dot(x_refs[0][...], w_refs[0][...],
                  preferred_element_type=jnp.float32)
    for xr, wr in zip(x_refs[1:], w_refs[1:]):
        acc = acc + jnp.dot(xr[...], wr[...], preferred_element_type=jnp.float32)
    y = acc + b_ref[...]
    if relu:
        y = jnp.maximum(y, 0.0)
    o_ref[...] = y.astype(o_ref.dtype)


def dense_multi(xs, ws, b, relu=False, tm=512):
    """xs: list of (M, K_i); ws: list of (K_i, N); b: (1, N) -> (Mp, N) padded out.

    All K_i and N stay at full extent (no 128-padding / no K grid / no acc scratch);
    only M is padded up to a multiple of 8 (and of tm)."""
    M = xs[0].shape[0]
    N = ws[0].shape[1]
    Mp = _round_up(M, 8)
    tm = min(tm, Mp)
    Mp = _round_up(Mp, tm)
    xs_p = [jnp.pad(x, ((0, Mp - M), (0, 0))) if Mp != M else x for x in xs]
    n = len(xs)
    in_specs = ([pl.BlockSpec((tm, x.shape[1]), lambda i: (i, 0)) for x in xs_p] +
                [pl.BlockSpec((w.shape[0], N), lambda i: (0, 0)) for w in ws] +
                [pl.BlockSpec((1, N), lambda i: (0, 0))])
    return pl.pallas_call(
        functools.partial(_proj_kernel, n_pieces=n, relu=relu),
        out_shape=jax.ShapeDtypeStruct((Mp, N), jnp.float32),
        grid_spec=pltpu.PrefetchScalarGridSpec(
            num_scalar_prefetch=0,
            grid=(Mp // tm,),
            in_specs=in_specs,
            out_specs=pl.BlockSpec((tm, N), lambda i: (i, 0)),
        ),
        compiler_params=pltpu.CompilerParams(
            dimension_semantics=("parallel",),
            vmem_limit_bytes=_VMEM_LIMIT),
    )(*xs_p, *ws, b)


def project_gates(pieces, wih, bias):
    """Gate projection without concatenation.

    pieces: list of (Tp, B, D_i) time-major arrays; wih: (sum D_i, N); bias: (1, N).
    Returns (Tp, B, N)."""
    Tp, B = pieces[0].shape[0], pieces[0].shape[1]
    xs, ws = [], []
    off = 0
    for p in pieces:
        d = p.shape[2]
        xs.append(p.reshape(Tp * B, d))
        ws.append(wih[off:off + d])
        off += d
    assert off == wih.shape[0]
    N = wih.shape[1]
    y = dense_multi(xs, ws, bias)
    M = Tp * B
    if y.shape[0] != M:
        y = y[:M]
    return y.reshape(Tp, B, N)


# --------------------------------------------------------------------------
# GRU recurrence kernels (input projection precomputed; time-chunked grid)
# --------------------------------------------------------------------------
def _gru_cell_update(gi, gh, h, bhn, H):
    """gi: (B,3H) precomputed x@Wih + (bih + [bhr,bhz,0]); gh: (B,3H) = h@Whh."""
    rz = jax.nn.sigmoid(gi[:, :2 * H] + gh[:, :2 * H])
    r, z = rz[:, :H], rz[:, H:]
    n = jnp.tanh(gi[:, 2 * H:] + r * (gh[:, 2 * H:] + bhn))
    return (1.0 - z) * n + z * h


def _gru_uni_kernel(gi_ref, whh_ref, bhn_ref, o_ref, h_ref, *, T, Tp, TT):
    t = pl.program_id(0)
    H = h_ref.shape[-1]

    @pl.when(t == 0)
    def _():
        h_ref[...] = jnp.zeros_like(h_ref)

    whh = whh_ref[...]
    bhn = bhn_ref[...]
    base = t * TT
    h = h_ref[...]
    for i in range(TT):
        gi = gi_ref[i]                                         # (B, 3H)
        gh = jnp.dot(h, whh, preferred_element_type=jnp.float32)
        h_new = _gru_cell_update(gi, gh, h, bhn, H)
        if Tp > T:                                             # mask padded steps
            h_new = jnp.where(base + i < T, h_new, h)
        h = h_new
        o_ref[i] = h
    h_ref[...] = h


def _bigru_step(gif, gib, hf, hb, whh, bhn, H):
    """One step of both directions; single MXU push against block-diagonal Whh."""
    gh = jnp.dot(jnp.concatenate([hf, hb], axis=-1), whh,
                 preferred_element_type=jnp.float32)           # (B, 6H)
    hf_new = _gru_cell_update(gif[:, :3 * H], gh[:, :3 * H], hf, bhn[:, :H], H)
    hb_new = _gru_cell_update(gib[:, 3 * H:], gh[:, 3 * H:], hb, bhn[:, H:], H)
    return hf_new, hb_new


def _bigru_kernel(gif_ref, gib_ref, whh_ref, bhn_ref, of_ref, ob_ref,
                  hf_ref, hb_ref, *, T, Tp, TT):
    t = pl.program_id(0)
    H = hf_ref.shape[-1]

    @pl.when(t == 0)
    def _():
        hf_ref[...] = jnp.zeros_like(hf_ref)
        hb_ref[...] = jnp.zeros_like(hb_ref)

    whh = whh_ref[...]
    bhn = bhn_ref[...]
    base = t * TT
    hf = hf_ref[...]
    hb = hb_ref[...]
    for i in range(TT):
        gif = gif_ref[i]                    # gates at forward time  base+i
        gib = gib_ref[TT - 1 - i]           # gates at backward step base+i
        hf_new, hb_new = _bigru_step(gif, gib, hf, hb, whh, bhn, H)
        if Tp > T:
            hf_new = jnp.where(base + i < T, hf_new, hf)
            hb_new = jnp.where(base + i >= Tp - T, hb_new, hb)
        hf, hb = hf_new, hb_new
        of_ref[i] = hf
        ob_ref[TT - 1 - i] = hb             # backward output at original time index
    hf_ref[...] = hf
    hb_ref[...] = hb


def _bigru_pool_kernel(gif_ref, gib_ref, whh_ref, bhn_ref, o_ref,
                       hf_ref, hb_ref, acc_ref, *, T, Tp, TT):
    t = pl.program_id(0)
    H = hf_ref.shape[-1]

    @pl.when(t == 0)
    def _():
        hf_ref[...] = jnp.zeros_like(hf_ref)
        hb_ref[...] = jnp.zeros_like(hb_ref)
        acc_ref[...] = jnp.zeros_like(acc_ref)

    whh = whh_ref[...]
    bhn = bhn_ref[...]
    base = t * TT
    hf = hf_ref[...]
    hb = hb_ref[...]
    acc = acc_ref[...]
    for i in range(TT):
        gif = gif_ref[i]
        gib = gib_ref[TT - 1 - i]
        hf_new, hb_new = _bigru_step(gif, gib, hf, hb, whh, bhn, H)
        if Tp > T:
            valid_f = base + i < T
            valid_b = base + i >= Tp - T
            hf = jnp.where(valid_f, hf_new, hf)
            hb = jnp.where(valid_b, hb_new, hb)
            acc = acc + jnp.concatenate(
                [jnp.where(valid_f, hf, jnp.zeros_like(hf)),
                 jnp.where(valid_b, hb, jnp.zeros_like(hb))], axis=-1)
        else:
            hf, hb = hf_new, hb_new
            acc = acc + jnp.concatenate([hf, hb], axis=-1)
    hf_ref[...] = hf
    hb_ref[...] = hb
    acc_ref[...] = acc

    @pl.when(t == pl.num_programs(0) - 1)
    def _():
        o_ref[...] = (acc_ref[...] * (1.0 / T)).astype(o_ref.dtype)


def gru_uni(pieces, p, T, Tp, TT):
    """Unidirectional GRU over time-major pieces -> (Tp, B, H)."""
    B = pieces[0].shape[1]
    H = p["whh"].shape[0]
    gi = project_gates(pieces, p["wih"], p["bias"])            # (Tp, B, 3H)
    nblk = Tp // TT
    return pl.pallas_call(
        functools.partial(_gru_uni_kernel, T=T, Tp=Tp, TT=TT),
        out_shape=jax.ShapeDtypeStruct((Tp, B, H), jnp.float32),
        grid_spec=pltpu.PrefetchScalarGridSpec(
            num_scalar_prefetch=0,
            grid=(nblk,),
            in_specs=[
                pl.BlockSpec((TT, B, 3 * H), lambda t: (t, 0, 0)),
                pl.BlockSpec((H, 3 * H), lambda t: (0, 0)),
                pl.BlockSpec((1, H), lambda t: (0, 0)),
            ],
            out_specs=pl.BlockSpec((TT, B, H), lambda t: (t, 0, 0)),
            scratch_shapes=[pltpu.VMEM((B, H), jnp.float32)],
        ),
        compiler_params=pltpu.CompilerParams(
            dimension_semantics=("arbitrary",),
            vmem_limit_bytes=_VMEM_LIMIT),
    )(gi, p["whh"], p["bhn"])


def gru_bi(pieces, p, T, Tp, TT, pool=False):
    """Bidirectional GRU over time-major pieces.

    pool=False -> (out_f, out_b), each (Tp, B, H)  (feature concat done implicitly
    downstream by treating them as separate projection pieces).
    pool=True  -> (B, 2H) time-averaged output (global average pooling fused in)."""
    B = pieces[0].shape[1]
    H = p["whh"].shape[0] // 2
    gi = project_gates(pieces, p["wih"], p["bias"])            # (Tp, B, 6H)
    nblk = Tp // TT
    in_specs = [
        pl.BlockSpec((TT, B, 6 * H), lambda t: (t, 0, 0)),
        pl.BlockSpec((TT, B, 6 * H), lambda t: (nblk - 1 - t, 0, 0)),
        pl.BlockSpec((2 * H, 6 * H), lambda t: (0, 0)),
        pl.BlockSpec((1, 2 * H), lambda t: (0, 0)),
    ]
    cp = pltpu.CompilerParams(dimension_semantics=("arbitrary",),
                              vmem_limit_bytes=_VMEM_LIMIT)
    if pool:
        return pl.pallas_call(
            functools.partial(_bigru_pool_kernel, T=T, Tp=Tp, TT=TT),
            out_shape=jax.ShapeDtypeStruct((B, 2 * H), jnp.float32),
            grid_spec=pltpu.PrefetchScalarGridSpec(
                num_scalar_prefetch=0,
                grid=(nblk,),
                in_specs=in_specs,
                out_specs=pl.BlockSpec((B, 2 * H), lambda t: (0, 0)),
                scratch_shapes=[pltpu.VMEM((B, H), jnp.float32),
                                pltpu.VMEM((B, H), jnp.float32),
                                pltpu.VMEM((B, 2 * H), jnp.float32)],
            ),
            compiler_params=cp,
        )(gi, gi, p["whh"], p["bhn"])

    out_f, out_b = pl.pallas_call(
        functools.partial(_bigru_kernel, T=T, Tp=Tp, TT=TT),
        out_shape=(jax.ShapeDtypeStruct((Tp, B, H), jnp.float32),
                   jax.ShapeDtypeStruct((Tp, B, H), jnp.float32)),
        grid_spec=pltpu.PrefetchScalarGridSpec(
            num_scalar_prefetch=0,
            grid=(nblk,),
            in_specs=in_specs,
            out_specs=[pl.BlockSpec((TT, B, H), lambda t: (t, 0, 0)),
                       pl.BlockSpec((TT, B, H), lambda t: (nblk - 1 - t, 0, 0))],
            scratch_shapes=[pltpu.VMEM((B, H), jnp.float32),
                            pltpu.VMEM((B, H), jnp.float32)],
        ),
        compiler_params=cp,
    )(gi, gi, p["whh"], p["bhn"])
    return out_f, out_b


# --------------------------------------------------------------------------
# Fused FC head (dropout = identity)
# --------------------------------------------------------------------------
def _fc_head_kernel(x_ref, w1_ref, b1_ref, w2_ref, b2_ref,
                    w3_ref, b3_ref, w4_ref, b4_ref, o_ref):
    def layer(h, w_ref, b_ref, relu):
        y = jnp.dot(h, w_ref[...], preferred_element_type=jnp.float32) + b_ref[...]
        return jnp.maximum(y, 0.0) if relu else y

    h = x_ref[...].astype(jnp.float32)
    h = layer(h, w1_ref, b1_ref, True)
    h = layer(h, w2_ref, b2_ref, True)
    h = layer(h, w3_ref, b3_ref, True)
    o_ref[...] = layer(h, w4_ref, b4_ref, False).astype(o_ref.dtype)


def fc_head(x, fc):
    B = x.shape[0]
    n_out = fc["w4"].shape[1]
    return pl.pallas_call(
        _fc_head_kernel,
        out_shape=jax.ShapeDtypeStruct((B, n_out), jnp.float32),
        compiler_params=pltpu.CompilerParams(vmem_limit_bytes=_VMEM_LIMIT),
    )(x, fc["w1"], fc["b1"], fc["w2"], fc["b2"],
      fc["w3"], fc["b3"], fc["w4"], fc["b4"])


# --------------------------------------------------------------------------
# Forward pass
# --------------------------------------------------------------------------
def chrononet_forward(x, params):
    # x: (B, C_in, L)
    x = jnp.transpose(x, (0, 2, 1))                            # (B, L, C) channels-last
    for blk in params["incept"]:
        x = inception_block(x, blk["W"], blk["b"])             # (B, L', 3*C_out)
    x = jnp.transpose(x, (1, 0, 2))                            # (T, B, Cc) time-major

    T = x.shape[0]
    nblk = pl.cdiv(T, 16)
    TT = pl.cdiv(T, nblk)                                      # time-chunk length <= 16
    Tp = nblk * TT
    if Tp > T:
        x = jnp.pad(x, ((0, Tp - T), (0, 0), (0, 0)))          # padded steps masked in-kernel

    out1 = gru_uni([x], params["gru1"], T, Tp, TT)             # (Tp, B, H)
    out2 = gru_uni([out1], params["gru2"], T, Tp, TT)          # (Tp, B, H)
    o3f, o3b = gru_bi([out1, out2], params["gru3"], T, Tp, TT)
    o4f, o4b = gru_bi([out1, out2, o3f, o3b], params["gru4"], T, Tp, TT)
    pooled = gru_bi([out1, out2, o3f, o3b, o4f, o4b],
                    params["gru5"], T, Tp, TT, pool=True)      # (B, 2H) (pooling fused)

    return fc_head(pooled, params["fc"])                       # (B, num_classes)


# --------------------------------------------------------------------------
# Deterministic parameter initialization (pre-fused layouts)
# --------------------------------------------------------------------------
def _uniform(key, shape, scale):
    return jax.random.uniform(key, shape, jnp.float32, -scale, scale)


def init_inception(key, c_in, c_out):
    ks = jax.random.split(key, 6)

    def conv(kw, kb, k):
        s = 1.0 / (c_in * k) ** 0.5
        return _uniform(kw, (c_out, c_in, k), s), _uniform(kb, (c_out,), s)

    w1, b1 = conv(ks[0], ks[1], 2)     # k=2, pad=1
    w2, b2 = conv(ks[2], ks[3], 4)     # k=4, pad=2
    w3, b3 = conv(ks[4], ks[5], 8)     # k=8, pad=4
    # Fuse into one (8, c_in, 3*c_out) weight: smaller-kernel branches are centered
    # subsets of the k=8/pad=4 window; unused taps are zero.
    W = jnp.zeros((8, c_in, 3 * c_out), jnp.float32)
    W = W.at[3:5, :, 0:c_out].set(jnp.transpose(w1, (2, 1, 0)))
    W = W.at[2:6, :, c_out:2 * c_out].set(jnp.transpose(w2, (2, 1, 0)))
    W = W.at[:, :, 2 * c_out:].set(jnp.transpose(w3, (2, 1, 0)))
    b = jnp.concatenate([b1, b2, b3]).reshape(1, 3 * c_out)
    return dict(W=W, b=b)


def init_gru_dir(key, d_in, h):
    ks = jax.random.split(key, 4)
    s = 1.0 / h ** 0.5
    wih = _uniform(ks[0], (d_in, 3 * h), s)    # fused gates [r|z|n]
    whh = _uniform(ks[1], (h, 3 * h), s)
    bih = _uniform(ks[2], (1, 3 * h), s)
    bhh = _uniform(ks[3], (1, 3 * h), s)
    # Fold b_hr, b_hz into the precomputed projection bias; keep b_hn separate
    # (it sits inside r * (W_hn h + b_hn)).
    bias = bih.at[:, :2 * h].add(bhh[:, :2 * h])
    bhn = bhh[:, 2 * h:]
    return dict(wih=wih, bias=bias, whh=whh, bhn=bhn)


def init_gru_bi(key, d_in, h):
    kf, kb = jax.random.split(key)
    pf = init_gru_dir(kf, d_in, h)
    pb = init_gru_dir(kb, d_in, h)
    # Block-diagonal hidden weight so one MXU push serves both directions.
    whh_blk = jnp.zeros((2 * h, 6 * h), jnp.float32)
    whh_blk = whh_blk.at[:h, :3 * h].set(pf["whh"])
    whh_blk = whh_blk.at[h:, 3 * h:].set(pb["whh"])
    return dict(
        wih=jnp.concatenate([pf["wih"], pb["wih"]], axis=1),     # (D, 6H)
        bias=jnp.concatenate([pf["bias"], pb["bias"]], axis=1),  # (1, 6H)
        whh=whh_blk,                                             # (2H, 6H)
        bhn=jnp.concatenate([pf["bhn"], pb["bhn"]], axis=1),     # (1, 2H)
    )


def init_linear(key, d_in, d_out):
    ks = jax.random.split(key, 2)
    s = 1.0 / d_in ** 0.5
    return _uniform(ks[0], (d_in, d_out), s), _uniform(ks[1], (1, d_out), s)


def init_params(key, c_in, conv_out, h, num_classes):
    conv_ch = conv_out * 3
    keys = jax.random.split(key, 14)
    params = {}
    params["incept"] = [init_inception(keys[0], c_in, conv_out)] + [
        init_inception(keys[i], conv_ch, conv_out) for i in range(1, 5)
    ]
    params["gru1"] = init_gru_dir(keys[5], conv_ch, h)
    params["gru2"] = init_gru_dir(keys[6], h, h)
    params["gru3"] = init_gru_bi(keys[7], 2 * h, h)
    params["gru4"] = init_gru_bi(keys[8], 4 * h, h)
    params["gru5"] = init_gru_bi(keys[9], 6 * h, h)
    fc = {}
    fc["w1"], fc["b1"] = init_linear(keys[10], 2 * h, 128)
    fc["w2"], fc["b2"] = init_linear(keys[11], 128, 64)
    fc["w3"], fc["b3"] = init_linear(keys[12], 64, 20)
    fc["w4"], fc["b4"] = init_linear(keys[13], 20, num_classes)
    params["fc"] = fc
    return params


# --------------------------------------------------------------------------
if __name__ == "__main__":
    B, C_IN, L = 2, 4, 64          # L=64 -> T=3 at the GRUs (recurrence exercised)
    CONV_OUT = 8                   # conv_channels = 24
    H = 32                         # gru_hidden_size
    NUM_CLASSES = 4

    key = jax.random.PRNGKey(0)
    kx, kp = jax.random.split(key)
    x = jax.random.normal(kx, (B, C_IN, L), jnp.float32)
    params = init_params(kp, C_IN, CONV_OUT, H, NUM_CLASSES)

    fwd = jax.jit(chrononet_forward)
    logits = fwd(x, params)
    logits = jax.block_until_ready(logits)
    assert logits.shape == (B, NUM_CLASSES), logits.shape
    assert bool(jnp.all(jnp.isfinite(logits)))
    print("KERNEL_OK")
</pallas_src>

<mosaic_0001>
module attributes {stable_mosaic.version = 11 : i64} {
  func.func @_inception_kernel(%arg0: i32, %arg1: memref<1x36x4xf32, #tpu.memory_space<vmem>>, %arg2: memref<1x36x4xf32, #tpu.memory_space<vmem>>, %arg3: memref<8x4x24xf32, #tpu.memory_space<vmem>>, %arg4: memref<1x24xf32, #tpu.memory_space<vmem>>, %arg5: memref<1x33x24xf32, #tpu.memory_space<vmem>>) attributes {dimension_semantics = [#tpu.dimension_semantics<parallel>], iteration_bounds = array<i64: 2>, scalar_prefetch = 0 : i64, scratch_operands = 0 : i64, tpu.core_type = #tpu.core_type<tc>, window_params = [{transform_indices = @transform_0, window_bounds = array<i64: 1, 36, 4>}, {transform_indices = @transform_1, window_bounds = array<i64: 1, 36, 4>}, {pipeline_mode = #tpu.pipeline_mode<synchronous>, transform_indices = @transform_2, window_bounds = array<i64: 8, 4, 24>}, {pipeline_mode = #tpu.pipeline_mode<synchronous>, transform_indices = @transform_3, window_bounds = array<i64: 1, 24>}, {transform_indices = @transform_4, window_bounds = array<i64: 1, 33, 24>}]} {
    %c0 = arith.constant 0 : index
    %c0_0 = arith.constant 0 : index
    %c0_1 = arith.constant 0 : index
    %0 = vector.load %arg1[%c0, %c0_0, %c0_1] : memref<1x36x4xf32, #tpu.memory_space<vmem>>, vector<1x33x4xf32>
    %1 = vector.shape_cast %0 : vector<1x33x4xf32> to vector<33x4xf32>
    %c0_2 = arith.constant 0 : index
    %c0_3 = arith.constant 0 : index
    %c0_4 = arith.constant 0 : index
    %2 = vector.load %arg3[%c0_2, %c0_3, %c0_4] : memref<8x4x24xf32, #tpu.memory_space<vmem>>, vector<1x4x24xf32>
    %3 = vector.shape_cast %2 : vector<1x4x24xf32> to vector<4x24xf32>
    %cst = arith.constant dense<0.000000e+00> : vector<33x24xf32>
    %4 = tpu.matmul %1, %3, %cst {dimension_numbers = #tpu.dot_dimension_numbers<[1], [0], [0], [1], [0, 0, 1, 1], [], []>} : vector<33x4xf32>, vector<4x24xf32>, vector<33x24xf32> -> vector<33x24xf32>
    %c0_5 = arith.constant 0 : index
    %c0_6 = arith.constant 0 : index
    %c0_7 = arith.constant 0 : index
    %5 = vector.load %arg2[%c0_5, %c0_6, %c0_7] : memref<1x36x4xf32, #tpu.memory_space<vmem>>, vector<1x33x4xf32>
    %6 = vector.shape_cast %5 : vector<1x33x4xf32> to vector<33x4xf32>
    %c1 = arith.constant 1 : index
    %c0_8 = arith.constant 0 : index
    %c0_9 = arith.constant 0 : index
    %7 = vector.load %arg3[%c1, %c0_8, %c0_9] : memref<8x4x24xf32, #tpu.memory_space<vmem>>, vector<1x4x24xf32>
    %8 = vector.shape_cast %7 : vector<1x4x24xf32> to vector<4x24xf32>
    %cst_10 = arith.constant dense<0.000000e+00> : vector<33x24xf32>
    %9 = tpu.matmul %6, %8, %cst_10 {dimension_numbers = #tpu.dot_dimension_numbers<[1], [0], [0], [1], [0, 0, 1, 1], [], []>} : vector<33x4xf32>, vector<4x24xf32>, vector<33x24xf32> -> vector<33x24xf32>
    %10 = arith.addf %4, %9 : vector<33x24xf32>
    %c0_11 = arith.constant 0 : index
    %c1_12 = arith.constant 1 : index
    %c0_13 = arith.constant 0 : index
    %11 = vector.load %arg1[%c0_11, %c1_12, %c0_13] : memref<1x36x4xf32, #tpu.memory_space<vmem>>, vector<1x33x4xf32>
    %12 = vector.shape_cast %11 : vector<1x33x4xf32> to vector<33x4xf32>
    %c2 = arith.constant 2 : index
    %c0_14 = arith.constant 0 : index
    %c0_15 = arith.constant 0 : index
    %13 = vector.load %arg3[%c2, %c0_14, %c0_15] : memref<8x4x24xf32, #tpu.memory_space<vmem>>, vector<1x4x24xf32>
    %14 = vector.shape_cast %13 : vector<1x4x24xf32> to vector<4x24xf32>
    %cst_16 = arith.constant dense<0.000000e+00> : vector<33x24xf32>
    %15 = tpu.matmul %12, %14, %cst_16 {dimension_numbers = #tpu.dot_dimension_numbers<[1], [0], [0], [1], [0, 0, 1, 1], [], []>} : vector<33x4xf32>, vector<4x24xf32>, vector<33x24xf32> -> vector<33x24xf32>
    %16 = arith.addf %10, %15 : vector<33x24xf32>
    %c0_17 = arith.constant 0 : index
    %c1_18 = arith.constant 1 : index
    %c0_19 = arith.constant 0 : index
    %17 = vector.load %arg2[%c0_17, %c1_18, %c0_19] : memref<1x36x4xf32, #tpu.memory_space<vmem>>, vector<1x33x4xf32>
    %18 = vector.shape_cast %17 : vector<1x33x4xf32> to vector<33x4xf32>
    %c3 = arith.constant 3 : index
    %c0_20 = arith.constant 0 : index
    %c0_21 = arith.constant 0 : index
    %19 = vector.load %arg3[%c3, %c0_20, %c0_21] : memref<8x4x24xf32, #tpu.memory_space<vmem>>, vector<1x4x24xf32>
    %20 = vector.shape_cast %19 : vector<1x4x24xf32> to vector<4x24xf32>
    %cst_22 = arith.constant dense<0.000000e+00> : vector<33x24xf32>
    %21 = tpu.matmul %18, %20, %cst_22 {dimension_numbers = #tpu.dot_dimension_numbers<[1], [0], [0], [1], [0, 0, 1, 1], [], []>} : vector<33x4xf32>, vector<4x24xf32>, vector<33x24xf32> -> vector<33x24xf32>
    %22 = arith.addf %16, %21 : vector<33x24xf32>
    %c0_23 = arith.constant 0 : index
    %c2_24 = arith.constant 2 : index
    %c0_25 = arith.constant 0 : index
    %23 = vector.load %arg1[%c0_23, %c2_24, %c0_25] : memref<1x36x4xf32, #tpu.memory_space<vmem>>, vector<1x33x4xf32>
    %24 = vector.shape_cast %23 : vector<1x33x4xf32> to vector<33x4xf32>
    %c4 = arith.constant 4 : index
    %c0_26 = arith.constant 0 : index
    %c0_27 = arith.constant 0 : index
    %25 = vector.load %arg3[%c4, %c0_26, %c0_27] : memref<8x4x24xf32, #tpu.memory_space<vmem>>, vector<1x4x24xf32>
    %26 = vector.shape_cast %25 : vector<1x4x24xf32> to vector<4x24xf32>
    %cst_28 = arith.constant dense<0.000000e+00> : vector<33x24xf32>
    %27 = tpu.matmul %24, %26, %cst_28 {dimension_numbers = #tpu.dot_dimension_numbers<[1], [0], [0], [1], [0, 0, 1, 1], [], []>} : vector<33x4xf32>, vector<4x24xf32>, vector<33x24xf32> -> vector<33x24xf32>
    %28 = arith.addf %22, %27 : vector<33x24xf32>
    %c0_29 = arith.constant 0 : index
    %c2_30 = arith.constant 2 : index
    %c0_31 = arith.constant 0 : index
    %29 = vector.load %arg2[%c0_29, %c2_30, %c0_31] : memref<1x36x4xf32, #tpu.memory_space<vmem>>, vector<1x33x4xf32>
    %30 = vector.shape_cast %29 : vector<1x33x4xf32> to vector<33x4xf32>
    %c5 = arith.constant 5 : index
    %c0_32 = arith.constant 0 : index
    %c0_33 = arith.constant 0 : index
    %31 = vector.load %arg3[%c5, %c0_32, %c0_33] : memref<8x4x24xf32, #tpu.memory_space<vmem>>, vector<1x4x24xf32>
    %32 = vector.shape_cast %31 : vector<1x4x24xf32> to vector<4x24xf32>
    %cst_34 = arith.constant dense<0.000000e+00> : vector<33x24xf32>
    %33 = tpu.matmul %30, %32, %cst_34 {dimension_numbers = #tpu.dot_dimension_numbers<[1], [0], [0], [1], [0, 0, 1, 1], [], []>} : vector<33x4xf32>, vector<4x24xf32>, vector<33x24xf32> -> vector<33x24xf32>
    %34 = arith.addf %28, %33 : vector<33x24xf32>
    %c0_35 = arith.constant 0 : index
    %c3_36 = arith.constant 3 : index
    %c0_37 = arith.constant 0 : index
    %35 = vector.load %arg1[%c0_35, %c3_36, %c0_37] : memref<1x36x4xf32, #tpu.memory_space<vmem>>, vector<1x33x4xf32>
    %36 = vector.shape_cast %35 : vector<1x33x4xf32> to vector<33x4xf32>
    %c6 = arith.constant 6 : index
    %c0_38 = arith.constant 0 : index
    %c0_39 = arith.constant 0 : index
    %37 = vector.load %arg3[%c6, %c0_38, %c0_39] : memref<8x4x24xf32, #tpu.memory_space<vmem>>, vector<1x4x24xf32>
    %38 = vector.shape_cast %37 : vector<1x4x24xf32> to vector<4x24xf32>
    %cst_40 = arith.constant dense<0.000000e+00> : vector<33x24xf32>
    %39 = tpu.matmul %36, %38, %cst_40 {dimension_numbers = #tpu.dot_dimension_numbers<[1], [0], [0], [1], [0, 0, 1, 1], [], []>} : vector<33x4xf32>, vector<4x24xf32>, vector<33x24xf32> -> vector<33x24xf32>
    %40 = arith.addf %34, %39 : vector<33x24xf32>
    %c0_41 = arith.constant 0 : index
    %c3_42 = arith.constant 3 : index
    %c0_43 = arith.constant 0 : index
    %41 = vector.load %arg2[%c0_41, %c3_42, %c0_43] : memref<1x36x4xf32, #tpu.memory_space<vmem>>, vector<1x33x4xf32>
    %42 = vector.shape_cast %41 : vector<1x33x4xf32> to vector<33x4xf32>
    %c7 = arith.constant 7 : index
    %c0_44 = arith.constant 0 : index
    %c0_45 = arith.constant 0 : index
    %43 = vector.load %arg3[%c7, %c0_44, %c0_45] : memref<8x4x24xf32, #tpu.memory_space<vmem>>, vector<1x4x24xf32>
    %44 = vector.shape_cast %43 : vector<1x4x24xf32> to vector<4x24xf32>
    %cst_46 = arith.constant dense<0.000000e+00> : vector<33x24xf32>
    %45 = tpu.matmul %42, %44, %cst_46 {dimension_numbers = #tpu.dot_dimension_numbers<[1], [0], [0], [1], [0, 0, 1, 1], [], []>} : vector<33x4xf32>, vector<4x24xf32>, vector<33x24xf32> -> vector<33x24xf32>
    %46 = arith.addf %40, %45 : vector<33x24xf32>
    %c0_47 = arith.constant 0 : index
    %c0_48 = arith.constant 0 : index
    %47 = vector.load %arg4[%c0_47, %c0_48] : memref<1x24xf32, #tpu.memory_space<vmem>>, vector<1x24xf32>
    %48 = vector.broadcast %47 : vector<1x24xf32> to vector<33x24xf32>
    %49 = arith.addf %46, %48 : vector<33x24xf32>
    %cst_49 = arith.constant 0.000000e+00 : f32
    %50 = vector.broadcast %cst_49 : f32 to vector<33x24xf32>
    %51 = arith.maximumf %49, %50 : vector<33x24xf32>
    %c0_50 = arith.constant 0 : index
    %c0_51 = arith.constant 0 : index
    %c0_52 = arith.constant 0 : index
    %52 = vector.load %arg5[%c0_50, %c0_51, %c0_52] : memref<1x33x24xf32, #tpu.memory_space<vmem>>, vector<1x33x24xf32>
    %53 = vector.shape_cast %52 : vector<1x33x24xf32> to vector<33x24xf32>
    %54 = vector.shape_cast %51 : vector<33x24xf32> to vector<1x33x24xf32>
    tpu.vector_store %arg5[%c0_50, %c0_51, %c0_52], %54 {strides = array<i32>} : memref<1x33x24xf32, #tpu.memory_space<vmem>>, vector<1x33x24xf32>,
    return
  }
  func.func @transform_0(%arg0: i32) -> (i32, i32, i32) {
    %c0_i32 = arith.constant 0 : i32
    %c0_i32_0 = arith.constant 0 : i32
    %c0_i32_1 = arith.constant 0 : i32
    return %arg0, %c0_i32, %c0_i32_0 : i32, i32, i32
  }
  func.func @transform_1(%arg0: i32) -> (i32, i32, i32) {
    %c0_i32 = arith.constant 0 : i32
    %c0_i32_0 = arith.constant 0 : i32
    %c0_i32_1 = arith.constant 0 : i32
    return %arg0, %c0_i32, %c0_i32_0 : i32, i32, i32
  }
  func.func @transform_2(%arg0: i32) -> (i32, i32, i32) {
    %c0_i32 = arith.constant 0 : i32
    %c0_i32_0 = arith.constant 0 : i32
    %c0_i32_1 = arith.constant 0 : i32
    %c0_i32_2 = arith.constant 0 : i32
    return %c0_i32, %c0_i32_0, %c0_i32_1 : i32, i32, i32
  }
  func.func @transform_3(%arg0: i32) -> (i32, i32) {
    %c0_i32 = arith.constant 0 : i32
    %c0_i32_0 = arith.constant 0 : i32
    %c0_i32_1 = arith.constant 0 : i32
    return %c0_i32, %c0_i32_0 : i32, i32
  }
  func.func @transform_4(%arg0: i32) -> (i32, i32, i32) {
    %c0_i32 = arith.constant 0 : i32
    %c0_i32_0 = arith.constant 0 : i32
    %c0_i32_1 = arith.constant 0 : i32
    return %arg0, %c0_i32, %c0_i32_0 : i32, i32, i32
  }
}

module attributes {stable_mosaic.version = 11 : i64} {
  func.func @_inception_kernel(%arg0: i32, %arg1: memref<1x21x24xf32, #tpu.memory_space<vmem>>, %arg2: memref<1x21x24xf32, #tpu.memory_space<vmem>>, %arg3: memref<8x24x24xf32, #tpu.memory_space<vmem>>, %arg4: memref<1x24xf32, #tpu.memory_space<vmem>>, %arg5: memref<1x17x24xf32, #tpu.memory_space<vmem>>) attributes {dimension_semantics = [#tpu.dimension_semantics<parallel>], iteration_bounds = array<i64: 2>, scalar_prefetch = 0 : i64, scratch_operands = 0 : i64, tpu.core_type = #tpu.core_type<tc>, window_params = [{transform_indices = @transform_0, window_bounds = array<i64: 1, 21, 24>}, {transform_indices = @transform_1, window_bounds = array<i64: 1, 21, 24>}, {pipeline_mode = #tpu.pipeline_mode<synchronous>, transform_indices = @transform_2, window_bounds = array<i64: 8, 24, 24>}, {pipeline_mode = #tpu.pipeline_mode<synchronous>, transform_indices = @transform_3, window_bounds = array<i64: 1, 24>}, {transform_indices = @transform_4, window_bounds = array<i64: 1, 17, 24>}]} {
    %c0 = arith.constant 0 : index
    %c0_0 = arith.constant 0 : index
    %c0_1 = arith.constant 0 : index
    %0 = vector.load %arg1[%c0, %c0_0, %c0_1] : memref<1x21x24xf32, #tpu.memory_space<vmem>>, vector<1x17x24xf32>
    %1 = vector.shape_cast %0 : vector<1x17x24xf32> to vector<17x24xf32>
    %c0_2 = arith.constant 0 : index
    %c0_3 = arith.constant 0 : index
    %c0_4 = arith.constant 0 : index
    %2 = vector.load %arg3[%c0_2, %c0_3, %c0_4] : memref<8x24x24xf32, #tpu.memory_space<vmem>>, vector<1x24x24xf32>
    %3 = vector.shape_cast %2 : vector<1x24x24xf32> to vector<24x24xf32>
    %cst = arith.constant dense<0.000000e+00> : vector<17x24xf32>
    %4 = tpu.matmul %1, %3, %cst {dimension_numbers = #tpu.dot_dimension_numbers<[1], [0], [0], [1], [0, 0, 1, 1], [], []>} : vector<17x24xf32>, vector<24x24xf32>, vector<17x24xf32> -> vector<17x24xf32>
    %c0_5 = arith.constant 0 : index
    %c0_6 = arith.constant 0 : index
    %c0_7 = arith.constant 0 : index
    %5 = vector.load %arg2[%c0_5, %c0_6, %c0_7] : memref<1x21x24xf32, #tpu.memory_space<vmem>>, vector<1x17x24xf32>
    %6 = vector.shape_cast %5 : vector<1x17x24xf32> to vector<17x24xf32>
    %c1 = arith.constant 1 : index
    %c0_8 = arith.constant 0 : index
    %c0_9 = arith.constant 0 : index
    %7 = vector.load %arg3[%c1, %c0_8, %c0_9] : memref<8x24x24xf32, #tpu.memory_space<vmem>>, vector<1x24x24xf32>
    %8 = vector.shape_cast %7 : vector<1x24x24xf32> to vector<24x24xf32>
    %cst_10 = arith.constant dense<0.000000e+00> : vector<17x24xf32>
    %9 = tpu.matmul %6, %8, %cst_10 {dimension_numbers = #tpu.dot_dimension_numbers<[1], [0], [0], [1], [0, 0, 1, 1], [], []>} : vector<17x24xf32>, vector<24x24xf32>, vector<17x24xf32> -> vector<17x24xf32>
    %10 = arith.addf %4, %9 : vector<17x24xf32>
    %c0_11 = arith.constant 0 : index
    %c1_12 = arith.constant 1 : index
    %c0_13 = arith.constant 0 : index
    %11 = vector.load %arg1[%c0_11, %c1_12, %c0_13] : memref<1x21x24xf32, #tpu.memory_space<vmem>>, vector<1x17x24xf32>
    %12 = vector.shape_cast %11 : vector<1x17x24xf32> to vector<17x24xf32>
    %c2 = arith.constant 2 : index
    %c0_14 = arith.constant 0 : index
    %c0_15 = arith.constant 0 : index
    %13 = vector.load %arg3[%c2, %c0_14, %c0_15] : memref<8x24x24xf32, #tpu.memory_space<vmem>>, vector<1x24x24xf32>
    %14 = vector.shape_cast %13 : vector<1x24x24xf32> to vector<24x24xf32>
    %cst_16 = arith.constant dense<0.000000e+00> : vector<17x24xf32>
    %15 = tpu.matmul %12, %14, %cst_16 {dimension_numbers = #tpu.dot_dimension_numbers<[1], [0], [0], [1], [0, 0, 1, 1], [], []>} : vector<17x24xf32>, vector<24x24xf32>, vector<17x24xf32> -> vector<17x24xf32>
    %16 = arith.addf %10, %15 : vector<17x24xf32>
    %c0_17 = arith.constant 0 : index
    %c1_18 = arith.constant 1 : index
    %c0_19 = arith.constant 0 : index
    %17 = vector.load %arg2[%c0_17, %c1_18, %c0_19] : memref<1x21x24xf32, #tpu.memory_space<vmem>>, vector<1x17x24xf32>
    %18 = vector.shape_cast %17 : vector<1x17x24xf32> to vector<17x24xf32>
    %c3 = arith.constant 3 : index
    %c0_20 = arith.constant 0 : index
    %c0_21 = arith.constant 0 : index
    %19 = vector.load %arg3[%c3, %c0_20, %c0_21] : memref<8x24x24xf32, #tpu.memory_space<vmem>>, vector<1x24x24xf32>
    %20 = vector.shape_cast %19 : vector<1x24x24xf32> to vector<24x24xf32>
    %cst_22 = arith.constant dense<0.000000e+00> : vector<17x24xf32>
    %21 = tpu.matmul %18, %20, %cst_22 {dimension_numbers = #tpu.dot_dimension_numbers<[1], [0], [0], [1], [0, 0, 1, 1], [], []>} : vector<17x24xf32>, vector<24x24xf32>, vector<17x24xf32> -> vector<17x24xf32>
    %22 = arith.addf %16, %21 : vector<17x24xf32>
    %c0_23 = arith.constant 0 : index
    %c2_24 = arith.constant 2 : index
    %c0_25 = arith.constant 0 : index
    %23 = vector.load %arg1[%c0_23, %c2_24, %c0_25] : memref<1x21x24xf32, #tpu.memory_space<vmem>>, vector<1x17x24xf32>
    %24 = vector.shape_cast %23 : vector<1x17x24xf32> to vector<17x24xf32>
    %c4 = arith.constant 4 : index
    %c0_26 = arith.constant 0 : index
    %c0_27 = arith.constant 0 : index
    %25 = vector.load %arg3[%c4, %c0_26, %c0_27] : memref<8x24x24xf32, #tpu.memory_space<vmem>>, vector<1x24x24xf32>
    %26 = vector.shape_cast %25 : vector<1x24x24xf32> to vector<24x24xf32>
    %cst_28 = arith.constant dense<0.000000e+00> : vector<17x24xf32>
    %27 = tpu.matmul %24, %26, %cst_28 {dimension_numbers = #tpu.dot_dimension_numbers<[1], [0], [0], [1], [0, 0, 1, 1], [], []>} : vector<17x24xf32>, vector<24x24xf32>, vector<17x24xf32> -> vector<17x24xf32>
    %28 = arith.addf %22, %27 : vector<17x24xf32>
    %c0_29 = arith.constant 0 : index
    %c2_30 = arith.constant 2 : index
    %c0_31 = arith.constant 0 : index
    %29 = vector.load %arg2[%c0_29, %c2_30, %c0_31] : memref<1x21x24xf32, #tpu.memory_space<vmem>>, vector<1x17x24xf32>
    %30 = vector.shape_cast %29 : vector<1x17x24xf32> to vector<17x24xf32>
    %c5 = arith.constant 5 : index
    %c0_32 = arith.constant 0 : index
    %c0_33 = arith.constant 0 : index
    %31 = vector.load %arg3[%c5, %c0_32, %c0_33] : memref<8x24x24xf32, #tpu.memory_space<vmem>>, vector<1x24x24xf32>
    %32 = vector.shape_cast %31 : vector<1x24x24xf32> to vector<24x24xf32>
    %cst_34 = arith.constant dense<0.000000e+00> : vector<17x24xf32>
    %33 = tpu.matmul %30, %32, %cst_34 {dimension_numbers = #tpu.dot_dimension_numbers<[1], [0], [0], [1], [0, 0, 1, 1], [], []>} : vector<17x24xf32>, vector<24x24xf32>, vector<17x24xf32> -> vector<17x24xf32>
    %34 = arith.addf %28, %33 : vector<17x24xf32>
    %c0_35 = arith.constant 0 : index
    %c3_36 = arith.constant 3 : index
    %c0_37 = arith.constant 0 : index
    %35 = vector.load %arg1[%c0_35, %c3_36, %c0_37] : memref<1x21x24xf32, #tpu.memory_space<vmem>>, vector<1x17x24xf32>
    %36 = vector.shape_cast %35 : vector<1x17x24xf32> to vector<17x24xf32>
    %c6 = arith.constant 6 : index
    %c0_38 = arith.constant 0 : index
    %c0_39 = arith.constant 0 : index
    %37 = vector.load %arg3[%c6, %c0_38, %c0_39] : memref<8x24x24xf32, #tpu.memory_space<vmem>>, vector<1x24x24xf32>
    %38 = vector.shape_cast %37 : vector<1x24x24xf32> to vector<24x24xf32>
    %cst_40 = arith.constant dense<0.000000e+00> : vector<17x24xf32>
    %39 = tpu.matmul %36, %38, %cst_40 {dimension_numbers = #tpu.dot_dimension_numbers<[1], [0], [0], [1], [0, 0, 1, 1], [], []>} : vector<17x24xf32>, vector<24x24xf32>, vector<17x24xf32> -> vector<17x24xf32>
    %40 = arith.addf %34, %39 : vector<17x24xf32>
    %c0_41 = arith.constant 0 : index
    %c3_42 = arith.constant 3 : index
    %c0_43 = arith.constant 0 : index
    %41 = vector.load %arg2[%c0_41, %c3_42, %c0_43] : memref<1x21x24xf32, #tpu.memory_space<vmem>>, vector<1x17x24xf32>
    %42 = vector.shape_cast %41 : vector<1x17x24xf32> to vector<17x24xf32>
    %c7 = arith.constant 7 : index
    %c0_44 = arith.constant 0 : index
    %c0_45 = arith.constant 0 : index
    %43 = vector.load %arg3[%c7, %c0_44, %c0_45] : memref<8x24x24xf32, #tpu.memory_space<vmem>>, vector<1x24x24xf32>
    %44 = vector.shape_cast %43 : vector<1x24x24xf32> to vector<24x24xf32>
    %cst_46 = arith.constant dense<0.000000e+00> : vector<17x24xf32>
    %45 = tpu.matmul %42, %44, %cst_46 {dimension_numbers = #tpu.dot_dimension_numbers<[1], [0], [0], [1], [0, 0, 1, 1], [], []>} : vector<17x24xf32>, vector<24x24xf32>, vector<17x24xf32> -> vector<17x24xf32>
    %46 = arith.addf %40, %45 : vector<17x24xf32>
    %c0_47 = arith.constant 0 : index
    %c0_48 = arith.constant 0 : index
    %47 = vector.load %arg4[%c0_47, %c0_48] : memref<1x24xf32, #tpu.memory_space<vmem>>, vector<1x24xf32>
    %48 = vector.broadcast %47 : vector<1x24xf32> to vector<17x24xf32>
    %49 = arith.addf %46, %48 : vector<17x24xf32>
    %cst_49 = arith.constant 0.000000e+00 : f32
    %50 = vector.broadcast %cst_49 : f32 to vector<17x24xf32>
    %51 = arith.maximumf %49, %50 : vector<17x24xf32>
    %c0_50 = arith.constant 0 : index
    %c0_51 = arith.constant 0 : index
    %c0_52 = arith.constant 0 : index
    %52 = vector.load %arg5[%c0_50, %c0_51, %c0_52] : memref<1x17x24xf32, #tpu.memory_space<vmem>>, vector<1x17x24xf32>
    %53 = vector.shape_cast %52 : vector<1x17x24xf32> to vector<17x24xf32>
    %54 = vector.shape_cast %51 : vector<17x24xf32> to vector<1x17x24xf32>
    tpu.vector_store %arg5[%c0_50, %c0_51, %c0_52], %54 {strides = array<i32>} : memref<1x17x24xf32, #tpu.memory_space<vmem>>, vector<1x17x24xf32>,
    return
  }
  func.func @transform_0(%arg0: i32) -> (i32, i32, i32) {
    %c0_i32 = arith.constant 0 : i32
    %c0_i32_0 = arith.constant 0 : i32
    %c0_i32_1 = arith.constant 0 : i32
    return %arg0, %c0_i32, %c0_i32_0 : i32, i32, i32
  }
  func.func @transform_1(%arg0: i32) -> (i32, i32, i32) {
    %c0_i32 = arith.constant 0 : i32
    %c0_i32_0 = arith.constant 0 : i32
    %c0_i32_1 = arith.constant 0 : i32
    return %arg0, %c0_i32, %c0_i32_0 : i32, i32, i32
  }
  func.func @transform_2(%arg0: i32) -> (i32, i32, i32) {
    %c0_i32 = arith.constant 0 : i32
    %c0_i32_0 = arith.constant 0 : i32
    %c0_i32_1 = arith.constant 0 : i32
    %c0_i32_2 = arith.constant 0 : i32
    return %c0_i32, %c0_i32_0, %c0_i32_1 : i32, i32, i32
  }
  func.func @transform_3(%arg0: i32) -> (i32, i32) {
    %c0_i32 = arith.constant 0 : i32
    %c0_i32_0 = arith.constant 0 : i32
    %c0_i32_1 = arith.constant 0 : i32
    return %c0_i32, %c0_i32_0 : i32, i32
  }
  func.func @transform_4(%arg0: i32) -> (i32, i32, i32) {
    %c0_i32 = arith.constant 0 : i32
    %c0_i32_0 = arith.constant 0 : i32
    %c0_i32_1 = arith.constant 0 : i32
    return %arg0, %c0_i32, %c0_i32_0 : i32, i32, i32
  }
}

module attributes {stable_mosaic.version = 11 : i64} {
  func.func @_inception_kernel(%arg0: i32, %arg1: memref<1x13x24xf32, #tpu.memory_space<vmem>>, %arg2: memref<1x13x24xf32, #tpu.memory_space<vmem>>, %arg3: memref<8x24x24xf32, #tpu.memory_space<vmem>>, %arg4: memref<1x24xf32, #tpu.memory_space<vmem>>, %arg5: memref<1x9x24xf32, #tpu.memory_space<vmem>>) attributes {dimension_semantics = [#tpu.dimension_semantics<parallel>], iteration_bounds = array<i64: 2>, scalar_prefetch = 0 : i64, scratch_operands = 0 : i64, tpu.core_type = #tpu.core_type<tc>, window_params = [{transform_indices = @transform_0, window_bounds = array<i64: 1, 13, 24>}, {transform_indices = @transform_1, window_bounds = array<i64: 1, 13, 24>}, {pipeline_mode = #tpu.pipeline_mode<synchronous>, transform_indices = @transform_2, window_bounds = array<i64: 8, 24, 24>}, {pipeline_mode = #tpu.pipeline_mode<synchronous>, transform_indices = @transform_3, window_bounds = array<i64: 1, 24>}, {transform_indices = @transform_4, window_bounds = array<i64: 1, 9, 24>}]} {
    %c0 = arith.constant 0 : index
    %c0_0 = arith.constant 0 : index
    %c0_1 = arith.constant 0 : index
    %0 = vector.load %arg1[%c0, %c0_0, %c0_1] : memref<1x13x24xf32, #tpu.memory_space<vmem>>, vector<1x9x24xf32>
    %1 = vector.shape_cast %0 : vector<1x9x24xf32> to vector<9x24xf32>
    %c0_2 = arith.constant 0 : index
    %c0_3 = arith.constant 0 : index
    %c0_4 = arith.constant 0 : index
    %2 = vector.load %arg3[%c0_2, %c0_3, %c0_4] : memref<8x24x24xf32, #tpu.memory_space<vmem>>, vector<1x24x24xf32>
    %3 = vector.shape_cast %2 : vector<1x24x24xf32> to vector<24x24xf32>
    %cst = arith.constant dense<0.000000e+00> : vector<9x24xf32>
    %4 = tpu.matmul %1, %3, %cst {dimension_numbers = #tpu.dot_dimension_numbers<[1], [0], [0], [1], [0, 0, 1, 1], [], []>} : vector<9x24xf32>, vector<24x24xf32>, vector<9x24xf32> -> vector<9x24xf32>
    %c0_5 = arith.constant 0 : index
    %c0_6 = arith.constant 0 : index
    %c0_7 = arith.constant 0 : index
    %5 = vector.load %arg2[%c0_5, %c0_6, %c0_7] : memref<1x13x24xf32, #tpu.memory_space<vmem>>, vector<1x9x24xf32>
    %6 = vector.shape_cast %5 : vector<1x9x24xf32> to vector<9x24xf32>
    %c1 = arith.constant 1 : index
    %c0_8 = arith.constant 0 : index
    %c0_9 = arith.constant 0 : index
    %7 = vector.load %arg3[%c1, %c0_8, %c0_9] : memref<8x24x24xf32, #tpu.memory_space<vmem>>, vector<1x24x24xf32>
    %8 = vector.shape_cast %7 : vector<1x24x24xf32> to vector<24x24xf32>
    %cst_10 = arith.constant dense<0.000000e+00> : vector<9x24xf32>
    %9 = tpu.matmul %6, %8, %cst_10 {dimension_numbers = #tpu.dot_dimension_numbers<[1], [0], [0], [1], [0, 0, 1, 1], [], []>} : vector<9x24xf32>, vector<24x24xf32>, vector<9x24xf32> -> vector<9x24xf32>
    %10 = arith.addf %4, %9 : vector<9x24xf32>
    %c0_11 = arith.constant 0 : index
    %c1_12 = arith.constant 1 : index
    %c0_13 = arith.constant 0 : index
    %11 = vector.load %arg1[%c0_11, %c1_12, %c0_13] : memref<1x13x24xf32, #tpu.memory_space<vmem>>, vector<1x9x24xf32>
    %12 = vector.shape_cast %11 : vector<1x9x24xf32> to vector<9x24xf32>
    %c2 = arith.constant 2 : index
    %c0_14 = arith.constant 0 : index
    %c0_15 = arith.constant 0 : index
    %13 = vector.load %arg3[%c2, %c0_14, %c0_15] : memref<8x24x24xf32, #tpu.memory_space<vmem>>, vector<1x24x24xf32>
    %14 = vector.shape_cast %13 : vector<1x24x24xf32> to vector<24x24xf32>
    %cst_16 = arith.constant dense<0.000000e+00> : vector<9x24xf32>
    %15 = tpu.matmul %12, %14, %cst_16 {dimension_numbers = #tpu.dot_dimension_numbers<[1], [0], [0], [1], [0, 0, 1, 1], [], []>} : vector<9x24xf32>, vector<24x24xf32>, vector<9x24xf32> -> vector<9x24xf32>
    %16 = arith.addf %10, %15 : vector<9x24xf32>
    %c0_17 = arith.constant 0 : index
    %c1_18 = arith.constant 1 : index
    %c0_19 = arith.constant 0 : index
    %17 = vector.load %arg2[%c0_17, %c1_18, %c0_19] : memref<1x13x24xf32, #tpu.memory_space<vmem>>, vector<1x9x24xf32>
    %18 = vector.shape_cast %17 : vector<1x9x24xf32> to vector<9x24xf32>
    %c3 = arith.constant 3 : index
    %c0_20 = arith.constant 0 : index
    %c0_21 = arith.constant 0 : index
    %19 = vector.load %arg3[%c3, %c0_20, %c0_21] : memref<8x24x24xf32, #tpu.memory_space<vmem>>, vector<1x24x24xf32>
    %20 = vector.shape_cast %19 : vector<1x24x24xf32> to vector<24x24xf32>
    %cst_22 = arith.constant dense<0.000000e+00> : vector<9x24xf32>
    %21 = tpu.matmul %18, %20, %cst_22 {dimension_numbers = #tpu.dot_dimension_numbers<[1], [0], [0], [1], [0, 0, 1, 1], [], []>} : vector<9x24xf32>, vector<24x24xf32>, vector<9x24xf32> -> vector<9x24xf32>
    %22 = arith.addf %16, %21 : vector<9x24xf32>
    %c0_23 = arith.constant 0 : index
    %c2_24 = arith.constant 2 : index
    %c0_25 = arith.constant 0 : index
    %23 = vector.load %arg1[%c0_23, %c2_24, %c0_25] : memref<1x13x24xf32, #tpu.memory_space<vmem>>, vector<1x9x24xf32>
    %24 = vector.shape_cast %23 : vector<1x9x24xf32> to vector<9x24xf32>
    %c4 = arith.constant 4 : index
    %c0_26 = arith.constant 0 : index
    %c0_27 = arith.constant 0 : index
    %25 = vector.load %arg3[%c4, %c0_26, %c0_27] : memref<8x24x24xf32, #tpu.memory_space<vmem>>, vector<1x24x24xf32>
    %26 = vector.shape_cast %25 : vector<1x24x24xf32> to vector<24x24xf32>
    %cst_28 = arith.constant dense<0.000000e+00> : vector<9x24xf32>
    %27 = tpu.matmul %24, %26, %cst_28 {dimension_numbers = #tpu.dot_dimension_numbers<[1], [0], [0], [1], [0, 0, 1, 1], [], []>} : vector<9x24xf32>, vector<24x24xf32>, vector<9x24xf32> -> vector<9x24xf32>
    %28 = arith.addf %22, %27 : vector<9x24xf32>
    %c0_29 = arith.constant 0 : index
    %c2_30 = arith.constant 2 : index
    %c0_31 = arith.constant 0 : index
    %29 = vector.load %arg2[%c0_29, %c2_30, %c0_31] : memref<1x13x24xf32, #tpu.memory_space<vmem>>, vector<1x9x24xf32>
    %30 = vector.shape_cast %29 : vector<1x9x24xf32> to vector<9x24xf32>
    %c5 = arith.constant 5 : index
    %c0_32 = arith.constant 0 : index
    %c0_33 = arith.constant 0 : index
    %31 = vector.load %arg3[%c5, %c0_32, %c0_33] : memref<8x24x24xf32, #tpu.memory_space<vmem>>, vector<1x24x24xf32>
    %32 = vector.shape_cast %31 : vector<1x24x24xf32> to vector<24x24xf32>
    %cst_34 = arith.constant dense<0.000000e+00> : vector<9x24xf32>
    %33 = tpu.matmul %30, %32, %cst_34 {dimension_numbers = #tpu.dot_dimension_numbers<[1], [0], [0], [1], [0, 0, 1, 1], [], []>} : vector<9x24xf32>, vector<24x24xf32>, vector<9x24xf32> -> vector<9x24xf32>
    %34 = arith.addf %28, %33 : vector<9x24xf32>
    %c0_35 = arith.constant 0 : index
    %c3_36 = arith.constant 3 : index
    %c0_37 = arith.constant 0 : index
    %35 = vector.load %arg1[%c0_35, %c3_36, %c0_37] : memref<1x13x24xf32, #tpu.memory_space<vmem>>, vector<1x9x24xf32>
    %36 = vector.shape_cast %35 : vector<1x9x24xf32> to vector<9x24xf32>
    %c6 = arith.constant 6 : index
    %c0_38 = arith.constant 0 : index
    %c0_39 = arith.constant 0 : index
    %37 = vector.load %arg3[%c6, %c0_38, %c0_39] : memref<8x24x24xf32, #tpu.memory_space<vmem>>, vector<1x24x24xf32>
    %38 = vector.shape_cast %37 : vector<1x24x24xf32> to vector<24x24xf32>
    %cst_40 = arith.constant dense<0.000000e+00> : vector<9x24xf32>
    %39 = tpu.matmul %36, %38, %cst_40 {dimension_numbers = #tpu.dot_dimension_numbers<[1], [0], [0], [1], [0, 0, 1, 1], [], []>} : vector<9x24xf32>, vector<24x24xf32>, vector<9x24xf32> -> vector<9x24xf32>
    %40 = arith.addf %34, %39 : vector<9x24xf32>
    %c0_41 = arith.constant 0 : index
    %c3_42 = arith.constant 3 : index
    %c0_43 = arith.constant 0 : index
    %41 = vector.load %arg2[%c0_41, %c3_42, %c0_43] : memref<1x13x24xf32, #tpu.memory_space<vmem>>, vector<1x9x24xf32>
    %42 = vector.shape_cast %41 : vector<1x9x24xf32> to vector<9x24xf32>
    %c7 = arith.constant 7 : index
    %c0_44 = arith.constant 0 : index
    %c0_45 = arith.constant 0 : index
    %43 = vector.load %arg3[%c7, %c0_44, %c0_45] : memref<8x24x24xf32, #tpu.memory_space<vmem>>, vector<1x24x24xf32>
    %44 = vector.shape_cast %43 : vector<1x24x24xf32> to vector<24x24xf32>
    %cst_46 = arith.constant dense<0.000000e+00> : vector<9x24xf32>
    %45 = tpu.matmul %42, %44, %cst_46 {dimension_numbers = #tpu.dot_dimension_numbers<[1], [0], [0], [1], [0, 0, 1, 1], [], []>} : vector<9x24xf32>, vector<24x24xf32>, vector<9x24xf32> -> vector<9x24xf32>
    %46 = arith.addf %40, %45 : vector<9x24xf32>
    %c0_47 = arith.constant 0 : index
    %c0_48 = arith.constant 0 : index
    %47 = vector.load %arg4[%c0_47, %c0_48] : memref<1x24xf32, #tpu.memory_space<vmem>>, vector<1x24xf32>
    %48 = vector.broadcast %47 : vector<1x24xf32> to vector<9x24xf32>
    %49 = arith.addf %46, %48 : vector<9x24xf32>
    %cst_49 = arith.constant 0.000000e+00 : f32
    %50 = vector.broadcast %cst_49 : f32 to vector<9x24xf32>
    %51 = arith.maximumf %49, %50 : vector<9x24xf32>
    %c0_50 = arith.constant 0 : index
    %c0_51 = arith.constant 0 : index
    %c0_52 = arith.constant 0 : index
    %52 = vector.load %arg5[%c0_50, %c0_51, %c0_52] : memref<1x9x24xf32, #tpu.memory_space<vmem>>, vector<1x9x24xf32>
    %53 = vector.shape_cast %52 : vector<1x9x24xf32> to vector<9x24xf32>
    %54 = vector.shape_cast %51 : vector<9x24xf32> to vector<1x9x24xf32>
    tpu.vector_store %arg5[%c0_50, %c0_51, %c0_52], %54 {strides = array<i32>} : memref<1x9x24xf32, #tpu.memory_space<vmem>>, vector<1x9x24xf32>,
    return
  }
  func.func @transform_0(%arg0: i32) -> (i32, i32, i32) {
    %c0_i32 = arith.constant 0 : i32
    %c0_i32_0 = arith.constant 0 : i32
    %c0_i32_1 = arith.constant 0 : i32
    return %arg0, %c0_i32, %c0_i32_0 : i32, i32, i32
  }
  func.func @transform_1(%arg0: i32) -> (i32, i32, i32) {
    %c0_i32 = arith.constant 0 : i32
    %c0_i32_0 = arith.constant 0 : i32
    %c0_i32_1 = arith.constant 0 : i32
    return %arg0, %c0_i32, %c0_i32_0 : i32, i32, i32
  }
  func.func @transform_2(%arg0: i32) -> (i32, i32, i32) {
    %c0_i32 = arith.constant 0 : i32
    %c0_i32_0 = arith.constant 0 : i32
    %c0_i32_1 = arith.constant 0 : i32
    %c0_i32_2 = arith.constant 0 : i32
    return %c0_i32, %c0_i32_0, %c0_i32_1 : i32, i32, i32
  }
  func.func @transform_3(%arg0: i32) -> (i32, i32) {
    %c0_i32 = arith.constant 0 : i32
    %c0_i32_0 = arith.constant 0 : i32
    %c0_i32_1 = arith.constant 0 : i32
    return %c0_i32, %c0_i32_0 : i32, i32
  }
  func.func @transform_4(%arg0: i32) -> (i32, i32, i32) {
    %c0_i32 = arith.constant 0 : i32
    %c0_i32_0 = arith.constant 0 : i32
    %c0_i32_1 = arith.constant 0 : i32
    return %arg0, %c0_i32, %c0_i32_0 : i32, i32, i32
  }
}

module attributes {stable_mosaic.version = 11 : i64} {
  func.func @_inception_kernel(%arg0: i32, %arg1: memref<1x9x24xf32, #tpu.memory_space<vmem>>, %arg2: memref<1x9x24xf32, #tpu.memory_space<vmem>>, %arg3: memref<8x24x24xf32, #tpu.memory_space<vmem>>, %arg4: memref<1x24xf32, #tpu.memory_space<vmem>>, %arg5: memref<1x5x24xf32, #tpu.memory_space<vmem>>) attributes {dimension_semantics = [#tpu.dimension_semantics<parallel>], iteration_bounds = array<i64: 2>, scalar_prefetch = 0 : i64, scratch_operands = 0 : i64, tpu.core_type = #tpu.core_type<tc>, window_params = [{transform_indices = @transform_0, window_bounds = array<i64: 1, 9, 24>}, {transform_indices = @transform_1, window_bounds = array<i64: 1, 9, 24>}, {pipeline_mode = #tpu.pipeline_mode<synchronous>, transform_indices = @transform_2, window_bounds = array<i64: 8, 24, 24>}, {pipeline_mode = #tpu.pipeline_mode<synchronous>, transform_indices = @transform_3, window_bounds = array<i64: 1, 24>}, {transform_indices = @transform_4, window_bounds = array<i64: 1, 5, 24>}]} {
    %c0 = arith.constant 0 : index
    %c0_0 = arith.constant 0 : index
    %c0_1 = arith.constant 0 : index
    %0 = vector.load %arg1[%c0, %c0_0, %c0_1] : memref<1x9x24xf32, #tpu.memory_space<vmem>>, vector<1x5x24xf32>
    %1 = vector.shape_cast %0 : vector<1x5x24xf32> to vector<5x24xf32>
    %c0_2 = arith.constant 0 : index
    %c0_3 = arith.constant 0 : index
    %c0_4 = arith.constant 0 : index
    %2 = vector.load %arg3[%c0_2, %c0_3, %c0_4] : memref<8x24x24xf32, #tpu.memory_space<vmem>>, vector<1x24x24xf32>
    %3 = vector.shape_cast %2 : vector<1x24x24xf32> to vector<24x24xf32>
    %cst = arith.constant dense<0.000000e+00> : vector<5x24xf32>
    %4 = tpu.matmul %1, %3, %cst {dimension_numbers = #tpu.dot_dimension_numbers<[1], [0], [0], [1], [0, 0, 1, 1], [], []>} : vector<5x24xf32>, vector<24x24xf32>, vector<5x24xf32> -> vector<5x24xf32>
    %c0_5 = arith.constant 0 : index
    %c0_6 = arith.constant 0 : index
    %c0_7 = arith.constant 0 : index
    %5 = vector.load %arg2[%c0_5, %c0_6, %c0_7] : memref<1x9x24xf32, #tpu.memory_space<vmem>>, vector<1x5x24xf32>
    %6 = vector.shape_cast %5 : vector<1x5x24xf32> to vector<5x24xf32>
    %c1 = arith.constant 1 : index
    %c0_8 = arith.constant 0 : index
    %c0_9 = arith.constant 0 : index
    %7 = vector.load %arg3[%c1, %c0_8, %c0_9] : memref<8x24x24xf32, #tpu.memory_space<vmem>>, vector<1x24x24xf32>
    %8 = vector.shape_cast %7 : vector<1x24x24xf32> to vector<24x24xf32>
    %cst_10 = arith.constant dense<0.000000e+00> : vector<5x24xf32>
    %9 = tpu.matmul %6, %8, %cst_10 {dimension_numbers = #tpu.dot_dimension_numbers<[1], [0], [0], [1], [0, 0, 1, 1], [], []>} : vector<5x24xf32>, vector<24x24xf32>, vector<5x24xf32> -> vector<5x24xf32>
    %10 = arith.addf %4, %9 : vector<5x24xf32>
    %c0_11 = arith.constant 0 : index
    %c1_12 = arith.constant 1 : index
    %c0_13 = arith.constant 0 : index
    %11 = vector.load %arg1[%c0_11, %c1_12, %c0_13] : memref<1x9x24xf32, #tpu.memory_space<vmem>>, vector<1x5x24xf32>
    %12 = vector.shape_cast %11 : vector<1x5x24xf32> to vector<5x24xf32>
    %c2 = arith.constant 2 : index
    %c0_14 = arith.constant 0 : index
    %c0_15 = arith.constant 0 : index
    %13 = vector.load %arg3[%c2, %c0_14, %c0_15] : memref<8x24x24xf32, #tpu.memory_space<vmem>>, vector<1x24x24xf32>
    %14 = vector.shape_cast %13 : vector<1x24x24xf32> to vector<24x24xf32>
    %cst_16 = arith.constant dense<0.000000e+00> : vector<5x24xf32>
    %15 = tpu.matmul %12, %14, %cst_16 {dimension_numbers = #tpu.dot_dimension_numbers<[1], [0], [0], [1], [0, 0, 1, 1], [], []>} : vector<5x24xf32>, vector<24x24xf32>, vector<5x24xf32> -> vector<5x24xf32>
    %16 = arith.addf %10, %15 : vector<5x24xf32>
    %c0_17 = arith.constant 0 : index
    %c1_18 = arith.constant 1 : index
    %c0_19 = arith.constant 0 : index
    %17 = vector.load %arg2[%c0_17, %c1_18, %c0_19] : memref<1x9x24xf32, #tpu.memory_space<vmem>>, vector<1x5x24xf32>
    %18 = vector.shape_cast %17 : vector<1x5x24xf32> to vector<5x24xf32>
    %c3 = arith.constant 3 : index
    %c0_20 = arith.constant 0 : index
    %c0_21 = arith.constant 0 : index
    %19 = vector.load %arg3[%c3, %c0_20, %c0_21] : memref<8x24x24xf32, #tpu.memory_space<vmem>>, vector<1x24x24xf32>
    %20 = vector.shape_cast %19 : vector<1x24x24xf32> to vector<24x24xf32>
    %cst_22 = arith.constant dense<0.000000e+00> : vector<5x24xf32>
    %21 = tpu.matmul %18, %20, %cst_22 {dimension_numbers = #tpu.dot_dimension_numbers<[1], [0], [0], [1], [0, 0, 1, 1], [], []>} : vector<5x24xf32>, vector<24x24xf32>, vector<5x24xf32> -> vector<5x24xf32>
    %22 = arith.addf %16, %21 : vector<5x24xf32>
    %c0_23 = arith.constant 0 : index
    %c2_24 = arith.constant 2 : index
    %c0_25 = arith.constant 0 : index
    %23 = vector.load %arg1[%c0_23, %c2_24, %c0_25] : memref<1x9x24xf32, #tpu.memory_space<vmem>>, vector<1x5x24xf32>
    %24 = vector.shape_cast %23 : vector<1x5x24xf32> to vector<5x24xf32>
    %c4 = arith.constant 4 : index
    %c0_26 = arith.constant 0 : index
    %c0_27 = arith.constant 0 : index
    %25 = vector.load %arg3[%c4, %c0_26, %c0_27] : memref<8x24x24xf32, #tpu.memory_space<vmem>>, vector<1x24x24xf32>
    %26 = vector.shape_cast %25 : vector<1x24x24xf32> to vector<24x24xf32>
    %cst_28 = arith.constant dense<0.000000e+00> : vector<5x24xf32>
    %27 = tpu.matmul %24, %26, %cst_28 {dimension_numbers = #tpu.dot_dimension_numbers<[1], [0], [0], [1], [0, 0, 1, 1], [], []>} : vector<5x24xf32>, vector<24x24xf32>, vector<5x24xf32> -> vector<5x24xf32>
    %28 = arith.addf %22, %27 : vector<5x24xf32>
    %c0_29 = arith.constant 0 : index
    %c2_30 = arith.constant 2 : index
    %c0_31 = arith.constant 0 : index
    %29 = vector.load %arg2[%c0_29, %c2_30, %c0_31] : memref<1x9x24xf32, #tpu.memory_space<vmem>>, vector<1x5x24xf32>
    %30 = vector.shape_cast %29 : vector<1x5x24xf32> to vector<5x24xf32>
    %c5 = arith.constant 5 : index
    %c0_32 = arith.constant 0 : index
    %c0_33 = arith.constant 0 : index
    %31 = vector.load %arg3[%c5, %c0_32, %c0_33] : memref<8x24x24xf32, #tpu.memory_space<vmem>>, vector<1x24x24xf32>
    %32 = vector.shape_cast %31 : vector<1x24x24xf32> to vector<24x24xf32>
    %cst_34 = arith.constant dense<0.000000e+00> : vector<5x24xf32>
    %33 = tpu.matmul %30, %32, %cst_34 {dimension_numbers = #tpu.dot_dimension_numbers<[1], [0], [0], [1], [0, 0, 1, 1], [], []>} : vector<5x24xf32>, vector<24x24xf32>, vector<5x24xf32> -> vector<5x24xf32>
    %34 = arith.addf %28, %33 : vector<5x24xf32>
    %c0_35 = arith.constant 0 : index
    %c3_36 = arith.constant 3 : index
    %c0_37 = arith.constant 0 : index
    %35 = vector.load %arg1[%c0_35, %c3_36, %c0_37] : memref<1x9x24xf32, #tpu.memory_space<vmem>>, vector<1x5x24xf32>
    %36 = vector.shape_cast %35 : vector<1x5x24xf32> to vector<5x24xf32>
    %c6 = arith.constant 6 : index
    %c0_38 = arith.constant 0 : index
    %c0_39 = arith.constant 0 : index
    %37 = vector.load %arg3[%c6, %c0_38, %c0_39] : memref<8x24x24xf32, #tpu.memory_space<vmem>>, vector<1x24x24xf32>
    %38 = vector.shape_cast %37 : vector<1x24x24xf32> to vector<24x24xf32>
    %cst_40 = arith.constant dense<0.000000e+00> : vector<5x24xf32>
    %39 = tpu.matmul %36, %38, %cst_40 {dimension_numbers = #tpu.dot_dimension_numbers<[1], [0], [0], [1], [0, 0, 1, 1], [], []>} : vector<5x24xf32>, vector<24x24xf32>, vector<5x24xf32> -> vector<5x24xf32>
    %40 = arith.addf %34, %39 : vector<5x24xf32>
    %c0_41 = arith.constant 0 : index
    %c3_42 = arith.constant 3 : index
    %c0_43 = arith.constant 0 : index
    %41 = vector.load %arg2[%c0_41, %c3_42, %c0_43] : memref<1x9x24xf32, #tpu.memory_space<vmem>>, vector<1x5x24xf32>
    %42 = vector.shape_cast %41 : vector<1x5x24xf32> to vector<5x24xf32>
    %c7 = arith.constant 7 : index
    %c0_44 = arith.constant 0 : index
    %c0_45 = arith.constant 0 : index
    %43 = vector.load %arg3[%c7, %c0_44, %c0_45] : memref<8x24x24xf32, #tpu.memory_space<vmem>>, vector<1x24x24xf32>
    %44 = vector.shape_cast %43 : vector<1x24x24xf32> to vector<24x24xf32>
    %cst_46 = arith.constant dense<0.000000e+00> : vector<5x24xf32>
    %45 = tpu.matmul %42, %44, %cst_46 {dimension_numbers = #tpu.dot_dimension_numbers<[1], [0], [0], [1], [0, 0, 1, 1], [], []>} : vector<5x24xf32>, vector<24x24xf32>, vector<5x24xf32> -> vector<5x24xf32>
    %46 = arith.addf %40, %45 : vector<5x24xf32>
    %c0_47 = arith.constant 0 : index
    %c0_48 = arith.constant 0 : index
    %47 = vector.load %arg4[%c0_47, %c0_48] : memref<1x24xf32, #tpu.memory_space<vmem>>, vector<1x24xf32>
    %48 = vector.broadcast %47 : vector<1x24xf32> to vector<5x24xf32>
    %49 = arith.addf %46, %48 : vector<5x24xf32>
    %cst_49 = arith.constant 0.000000e+00 : f32
    %50 = vector.broadcast %cst_49 : f32 to vector<5x24xf32>
    %51 = arith.maximumf %49, %50 : vector<5x24xf32>
    %c0_50 = arith.constant 0 : index
    %c0_51 = arith.constant 0 : index
    %c0_52 = arith.constant 0 : index
    %52 = vector.load %arg5[%c0_50, %c0_51, %c0_52] : memref<1x5x24xf32, #tpu.memory_space<vmem>>, vector<1x5x24xf32>
    %53 = vector.shape_cast %52 : vector<1x5x24xf32> to vector<5x24xf32>
    %54 = vector.shape_cast %51 : vector<5x24xf32> to vector<1x5x24xf32>
    tpu.vector_store %arg5[%c0_50, %c0_51, %c0_52], %54 {strides = array<i32>} : memref<1x5x24xf32, #tpu.memory_space<vmem>>, vector<1x5x24xf32>,
    return
  }
  func.func @transform_0(%arg0: i32) -> (i32, i32, i32) {
    %c0_i32 = arith.constant 0 : i32
    %c0_i32_0 = arith.constant 0 : i32
    %c0_i32_1 = arith.constant 0 : i32
    return %arg0, %c0_i32, %c0_i32_0 : i32, i32, i32
  }
  func.func @transform_1(%arg0: i32) -> (i32, i32, i32) {
    %c0_i32 = arith.constant 0 : i32
    %c0_i32_0 = arith.constant 0 : i32
    %c0_i32_1 = arith.constant 0 : i32
    return %arg0, %c0_i32, %c0_i32_0 : i32, i32, i32
  }
  func.func @transform_2(%arg0: i32) -> (i32, i32, i32) {
    %c0_i32 = arith.constant 0 : i32
    %c0_i32_0 = arith.constant 0 : i32
    %c0_i32_1 = arith.constant 0 : i32
    %c0_i32_2 = arith.constant 0 : i32
    return %c0_i32, %c0_i32_0, %c0_i32_1 : i32, i32, i32
  }
  func.func @transform_3(%arg0: i32) -> (i32, i32) {
    %c0_i32 = arith.constant 0 : i32
    %c0_i32_0 = arith.constant 0 : i32
    %c0_i32_1 = arith.constant 0 : i32
    return %c0_i32, %c0_i32_0 : i32, i32
  }
  func.func @transform_4(%arg0: i32) -> (i32, i32, i32) {
    %c0_i32 = arith.constant 0 : i32
    %c0_i32_0 = arith.constant 0 : i32
    %c0_i32_1 = arith.constant 0 : i32
    return %arg0, %c0_i32, %c0_i32_0 : i32, i32, i32
  }
}

module attributes {stable_mosaic.version = 11 : i64} {
  func.func @_inception_kernel(%arg0: i32, %arg1: memref<1x7x24xf32, #tpu.memory_space<vmem>>, %arg2: memref<1x7x24xf32, #tpu.memory_space<vmem>>, %arg3: memref<8x24x24xf32, #tpu.memory_space<vmem>>, %arg4: memref<1x24xf32, #tpu.memory_space<vmem>>, %arg5: memref<1x3x24xf32, #tpu.memory_space<vmem>>) attributes {dimension_semantics = [#tpu.dimension_semantics<parallel>], iteration_bounds = array<i64: 2>, scalar_prefetch = 0 : i64, scratch_operands = 0 : i64, tpu.core_type = #tpu.core_type<tc>, window_params = [{transform_indices = @transform_0, window_bounds = array<i64: 1, 7, 24>}, {transform_indices = @transform_1, window_bounds = array<i64: 1, 7, 24>}, {pipeline_mode = #tpu.pipeline_mode<synchronous>, transform_indices = @transform_2, window_bounds = array<i64: 8, 24, 24>}, {pipeline_mode = #tpu.pipeline_mode<synchronous>, transform_indices = @transform_3, window_bounds = array<i64: 1, 24>}, {transform_indices = @transform_4, window_bounds = array<i64: 1, 3, 24>}]} {
    %c0 = arith.constant 0 : index
    %c0_0 = arith.constant 0 : index
    %c0_1 = arith.constant 0 : index
    %0 = vector.load %arg1[%c0, %c0_0, %c0_1] : memref<1x7x24xf32, #tpu.memory_space<vmem>>, vector<1x3x24xf32>
    %1 = vector.shape_cast %0 : vector<1x3x24xf32> to vector<3x24xf32>
    %c0_2 = arith.constant 0 : index
    %c0_3 = arith.constant 0 : index
    %c0_4 = arith.constant 0 : index
    %2 = vector.load %arg3[%c0_2, %c0_3, %c0_4] : memref<8x24x24xf32, #tpu.memory_space<vmem>>, vector<1x24x24xf32>
    %3 = vector.shape_cast %2 : vector<1x24x24xf32> to vector<24x24xf32>
    %cst = arith.constant dense<0.000000e+00> : vector<3x24xf32>
    %4 = tpu.matmul %1, %3, %cst {dimension_numbers = #tpu.dot_dimension_numbers<[1], [0], [0], [1], [0, 0, 1, 1], [], []>} : vector<3x24xf32>, vector<24x24xf32>, vector<3x24xf32> -> vector<3x24xf32>
    %c0_5 = arith.constant 0 : index
    %c0_6 = arith.constant 0 : index
    %c0_7 = arith.constant 0 : index
    %5 = vector.load %arg2[%c0_5, %c0_6, %c0_7] : memref<1x7x24xf32, #tpu.memory_space<vmem>>, vector<1x3x24xf32>
    %6 = vector.shape_cast %5 : vector<1x3x24xf32> to vector<3x24xf32>
    %c1 = arith.constant 1 : index
    %c0_8 = arith.constant 0 : index
    %c0_9 = arith.constant 0 : index
    %7 = vector.load %arg3[%c1, %c0_8, %c0_9] : memref<8x24x24xf32, #tpu.memory_space<vmem>>, vector<1x24x24xf32>
    %8 = vector.shape_cast %7 : vector<1x24x24xf32> to vector<24x24xf32>
    %cst_10 = arith.constant dense<0.000000e+00> : vector<3x24xf32>
    %9 = tpu.matmul %6, %8, %cst_10 {dimension_numbers = #tpu.dot_dimension_numbers<[1], [0], [0], [1], [0, 0, 1, 1], [], []>} : vector<3x24xf32>, vector<24x24xf32>, vector<3x24xf32> -> vector<3x24xf32>
    %10 = arith.addf %4, %9 : vector<3x24xf32>
    %c0_11 = arith.constant 0 : index
    %c1_12 = arith.constant 1 : index
    %c0_13 = arith.constant 0 : index
    %11 = vector.load %arg1[%c0_11, %c1_12, %c0_13] : memref<1x7x24xf32, #tpu.memory_space<vmem>>, vector<1x3x24xf32>
    %12 = vector.shape_cast %11 : vector<1x3x24xf32> to vector<3x24xf32>
    %c2 = arith.constant 2 : index
    %c0_14 = arith.constant 0 : index
    %c0_15 = arith.constant 0 : index
    %13 = vector.load %arg3[%c2, %c0_14, %c0_15] : memref<8x24x24xf32, #tpu.memory_space<vmem>>, vector<1x24x24xf32>
    %14 = vector.shape_cast %13 : vector<1x24x24xf32> to vector<24x24xf32>
    %cst_16 = arith.constant dense<0.000000e+00> : vector<3x24xf32>
    %15 = tpu.matmul %12, %14, %cst_16 {dimension_numbers = #tpu.dot_dimension_numbers<[1], [0], [0], [1], [0, 0, 1, 1], [], []>} : vector<3x24xf32>, vector<24x24xf32>, vector<3x24xf32> -> vector<3x24xf32>
    %16 = arith.addf %10, %15 : vector<3x24xf32>
    %c0_17 = arith.constant 0 : index
    %c1_18 = arith.constant 1 : index
    %c0_19 = arith.constant 0 : index
    %17 = vector.load %arg2[%c0_17, %c1_18, %c0_19] : memref<1x7x24xf32, #tpu.memory_space<vmem>>, vector<1x3x24xf32>
    %18 = vector.shape_cast %17 : vector<1x3x24xf32> to vector<3x24xf32>
    %c3 = arith.constant 3 : index
    %c0_20 = arith.constant 0 : index
    %c0_21 = arith.constant 0 : index
    %19 = vector.load %arg3[%c3, %c0_20, %c0_21] : memref<8x24x24xf32, #tpu.memory_space<vmem>>, vector<1x24x24xf32>
    %20 = vector.shape_cast %19 : vector<1x24x24xf32> to vector<24x24xf32>
    %cst_22 = arith.constant dense<0.000000e+00> : vector<3x24xf32>
    %21 = tpu.matmul %18, %20, %cst_22 {dimension_numbers = #tpu.dot_dimension_numbers<[1], [0], [0], [1], [0, 0, 1, 1], [], []>} : vector<3x24xf32>, vector<24x24xf32>, vector<3x24xf32> -> vector<3x24xf32>
    %22 = arith.addf %16, %21 : vector<3x24xf32>
    %c0_23 = arith.constant 0 : index
    %c2_24 = arith.constant 2 : index
    %c0_25 = arith.constant 0 : index
    %23 = vector.load %arg1[%c0_23, %c2_24, %c0_25] : memref<1x7x24xf32, #tpu.memory_space<vmem>>, vector<1x3x24xf32>
    %24 = vector.shape_cast %23 : vector<1x3x24xf32> to vector<3x24xf32>
    %c4 = arith.constant 4 : index
    %c0_26 = arith.constant 0 : index
    %c0_27 = arith.constant 0 : index
    %25 = vector.load %arg3[%c4, %c0_26, %c0_27] : memref<8x24x24xf32, #tpu.memory_space<vmem>>, vector<1x24x24xf32>
    %26 = vector.shape_cast %25 : vector<1x24x24xf32> to vector<24x24xf32>
    %cst_28 = arith.constant dense<0.000000e+00> : vector<3x24xf32>
    %27 = tpu.matmul %24, %26, %cst_28 {dimension_numbers = #tpu.dot_dimension_numbers<[1], [0], [0], [1], [0, 0, 1, 1], [], []>} : vector<3x24xf32>, vector<24x24xf32>, vector<3x24xf32> -> vector<3x24xf32>
    %28 = arith.addf %22, %27 : vector<3x24xf32>
    %c0_29 = arith.constant 0 : index
    %c2_30 = arith.constant 2 : index
    %c0_31 = arith.constant 0 : index
    %29 = vector.load %arg2[%c0_29, %c2_30, %c0_31] : memref<1x7x24xf32, #tpu.memory_space<vmem>>, vector<1x3x24xf32>
    %30 = vector.shape_cast %29 : vector<1x3x24xf32> to vector<3x24xf32>
    %c5 = arith.constant 5 : index
    %c0_32 = arith.constant 0 : index
    %c0_33 = arith.constant 0 : index
    %31 = vector.load %arg3[%c5, %c0_32, %c0_33] : memref<8x24x24xf32, #tpu.memory_space<vmem>>, vector<1x24x24xf32>
    %32 = vector.shape_cast %31 : vector<1x24x24xf32> to vector<24x24xf32>
    %cst_34 = arith.constant dense<0.000000e+00> : vector<3x24xf32>
    %33 = tpu.matmul %30, %32, %cst_34 {dimension_numbers = #tpu.dot_dimension_numbers<[1], [0], [0], [1], [0, 0, 1, 1], [], []>} : vector<3x24xf32>, vector<24x24xf32>, vector<3x24xf32> -> vector<3x24xf32>
    %34 = arith.addf %28, %33 : vector<3x24xf32>
    %c0_35 = arith.constant 0 : index
    %c3_36 = arith.constant 3 : index
    %c0_37 = arith.constant 0 : index
    %35 = vector.load %arg1[%c0_35, %c3_36, %c0_37] : memref<1x7x24xf32, #tpu.memory_space<vmem>>, vector<1x3x24xf32>
    %36 = vector.shape_cast %35 : vector<1x3x24xf32> to vector<3x24xf32>
    %c6 = arith.constant 6 : index
    %c0_38 = arith.constant 0 : index
    %c0_39 = arith.constant 0 : index
    %37 = vector.load %arg3[%c6, %c0_38, %c0_39] : memref<8x24x24xf32, #tpu.memory_space<vmem>>, vector<1x24x24xf32>
    %38 = vector.shape_cast %37 : vector<1x24x24xf32> to vector<24x24xf32>
    %cst_40 = arith.constant dense<0.000000e+00> : vector<3x24xf32>
    %39 = tpu.matmul %36, %38, %cst_40 {dimension_numbers = #tpu.dot_dimension_numbers<[1], [0], [0], [1], [0, 0, 1, 1], [], []>} : vector<3x24xf32>, vector<24x24xf32>, vector<3x24xf32> -> vector<3x24xf32>
    %40 = arith.addf %34, %39 : vector<3x24xf32>
    %c0_41 = arith.constant 0 : index
    %c3_42 = arith.constant 3 : index
    %c0_43 = arith.constant 0 : index
    %41 = vector.load %arg2[%c0_41, %c3_42, %c0_43] : memref<1x7x24xf32, #tpu.memory_space<vmem>>, vector<1x3x24xf32>
    %42 = vector.shape_cast %41 : vector<1x3x24xf32> to vector<3x24xf32>
    %c7 = arith.constant 7 : index
    %c0_44 = arith.constant 0 : index
    %c0_45 = arith.constant 0 : index
    %43 = vector.load %arg3[%c7, %c0_44, %c0_45] : memref<8x24x24xf32, #tpu.memory_space<vmem>>, vector<1x24x24xf32>
    %44 = vector.shape_cast %43 : vector<1x24x24xf32> to vector<24x24xf32>
    %cst_46 = arith.constant dense<0.000000e+00> : vector<3x24xf32>
    %45 = tpu.matmul %42, %44, %cst_46 {dimension_numbers = #tpu.dot_dimension_numbers<[1], [0], [0], [1], [0, 0, 1, 1], [], []>} : vector<3x24xf32>, vector<24x24xf32>, vector<3x24xf32> -> vector<3x24xf32>
    %46 = arith.addf %40, %45 : vector<3x24xf32>
    %c0_47 = arith.constant 0 : index
    %c0_48 = arith.constant 0 : index
    %47 = vector.load %arg4[%c0_47, %c0_48] : memref<1x24xf32, #tpu.memory_space<vmem>>, vector<1x24xf32>
    %48 = vector.broadcast %47 : vector<1x24xf32> to vector<3x24xf32>
    %49 = arith.addf %46, %48 : vector<3x24xf32>
    %cst_49 = arith.constant 0.000000e+00 : f32
    %50 = vector.broadcast %cst_49 : f32 to vector<3x24xf32>
    %51 = arith.maximumf %49, %50 : vector<3x24xf32>
    %c0_50 = arith.constant 0 : index
    %c0_51 = arith.constant 0 : index
    %c0_52 = arith.constant 0 : index
    %52 = vector.load %arg5[%c0_50, %c0_51, %c0_52] : memref<1x3x24xf32, #tpu.memory_space<vmem>>, vector<1x3x24xf32>
    %53 = vector.shape_cast %52 : vector<1x3x24xf32> to vector<3x24xf32>
    %54 = vector.shape_cast %51 : vector<3x24xf32> to vector<1x3x24xf32>
    tpu.vector_store %arg5[%c0_50, %c0_51, %c0_52], %54 {strides = array<i32>} : memref<1x3x24xf32, #tpu.memory_space<vmem>>, vector<1x3x24xf32>,
    return
  }
  func.func @transform_0(%arg0: i32) -> (i32, i32, i32) {
    %c0_i32 = arith.constant 0 : i32
    %c0_i32_0 = arith.constant 0 : i32
    %c0_i32_1 = arith.constant 0 : i32
    return %arg0, %c0_i32, %c0_i32_0 : i32, i32, i32
  }
  func.func @transform_1(%arg0: i32) -> (i32, i32, i32) {
    %c0_i32 = arith.constant 0 : i32
    %c0_i32_0 = arith.constant 0 : i32
    %c0_i32_1 = arith.constant 0 : i32
    return %arg0, %c0_i32, %c0_i32_0 : i32, i32, i32
  }
  func.func @transform_2(%arg0: i32) -> (i32, i32, i32) {
    %c0_i32 = arith.constant 0 : i32
    %c0_i32_0 = arith.constant 0 : i32
    %c0_i32_1 = arith.constant 0 : i32
    %c0_i32_2 = arith.constant 0 : i32
    return %c0_i32, %c0_i32_0, %c0_i32_1 : i32, i32, i32
  }
  func.func @transform_3(%arg0: i32) -> (i32, i32) {
    %c0_i32 = arith.constant 0 : i32
    %c0_i32_0 = arith.constant 0 : i32
    %c0_i32_1 = arith.constant 0 : i32
    return %c0_i32, %c0_i32_0 : i32, i32
  }
  func.func @transform_4(%arg0: i32) -> (i32, i32, i32) {
    %c0_i32 = arith.constant 0 : i32
    %c0_i32_0 = arith.constant 0 : i32
    %c0_i32_1 = arith.constant 0 : i32
    return %arg0, %c0_i32, %c0_i32_0 : i32, i32, i32
  }
}

module attributes {stable_mosaic.version = 11 : i64} {
  func.func @_gru_uni_kernel(%arg0: i32, %arg1: memref<3x2x96xf32, #tpu.memory_space<vmem>>, %arg2: memref<32x96xf32, #tpu.memory_space<vmem>>, %arg3: memref<1x32xf32, #tpu.memory_space<vmem>>, %arg4: memref<3x2x32xf32, #tpu.memory_space<vmem>>, %arg5: memref<2x32xf32, #tpu.memory_space<vmem>>) attributes {dimension_semantics = [#tpu.dimension_semantics<arbitrary>], iteration_bounds = array<i64: 1>, scalar_prefetch = 0 : i64, scratch_operands = 1 : i64, tpu.core_type = #tpu.core_type<tc>, window_params = [{transform_indices = @transform_0, window_bounds = array<i64: 3, 2, 96>}, {pipeline_mode = #tpu.pipeline_mode<synchronous>, transform_indices = @transform_1, window_bounds = array<i64: 32, 96>}, {pipeline_mode = #tpu.pipeline_mode<synchronous>, transform_indices = @transform_2, window_bounds = array<i64: 1, 32>}, {transform_indices = @transform_3, window_bounds = array<i64: 3, 2, 32>}]} {
    %c0_i32 = arith.constant 0 : i32
    %0 = arith.cmpi eq, %arg0, %c0_i32 : i32
    %1 = arith.extui %0 : i1 to i32
    %c0_i32_0 = arith.constant 0 : i32
    %2 = arith.cmpi ne, %1, %c0_i32_0 : i32
    scf.if %2 {
      %cst_32 = arith.constant 0.000000e+00 : f32
      %91 = vector.broadcast %cst_32 : f32 to vector<2x32xf32>
      %c0_33 = arith.constant 0 : index
      %c0_34 = arith.constant 0 : index
      %92 = vector.load %arg5[%c0_33, %c0_34] : memref<2x32xf32, #tpu.memory_space<vmem>>, vector<2x32xf32>
      tpu.vector_store %arg5[%c0_33, %c0_34], %91 {strides = array<i32>} : memref<2x32xf32, #tpu.memory_space<vmem>>, vector<2x32xf32>,
    } else {
    }
    %c0 = arith.constant 0 : index
    %c0_1 = arith.constant 0 : index
    %3 = vector.load %arg2[%c0, %c0_1] : memref<32x96xf32, #tpu.memory_space<vmem>>, vector<32x96xf32>
    %c0_2 = arith.constant 0 : index
    %c0_3 = arith.constant 0 : index
    %4 = vector.load %arg3[%c0_2, %c0_3] : memref<1x32xf32, #tpu.memory_space<vmem>>, vector<1x32xf32>
    %c0_4 = arith.constant 0 : index
    %c0_5 = arith.constant 0 : index
    %5 = vector.load %arg5[%c0_4, %c0_5] : memref<2x32xf32, #tpu.memory_space<vmem>>, vector<2x32xf32>
    %c0_6 = arith.constant 0 : index
    %c0_7 = arith.constant 0 : index
    %c0_8 = arith.constant 0 : index
    %6 = vector.load %arg1[%c0_6, %c0_7, %c0_8] : memref<3x2x96xf32, #tpu.memory_space<vmem>>, vector<1x2x96xf32>
    %7 = vector.shape_cast %6 : vector<1x2x96xf32> to vector<2x96xf32>
    %cst = arith.constant dense<0.000000e+00> : vector<2x96xf32>
    %8 = tpu.matmul %5, %3, %cst {dimension_numbers = #tpu.dot_dimension_numbers<[1], [0], [0], [1], [0, 0, 1, 1], [], []>} : vector<2x32xf32>, vector<32x96xf32>, vector<2x96xf32> -> vector<2x96xf32>
    %9 = vector.extract_strided_slice %7 {offsets = [0, 0], sizes = [2, 64], strides = [1, 1]} : vector<2x96xf32> to vector<2x64xf32>
    %10 = vector.extract_strided_slice %8 {offsets = [0, 0], sizes = [2, 64], strides = [1, 1]} : vector<2x96xf32> to vector<2x64xf32>
    %11 = arith.addf %9, %10 : vector<2x64xf32>
    %12 = arith.negf %11 : vector<2x64xf32>
    %13 = math.exp %12 : vector<2x64xf32>
    %cst_9 = arith.constant 1.000000e+00 : f32
    %14 = vector.broadcast %cst_9 : f32 to vector<2x64xf32>
    %15 = arith.addf %14, %13 : vector<2x64xf32>
    %16 = arith.divf %14, %15 : vector<2x64xf32>
    %17 = vector.extract_strided_slice %16 {offsets = [0, 0], sizes = [2, 32], strides = [1, 1]} : vector<2x64xf32> to vector<2x32xf32>
    %18 = vector.extract_strided_slice %16 {offsets = [0, 32], sizes = [2, 32], strides = [1, 1]} : vector<2x64xf32> to vector<2x32xf32>
    %19 = vector.extract_strided_slice %7 {offsets = [0, 64], sizes = [2, 32], strides = [1, 1]} : vector<2x96xf32> to vector<2x32xf32>
    %20 = vector.extract_strided_slice %8 {offsets = [0, 64], sizes = [2, 32], strides = [1, 1]} : vector<2x96xf32> to vector<2x32xf32>
    %21 = vector.broadcast %4 : vector<1x32xf32> to vector<2x32xf32>
    %22 = arith.addf %20, %21 : vector<2x32xf32>
    %23 = arith.mulf %17, %22 : vector<2x32xf32>
    %24 = arith.addf %19, %23 : vector<2x32xf32>
    %25 = math.tanh %24 : vector<2x32xf32>
    %cst_10 = arith.constant 1.000000e+00 : f32
    %26 = vector.broadcast %cst_10 : f32 to vector<2x32xf32>
    %27 = arith.subf %26, %18 : vector<2x32xf32>
    %28 = arith.mulf %27, %25 : vector<2x32xf32>
    %29 = arith.mulf %18, %5 : vector<2x32xf32>
    %30 = arith.addf %28, %29 : vector<2x32xf32>
    %c0_11 = arith.constant 0 : index
    %c0_12 = arith.constant 0 : index
    %c0_13 = arith.constant 0 : index
    %31 = vector.load %arg4[%c0_11, %c0_12, %c0_13] : memref<3x2x32xf32, #tpu.memory_space<vmem>>, vector<1x2x32xf32>
    %32 = vector.shape_cast %31 : vector<1x2x32xf32> to vector<2x32xf32>
    %33 = vector.shape_cast %30 : vector<2x32xf32> to vector<1x2x32xf32>
    tpu.vector_store %arg4[%c0_11, %c0_12, %c0_13], %33 {strides = array<i32>} : memref<3x2x32xf32, #tpu.memory_space<vmem>>, vector<1x2x32xf32>,
    %c1 = arith.constant 1 : index
    %c0_14 = arith.constant 0 : index
    %c0_15 = arith.constant 0 : index
    %34 = vector.load %arg1[%c1, %c0_14, %c0_15] : memref<3x2x96xf32, #tpu.memory_space<vmem>>, vector<1x2x96xf32>
    %35 = vector.shape_cast %34 : vector<1x2x96xf32> to vector<2x96xf32>
    %cst_16 = arith.constant dense<0.000000e+00> : vector<2x96xf32>
    %36 = tpu.matmul %30, %3, %cst_16 {dimension_numbers = #tpu.dot_dimension_numbers<[1], [0], [0], [1], [0, 0, 1, 1], [], []>} : vector<2x32xf32>, vector<32x96xf32>, vector<2x96xf32> -> vector<2x96xf32>
    %37 = vector.extract_strided_slice %35 {offsets = [0, 0], sizes = [2, 64], strides = [1, 1]} : vector<2x96xf32> to vector<2x64xf32>
    %38 = vector.extract_strided_slice %36 {offsets = [0, 0], sizes = [2, 64], strides = [1, 1]} : vector<2x96xf32> to vector<2x64xf32>
    %39 = arith.addf %37, %38 : vector<2x64xf32>
    %40 = arith.negf %39 : vector<2x64xf32>
    %41 = math.exp %40 : vector<2x64xf32>
    %cst_17 = arith.constant 1.000000e+00 : f32
    %42 = vector.broadcast %cst_17 : f32 to vector<2x64xf32>
    %43 = arith.addf %42, %41 : vector<2x64xf32>
    %44 = arith.divf %42, %43 : vector<2x64xf32>
    %45 = vector.extract_strided_slice %44 {offsets = [0, 0], sizes = [2, 32], strides = [1, 1]} : vector<2x64xf32> to vector<2x32xf32>
    %46 = vector.extract_strided_slice %44 {offsets = [0, 32], sizes = [2, 32], strides = [1, 1]} : vector<2x64xf32> to vector<2x32xf32>
    %47 = vector.extract_strided_slice %35 {offsets = [0, 64], sizes = [2, 32], strides = [1, 1]} : vector<2x96xf32> to vector<2x32xf32>
    %48 = vector.extract_strided_slice %36 {offsets = [0, 64], sizes = [2, 32], strides = [1, 1]} : vector<2x96xf32> to vector<2x32xf32>
    %49 = vector.broadcast %4 : vector<1x32xf32> to vector<2x32xf32>
    %50 = arith.addf %48, %49 : vector<2x32xf32>
    %51 = arith.mulf %45, %50 : vector<2x32xf32>
    %52 = arith.addf %47, %51 : vector<2x32xf32>
    %53 = math.tanh %52 : vector<2x32xf32>
    %cst_18 = arith.constant 1.000000e+00 : f32
    %54 = vector.broadcast %cst_18 : f32 to vector<2x32xf32>
    %55 = arith.subf %54, %46 : vector<2x32xf32>
    %56 = arith.mulf %55, %53 : vector<2x32xf32>
    %57 = arith.mulf %46, %30 : vector<2x32xf32>
    %58 = arith.addf %56, %57 : vector<2x32xf32>
    %c1_19 = arith.constant 1 : index
    %c0_20 = arith.constant 0 : index
    %c0_21 = arith.constant 0 : index
    %59 = vector.load %arg4[%c1_19, %c0_20, %c0_21] : memref<3x2x32xf32, #tpu.memory_space<vmem>>, vector<1x2x32xf32>
    %60 = vector.shape_cast %59 : vector<1x2x32xf32> to vector<2x32xf32>
    %61 = vector.shape_cast %58 : vector<2x32xf32> to vector<1x2x32xf32>
    tpu.vector_store %arg4[%c1_19, %c0_20, %c0_21], %61 {strides = array<i32>} : memref<3x2x32xf32, #tpu.memory_space<vmem>>, vector<1x2x32xf32>,
    %c2 = arith.constant 2 : index
    %c0_22 = arith.constant 0 : index
    %c0_23 = arith.constant 0 : index
    %62 = vector.load %arg1[%c2, %c0_22, %c0_23] : memref<3x2x96xf32, #tpu.memory_space<vmem>>, vector<1x2x96xf32>
    %63 = vector.shape_cast %62 : vector<1x2x96xf32> to vector<2x96xf32>
    %cst_24 = arith.constant dense<0.000000e+00> : vector<2x96xf32>
    %64 = tpu.matmul %58, %3, %cst_24 {dimension_numbers = #tpu.dot_dimension_numbers<[1], [0], [0], [1], [0, 0, 1, 1], [], []>} : vector<2x32xf32>, vector<32x96xf32>, vector<2x96xf32> -> vector<2x96xf32>
    %65 = vector.extract_strided_slice %63 {offsets = [0, 0], sizes = [2, 64], strides = [1, 1]} : vector<2x96xf32> to vector<2x64xf32>
    %66 = vector.extract_strided_slice %64 {offsets = [0, 0], sizes = [2, 64], strides = [1, 1]} : vector<2x96xf32> to vector<2x64xf32>
    %67 = arith.addf %65, %66 : vector<2x64xf32>
    %68 = arith.negf %67 : vector<2x64xf32>
    %69 = math.exp %68 : vector<2x64xf32>
    %cst_25 = arith.constant 1.000000e+00 : f32
    %70 = vector.broadcast %cst_25 : f32 to vector<2x64xf32>
    %71 = arith.addf %70, %69 : vector<2x64xf32>
    %72 = arith.divf %70, %71 : vector<2x64xf32>
    %73 = vector.extract_strided_slice %72 {offsets = [0, 0], sizes = [2, 32], strides = [1, 1]} : vector<2x64xf32> to vector<2x32xf32>
    %74 = vector.extract_strided_slice %72 {offsets = [0, 32], sizes = [2, 32], strides = [1, 1]} : vector<2x64xf32> to vector<2x32xf32>
    %75 = vector.extract_strided_slice %63 {offsets = [0, 64], sizes = [2, 32], strides = [1, 1]} : vector<2x96xf32> to vector<2x32xf32>
    %76 = vector.extract_strided_slice %64 {offsets = [0, 64], sizes = [2, 32], strides = [1, 1]} : vector<2x96xf32> to vector<2x32xf32>
    %77 = vector.broadcast %4 : vector<1x32xf32> to vector<2x32xf32>
    %78 = arith.addf %76, %77 : vector<2x32xf32>
    %79 = arith.mulf %73, %78 : vector<2x32xf32>
    %80 = arith.addf %75, %79 : vector<2x32xf32>
    %81 = math.tanh %80 : vector<2x32xf32>
    %cst_26 = arith.constant 1.000000e+00 : f32
    %82 = vector.broadcast %cst_26 : f32 to vector<2x32xf32>
    %83 = arith.subf %82, %74 : vector<2x32xf32>
    %84 = arith.mulf %83, %81 : vector<2x32xf32>
    %85 = arith.mulf %74, %58 : vector<2x32xf32>
    %86 = arith.addf %84, %85 : vector<2x32xf32>
    %c2_27 = arith.constant 2 : index
    %c0_28 = arith.constant 0 : index
    %c0_29 = arith.constant 0 : index
    %87 = vector.load %arg4[%c2_27, %c0_28, %c0_29] : memref<3x2x32xf32, #tpu.memory_space<vmem>>, vector<1x2x32xf32>
    %88 = vector.shape_cast %87 : vector<1x2x32xf32> to vector<2x32xf32>
    %89 = vector.shape_cast %86 : vector<2x32xf32> to vector<1x2x32xf32>
    tpu.vector_store %arg4[%c2_27, %c0_28, %c0_29], %89 {strides = array<i32>} : memref<3x2x32xf32, #tpu.memory_space<vmem>>, vector<1x2x32xf32>,
    %c0_30 = arith.constant 0 : index
    %c0_31 = arith.constant 0 : index
    %90 = vector.load %arg5[%c0_30, %c0_31] : memref<2x32xf32, #tpu.memory_space<vmem>>, vector<2x32xf32>
    tpu.vector_store %arg5[%c0_30, %c0_31], %86 {strides = array<i32>} : memref<2x32xf32, #tpu.memory_space<vmem>>, vector<2x32xf32>,
    return
  }
  func.func @transform_0(%arg0: i32) -> (i32, i32, i32) {
    %c0_i32 = arith.constant 0 : i32
    %c0_i32_0 = arith.constant 0 : i32
    %c0_i32_1 = arith.constant 0 : i32
    return %arg0, %c0_i32, %c0_i32_0 : i32, i32, i32
  }
  func.func @transform_1(%arg0: i32) -> (i32, i32) {
    %c0_i32 = arith.constant 0 : i32
    %c0_i32_0 = arith.constant 0 : i32
    %c0_i32_1 = arith.constant 0 : i32
    return %c0_i32, %c0_i32_0 : i32, i32
  }
  func.func @transform_2(%arg0: i32) -> (i32, i32) {
    %c0_i32 = arith.constant 0 : i32
    %c0_i32_0 = arith.constant 0 : i32
    %c0_i32_1 = arith.constant 0 : i32
    return %c0_i32, %c0_i32_0 : i32, i32
  }
  func.func @transform_3(%arg0: i32) -> (i32, i32, i32) {
    %c0_i32 = arith.constant 0 : i32
    %c0_i32_0 = arith.constant 0 : i32
    %c0_i32_1 = arith.constant 0 : i32
    return %arg0, %c0_i32, %c0_i32_0 : i32, i32, i32
  }
}

module attributes {stable_mosaic.version = 11 : i64} {
  func.func @_proj_kernel(%arg0: i32, %arg1: memref<8x24xf32, #tpu.memory_space<vmem>>, %arg2: memref<24x96xf32, #tpu.memory_space<vmem>>, %arg3: memref<1x96xf32, #tpu.memory_space<vmem>>, %arg4: memref<8x96xf32, #tpu.memory_space<vmem>>) attributes {dimension_semantics = [#tpu.dimension_semantics<parallel>], iteration_bounds = array<i64: 1>, scalar_prefetch = 0 : i64, scratch_operands = 0 : i64, tpu.core_type = #tpu.core_type<tc>, window_params = [{transform_indices = @transform_0, window_bounds = array<i64: 8, 24>}, {pipeline_mode = #tpu.pipeline_mode<synchronous>, transform_indices = @transform_1, window_bounds = array<i64: 24, 96>}, {pipeline_mode = #tpu.pipeline_mode<synchronous>, transform_indices = @transform_2, window_bounds = array<i64: 1, 96>}, {transform_indices = @transform_3, window_bounds = array<i64: 8, 96>}]} {
    %c0 = arith.constant 0 : index
    %c0_0 = arith.constant 0 : index
    %0 = vector.load %arg1[%c0, %c0_0] : memref<8x24xf32, #tpu.memory_space<vmem>>, vector<8x24xf32>
    %c0_1 = arith.constant 0 : index
    %c0_2 = arith.constant 0 : index
    %1 = vector.load %arg2[%c0_1, %c0_2] : memref<24x96xf32, #tpu.memory_space<vmem>>, vector<24x96xf32>
    %cst = arith.constant dense<0.000000e+00> : vector<8x96xf32>
    %2 = tpu.matmul %0, %1, %cst {dimension_numbers = #tpu.dot_dimension_numbers<[1], [0], [0], [1], [0, 0, 1, 1], [], []>} : vector<8x24xf32>, vector<24x96xf32>, vector<8x96xf32> -> vector<8x96xf32>
    %c0_3 = arith.constant 0 : index
    %c0_4 = arith.constant 0 : index
    %3 = vector.load %arg3[%c0_3, %c0_4] : memref<1x96xf32, #tpu.memory_space<vmem>>, vector<1x96xf32>
    %4 = vector.broadcast %3 : vector<1x96xf32> to vector<8x96xf32>
    %5 = arith.addf %2, %4 : vector<8x96xf32>
    %c0_5 = arith.constant 0 : index
    %c0_6 = arith.constant 0 : index
    %6 = vector.load %arg4[%c0_5, %c0_6] : memref<8x96xf32, #tpu.memory_space<vmem>>, vector<8x96xf32>
    tpu.vector_store %arg4[%c0_5, %c0_6], %5 {strides = array<i32>} : memref<8x96xf32, #tpu.memory_space<vmem>>, vector<8x96xf32>,
    return
  }
  func.func @transform_0(%arg0: i32) -> (i32, i32) {
    %c0_i32 = arith.constant 0 : i32
    %c0_i32_0 = arith.constant 0 : i32
    return %arg0, %c0_i32 : i32, i32
  }
  func.func @transform_1(%arg0: i32) -> (i32, i32) {
    %c0_i32 = arith.constant 0 : i32
    %c0_i32_0 = arith.constant 0 : i32
    %c0_i32_1 = arith.constant 0 : i32
    return %c0_i32, %c0_i32_0 : i32, i32
  }
  func.func @transform_2(%arg0: i32) -> (i32, i32) {
    %c0_i32 = arith.constant 0 : i32
    %c0_i32_0 = arith.constant 0 : i32
    %c0_i32_1 = arith.constant 0 : i32
    return %c0_i32, %c0_i32_0 : i32, i32
  }
  func.func @transform_3(%arg0: i32) -> (i32, i32) {
    %c0_i32 = arith.constant 0 : i32
    %c0_i32_0 = arith.constant 0 : i32
    return %arg0, %c0_i32 : i32, i32
  }
}

module attributes {stable_mosaic.version = 11 : i64} {
  func.func @_proj_kernel(%arg0: i32, %arg1: memref<8x32xf32, #tpu.memory_space<vmem>>, %arg2: memref<32x96xf32, #tpu.memory_space<vmem>>, %arg3: memref<1x96xf32, #tpu.memory_space<vmem>>, %arg4: memref<8x96xf32, #tpu.memory_space<vmem>>) attributes {dimension_semantics = [#tpu.dimension_semantics<parallel>], iteration_bounds = array<i64: 1>, scalar_prefetch = 0 : i64, scratch_operands = 0 : i64, tpu.core_type = #tpu.core_type<tc>, window_params = [{transform_indices = @transform_0, window_bounds = array<i64: 8, 32>}, {pipeline_mode = #tpu.pipeline_mode<synchronous>, transform_indices = @transform_1, window_bounds = array<i64: 32, 96>}, {pipeline_mode = #tpu.pipeline_mode<synchronous>, transform_indices = @transform_2, window_bounds = array<i64: 1, 96>}, {transform_indices = @transform_3, window_bounds = array<i64: 8, 96>}]} {
    %c0 = arith.constant 0 : index
    %c0_0 = arith.constant 0 : index
    %0 = vector.load %arg1[%c0, %c0_0] : memref<8x32xf32, #tpu.memory_space<vmem>>, vector<8x32xf32>
    %c0_1 = arith.constant 0 : index
    %c0_2 = arith.constant 0 : index
    %1 = vector.load %arg2[%c0_1, %c0_2] : memref<32x96xf32, #tpu.memory_space<vmem>>, vector<32x96xf32>
    %cst = arith.constant dense<0.000000e+00> : vector<8x96xf32>
    %2 = tpu.matmul %0, %1, %cst {dimension_numbers = #tpu.dot_dimension_numbers<[1], [0], [0], [1], [0, 0, 1, 1], [], []>} : vector<8x32xf32>, vector<32x96xf32>, vector<8x96xf32> -> vector<8x96xf32>
    %c0_3 = arith.constant 0 : index
    %c0_4 = arith.constant 0 : index
    %3 = vector.load %arg3[%c0_3, %c0_4] : memref<1x96xf32, #tpu.memory_space<vmem>>, vector<1x96xf32>
    %4 = vector.broadcast %3 : vector<1x96xf32> to vector<8x96xf32>
    %5 = arith.addf %2, %4 : vector<8x96xf32>
    %c0_5 = arith.constant 0 : index
    %c0_6 = arith.constant 0 : index
    %6 = vector.load %arg4[%c0_5, %c0_6] : memref<8x96xf32, #tpu.memory_space<vmem>>, vector<8x96xf32>
    tpu.vector_store %arg4[%c0_5, %c0_6], %5 {strides = array<i32>} : memref<8x96xf32, #tpu.memory_space<vmem>>, vector<8x96xf32>,
    return
  }
  func.func @transform_0(%arg0: i32) -> (i32, i32) {
    %c0_i32 = arith.constant 0 : i32
    %c0_i32_0 = arith.constant 0 : i32
    return %arg0, %c0_i32 : i32, i32
  }
  func.func @transform_1(%arg0: i32) -> (i32, i32) {
    %c0_i32 = arith.constant 0 : i32
    %c0_i32_0 = arith.constant 0 : i32
    %c0_i32_1 = arith.constant 0 : i32
    return %c0_i32, %c0_i32_0 : i32, i32
  }
  func.func @transform_2(%arg0: i32) -> (i32, i32) {
    %c0_i32 = arith.constant 0 : i32
    %c0_i32_0 = arith.constant 0 : i32
    %c0_i32_1 = arith.constant 0 : i32
    return %c0_i32, %c0_i32_0 : i32, i32
  }
  func.func @transform_3(%arg0: i32) -> (i32, i32) {
    %c0_i32 = arith.constant 0 : i32
    %c0_i32_0 = arith.constant 0 : i32
    return %arg0, %c0_i32 : i32, i32
  }
}

module attributes {stable_mosaic.version = 11 : i64} {
  func.func @_proj_kernel(%arg0: i32, %arg1: memref<8x32xf32, #tpu.memory_space<vmem>>, %arg2: memref<8x32xf32, #tpu.memory_space<vmem>>, %arg3: memref<32x192xf32, #tpu.memory_space<vmem>>, %arg4: memref<32x192xf32, #tpu.memory_space<vmem>>, %arg5: memref<1x192xf32, #tpu.memory_space<vmem>>, %arg6: memref<8x192xf32, #tpu.memory_space<vmem>>) attributes {dimension_semantics = [#tpu.dimension_semantics<parallel>], iteration_bounds = array<i64: 1>, scalar_prefetch = 0 : i64, scratch_operands = 0 : i64, tpu.core_type = #tpu.core_type<tc>, window_params = [{transform_indices = @transform_0, window_bounds = array<i64: 8, 32>}, {transform_indices = @transform_1, window_bounds = array<i64: 8, 32>}, {pipeline_mode = #tpu.pipeline_mode<synchronous>, transform_indices = @transform_2, window_bounds = array<i64: 32, 192>}, {pipeline_mode = #tpu.pipeline_mode<synchronous>, transform_indices = @transform_3, window_bounds = array<i64: 32, 192>}, {pipeline_mode = #tpu.pipeline_mode<synchronous>, transform_indices = @transform_4, window_bounds = array<i64: 1, 192>}, {transform_indices = @transform_5, window_bounds = array<i64: 8, 192>}]} {
    %c0 = arith.constant 0 : index
    %c0_0 = arith.constant 0 : index
    %0 = vector.load %arg1[%c0, %c0_0] : memref<8x32xf32, #tpu.memory_space<vmem>>, vector<8x32xf32>
    %c0_1 = arith.constant 0 : index
    %c0_2 = arith.constant 0 : index
    %1 = vector.load %arg3[%c0_1, %c0_2] : memref<32x192xf32, #tpu.memory_space<vmem>>, vector<32x192xf32>
    %cst = arith.constant dense<0.000000e+00> : vector<8x192xf32>
    %2 = tpu.matmul %0, %1, %cst {dimension_numbers = #tpu.dot_dimension_numbers<[1], [0], [0], [1], [0, 0, 1, 1], [], []>} : vector<8x32xf32>, vector<32x192xf32>, vector<8x192xf32> -> vector<8x192xf32>
    %c0_3 = arith.constant 0 : index
    %c0_4 = arith.constant 0 : index
    %3 = vector.load %arg2[%c0_3, %c0_4] : memref<8x32xf32, #tpu.memory_space<vmem>>, vector<8x32xf32>
    %c0_5 = arith.constant 0 : index
    %c0_6 = arith.constant 0 : index
    %4 = vector.load %arg4[%c0_5, %c0_6] : memref<32x192xf32, #tpu.memory_space<vmem>>, vector<32x192xf32>
    %cst_7 = arith.constant dense<0.000000e+00> : vector<8x192xf32>
    %5 = tpu.matmul %3, %4, %cst_7 {dimension_numbers = #tpu.dot_dimension_numbers<[1], [0], [0], [1], [0, 0, 1, 1], [], []>} : vector<8x32xf32>, vector<32x192xf32>, vector<8x192xf32> -> vector<8x192xf32>
    %6 = arith.addf %2, %5 : vector<8x192xf32>
    %c0_8 = arith.constant 0 : index
    %c0_9 = arith.constant 0 : index
    %7 = vector.load %arg5[%c0_8, %c0_9] : memref<1x192xf32, #tpu.memory_space<vmem>>, vector<1x192xf32>
    %8 = vector.broadcast %7 : vector<1x192xf32> to vector<8x192xf32>
    %9 = arith.addf %6, %8 : vector<8x192xf32>
    %c0_10 = arith.constant 0 : index
    %c0_11 = arith.constant 0 : index
    %10 = vector.load %arg6[%c0_10, %c0_11] : memref<8x192xf32, #tpu.memory_space<vmem>>, vector<8x192xf32>
    tpu.vector_store %arg6[%c0_10, %c0_11], %9 {strides = array<i32>} : memref<8x192xf32, #tpu.memory_space<vmem>>, vector<8x192xf32>,
    return
  }
  func.func @transform_0(%arg0: i32) -> (i32, i32) {
    %c0_i32 = arith.constant 0 : i32
    %c0_i32_0 = arith.constant 0 : i32
    return %arg0, %c0_i32 : i32, i32
  }
  func.func @transform_1(%arg0: i32) -> (i32, i32) {
    %c0_i32 = arith.constant 0 : i32
    %c0_i32_0 = arith.constant 0 : i32
    return %arg0, %c0_i32 : i32, i32
  }
  func.func @transform_2(%arg0: i32) -> (i32, i32) {
    %c0_i32 = arith.constant 0 : i32
    %c0_i32_0 = arith.constant 0 : i32
    %c0_i32_1 = arith.constant 0 : i32
    return %c0_i32, %c0_i32_0 : i32, i32
  }
  func.func @transform_3(%arg0: i32) -> (i32, i32) {
    %c0_i32 = arith.constant 0 : i32
    %c0_i32_0 = arith.constant 0 : i32
    %c0_i32_1 = arith.constant 0 : i32
    return %c0_i32, %c0_i32_0 : i32, i32
  }
  func.func @transform_4(%arg0: i32) -> (i32, i32) {
    %c0_i32 = arith.constant 0 : i32
    %c0_i32_0 = arith.constant 0 : i32
    %c0_i32_1 = arith.constant 0 : i32
    return %c0_i32, %c0_i32_0 : i32, i32
  }
  func.func @transform_5(%arg0: i32) -> (i32, i32) {
    %c0_i32 = arith.constant 0 : i32
    %c0_i32_0 = arith.constant 0 : i32
    return %arg0, %c0_i32 : i32, i32
  }
}

module attributes {stable_mosaic.version = 11 : i64} {
  func.func @_bigru_kernel(%arg0: i32, %arg1: memref<3x2x192xf32, #tpu.memory_space<vmem>>, %arg2: memref<3x2x192xf32, #tpu.memory_space<vmem>>, %arg3: memref<64x192xf32, #tpu.memory_space<vmem>>, %arg4: memref<1x64xf32, #tpu.memory_space<vmem>>, %arg5: memref<3x2x32xf32, #tpu.memory_space<vmem>>, %arg6: memref<3x2x32xf32, #tpu.memory_space<vmem>>, %arg7: memref<2x32xf32, #tpu.memory_space<vmem>>, %arg8: memref<2x32xf32, #tpu.memory_space<vmem>>) attributes {dimension_semantics = [#tpu.dimension_semantics<arbitrary>], iteration_bounds = array<i64: 1>, scalar_prefetch = 0 : i64, scratch_operands = 2 : i64, tpu.core_type = #tpu.core_type<tc>, window_params = [{transform_indices = @transform_0, window_bounds = array<i64: 3, 2, 192>}, {transform_indices = @transform_1, window_bounds = array<i64: 3, 2, 192>}, {pipeline_mode = #tpu.pipeline_mode<synchronous>, transform_indices = @transform_2, window_bounds = array<i64: 64, 192>}, {pipeline_mode = #tpu.pipeline_mode<synchronous>, transform_indices = @transform_3, window_bounds = array<i64: 1, 64>}, {transform_indices = @transform_4, window_bounds = array<i64: 3, 2, 32>}, {transform_indices = @transform_5, window_bounds = array<i64: 3, 2, 32>}]} {
    %c0_i32 = arith.constant 0 : i32
    %0 = arith.cmpi eq, %arg0, %c0_i32 : i32
    %1 = arith.extui %0 : i1 to i32
    %c0_i32_0 = arith.constant 0 : i32
    %2 = arith.cmpi ne, %1, %c0_i32_0 : i32
    scf.if %2 {
      %cst_60 = arith.constant 0.000000e+00 : f32
      %195 = vector.broadcast %cst_60 : f32 to vector<2x32xf32>
      %c0_61 = arith.constant 0 : index
      %c0_62 = arith.constant 0 : index
      %196 = vector.load %arg7[%c0_61, %c0_62] : memref<2x32xf32, #tpu.memory_space<vmem>>, vector<2x32xf32>
      tpu.vector_store %arg7[%c0_61, %c0_62], %195 {strides = array<i32>} : memref<2x32xf32, #tpu.memory_space<vmem>>, vector<2x32xf32>,
      %cst_63 = arith.constant 0.000000e+00 : f32
      %197 = vector.broadcast %cst_63 : f32 to vector<2x32xf32>
      %c0_64 = arith.constant 0 : index
      %c0_65 = arith.constant 0 : index
      %198 = vector.load %arg8[%c0_64, %c0_65] : memref<2x32xf32, #tpu.memory_space<vmem>>, vector<2x32xf32>
      tpu.vector_store %arg8[%c0_64, %c0_65], %197 {strides = array<i32>} : memref<2x32xf32, #tpu.memory_space<vmem>>, vector<2x32xf32>,
    } else {
    }
    %c0 = arith.constant 0 : index
    %c0_1 = arith.constant 0 : index
    %3 = vector.load %arg3[%c0, %c0_1] : memref<64x192xf32, #tpu.memory_space<vmem>>, vector<64x192xf32>
    %c0_2 = arith.constant 0 : index
    %c0_3 = arith.constant 0 : index
    %4 = vector.load %arg4[%c0_2, %c0_3] : memref<1x64xf32, #tpu.memory_space<vmem>>, vector<1x64xf32>
    %c0_4 = arith.constant 0 : index
    %c0_5 = arith.constant 0 : index
    %5 = vector.load %arg7[%c0_4, %c0_5] : memref<2x32xf32, #tpu.memory_space<vmem>>, vector<2x32xf32>
    %c0_6 = arith.constant 0 : index
    %c0_7 = arith.constant 0 : index
    %6 = vector.load %arg8[%c0_6, %c0_7] : memref<2x32xf32, #tpu.memory_space<vmem>>, vector<2x32xf32>
    %c0_8 = arith.constant 0 : index
    %c0_9 = arith.constant 0 : index
    %c0_10 = arith.constant 0 : index
    %7 = vector.load %arg1[%c0_8, %c0_9, %c0_10] : memref<3x2x192xf32, #tpu.memory_space<vmem>>, vector<1x2x192xf32>
    %8 = vector.shape_cast %7 : vector<1x2x192xf32> to vector<2x192xf32>
    %c2 = arith.constant 2 : index
    %c0_11 = arith.constant 0 : index
    %c0_12 = arith.constant 0 : index
    %9 = vector.load %arg2[%c2, %c0_11, %c0_12] : memref<3x2x192xf32, #tpu.memory_space<vmem>>, vector<1x2x192xf32>
    %10 = vector.shape_cast %9 : vector<1x2x192xf32> to vector<2x192xf32>
    %11 = tpu.concatenate %5, %6 in 1 : vector<2x32xf32>, vector<2x32xf32> -> vector<2x64xf32>
    %cst = arith.constant dense<0.000000e+00> : vector<2x192xf32>
    %12 = tpu.matmul %11, %3, %cst {dimension_numbers = #tpu.dot_dimension_numbers<[1], [0], [0], [1], [0, 0, 1, 1], [], []>} : vector<2x64xf32>, vector<64x192xf32>, vector<2x192xf32> -> vector<2x192xf32>
    %13 = vector.extract_strided_slice %8 {offsets = [0, 0], sizes = [2, 96], strides = [1, 1]} : vector<2x192xf32> to vector<2x96xf32>
    %14 = vector.extract_strided_slice %12 {offsets = [0, 0], sizes = [2, 96], strides = [1, 1]} : vector<2x192xf32> to vector<2x96xf32>
    %15 = vector.extract_strided_slice %4 {offsets = [0, 0], sizes = [1, 32], strides = [1, 1]} : vector<1x64xf32> to vector<1x32xf32>
    %16 = vector.extract_strided_slice %13 {offsets = [0, 0], sizes = [2, 64], strides = [1, 1]} : vector<2x96xf32> to vector<2x64xf32>
    %17 = vector.extract_strided_slice %14 {offsets = [0, 0], sizes = [2, 64], strides = [1, 1]} : vector<2x96xf32> to vector<2x64xf32>
    %18 = arith.addf %16, %17 : vector<2x64xf32>
    %19 = arith.negf %18 : vector<2x64xf32>
    %20 = math.exp %19 : vector<2x64xf32>
    %cst_13 = arith.constant 1.000000e+00 : f32
    %21 = vector.broadcast %cst_13 : f32 to vector<2x64xf32>
    %22 = arith.addf %21, %20 : vector<2x64xf32>
    %23 = arith.divf %21, %22 : vector<2x64xf32>
    %24 = vector.extract_strided_slice %23 {offsets = [0, 0], sizes = [2, 32], strides = [1, 1]} : vector<2x64xf32> to vector<2x32xf32>
    %25 = vector.extract_strided_slice %23 {offsets = [0, 32], sizes = [2, 32], strides = [1, 1]} : vector<2x64xf32> to vector<2x32xf32>
    %26 = vector.extract_strided_slice %13 {offsets = [0, 64], sizes = [2, 32], strides = [1, 1]} : vector<2x96xf32> to vector<2x32xf32>
    %27 = vector.extract_strided_slice %14 {offsets = [0, 64], sizes = [2, 32], strides = [1, 1]} : vector<2x96xf32> to vector<2x32xf32>
    %28 = vector.broadcast %15 : vector<1x32xf32> to vector<2x32xf32>
    %29 = arith.addf %27, %28 : vector<2x32xf32>
    %30 = arith.mulf %24, %29 : vector<2x32xf32>
    %31 = arith.addf %26, %30 : vector<2x32xf32>
    %32 = math.tanh %31 : vector<2x32xf32>
    %cst_14 = arith.constant 1.000000e+00 : f32
    %33 = vector.broadcast %cst_14 : f32 to vector<2x32xf32>
    %34 = arith.subf %33, %25 : vector<2x32xf32>
    %35 = arith.mulf %34, %32 : vector<2x32xf32>
    %36 = arith.mulf %25, %5 : vector<2x32xf32>
    %37 = arith.addf %35, %36 : vector<2x32xf32>
    %38 = vector.extract_strided_slice %10 {offsets = [0, 96], sizes = [2, 96], strides = [1, 1]} : vector<2x192xf32> to vector<2x96xf32>
    %39 = vector.extract_strided_slice %12 {offsets = [0, 96], sizes = [2, 96], strides = [1, 1]} : vector<2x192xf32> to vector<2x96xf32>
    %40 = vector.extract_strided_slice %4 {offsets = [0, 32], sizes = [1, 32], strides = [1, 1]} : vector<1x64xf32> to vector<1x32xf32>
    %41 = vector.extract_strided_slice %38 {offsets = [0, 0], sizes = [2, 64], strides = [1, 1]} : vector<2x96xf32> to vector<2x64xf32>
    %42 = vector.extract_strided_slice %39 {offsets = [0, 0], sizes = [2, 64], strides = [1, 1]} : vector<2x96xf32> to vector<2x64xf32>
    %43 = arith.addf %41, %42 : vector<2x64xf32>
    %44 = arith.negf %43 : vector<2x64xf32>
    %45 = math.exp %44 : vector<2x64xf32>
    %cst_15 = arith.constant 1.000000e+00 : f32
    %46 = vector.broadcast %cst_15 : f32 to vector<2x64xf32>
    %47 = arith.addf %46, %45 : vector<2x64xf32>
    %48 = arith.divf %46, %47 : vector<2x64xf32>
    %49 = vector.extract_strided_slice %48 {offsets = [0, 0], sizes = [2, 32], strides = [1, 1]} : vector<2x64xf32> to vector<2x32xf32>
    %50 = vector.extract_strided_slice %48 {offsets = [0, 32], sizes = [2, 32], strides = [1, 1]} : vector<2x64xf32> to vector<2x32xf32>
    %51 = vector.extract_strided_slice %38 {offsets = [0, 64], sizes = [2, 32], strides = [1, 1]} : vector<2x96xf32> to vector<2x32xf32>
    %52 = vector.extract_strided_slice %39 {offsets = [0, 64], sizes = [2, 32], strides = [1, 1]} : vector<2x96xf32> to vector<2x32xf32>
    %53 = vector.broadcast %40 : vector<1x32xf32> to vector<2x32xf32>
    %54 = arith.addf %52, %53 : vector<2x32xf32>
    %55 = arith.mulf %49, %54 : vector<2x32xf32>
    %56 = arith.addf %51, %55 : vector<2x32xf32>
    %57 = math.tanh %56 : vector<2x32xf32>
    %cst_16 = arith.constant 1.000000e+00 : f32
    %58 = vector.broadcast %cst_16 : f32 to vector<2x32xf32>
    %59 = arith.subf %58, %50 : vector<2x32xf32>
    %60 = arith.mulf %59, %57 : vector<2x32xf32>
    %61 = arith.mulf %50, %6 : vector<2x32xf32>
    %62 = arith.addf %60, %61 : vector<2x32xf32>
    %c0_17 = arith.constant 0 : index
    %c0_18 = arith.constant 0 : index
    %c0_19 = arith.constant 0 : index
    %63 = vector.load %arg5[%c0_17, %c0_18, %c0_19] : memref<3x2x32xf32, #tpu.memory_space<vmem>>, vector<1x2x32xf32>
    %64 = vector.shape_cast %63 : vector<1x2x32xf32> to vector<2x32xf32>
    %65 = vector.shape_cast %37 : vector<2x32xf32> to vector<1x2x32xf32>
    tpu.vector_store %arg5[%c0_17, %c0_18, %c0_19], %65 {strides = array<i32>} : memref<3x2x32xf32, #tpu.memory_space<vmem>>, vector<1x2x32xf32>,
    %c2_20 = arith.constant 2 : index
    %c0_21 = arith.constant 0 : index
    %c0_22 = arith.constant 0 : index
    %66 = vector.load %arg6[%c2_20, %c0_21, %c0_22] : memref<3x2x32xf32, #tpu.memory_space<vmem>>, vector<1x2x32xf32>
    %67 = vector.shape_cast %66 : vector<1x2x32xf32> to vector<2x32xf32>
    %68 = vector.shape_cast %62 : vector<2x32xf32> to vector<1x2x32xf32>
    tpu.vector_store %arg6[%c2_20, %c0_21, %c0_22], %68 {strides = array<i32>} : memref<3x2x32xf32, #tpu.memory_space<vmem>>, vector<1x2x32xf32>,
    %c1 = arith.constant 1 : index
    %c0_23 = arith.constant 0 : index
    %c0_24 = arith.constant 0 : index
    %69 = vector.load %arg1[%c1, %c0_23, %c0_24] : memref<3x2x192xf32, #tpu.memory_space<vmem>>, vector<1x2x192xf32>
    %70 = vector.shape_cast %69 : vector<1x2x192xf32> to vector<2x192xf32>
    %c1_25 = arith.constant 1 : index
    %c0_26 = arith.constant 0 : index
    %c0_27 = arith.constant 0 : index
    %71 = vector.load %arg2[%c1_25, %c0_26, %c0_27] : memref<3x2x192xf32, #tpu.memory_space<vmem>>, vector<1x2x192xf32>
    %72 = vector.shape_cast %71 : vector<1x2x192xf32> to vector<2x192xf32>
    %73 = tpu.concatenate %37, %62 in 1 : vector<2x32xf32>, vector<2x32xf32> -> vector<2x64xf32>
    %cst_28 = arith.constant dense<0.000000e+00> : vector<2x192xf32>
    %74 = tpu.matmul %73, %3, %cst_28 {dimension_numbers = #tpu.dot_dimension_numbers<[1], [0], [0], [1], [0, 0, 1, 1], [], []>} : vector<2x64xf32>, vector<64x192xf32>, vector<2x192xf32> -> vector<2x192xf32>
    %75 = vector.extract_strided_slice %70 {offsets = [0, 0], sizes = [2, 96], strides = [1, 1]} : vector<2x192xf32> to vector<2x96xf32>
    %76 = vector.extract_strided_slice %74 {offsets = [0, 0], sizes = [2, 96], strides = [1, 1]} : vector<2x192xf32> to vector<2x96xf32>
    %77 = vector.extract_strided_slice %4 {offsets = [0, 0], sizes = [1, 32], strides = [1, 1]} : vector<1x64xf32> to vector<1x32xf32>
    %78 = vector.extract_strided_slice %75 {offsets = [0, 0], sizes = [2, 64], strides = [1, 1]} : vector<2x96xf32> to vector<2x64xf32>
    %79 = vector.extract_strided_slice %76 {offsets = [0, 0], sizes = [2, 64], strides = [1, 1]} : vector<2x96xf32> to vector<2x64xf32>
    %80 = arith.addf %78, %79 : vector<2x64xf32>
    %81 = arith.negf %80 : vector<2x64xf32>
    %82 = math.exp %81 : vector<2x64xf32>
    %cst_29 = arith.constant 1.000000e+00 : f32
    %83 = vector.broadcast %cst_29 : f32 to vector<2x64xf32>
    %84 = arith.addf %83, %82 : vector<2x64xf32>
    %85 = arith.divf %83, %84 : vector<2x64xf32>
    %86 = vector.extract_strided_slice %85 {offsets = [0, 0], sizes = [2, 32], strides = [1, 1]} : vector<2x64xf32> to vector<2x32xf32>
    %87 = vector.extract_strided_slice %85 {offsets = [0, 32], sizes = [2, 32], strides = [1, 1]} : vector<2x64xf32> to vector<2x32xf32>
    %88 = vector.extract_strided_slice %75 {offsets = [0, 64], sizes = [2, 32], strides = [1, 1]} : vector<2x96xf32> to vector<2x32xf32>
    %89 = vector.extract_strided_slice %76 {offsets = [0, 64], sizes = [2, 32], strides = [1, 1]} : vector<2x96xf32> to vector<2x32xf32>
    %90 = vector.broadcast %77 : vector<1x32xf32> to vector<2x32xf32>
    %91 = arith.addf %89, %90 : vector<2x32xf32>
    %92 = arith.mulf %86, %91 : vector<2x32xf32>
    %93 = arith.addf %88, %92 : vector<2x32xf32>
    %94 = math.tanh %93 : vector<2x32xf32>
    %cst_30 = arith.constant 1.000000e+00 : f32
    %95 = vector.broadcast %cst_30 : f32 to vector<2x32xf32>
    %96 = arith.subf %95, %87 : vector<2x32xf32>
    %97 = arith.mulf %96, %94 : vector<2x32xf32>
    %98 = arith.mulf %87, %37 : vector<2x32xf32>
    %99 = arith.addf %97, %98 : vector<2x32xf32>
    %100 = vector.extract_strided_slice %72 {offsets = [0, 96], sizes = [2, 96], strides = [1, 1]} : vector<2x192xf32> to vector<2x96xf32>
    %101 = vector.extract_strided_slice %74 {offsets = [0, 96], sizes = [2, 96], strides = [1, 1]} : vector<2x192xf32> to vector<2x96xf32>
    %102 = vector.extract_strided_slice %4 {offsets = [0, 32], sizes = [1, 32], strides = [1, 1]} : vector<1x64xf32> to vector<1x32xf32>
    %103 = vector.extract_strided_slice %100 {offsets = [0, 0], sizes = [2, 64], strides = [1, 1]} : vector<2x96xf32> to vector<2x64xf32>
    %104 = vector.extract_strided_slice %101 {offsets = [0, 0], sizes = [2, 64], strides = [1, 1]} : vector<2x96xf32> to vector<2x64xf32>
    %105 = arith.addf %103, %104 : vector<2x64xf32>
    %106 = arith.negf %105 : vector<2x64xf32>
    %107 = math.exp %106 : vector<2x64xf32>
    %cst_31 = arith.constant 1.000000e+00 : f32
    %108 = vector.broadcast %cst_31 : f32 to vector<2x64xf32>
    %109 = arith.addf %108, %107 : vector<2x64xf32>
    %110 = arith.divf %108, %109 : vector<2x64xf32>
    %111 = vector.extract_strided_slice %110 {offsets = [0, 0], sizes = [2, 32], strides = [1, 1]} : vector<2x64xf32> to vector<2x32xf32>
    %112 = vector.extract_strided_slice %110 {offsets = [0, 32], sizes = [2, 32], strides = [1, 1]} : vector<2x64xf32> to vector<2x32xf32>
    %113 = vector.extract_strided_slice %100 {offsets = [0, 64], sizes = [2, 32], strides = [1, 1]} : vector<2x96xf32> to vector<2x32xf32>
    %114 = vector.extract_strided_slice %101 {offsets = [0, 64], sizes = [2, 32], strides = [1, 1]} : vector<2x96xf32> to vector<2x32xf32>
    %115 = vector.broadcast %102 : vector<1x32xf32> to vector<2x32xf32>
    %116 = arith.addf %114, %115 : vector<2x32xf32>
    %117 = arith.mulf %111, %116 : vector<2x32xf32>
    %118 = arith.addf %113, %117 : vector<2x32xf32>
    %119 = math.tanh %118 : vector<2x32xf32>
    %cst_32 = arith.constant 1.000000e+00 : f32
    %120 = vector.broadcast %cst_32 : f32 to vector<2x32xf32>
    %121 = arith.subf %120, %112 : vector<2x32xf32>
    %122 = arith.mulf %121, %119 : vector<2x32xf32>
    %123 = arith.mulf %112, %62 : vector<2x32xf32>
    %124 = arith.addf %122, %123 : vector<2x32xf32>
    %c1_33 = arith.constant 1 : index
    %c0_34 = arith.constant 0 : index
    %c0_35 = arith.constant 0 : index
    %125 = vector.load %arg5[%c1_33, %c0_34, %c0_35] : memref<3x2x32xf32, #tpu.memory_space<vmem>>, vector<1x2x32xf32>
    %126 = vector.shape_cast %125 : vector<1x2x32xf32> to vector<2x32xf32>
    %127 = vector.shape_cast %99 : vector<2x32xf32> to vector<1x2x32xf32>
    tpu.vector_store %arg5[%c1_33, %c0_34, %c0_35], %127 {strides = array<i32>} : memref<3x2x32xf32, #tpu.memory_space<vmem>>, vector<1x2x32xf32>,
    %c1_36 = arith.constant 1 : index
    %c0_37 = arith.constant 0 : index
    %c0_38 = arith.constant 0 : index
    %128 = vector.load %arg6[%c1_36, %c0_37, %c0_38] : memref<3x2x32xf32, #tpu.memory_space<vmem>>, vector<1x2x32xf32>
    %129 = vector.shape_cast %128 : vector<1x2x32xf32> to vector<2x32xf32>
    %130 = vector.shape_cast %124 : vector<2x32xf32> to vector<1x2x32xf32>
    tpu.vector_store %arg6[%c1_36, %c0_37, %c0_38], %130 {strides = array<i32>} : memref<3x2x32xf32, #tpu.memory_space<vmem>>, vector<1x2x32xf32>,
    %c2_39 = arith.constant 2 : index
    %c0_40 = arith.constant 0 : index
    %c0_41 = arith.constant 0 : index
    %131 = vector.load %arg1[%c2_39, %c0_40, %c0_41] : memref<3x2x192xf32, #tpu.memory_space<vmem>>, vector<1x2x192xf32>
    %132 = vector.shape_cast %131 : vector<1x2x192xf32> to vector<2x192xf32>
    %c0_42 = arith.constant 0 : index
    %c0_43 = arith.constant 0 : index
    %c0_44 = arith.constant 0 : index
    %133 = vector.load %arg2[%c0_42, %c0_43, %c0_44] : memref<3x2x192xf32, #tpu.memory_space<vmem>>, vector<1x2x192xf32>
    %134 = vector.shape_cast %133 : vector<1x2x192xf32> to vector<2x192xf32>
    %135 = tpu.concatenate %99, %124 in 1 : vector<2x32xf32>, vector<2x32xf32> -> vector<2x64xf32>
    %cst_45 = arith.constant dense<0.000000e+00> : vector<2x192xf32>
    %136 = tpu.matmul %135, %3, %cst_45 {dimension_numbers = #tpu.dot_dimension_numbers<[1], [0], [0], [1], [0, 0, 1, 1], [], []>} : vector<2x64xf32>, vector<64x192xf32>, vector<2x192xf32> -> vector<2x192xf32>
    %137 = vector.extract_strided_slice %132 {offsets = [0, 0], sizes = [2, 96], strides = [1, 1]} : vector<2x192xf32> to vector<2x96xf32>
    %138 = vector.extract_strided_slice %136 {offsets = [0, 0], sizes = [2, 96], strides = [1, 1]} : vector<2x192xf32> to vector<2x96xf32>
    %139 = vector.extract_strided_slice %4 {offsets = [0, 0], sizes = [1, 32], strides = [1, 1]} : vector<1x64xf32> to vector<1x32xf32>
    %140 = vector.extract_strided_slice %137 {offsets = [0, 0], sizes = [2, 64], strides = [1, 1]} : vector<2x96xf32> to vector<2x64xf32>
    %141 = vector.extract_strided_slice %138 {offsets = [0, 0], sizes = [2, 64], strides = [1, 1]} : vector<2x96xf32> to vector<2x64xf32>
    %142 = arith.addf %140, %141 : vector<2x64xf32>
    %143 = arith.negf %142 : vector<2x64xf32>
    %144 = math.exp %143 : vector<2x64xf32>
    %cst_46 = arith.constant 1.000000e+00 : f32
    %145 = vector.broadcast %cst_46 : f32 to vector<2x64xf32>
    %146 = arith.addf %145, %144 : vector<2x64xf32>
    %147 = arith.divf %145, %146 : vector<2x64xf32>
    %148 = vector.extract_strided_slice %147 {offsets = [0, 0], sizes = [2, 32], strides = [1, 1]} : vector<2x64xf32> to vector<2x32xf32>
    %149 = vector.extract_strided_slice %147 {offsets = [0, 32], sizes = [2, 32], strides = [1, 1]} : vector<2x64xf32> to vector<2x32xf32>
    %150 = vector.extract_strided_slice %137 {offsets = [0, 64], sizes = [2, 32], strides = [1, 1]} : vector<2x96xf32> to vector<2x32xf32>
    %151 = vector.extract_strided_slice %138 {offsets = [0, 64], sizes = [2, 32], strides = [1, 1]} : vector<2x96xf32> to vector<2x32xf32>
    %152 = vector.broadcast %139 : vector<1x32xf32> to vector<2x32xf32>
    %153 = arith.addf %151, %152 : vector<2x32xf32>
    %154 = arith.mulf %148, %153 : vector<2x32xf32>
    %155 = arith.addf %150, %154 : vector<2x32xf32>
    %156 = math.tanh %155 : vector<2x32xf32>
    %cst_47 = arith.constant 1.000000e+00 : f32
    %157 = vector.broadcast %cst_47 : f32 to vector<2x32xf32>
    %158 = arith.subf %157, %149 : vector<2x32xf32>
    %159 = arith.mulf %158, %156 : vector<2x32xf32>
    %160 = arith.mulf %149, %99 : vector<2x32xf32>
    %161 = arith.addf %159, %160 : vector<2x32xf32>
    %162 = vector.extract_strided_slice %134 {offsets = [0, 96], sizes = [2, 96], strides = [1, 1]} : vector<2x192xf32> to vector<2x96xf32>
    %163 = vector.extract_strided_slice %136 {offsets = [0, 96], sizes = [2, 96], strides = [1, 1]} : vector<2x192xf32> to vector<2x96xf32>
    %164 = vector.extract_strided_slice %4 {offsets = [0, 32], sizes = [1, 32], strides = [1, 1]} : vector<1x64xf32> to vector<1x32xf32>
    %165 = vector.extract_strided_slice %162 {offsets = [0, 0], sizes = [2, 64], strides = [1, 1]} : vector<2x96xf32> to vector<2x64xf32>
    %166 = vector.extract_strided_slice %163 {offsets = [0, 0], sizes = [2, 64], strides = [1, 1]} : vector<2x96xf32> to vector<2x64xf32>
    %167 = arith.addf %165, %166 : vector<2x64xf32>
    %168 = arith.negf %167 : vector<2x64xf32>
    %169 = math.exp %168 : vector<2x64xf32>
    %cst_48 = arith.constant 1.000000e+00 : f32
    %170 = vector.broadcast %cst_48 : f32 to vector<2x64xf32>
    %171 = arith.addf %170, %169 : vector<2x64xf32>
    %172 = arith.divf %170, %171 : vector<2x64xf32>
    %173 = vector.extract_strided_slice %172 {offsets = [0, 0], sizes = [2, 32], strides = [1, 1]} : vector<2x64xf32> to vector<2x32xf32>
    %174 = vector.extract_strided_slice %172 {offsets = [0, 32], sizes = [2, 32], strides = [1, 1]} : vector<2x64xf32> to vector<2x32xf32>
    %175 = vector.extract_strided_slice %162 {offsets = [0, 64], sizes = [2, 32], strides = [1, 1]} : vector<2x96xf32> to vector<2x32xf32>
    %176 = vector.extract_strided_slice %163 {offsets = [0, 64], sizes = [2, 32], strides = [1, 1]} : vector<2x96xf32> to vector<2x32xf32>
    %177 = vector.broadcast %164 : vector<1x32xf32> to vector<2x32xf32>
    %178 = arith.addf %176, %177 : vector<2x32xf32>
    %179 = arith.mulf %173, %178 : vector<2x32xf32>
    %180 = arith.addf %175, %179 : vector<2x32xf32>
    %181 = math.tanh %180 : vector<2x32xf32>
    %cst_49 = arith.constant 1.000000e+00 : f32
    %182 = vector.broadcast %cst_49 : f32 to vector<2x32xf32>
    %183 = arith.subf %182, %174 : vector<2x32xf32>
    %184 = arith.mulf %183, %181 : vector<2x32xf32>
    %185 = arith.mulf %174, %124 : vector<2x32xf32>
    %186 = arith.addf %184, %185 : vector<2x32xf32>
    %c2_50 = arith.constant 2 : index
    %c0_51 = arith.constant 0 : index
    %c0_52 = arith.constant 0 : index
    %187 = vector.load %arg5[%c2_50, %c0_51, %c0_52] : memref<3x2x32xf32, #tpu.memory_space<vmem>>, vector<1x2x32xf32>
    %188 = vector.shape_cast %187 : vector<1x2x32xf32> to vector<2x32xf32>
    %189 = vector.shape_cast %161 : vector<2x32xf32> to vector<1x2x32xf32>
    tpu.vector_store %arg5[%c2_50, %c0_51, %c0_52], %189 {strides = array<i32>} : memref<3x2x32xf32, #tpu.memory_space<vmem>>, vector<1x2x32xf32>,
    %c0_53 = arith.constant 0 : index
    %c0_54 = arith.constant 0 : index
    %c0_55 = arith.constant 0 : index
    %190 = vector.load %arg6[%c0_53, %c0_54, %c0_55] : memref<3x2x32xf32, #tpu.memory_space<vmem>>, vector<1x2x32xf32>
    %191 = vector.shape_cast %190 : vector<1x2x32xf32> to vector<2x32xf32>
    %192 = vector.shape_cast %186 : vector<2x32xf32> to vector<1x2x32xf32>
    tpu.vector_store %arg6[%c0_53, %c0_54, %c0_55], %192 {strides = array<i32>} : memref<3x2x32xf32, #tpu.memory_space<vmem>>, vector<1x2x32xf32>,
    %c0_56 = arith.constant 0 : index
    %c0_57 = arith.constant 0 : index
    %193 = vector.load %arg7[%c0_56, %c0_57] : memref<2x32xf32, #tpu.memory_space<vmem>>, vector<2x32xf32>
    tpu.vector_store %arg7[%c0_56, %c0_57], %161 {strides = array<i32>} : memref<2x32xf32, #tpu.memory_space<vmem>>, vector<2x32xf32>,
    %c0_58 = arith.constant 0 : index
    %c0_59 = arith.constant 0 : index
    %194 = vector.load %arg8[%c0_58, %c0_59] : memref<2x32xf32, #tpu.memory_space<vmem>>, vector<2x32xf32>
    tpu.vector_store %arg8[%c0_58, %c0_59], %186 {strides = array<i32>} : memref<2x32xf32, #tpu.memory_space<vmem>>, vector<2x32xf32>,
    return
  }
  func.func @transform_0(%arg0: i32) -> (i32, i32, i32) {
    %c0_i32 = arith.constant 0 : i32
    %c0_i32_0 = arith.constant 0 : i32
    %c0_i32_1 = arith.constant 0 : i32
    return %arg0, %c0_i32, %c0_i32_0 : i32, i32, i32
  }
  func.func @transform_1(%arg0: i32) -> (i32, i32, i32) {
    %c0_i32 = arith.constant 0 : i32
    %0 = arith.subi %c0_i32, %arg0 : i32
    %c0_i32_0 = arith.constant 0 : i32
    %c0_i32_1 = arith.constant 0 : i32
    %c0_i32_2 = arith.constant 0 : i32
    return %0, %c0_i32_0, %c0_i32_1 : i32, i32, i32
  }
  func.func @transform_2(%arg0: i32) -> (i32, i32) {
    %c0_i32 = arith.constant 0 : i32
    %c0_i32_0 = arith.constant 0 : i32
    %c0_i32_1 = arith.constant 0 : i32
    return %c0_i32, %c0_i32_0 : i32, i32
  }
  func.func @transform_3(%arg0: i32) -> (i32, i32) {
    %c0_i32 = arith.constant 0 : i32
    %c0_i32_0 = arith.constant 0 : i32
    %c0_i32_1 = arith.constant 0 : i32
    return %c0_i32, %c0_i32_0 : i32, i32
  }
  func.func @transform_4(%arg0: i32) -> (i32, i32, i32) {
    %c0_i32 = arith.constant 0 : i32
    %c0_i32_0 = arith.constant 0 : i32
    %c0_i32_1 = arith.constant 0 : i32
    return %arg0, %c0_i32, %c0_i32_0 : i32, i32, i32
  }
  func.func @transform_5(%arg0: i32) -> (i32, i32, i32) {
    %c0_i32 = arith.constant 0 : i32
    %0 = arith.subi %c0_i32, %arg0 : i32
    %c0_i32_0 = arith.constant 0 : i32
    %c0_i32_1 = arith.constant 0 : i32
    %c0_i32_2 = arith.constant 0 : i32
    return %0, %c0_i32_0, %c0_i32_1 : i32, i32, i32
  }
}

module attributes {stable_mosaic.version = 11 : i64} {
  func.func @_proj_kernel(%arg0: i32, %arg1: memref<8x32xf32, #tpu.memory_space<vmem>>, %arg2: memref<8x32xf32, #tpu.memory_space<vmem>>, %arg3: memref<8x32xf32, #tpu.memory_space<vmem>>, %arg4: memref<8x32xf32, #tpu.memory_space<vmem>>, %arg5: memref<32x192xf32, #tpu.memory_space<vmem>>, %arg6: memref<32x192xf32, #tpu.memory_space<vmem>>, %arg7: memref<32x192xf32, #tpu.memory_space<vmem>>, %arg8: memref<32x192xf32, #tpu.memory_space<vmem>>, %arg9: memref<1x192xf32, #tpu.memory_space<vmem>>, %arg10: memref<8x192xf32, #tpu.memory_space<vmem>>) attributes {dimension_semantics = [#tpu.dimension_semantics<parallel>], iteration_bounds = array<i64: 1>, scalar_prefetch = 0 : i64, scratch_operands = 0 : i64, tpu.core_type = #tpu.core_type<tc>, window_params = [{transform_indices = @transform_0, window_bounds = array<i64: 8, 32>}, {transform_indices = @transform_1, window_bounds = array<i64: 8, 32>}, {transform_indices = @transform_2, window_bounds = array<i64: 8, 32>}, {transform_indices = @transform_3, window_bounds = array<i64: 8, 32>}, {pipeline_mode = #tpu.pipeline_mode<synchronous>, transform_indices = @transform_4, window_bounds = array<i64: 32, 192>}, {pipeline_mode = #tpu.pipeline_mode<synchronous>, transform_indices = @transform_5, window_bounds = array<i64: 32, 192>}, {pipeline_mode = #tpu.pipeline_mode<synchronous>, transform_indices = @transform_6, window_bounds = array<i64: 32, 192>}, {pipeline_mode = #tpu.pipeline_mode<synchronous>, transform_indices = @transform_7, window_bounds = array<i64: 32, 192>}, {pipeline_mode = #tpu.pipeline_mode<synchronous>, transform_indices = @transform_8, window_bounds = array<i64: 1, 192>}, {transform_indices = @transform_9, window_bounds = array<i64: 8, 192>}]} {
    %c0 = arith.constant 0 : index
    %c0_0 = arith.constant 0 : index
    %0 = vector.load %arg1[%c0, %c0_0] : memref<8x32xf32, #tpu.memory_space<vmem>>, vector<8x32xf32>
    %c0_1 = arith.constant 0 : index
    %c0_2 = arith.constant 0 : index
    %1 = vector.load %arg5[%c0_1, %c0_2] : memref<32x192xf32, #tpu.memory_space<vmem>>, vector<32x192xf32>
    %cst = arith.constant dense<0.000000e+00> : vector<8x192xf32>
    %2 = tpu.matmul %0, %1, %cst {dimension_numbers = #tpu.dot_dimension_numbers<[1], [0], [0], [1], [0, 0, 1, 1], [], []>} : vector<8x32xf32>, vector<32x192xf32>, vector<8x192xf32> -> vector<8x192xf32>
    %c0_3 = arith.constant 0 : index
    %c0_4 = arith.constant 0 : index
    %3 = vector.load %arg2[%c0_3, %c0_4] : memref<8x32xf32, #tpu.memory_space<vmem>>, vector<8x32xf32>
    %c0_5 = arith.constant 0 : index
    %c0_6 = arith.constant 0 : index
    %4 = vector.load %arg6[%c0_5, %c0_6] : memref<32x192xf32, #tpu.memory_space<vmem>>, vector<32x192xf32>
    %cst_7 = arith.constant dense<0.000000e+00> : vector<8x192xf32>
    %5 = tpu.matmul %3, %4, %cst_7 {dimension_numbers = #tpu.dot_dimension_numbers<[1], [0], [0], [1], [0, 0, 1, 1], [], []>} : vector<8x32xf32>, vector<32x192xf32>, vector<8x192xf32> -> vector<8x192xf32>
    %6 = arith.addf %2, %5 : vector<8x192xf32>
    %c0_8 = arith.constant 0 : index
    %c0_9 = arith.constant 0 : index
    %7 = vector.load %arg3[%c0_8, %c0_9] : memref<8x32xf32, #tpu.memory_space<vmem>>, vector<8x32xf32>
    %c0_10 = arith.constant 0 : index
    %c0_11 = arith.constant 0 : index
    %8 = vector.load %arg7[%c0_10, %c0_11] : memref<32x192xf32, #tpu.memory_space<vmem>>, vector<32x192xf32>
    %cst_12 = arith.constant dense<0.000000e+00> : vector<8x192xf32>
    %9 = tpu.matmul %7, %8, %cst_12 {dimension_numbers = #tpu.dot_dimension_numbers<[1], [0], [0], [1], [0, 0, 1, 1], [], []>} : vector<8x32xf32>, vector<32x192xf32>, vector<8x192xf32> -> vector<8x192xf32>
    %10 = arith.addf %6, %9 : vector<8x192xf32>
    %c0_13 = arith.constant 0 : index
    %c0_14 = arith.constant 0 : index
    %11 = vector.load %arg4[%c0_13, %c0_14] : memref<8x32xf32, #tpu.memory_space<vmem>>, vector<8x32xf32>
    %c0_15 = arith.constant 0 : index
    %c0_16 = arith.constant 0 : index
    %12 = vector.load %arg8[%c0_15, %c0_16] : memref<32x192xf32, #tpu.memory_space<vmem>>, vector<32x192xf32>
    %cst_17 = arith.constant dense<0.000000e+00> : vector<8x192xf32>
    %13 = tpu.matmul %11, %12, %cst_17 {dimension_numbers = #tpu.dot_dimension_numbers<[1], [0], [0], [1], [0, 0, 1, 1], [], []>} : vector<8x32xf32>, vector<32x192xf32>, vector<8x192xf32> -> vector<8x192xf32>
    %14 = arith.addf %10, %13 : vector<8x192xf32>
    %c0_18 = arith.constant 0 : index
    %c0_19 = arith.constant 0 : index
    %15 = vector.load %arg9[%c0_18, %c0_19] : memref<1x192xf32, #tpu.memory_space<vmem>>, vector<1x192xf32>
    %16 = vector.broadcast %15 : vector<1x192xf32> to vector<8x192xf32>
    %17 = arith.addf %14, %16 : vector<8x192xf32>
    %c0_20 = arith.constant 0 : index
    %c0_21 = arith.constant 0 : index
    %18 = vector.load %arg10[%c0_20, %c0_21] : memref<8x192xf32, #tpu.memory_space<vmem>>, vector<8x192xf32>
    tpu.vector_store %arg10[%c0_20, %c0_21], %17 {strides = array<i32>} : memref<8x192xf32, #tpu.memory_space<vmem>>, vector<8x192xf32>,
    return
  }
  func.func @transform_0(%arg0: i32) -> (i32, i32) {
    %c0_i32 = arith.constant 0 : i32
    %c0_i32_0 = arith.constant 0 : i32
    return %arg0, %c0_i32 : i32, i32
  }
  func.func @transform_1(%arg0: i32) -> (i32, i32) {
    %c0_i32 = arith.constant 0 : i32
    %c0_i32_0 = arith.constant 0 : i32
    return %arg0, %c0_i32 : i32, i32
  }
  func.func @transform_2(%arg0: i32) -> (i32, i32) {
    %c0_i32 = arith.constant 0 : i32
    %c0_i32_0 = arith.constant 0 : i32
    return %arg0, %c0_i32 : i32, i32
  }
  func.func @transform_3(%arg0: i32) -> (i32, i32) {
    %c0_i32 = arith.constant 0 : i32
    %c0_i32_0 = arith.constant 0 : i32
    return %arg0, %c0_i32 : i32, i32
  }
  func.func @transform_4(%arg0: i32) -> (i32, i32) {
    %c0_i32 = arith.constant 0 : i32
    %c0_i32_0 = arith.constant 0 : i32
    %c0_i32_1 = arith.constant 0 : i32
    return %c0_i32, %c0_i32_0 : i32, i32
  }
  func.func @transform_5(%arg0: i32) -> (i32, i32) {
    %c0_i32 = arith.constant 0 : i32
    %c0_i32_0 = arith.constant 0 : i32
    %c0_i32_1 = arith.constant 0 : i32
    return %c0_i32, %c0_i32_0 : i32, i32
  }
  func.func @transform_6(%arg0: i32) -> (i32, i32) {
    %c0_i32 = arith.constant 0 : i32
    %c0_i32_0 = arith.constant 0 : i32
    %c0_i32_1 = arith.constant 0 : i32
    return %c0_i32, %c0_i32_0 : i32, i32
  }
  func.func @transform_7(%arg0: i32) -> (i32, i32) {
    %c0_i32 = arith.constant 0 : i32
    %c0_i32_0 = arith.constant 0 : i32
    %c0_i32_1 = arith.constant 0 : i32
    return %c0_i32, %c0_i32_0 : i32, i32
  }
  func.func @transform_8(%arg0: i32) -> (i32, i32) {
    %c0_i32 = arith.constant 0 : i32
    %c0_i32_0 = arith.constant 0 : i32
    %c0_i32_1 = arith.constant 0 : i32
    return %c0_i32, %c0_i32_0 : i32, i32
  }
  func.func @transform_9(%arg0: i32) -> (i32, i32) {
    %c0_i32 = arith.constant 0 : i32
    %c0_i32_0 = arith.constant 0 : i32
    return %arg0, %c0_i32 : i32, i32
  }
}

module attributes {stable_mosaic.version = 11 : i64} {
  func.func @_proj_kernel(%arg0: i32, %arg1: memref<8x32xf32, #tpu.memory_space<vmem>>, %arg2: memref<8x32xf32, #tpu.memory_space<vmem>>, %arg3: memref<8x32xf32, #tpu.memory_space<vmem>>, %arg4: memref<8x32xf32, #tpu.memory_space<vmem>>, %arg5: memref<8x32xf32, #tpu.memory_space<vmem>>, %arg6: memref<8x32xf32, #tpu.memory_space<vmem>>, %arg7: memref<32x192xf32, #tpu.memory_space<vmem>>, %arg8: memref<32x192xf32, #tpu.memory_space<vmem>>, %arg9: memref<32x192xf32, #tpu.memory_space<vmem>>, %arg10: memref<32x192xf32, #tpu.memory_space<vmem>>, %arg11: memref<32x192xf32, #tpu.memory_space<vmem>>, %arg12: memref<32x192xf32, #tpu.memory_space<vmem>>, %arg13: memref<1x192xf32, #tpu.memory_space<vmem>>, %arg14: memref<8x192xf32, #tpu.memory_space<vmem>>) attributes {dimension_semantics = [#tpu.dimension_semantics<parallel>], iteration_bounds = array<i64: 1>, scalar_prefetch = 0 : i64, scratch_operands = 0 : i64, tpu.core_type = #tpu.core_type<tc>, window_params = [{transform_indices = @transform_0, window_bounds = array<i64: 8, 32>}, {transform_indices = @transform_1, window_bounds = array<i64: 8, 32>}, {transform_indices = @transform_2, window_bounds = array<i64: 8, 32>}, {transform_indices = @transform_3, window_bounds = array<i64: 8, 32>}, {transform_indices = @transform_4, window_bounds = array<i64: 8, 32>}, {transform_indices = @transform_5, window_bounds = array<i64: 8, 32>}, {pipeline_mode = #tpu.pipeline_mode<synchronous>, transform_indices = @transform_6, window_bounds = array<i64: 32, 192>}, {pipeline_mode = #tpu.pipeline_mode<synchronous>, transform_indices = @transform_7, window_bounds = array<i64: 32, 192>}, {pipeline_mode = #tpu.pipeline_mode<synchronous>, transform_indices = @transform_8, window_bounds = array<i64: 32, 192>}, {pipeline_mode = #tpu.pipeline_mode<synchronous>, transform_indices = @transform_9, window_bounds = array<i64: 32, 192>}, {pipeline_mode = #tpu.pipeline_mode<synchronous>, transform_indices = @transform_10, window_bounds = array<i64: 32, 192>}, {pipeline_mode = #tpu.pipeline_mode<synchronous>, transform_indices = @transform_11, window_bounds = array<i64: 32, 192>}, {pipeline_mode = #tpu.pipeline_mode<synchronous>, transform_indices = @transform_12, window_bounds = array<i64: 1, 192>}, {transform_indices = @transform_13, window_bounds = array<i64: 8, 192>}]} {
    %c0 = arith.constant 0 : index
    %c0_0 = arith.constant 0 : index
    %0 = vector.load %arg1[%c0, %c0_0] : memref<8x32xf32, #tpu.memory_space<vmem>>, vector<8x32xf32>
    %c0_1 = arith.constant 0 : index
    %c0_2 = arith.constant 0 : index
    %1 = vector.load %arg7[%c0_1, %c0_2] : memref<32x192xf32, #tpu.memory_space<vmem>>, vector<32x192xf32>
    %cst = arith.constant dense<0.000000e+00> : vector<8x192xf32>
    %2 = tpu.matmul %0, %1, %cst {dimension_numbers = #tpu.dot_dimension_numbers<[1], [0], [0], [1], [0, 0, 1, 1], [], []>} : vector<8x32xf32>, vector<32x192xf32>, vector<8x192xf32> -> vector<8x192xf32>
    %c0_3 = arith.constant 0 : index
    %c0_4 = arith.constant 0 : index
    %3 = vector.load %arg2[%c0_3, %c0_4] : memref<8x32xf32, #tpu.memory_space<vmem>>, vector<8x32xf32>
    %c0_5 = arith.constant 0 : index
    %c0_6 = arith.constant 0 : index
    %4 = vector.load %arg8[%c0_5, %c0_6] : memref<32x192xf32, #tpu.memory_space<vmem>>, vector<32x192xf32>
    %cst_7 = arith.constant dense<0.000000e+00> : vector<8x192xf32>
    %5 = tpu.matmul %3, %4, %cst_7 {dimension_numbers = #tpu.dot_dimension_numbers<[1], [0], [0], [1], [0, 0, 1, 1], [], []>} : vector<8x32xf32>, vector<32x192xf32>, vector<8x192xf32> -> vector<8x192xf32>
    %6 = arith.addf %2, %5 : vector<8x192xf32>
    %c0_8 = arith.constant 0 : index
    %c0_9 = arith.constant 0 : index
    %7 = vector.load %arg3[%c0_8, %c0_9] : memref<8x32xf32, #tpu.memory_space<vmem>>, vector<8x32xf32>
    %c0_10 = arith.constant 0 : index
    %c0_11 = arith.constant 0 : index
    %8 = vector.load %arg9[%c0_10, %c0_11] : memref<32x192xf32, #tpu.memory_space<vmem>>, vector<32x192xf32>
    %cst_12 = arith.constant dense<0.000000e+00> : vector<8x192xf32>
    %9 = tpu.matmul %7, %8, %cst_12 {dimension_numbers = #tpu.dot_dimension_numbers<[1], [0], [0], [1], [0, 0, 1, 1], [], []>} : vector<8x32xf32>, vector<32x192xf32>, vector<8x192xf32> -> vector<8x192xf32>
    %10 = arith.addf %6, %9 : vector<8x192xf32>
    %c0_13 = arith.constant 0 : index
    %c0_14 = arith.constant 0 : index
    %11 = vector.load %arg4[%c0_13, %c0_14] : memref<8x32xf32, #tpu.memory_space<vmem>>, vector<8x32xf32>
    %c0_15 = arith.constant 0 : index
    %c0_16 = arith.constant 0 : index
    %12 = vector.load %arg10[%c0_15, %c0_16] : memref<32x192xf32, #tpu.memory_space<vmem>>, vector<32x192xf32>
    %cst_17 = arith.constant dense<0.000000e+00> : vector<8x192xf32>
    %13 = tpu.matmul %11, %12, %cst_17 {dimension_numbers = #tpu.dot_dimension_numbers<[1], [0], [0], [1], [0, 0, 1, 1], [], []>} : vector<8x32xf32>, vector<32x192xf32>, vector<8x192xf32> -> vector<8x192xf32>
    %14 = arith.addf %10, %13 : vector<8x192xf32>
    %c0_18 = arith.constant 0 : index
    %c0_19 = arith.constant 0 : index
    %15 = vector.load %arg5[%c0_18, %c0_19] : memref<8x32xf32, #tpu.memory_space<vmem>>, vector<8x32xf32>
    %c0_20 = arith.constant 0 : index
    %c0_21 = arith.constant 0 : index
    %16 = vector.load %arg11[%c0_20, %c0_21] : memref<32x192xf32, #tpu.memory_space<vmem>>, vector<32x192xf32>
    %cst_22 = arith.constant dense<0.000000e+00> : vector<8x192xf32>
    %17 = tpu.matmul %15, %16, %cst_22 {dimension_numbers = #tpu.dot_dimension_numbers<[1], [0], [0], [1], [0, 0, 1, 1], [], []>} : vector<8x32xf32>, vector<32x192xf32>, vector<8x192xf32> -> vector<8x192xf32>
    %18 = arith.addf %14, %17 : vector<8x192xf32>
    %c0_23 = arith.constant 0 : index
    %c0_24 = arith.constant 0 : index
    %19 = vector.load %arg6[%c0_23, %c0_24] : memref<8x32xf32, #tpu.memory_space<vmem>>, vector<8x32xf32>
    %c0_25 = arith.constant 0 : index
    %c0_26 = arith.constant 0 : index
    %20 = vector.load %arg12[%c0_25, %c0_26] : memref<32x192xf32, #tpu.memory_space<vmem>>, vector<32x192xf32>
    %cst_27 = arith.constant dense<0.000000e+00> : vector<8x192xf32>
    %21 = tpu.matmul %19, %20, %cst_27 {dimension_numbers = #tpu.dot_dimension_numbers<[1], [0], [0], [1], [0, 0, 1, 1], [], []>} : vector<8x32xf32>, vector<32x192xf32>, vector<8x192xf32> -> vector<8x192xf32>
    %22 = arith.addf %18, %21 : vector<8x192xf32>
    %c0_28 = arith.constant 0 : index
    %c0_29 = arith.constant 0 : index
    %23 = vector.load %arg13[%c0_28, %c0_29] : memref<1x192xf32, #tpu.memory_space<vmem>>, vector<1x192xf32>
    %24 = vector.broadcast %23 : vector<1x192xf32> to vector<8x192xf32>
    %25 = arith.addf %22, %24 : vector<8x192xf32>
    %c0_30 = arith.constant 0 : index
    %c0_31 = arith.constant 0 : index
    %26 = vector.load %arg14[%c0_30, %c0_31] : memref<8x192xf32, #tpu.memory_space<vmem>>, vector<8x192xf32>
    tpu.vector_store %arg14[%c0_30, %c0_31], %25 {strides = array<i32>} : memref<8x192xf32, #tpu.memory_space<vmem>>, vector<8x192xf32>,
    return
  }
  func.func @transform_0(%arg0: i32) -> (i32, i32) {
    %c0_i32 = arith.constant 0 : i32
    %c0_i32_0 = arith.constant 0 : i32
    return %arg0, %c0_i32 : i32, i32
  }
  func.func @transform_1(%arg0: i32) -> (i32, i32) {
    %c0_i32 = arith.constant 0 : i32
    %c0_i32_0 = arith.constant 0 : i32
    return %arg0, %c0_i32 : i32, i32
  }
  func.func @transform_2(%arg0: i32) -> (i32, i32) {
    %c0_i32 = arith.constant 0 : i32
    %c0_i32_0 = arith.constant 0 : i32
    return %arg0, %c0_i32 : i32, i32
  }
  func.func @transform_3(%arg0: i32) -> (i32, i32) {
    %c0_i32 = arith.constant 0 : i32
    %c0_i32_0 = arith.constant 0 : i32
    return %arg0, %c0_i32 : i32, i32
  }
  func.func @transform_4(%arg0: i32) -> (i32, i32) {
    %c0_i32 = arith.constant 0 : i32
    %c0_i32_0 = arith.constant 0 : i32
    return %arg0, %c0_i32 : i32, i32
  }
  func.func @transform_5(%arg0: i32) -> (i32, i32) {
    %c0_i32 = arith.constant 0 : i32
    %c0_i32_0 = arith.constant 0 : i32
    return %arg0, %c0_i32 : i32, i32
  }
  func.func @transform_6(%arg0: i32) -> (i32, i32) {
    %c0_i32 = arith.constant 0 : i32
    %c0_i32_0 = arith.constant 0 : i32
    %c0_i32_1 = arith.constant 0 : i32
    return %c0_i32, %c0_i32_0 : i32, i32
  }
  func.func @transform_7(%arg0: i32) -> (i32, i32) {
    %c0_i32 = arith.constant 0 : i32
    %c0_i32_0 = arith.constant 0 : i32
    %c0_i32_1 = arith.constant 0 : i32
    return %c0_i32, %c0_i32_0 : i32, i32
  }
  func.func @transform_8(%arg0: i32) -> (i32, i32) {
    %c0_i32 = arith.constant 0 : i32
    %c0_i32_0 = arith.constant 0 : i32
    %c0_i32_1 = arith.constant 0 : i32
    return %c0_i32, %c0_i32_0 : i32, i32
  }
  func.func @transform_9(%arg0: i32) -> (i32, i32) {
    %c0_i32 = arith.constant 0 : i32
    %c0_i32_0 = arith.constant 0 : i32
    %c0_i32_1 = arith.constant 0 : i32
    return %c0_i32, %c0_i32_0 : i32, i32
  }
  func.func @transform_10(%arg0: i32) -> (i32, i32) {
    %c0_i32 = arith.constant 0 : i32
    %c0_i32_0 = arith.constant 0 : i32
    %c0_i32_1 = arith.constant 0 : i32
    return %c0_i32, %c0_i32_0 : i32, i32
  }
  func.func @transform_11(%arg0: i32) -> (i32, i32) {
    %c0_i32 = arith.constant 0 : i32
    %c0_i32_0 = arith.constant 0 : i32
    %c0_i32_1 = arith.constant 0 : i32
    return %c0_i32, %c0_i32_0 : i32, i32
  }
  func.func @transform_12(%arg0: i32) -> (i32, i32) {
    %c0_i32 = arith.constant 0 : i32
    %c0_i32_0 = arith.constant 0 : i32
    %c0_i32_1 = arith.constant 0 : i32
    return %c0_i32, %c0_i32_0 : i32, i32
  }
  func.func @transform_13(%arg0: i32) -> (i32, i32) {
    %c0_i32 = arith.constant 0 : i32
    %c0_i32_0 = arith.constant 0 : i32
    return %arg0, %c0_i32 : i32, i32
  }
}

module attributes {stable_mosaic.version = 11 : i64} {
  func.func @_bigru_pool_kernel(%arg0: i32, %arg1: memref<3x2x192xf32, #tpu.memory_space<vmem>>, %arg2: memref<3x2x192xf32, #tpu.memory_space<vmem>>, %arg3: memref<64x192xf32, #tpu.memory_space<vmem>>, %arg4: memref<1x64xf32, #tpu.memory_space<vmem>>, %arg5: memref<2x64xf32, #tpu.memory_space<vmem>>, %arg6: memref<2x32xf32, #tpu.memory_space<vmem>>, %arg7: memref<2x32xf32, #tpu.memory_space<vmem>>, %arg8: memref<2x64xf32, #tpu.memory_space<vmem>>) attributes {dimension_semantics = [#tpu.dimension_semantics<arbitrary>], iteration_bounds = array<i64: 1>, scalar_prefetch = 0 : i64, scratch_operands = 3 : i64, tpu.core_type = #tpu.core_type<tc>, window_params = [{transform_indices = @transform_0, window_bounds = array<i64: 3, 2, 192>}, {transform_indices = @transform_1, window_bounds = array<i64: 3, 2, 192>}, {pipeline_mode = #tpu.pipeline_mode<synchronous>, transform_indices = @transform_2, window_bounds = array<i64: 64, 192>}, {pipeline_mode = #tpu.pipeline_mode<synchronous>, transform_indices = @transform_3, window_bounds = array<i64: 1, 64>}, {pipeline_mode = #tpu.pipeline_mode<synchronous>, transform_indices = @transform_4, window_bounds = array<i64: 2, 64>}]} {
    %c0_i32 = arith.constant 0 : i32
    %0 = arith.cmpi eq, %arg0, %c0_i32 : i32
    %1 = arith.extui %0 : i1 to i32
    %c0_i32_0 = arith.constant 0 : i32
    %2 = arith.cmpi ne, %1, %c0_i32_0 : i32
    scf.if %2 {
      %cst_48 = arith.constant 0.000000e+00 : f32
      %188 = vector.broadcast %cst_48 : f32 to vector<2x32xf32>
      %c0_49 = arith.constant 0 : index
      %c0_50 = arith.constant 0 : index
      %189 = vector.load %arg6[%c0_49, %c0_50] : memref<2x32xf32, #tpu.memory_space<vmem>>, vector<2x32xf32>
      tpu.vector_store %arg6[%c0_49, %c0_50], %188 {strides = array<i32>} : memref<2x32xf32, #tpu.memory_space<vmem>>, vector<2x32xf32>,
      %cst_51 = arith.constant 0.000000e+00 : f32
      %190 = vector.broadcast %cst_51 : f32 to vector<2x32xf32>
      %c0_52 = arith.constant 0 : index
      %c0_53 = arith.constant 0 : index
      %191 = vector.load %arg7[%c0_52, %c0_53] : memref<2x32xf32, #tpu.memory_space<vmem>>, vector<2x32xf32>
      tpu.vector_store %arg7[%c0_52, %c0_53], %190 {strides = array<i32>} : memref<2x32xf32, #tpu.memory_space<vmem>>, vector<2x32xf32>,
      %cst_54 = arith.constant 0.000000e+00 : f32
      %192 = vector.broadcast %cst_54 : f32 to vector<2x64xf32>
      %c0_55 = arith.constant 0 : index
      %c0_56 = arith.constant 0 : index
      %193 = vector.load %arg8[%c0_55, %c0_56] : memref<2x64xf32, #tpu.memory_space<vmem>>, vector<2x64xf32>
      tpu.vector_store %arg8[%c0_55, %c0_56], %192 {strides = array<i32>} : memref<2x64xf32, #tpu.memory_space<vmem>>, vector<2x64xf32>,
    } else {
    }
    %c0 = arith.constant 0 : index
    %c0_1 = arith.constant 0 : index
    %3 = vector.load %arg3[%c0, %c0_1] : memref<64x192xf32, #tpu.memory_space<vmem>>, vector<64x192xf32>
    %c0_2 = arith.constant 0 : index
    %c0_3 = arith.constant 0 : index
    %4 = vector.load %arg4[%c0_2, %c0_3] : memref<1x64xf32, #tpu.memory_space<vmem>>, vector<1x64xf32>
    %c0_4 = arith.constant 0 : index
    %c0_5 = arith.constant 0 : index
    %5 = vector.load %arg6[%c0_4, %c0_5] : memref<2x32xf32, #tpu.memory_space<vmem>>, vector<2x32xf32>
    %c0_6 = arith.constant 0 : index
    %c0_7 = arith.constant 0 : index
    %6 = vector.load %arg7[%c0_6, %c0_7] : memref<2x32xf32, #tpu.memory_space<vmem>>, vector<2x32xf32>
    %c0_8 = arith.constant 0 : index
    %c0_9 = arith.constant 0 : index
    %7 = vector.load %arg8[%c0_8, %c0_9] : memref<2x64xf32, #tpu.memory_space<vmem>>, vector<2x64xf32>
    %c0_10 = arith.constant 0 : index
    %c0_11 = arith.constant 0 : index
    %c0_12 = arith.constant 0 : index
    %8 = vector.load %arg1[%c0_10, %c0_11, %c0_12] : memref<3x2x192xf32, #tpu.memory_space<vmem>>, vector<1x2x192xf32>
    %9 = vector.shape_cast %8 : vector<1x2x192xf32> to vector<2x192xf32>
    %c2 = arith.constant 2 : index
    %c0_13 = arith.constant 0 : index
    %c0_14 = arith.constant 0 : index
    %10 = vector.load %arg2[%c2, %c0_13, %c0_14] : memref<3x2x192xf32, #tpu.memory_space<vmem>>, vector<1x2x192xf32>
    %11 = vector.shape_cast %10 : vector<1x2x192xf32> to vector<2x192xf32>
    %12 = tpu.concatenate %5, %6 in 1 : vector<2x32xf32>, vector<2x32xf32> -> vector<2x64xf32>
    %cst = arith.constant dense<0.000000e+00> : vector<2x192xf32>
    %13 = tpu.matmul %12, %3, %cst {dimension_numbers = #tpu.dot_dimension_numbers<[1], [0], [0], [1], [0, 0, 1, 1], [], []>} : vector<2x64xf32>, vector<64x192xf32>, vector<2x192xf32> -> vector<2x192xf32>
    %14 = vector.extract_strided_slice %9 {offsets = [0, 0], sizes = [2, 96], strides = [1, 1]} : vector<2x192xf32> to vector<2x96xf32>
    %15 = vector.extract_strided_slice %13 {offsets = [0, 0], sizes = [2, 96], strides = [1, 1]} : vector<2x192xf32> to vector<2x96xf32>
    %16 = vector.extract_strided_slice %4 {offsets = [0, 0], sizes = [1, 32], strides = [1, 1]} : vector<1x64xf32> to vector<1x32xf32>
    %17 = vector.extract_strided_slice %14 {offsets = [0, 0], sizes = [2, 64], strides = [1, 1]} : vector<2x96xf32> to vector<2x64xf32>
    %18 = vector.extract_strided_slice %15 {offsets = [0, 0], sizes = [2, 64], strides = [1, 1]} : vector<2x96xf32> to vector<2x64xf32>
    %19 = arith.addf %17, %18 : vector<2x64xf32>
    %20 = arith.negf %19 : vector<2x64xf32>
    %21 = math.exp %20 : vector<2x64xf32>
    %cst_15 = arith.constant 1.000000e+00 : f32
    %22 = vector.broadcast %cst_15 : f32 to vector<2x64xf32>
    %23 = arith.addf %22, %21 : vector<2x64xf32>
    %24 = arith.divf %22, %23 : vector<2x64xf32>
    %25 = vector.extract_strided_slice %24 {offsets = [0, 0], sizes = [2, 32], strides = [1, 1]} : vector<2x64xf32> to vector<2x32xf32>
    %26 = vector.extract_strided_slice %24 {offsets = [0, 32], sizes = [2, 32], strides = [1, 1]} : vector<2x64xf32> to vector<2x32xf32>
    %27 = vector.extract_strided_slice %14 {offsets = [0, 64], sizes = [2, 32], strides = [1, 1]} : vector<2x96xf32> to vector<2x32xf32>
    %28 = vector.extract_strided_slice %15 {offsets = [0, 64], sizes = [2, 32], strides = [1, 1]} : vector<2x96xf32> to vector<2x32xf32>
    %29 = vector.broadcast %16 : vector<1x32xf32> to vector<2x32xf32>
    %30 = arith.addf %28, %29 : vector<2x32xf32>
    %31 = arith.mulf %25, %30 : vector<2x32xf32>
    %32 = arith.addf %27, %31 : vector<2x32xf32>
    %33 = math.tanh %32 : vector<2x32xf32>
    %cst_16 = arith.constant 1.000000e+00 : f32
    %34 = vector.broadcast %cst_16 : f32 to vector<2x32xf32>
    %35 = arith.subf %34, %26 : vector<2x32xf32>
    %36 = arith.mulf %35, %33 : vector<2x32xf32>
    %37 = arith.mulf %26, %5 : vector<2x32xf32>
    %38 = arith.addf %36, %37 : vector<2x32xf32>
    %39 = vector.extract_strided_slice %11 {offsets = [0, 96], sizes = [2, 96], strides = [1, 1]} : vector<2x192xf32> to vector<2x96xf32>
    %40 = vector.extract_strided_slice %13 {offsets = [0, 96], sizes = [2, 96], strides = [1, 1]} : vector<2x192xf32> to vector<2x96xf32>
    %41 = vector.extract_strided_slice %4 {offsets = [0, 32], sizes = [1, 32], strides = [1, 1]} : vector<1x64xf32> to vector<1x32xf32>
    %42 = vector.extract_strided_slice %39 {offsets = [0, 0], sizes = [2, 64], strides = [1, 1]} : vector<2x96xf32> to vector<2x64xf32>
    %43 = vector.extract_strided_slice %40 {offsets = [0, 0], sizes = [2, 64], strides = [1, 1]} : vector<2x96xf32> to vector<2x64xf32>
    %44 = arith.addf %42, %43 : vector<2x64xf32>
    %45 = arith.negf %44 : vector<2x64xf32>
    %46 = math.exp %45 : vector<2x64xf32>
    %cst_17 = arith.constant 1.000000e+00 : f32
    %47 = vector.broadcast %cst_17 : f32 to vector<2x64xf32>
    %48 = arith.addf %47, %46 : vector<2x64xf32>
    %49 = arith.divf %47, %48 : vector<2x64xf32>
    %50 = vector.extract_strided_slice %49 {offsets = [0, 0], sizes = [2, 32], strides = [1, 1]} : vector<2x64xf32> to vector<2x32xf32>
    %51 = vector.extract_strided_slice %49 {offsets = [0, 32], sizes = [2, 32], strides = [1, 1]} : vector<2x64xf32> to vector<2x32xf32>
    %52 = vector.extract_strided_slice %39 {offsets = [0, 64], sizes = [2, 32], strides = [1, 1]} : vector<2x96xf32> to vector<2x32xf32>
    %53 = vector.extract_strided_slice %40 {offsets = [0, 64], sizes = [2, 32], strides = [1, 1]} : vector<2x96xf32> to vector<2x32xf32>
    %54 = vector.broadcast %41 : vector<1x32xf32> to vector<2x32xf32>
    %55 = arith.addf %53, %54 : vector<2x32xf32>
    %56 = arith.mulf %50, %55 : vector<2x32xf32>
    %57 = arith.addf %52, %56 : vector<2x32xf32>
    %58 = math.tanh %57 : vector<2x32xf32>
    %cst_18 = arith.constant 1.000000e+00 : f32
    %59 = vector.broadcast %cst_18 : f32 to vector<2x32xf32>
    %60 = arith.subf %59, %51 : vector<2x32xf32>
    %61 = arith.mulf %60, %58 : vector<2x32xf32>
    %62 = arith.mulf %51, %6 : vector<2x32xf32>
    %63 = arith.addf %61, %62 : vector<2x32xf32>
    %64 = tpu.concatenate %38, %63 in 1 : vector<2x32xf32>, vector<2x32xf32> -> vector<2x64xf32>
    %65 = arith.addf %7, %64 : vector<2x64xf32>
    %c1 = arith.constant 1 : index
    %c0_19 = arith.constant 0 : index
    %c0_20 = arith.constant 0 : index
    %66 = vector.load %arg1[%c1, %c0_19, %c0_20] : memref<3x2x192xf32, #tpu.memory_space<vmem>>, vector<1x2x192xf32>
    %67 = vector.shape_cast %66 : vector<1x2x192xf32> to vector<2x192xf32>
    %c1_21 = arith.constant 1 : index
    %c0_22 = arith.constant 0 : index
    %c0_23 = arith.constant 0 : index
    %68 = vector.load %arg2[%c1_21, %c0_22, %c0_23] : memref<3x2x192xf32, #tpu.memory_space<vmem>>, vector<1x2x192xf32>
    %69 = vector.shape_cast %68 : vector<1x2x192xf32> to vector<2x192xf32>
    %70 = tpu.concatenate %38, %63 in 1 : vector<2x32xf32>, vector<2x32xf32> -> vector<2x64xf32>
    %cst_24 = arith.constant dense<0.000000e+00> : vector<2x192xf32>
    %71 = tpu.matmul %70, %3, %cst_24 {dimension_numbers = #tpu.dot_dimension_numbers<[1], [0], [0], [1], [0, 0, 1, 1], [], []>} : vector<2x64xf32>, vector<64x192xf32>, vector<2x192xf32> -> vector<2x192xf32>
    %72 = vector.extract_strided_slice %67 {offsets = [0, 0], sizes = [2, 96], strides = [1, 1]} : vector<2x192xf32> to vector<2x96xf32>
    %73 = vector.extract_strided_slice %71 {offsets = [0, 0], sizes = [2, 96], strides = [1, 1]} : vector<2x192xf32> to vector<2x96xf32>
    %74 = vector.extract_strided_slice %4 {offsets = [0, 0], sizes = [1, 32], strides = [1, 1]} : vector<1x64xf32> to vector<1x32xf32>
    %75 = vector.extract_strided_slice %72 {offsets = [0, 0], sizes = [2, 64], strides = [1, 1]} : vector<2x96xf32> to vector<2x64xf32>
    %76 = vector.extract_strided_slice %73 {offsets = [0, 0], sizes = [2, 64], strides = [1, 1]} : vector<2x96xf32> to vector<2x64xf32>
    %77 = arith.addf %75, %76 : vector<2x64xf32>
    %78 = arith.negf %77 : vector<2x64xf32>
    %79 = math.exp %78 : vector<2x64xf32>
    %cst_25 = arith.constant 1.000000e+00 : f32
    %80 = vector.broadcast %cst_25 : f32 to vector<2x64xf32>
    %81 = arith.addf %80, %79 : vector<2x64xf32>
    %82 = arith.divf %80, %81 : vector<2x64xf32>
    %83 = vector.extract_strided_slice %82 {offsets = [0, 0], sizes = [2, 32], strides = [1, 1]} : vector<2x64xf32> to vector<2x32xf32>
    %84 = vector.extract_strided_slice %82 {offsets = [0, 32], sizes = [2, 32], strides = [1, 1]} : vector<2x64xf32> to vector<2x32xf32>
    %85 = vector.extract_strided_slice %72 {offsets = [0, 64], sizes = [2, 32], strides = [1, 1]} : vector<2x96xf32> to vector<2x32xf32>
    %86 = vector.extract_strided_slice %73 {offsets = [0, 64], sizes = [2, 32], strides = [1, 1]} : vector<2x96xf32> to vector<2x32xf32>
    %87 = vector.broadcast %74 : vector<1x32xf32> to vector<2x32xf32>
    %88 = arith.addf %86, %87 : vector<2x32xf32>
    %89 = arith.mulf %83, %88 : vector<2x32xf32>
    %90 = arith.addf %85, %89 : vector<2x32xf32>
    %91 = math.tanh %90 : vector<2x32xf32>
    %cst_26 = arith.constant 1.000000e+00 : f32
    %92 = vector.broadcast %cst_26 : f32 to vector<2x32xf32>
    %93 = arith.subf %92, %84 : vector<2x32xf32>
    %94 = arith.mulf %93, %91 : vector<2x32xf32>
    %95 = arith.mulf %84, %38 : vector<2x32xf32>
    %96 = arith.addf %94, %95 : vector<2x32xf32>
    %97 = vector.extract_strided_slice %69 {offsets = [0, 96], sizes = [2, 96], strides = [1, 1]} : vector<2x192xf32> to vector<2x96xf32>
    %98 = vector.extract_strided_slice %71 {offsets = [0, 96], sizes = [2, 96], strides = [1, 1]} : vector<2x192xf32> to vector<2x96xf32>
    %99 = vector.extract_strided_slice %4 {offsets = [0, 32], sizes = [1, 32], strides = [1, 1]} : vector<1x64xf32> to vector<1x32xf32>
    %100 = vector.extract_strided_slice %97 {offsets = [0, 0], sizes = [2, 64], strides = [1, 1]} : vector<2x96xf32> to vector<2x64xf32>
    %101 = vector.extract_strided_slice %98 {offsets = [0, 0], sizes = [2, 64], strides = [1, 1]} : vector<2x96xf32> to vector<2x64xf32>
    %102 = arith.addf %100, %101 : vector<2x64xf32>
    %103 = arith.negf %102 : vector<2x64xf32>
    %104 = math.exp %103 : vector<2x64xf32>
    %cst_27 = arith.constant 1.000000e+00 : f32
    %105 = vector.broadcast %cst_27 : f32 to vector<2x64xf32>
    %106 = arith.addf %105, %104 : vector<2x64xf32>
    %107 = arith.divf %105, %106 : vector<2x64xf32>
    %108 = vector.extract_strided_slice %107 {offsets = [0, 0], sizes = [2, 32], strides = [1, 1]} : vector<2x64xf32> to vector<2x32xf32>
    %109 = vector.extract_strided_slice %107 {offsets = [0, 32], sizes = [2, 32], strides = [1, 1]} : vector<2x64xf32> to vector<2x32xf32>
    %110 = vector.extract_strided_slice %97 {offsets = [0, 64], sizes = [2, 32], strides = [1, 1]} : vector<2x96xf32> to vector<2x32xf32>
    %111 = vector.extract_strided_slice %98 {offsets = [0, 64], sizes = [2, 32], strides = [1, 1]} : vector<2x96xf32> to vector<2x32xf32>
    %112 = vector.broadcast %99 : vector<1x32xf32> to vector<2x32xf32>
    %113 = arith.addf %111, %112 : vector<2x32xf32>
    %114 = arith.mulf %108, %113 : vector<2x32xf32>
    %115 = arith.addf %110, %114 : vector<2x32xf32>
    %116 = math.tanh %115 : vector<2x32xf32>
    %cst_28 = arith.constant 1.000000e+00 : f32
    %117 = vector.broadcast %cst_28 : f32 to vector<2x32xf32>
    %118 = arith.subf %117, %109 : vector<2x32xf32>
    %119 = arith.mulf %118, %116 : vector<2x32xf32>
    %120 = arith.mulf %109, %63 : vector<2x32xf32>
    %121 = arith.addf %119, %120 : vector<2x32xf32>
    %122 = tpu.concatenate %96, %121 in 1 : vector<2x32xf32>, vector<2x32xf32> -> vector<2x64xf32>
    %123 = arith.addf %65, %122 : vector<2x64xf32>
    %c2_29 = arith.constant 2 : index
    %c0_30 = arith.constant 0 : index
    %c0_31 = arith.constant 0 : index
    %124 = vector.load %arg1[%c2_29, %c0_30, %c0_31] : memref<3x2x192xf32, #tpu.memory_space<vmem>>, vector<1x2x192xf32>
    %125 = vector.shape_cast %124 : vector<1x2x192xf32> to vector<2x192xf32>
    %c0_32 = arith.constant 0 : index
    %c0_33 = arith.constant 0 : index
    %c0_34 = arith.constant 0 : index
    %126 = vector.load %arg2[%c0_32, %c0_33, %c0_34] : memref<3x2x192xf32, #tpu.memory_space<vmem>>, vector<1x2x192xf32>
    %127 = vector.shape_cast %126 : vector<1x2x192xf32> to vector<2x192xf32>
    %128 = tpu.concatenate %96, %121 in 1 : vector<2x32xf32>, vector<2x32xf32> -> vector<2x64xf32>
    %cst_35 = arith.constant dense<0.000000e+00> : vector<2x192xf32>
    %129 = tpu.matmul %128, %3, %cst_35 {dimension_numbers = #tpu.dot_dimension_numbers<[1], [0], [0], [1], [0, 0, 1, 1], [], []>} : vector<2x64xf32>, vector<64x192xf32>, vector<2x192xf32> -> vector<2x192xf32>
    %130 = vector.extract_strided_slice %125 {offsets = [0, 0], sizes = [2, 96], strides = [1, 1]} : vector<2x192xf32> to vector<2x96xf32>
    %131 = vector.extract_strided_slice %129 {offsets = [0, 0], sizes = [2, 96], strides = [1, 1]} : vector<2x192xf32> to vector<2x96xf32>
    %132 = vector.extract_strided_slice %4 {offsets = [0, 0], sizes = [1, 32], strides = [1, 1]} : vector<1x64xf32> to vector<1x32xf32>
    %133 = vector.extract_strided_slice %130 {offsets = [0, 0], sizes = [2, 64], strides = [1, 1]} : vector<2x96xf32> to vector<2x64xf32>
    %134 = vector.extract_strided_slice %131 {offsets = [0, 0], sizes = [2, 64], strides = [1, 1]} : vector<2x96xf32> to vector<2x64xf32>
    %135 = arith.addf %133, %134 : vector<2x64xf32>
    %136 = arith.negf %135 : vector<2x64xf32>
    %137 = math.exp %136 : vector<2x64xf32>
    %cst_36 = arith.constant 1.000000e+00 : f32
    %138 = vector.broadcast %cst_36 : f32 to vector<2x64xf32>
    %139 = arith.addf %138, %137 : vector<2x64xf32>
    %140 = arith.divf %138, %139 : vector<2x64xf32>
    %141 = vector.extract_strided_slice %140 {offsets = [0, 0], sizes = [2, 32], strides = [1, 1]} : vector<2x64xf32> to vector<2x32xf32>
    %142 = vector.extract_strided_slice %140 {offsets = [0, 32], sizes = [2, 32], strides = [1, 1]} : vector<2x64xf32> to vector<2x32xf32>
    %143 = vector.extract_strided_slice %130 {offsets = [0, 64], sizes = [2, 32], strides = [1, 1]} : vector<2x96xf32> to vector<2x32xf32>
    %144 = vector.extract_strided_slice %131 {offsets = [0, 64], sizes = [2, 32], strides = [1, 1]} : vector<2x96xf32> to vector<2x32xf32>
    %145 = vector.broadcast %132 : vector<1x32xf32> to vector<2x32xf32>
    %146 = arith.addf %144, %145 : vector<2x32xf32>
    %147 = arith.mulf %141, %146 : vector<2x32xf32>
    %148 = arith.addf %143, %147 : vector<2x32xf32>
    %149 = math.tanh %148 : vector<2x32xf32>
    %cst_37 = arith.constant 1.000000e+00 : f32
    %150 = vector.broadcast %cst_37 : f32 to vector<2x32xf32>
    %151 = arith.subf %150, %142 : vector<2x32xf32>
    %152 = arith.mulf %151, %149 : vector<2x32xf32>
    %153 = arith.mulf %142, %96 : vector<2x32xf32>
    %154 = arith.addf %152, %153 : vector<2x32xf32>
    %155 = vector.extract_strided_slice %127 {offsets = [0, 96], sizes = [2, 96], strides = [1, 1]} : vector<2x192xf32> to vector<2x96xf32>
    %156 = vector.extract_strided_slice %129 {offsets = [0, 96], sizes = [2, 96], strides = [1, 1]} : vector<2x192xf32> to vector<2x96xf32>
    %157 = vector.extract_strided_slice %4 {offsets = [0, 32], sizes = [1, 32], strides = [1, 1]} : vector<1x64xf32> to vector<1x32xf32>
    %158 = vector.extract_strided_slice %155 {offsets = [0, 0], sizes = [2, 64], strides = [1, 1]} : vector<2x96xf32> to vector<2x64xf32>
    %159 = vector.extract_strided_slice %156 {offsets = [0, 0], sizes = [2, 64], strides = [1, 1]} : vector<2x96xf32> to vector<2x64xf32>
    %160 = arith.addf %158, %159 : vector<2x64xf32>
    %161 = arith.negf %160 : vector<2x64xf32>
    %162 = math.exp %161 : vector<2x64xf32>
    %cst_38 = arith.constant 1.000000e+00 : f32
    %163 = vector.broadcast %cst_38 : f32 to vector<2x64xf32>
    %164 = arith.addf %163, %162 : vector<2x64xf32>
    %165 = arith.divf %163, %164 : vector<2x64xf32>
    %166 = vector.extract_strided_slice %165 {offsets = [0, 0], sizes = [2, 32], strides = [1, 1]} : vector<2x64xf32> to vector<2x32xf32>
    %167 = vector.extract_strided_slice %165 {offsets = [0, 32], sizes = [2, 32], strides = [1, 1]} : vector<2x64xf32> to vector<2x32xf32>
    %168 = vector.extract_strided_slice %155 {offsets = [0, 64], sizes = [2, 32], strides = [1, 1]} : vector<2x96xf32> to vector<2x32xf32>
    %169 = vector.extract_strided_slice %156 {offsets = [0, 64], sizes = [2, 32], strides = [1, 1]} : vector<2x96xf32> to vector<2x32xf32>
    %170 = vector.broadcast %157 : vector<1x32xf32> to vector<2x32xf32>
    %171 = arith.addf %169, %170 : vector<2x32xf32>
    %172 = arith.mulf %166, %171 : vector<2x32xf32>
    %173 = arith.addf %168, %172 : vector<2x32xf32>
    %174 = math.tanh %173 : vector<2x32xf32>
    %cst_39 = arith.constant 1.000000e+00 : f32
    %175 = vector.broadcast %cst_39 : f32 to vector<2x32xf32>
    %176 = arith.subf %175, %167 : vector<2x32xf32>
    %177 = arith.mulf %176, %174 : vector<2x32xf32>
    %178 = arith.mulf %167, %121 : vector<2x32xf32>
    %179 = arith.addf %177, %178 : vector<2x32xf32>
    %180 = tpu.concatenate %154, %179 in 1 : vector<2x32xf32>, vector<2x32xf32> -> vector<2x64xf32>
    %181 = arith.addf %123, %180 : vector<2x64xf32>
    %c0_40 = arith.constant 0 : index
    %c0_41 = arith.constant 0 : index
    %182 = vector.load %arg6[%c0_40, %c0_41] : memref<2x32xf32, #tpu.memory_space<vmem>>, vector<2x32xf32>
    tpu.vector_store %arg6[%c0_40, %c0_41], %154 {strides = array<i32>} : memref<2x32xf32, #tpu.memory_space<vmem>>, vector<2x32xf32>,
    %c0_42 = arith.constant 0 : index
    %c0_43 = arith.constant 0 : index
    %183 = vector.load %arg7[%c0_42, %c0_43] : memref<2x32xf32, #tpu.memory_space<vmem>>, vector<2x32xf32>
    tpu.vector_store %arg7[%c0_42, %c0_43], %179 {strides = array<i32>} : memref<2x32xf32, #tpu.memory_space<vmem>>, vector<2x32xf32>,
    %c0_44 = arith.constant 0 : index
    %c0_45 = arith.constant 0 : index
    %184 = vector.load %arg8[%c0_44, %c0_45] : memref<2x64xf32, #tpu.memory_space<vmem>>, vector<2x64xf32>
    tpu.vector_store %arg8[%c0_44, %c0_45], %181 {strides = array<i32>} : memref<2x64xf32, #tpu.memory_space<vmem>>, vector<2x64xf32>,
    %c0_i32_46 = arith.constant 0 : i32
    %185 = arith.cmpi eq, %arg0, %c0_i32_46 : i32
    %186 = arith.extui %185 : i1 to i32
    %c0_i32_47 = arith.constant 0 : i32
    %187 = arith.cmpi ne, %186, %c0_i32_47 : i32
    scf.if %187 {
      %c0_48 = arith.constant 0 : index
      %c0_49 = arith.constant 0 : index
      %188 = vector.load %arg8[%c0_48, %c0_49] : memref<2x64xf32, #tpu.memory_space<vmem>>, vector<2x64xf32>
      %cst_50 = arith.constant 0.333333343 : f32
      %189 = vector.broadcast %cst_50 : f32 to vector<2x64xf32>
      %190 = arith.mulf %188, %189 : vector<2x64xf32>
      %c0_51 = arith.constant 0 : index
      %c0_52 = arith.constant 0 : index
      %191 = vector.load %arg5[%c0_51, %c0_52] : memref<2x64xf32, #tpu.memory_space<vmem>>, vector<2x64xf32>
      tpu.vector_store %arg5[%c0_51, %c0_52], %190 {strides = array<i32>} : memref<2x64xf32, #tpu.memory_space<vmem>>, vector<2x64xf32>,
    } else {
    }
    return
  }
  func.func @transform_0(%arg0: i32) -> (i32, i32, i32) {
    %c0_i32 = arith.constant 0 : i32
    %c0_i32_0 = arith.constant 0 : i32
    %c0_i32_1 = arith.constant 0 : i32
    return %arg0, %c0_i32, %c0_i32_0 : i32, i32, i32
  }
  func.func @transform_1(%arg0: i32) -> (i32, i32, i32) {
    %c0_i32 = arith.constant 0 : i32
    %0 = arith.subi %c0_i32, %arg0 : i32
    %c0_i32_0 = arith.constant 0 : i32
    %c0_i32_1 = arith.constant 0 : i32
    %c0_i32_2 = arith.constant 0 : i32
    return %0, %c0_i32_0, %c0_i32_1 : i32, i32, i32
  }
  func.func @transform_2(%arg0: i32) -> (i32, i32) {
    %c0_i32 = arith.constant 0 : i32
    %c0_i32_0 = arith.constant 0 : i32
    %c0_i32_1 = arith.constant 0 : i32
    return %c0_i32, %c0_i32_0 : i32, i32
  }
  func.func @transform_3(%arg0: i32) -> (i32, i32) {
    %c0_i32 = arith.constant 0 : i32
    %c0_i32_0 = arith.constant 0 : i32
    %c0_i32_1 = arith.constant 0 : i32
    return %c0_i32, %c0_i32_0 : i32, i32
  }
  func.func @transform_4(%arg0: i32) -> (i32, i32) {
    %c0_i32 = arith.constant 0 : i32
    %c0_i32_0 = arith.constant 0 : i32
    %c0_i32_1 = arith.constant 0 : i32
    return %c0_i32, %c0_i32_0 : i32, i32
  }
}

module attributes {stable_mosaic.version = 11 : i64} {
  func.func @_fc_head_kernel(%arg0: memref<2x64xf32, #tpu.memory_space<vmem>>, %arg1: memref<64x128xf32, #tpu.memory_space<vmem>>, %arg2: memref<1x128xf32, #tpu.memory_space<vmem>>, %arg3: memref<128x64xf32, #tpu.memory_space<vmem>>, %arg4: memref<1x64xf32, #tpu.memory_space<vmem>>, %arg5: memref<64x20xf32, #tpu.memory_space<vmem>>, %arg6: memref<1x20xf32, #tpu.memory_space<vmem>>, %arg7: memref<20x4xf32, #tpu.memory_space<vmem>>, %arg8: memref<1x4xf32, #tpu.memory_space<vmem>>, %arg9: memref<2x4xf32, #tpu.memory_space<vmem>>) attributes {dimension_semantics = [], scalar_prefetch = 0 : i64, scratch_operands = 0 : i64, tpu.core_type = #tpu.core_type<tc>} {
    %c0 = arith.constant 0 : index
    %c0_0 = arith.constant 0 : index
    %0 = vector.load %arg0[%c0, %c0_0] : memref<2x64xf32, #tpu.memory_space<vmem>>, vector<2x64xf32>
    %c0_1 = arith.constant 0 : index
    %c0_2 = arith.constant 0 : index
    %1 = vector.load %arg1[%c0_1, %c0_2] : memref<64x128xf32, #tpu.memory_space<vmem>>, vector<64x128xf32>
    %cst = arith.constant dense<0.000000e+00> : vector<2x128xf32>
    %2 = tpu.matmul %0, %1, %cst {dimension_numbers = #tpu.dot_dimension_numbers<[1], [0], [0], [1], [0, 0, 1, 1], [], []>} : vector<2x64xf32>, vector<64x128xf32>, vector<2x128xf32> -> vector<2x128xf32>
    %c0_3 = arith.constant 0 : index
    %c0_4 = arith.constant 0 : index
    %3 = vector.load %arg2[%c0_3, %c0_4] : memref<1x128xf32, #tpu.memory_space<vmem>>, vector<1x128xf32>
    %4 = vector.broadcast %3 : vector<1x128xf32> to vector<2x128xf32>
    %5 = arith.addf %2, %4 : vector<2x128xf32>
    %cst_5 = arith.constant 0.000000e+00 : f32
    %6 = vector.broadcast %cst_5 : f32 to vector<2x128xf32>
    %7 = arith.maximumf %5, %6 : vector<2x128xf32>
    %c0_6 = arith.constant 0 : index
    %c0_7 = arith.constant 0 : index
    %8 = vector.load %arg3[%c0_6, %c0_7] : memref<128x64xf32, #tpu.memory_space<vmem>>, vector<128x64xf32>
    %cst_8 = arith.constant dense<0.000000e+00> : vector<2x64xf32>
    %9 = tpu.matmul %7, %8, %cst_8 {dimension_numbers = #tpu.dot_dimension_numbers<[1], [0], [0], [1], [0, 0, 1, 1], [], []>} : vector<2x128xf32>, vector<128x64xf32>, vector<2x64xf32> -> vector<2x64xf32>
    %c0_9 = arith.constant 0 : index
    %c0_10 = arith.constant 0 : index
    %10 = vector.load %arg4[%c0_9, %c0_10] : memref<1x64xf32, #tpu.memory_space<vmem>>, vector<1x64xf32>
    %11 = vector.broadcast %10 : vector<1x64xf32> to vector<2x64xf32>
    %12 = arith.addf %9, %11 : vector<2x64xf32>
    %cst_11 = arith.constant 0.000000e+00 : f32
    %13 = vector.broadcast %cst_11 : f32 to vector<2x64xf32>
    %14 = arith.maximumf %12, %13 : vector<2x64xf32>
    %c0_12 = arith.constant 0 : index
    %c0_13 = arith.constant 0 : index
    %15 = vector.load %arg5[%c0_12, %c0_13] : memref<64x20xf32, #tpu.memory_space<vmem>>, vector<64x20xf32>
    %cst_14 = arith.constant dense<0.000000e+00> : vector<2x20xf32>
    %16 = tpu.matmul %14, %15, %cst_14 {dimension_numbers = #tpu.dot_dimension_numbers<[1], [0], [0], [1], [0, 0, 1, 1], [], []>} : vector<2x64xf32>, vector<64x20xf32>, vector<2x20xf32> -> vector<2x20xf32>
    %c0_15 = arith.constant 0 : index
    %c0_16 = arith.constant 0 : index
    %17 = vector.load %arg6[%c0_15, %c0_16] : memref<1x20xf32, #tpu.memory_space<vmem>>, vector<1x20xf32>
    %18 = vector.broadcast %17 : vector<1x20xf32> to vector<2x20xf32>
    %19 = arith.addf %16, %18 : vector<2x20xf32>
    %cst_17 = arith.constant 0.000000e+00 : f32
    %20 = vector.broadcast %cst_17 : f32 to vector<2x20xf32>
    %21 = arith.maximumf %19, %20 : vector<2x20xf32>
    %c0_18 = arith.constant 0 : index
    %c0_19 = arith.constant 0 : index
    %22 = vector.load %arg7[%c0_18, %c0_19] : memref<20x4xf32, #tpu.memory_space<vmem>>, vector<20x4xf32>
    %cst_20 = arith.constant dense<0.000000e+00> : vector<2x4xf32>
    %23 = tpu.matmul %21, %22, %cst_20 {dimension_numbers = #tpu.dot_dimension_numbers<[1], [0], [0], [1], [0, 0, 1, 1], [], []>} : vector<2x20xf32>, vector<20x4xf32>, vector<2x4xf32> -> vector<2x4xf32>
    %c0_21 = arith.constant 0 : index
    %c0_22 = arith.constant 0 : index
    %24 = vector.load %arg8[%c0_21, %c0_22] : memref<1x4xf32, #tpu.memory_space<vmem>>, vector<1x4xf32>
    %25 = vector.broadcast %24 : vector<1x4xf32> to vector<2x4xf32>
    %26 = arith.addf %23, %25 : vector<2x4xf32>
    %c0_23 = arith.constant 0 : index
    %c0_24 = arith.constant 0 : index
    %27 = vector.load %arg9[%c0_23, %c0_24] : memref<2x4xf32, #tpu.memory_space<vmem>>, vector<2x4xf32>
    tpu.vector_store %arg9[%c0_23, %c0_24], %26 {strides = array<i32>} : memref<2x4xf32, #tpu.memory_space<vmem>>, vector<2x4xf32>,
    return
  }
}

</mosaic_0001>

<bundles_post_ra>
// kernel: chrononet_forward.16
= control target key start
LH: loop header
LB: loop body
LE: loop exit
PB: predicated region body
PF: predicated region fallthrough
CT: control target
= control target key end

     0   :  { %s901_s15 = smov 0   ;;  %s1056_s0 = inlined_call_operand.vmem [shape: f32[2,36,4], index: 0, kind: input, shape index: {}]   ;;  %s1057_s1 = inlined_call_operand.vmem [shape: f32[2,36,4], index: 1, kind: input, shape index: {}]   ;;  %s1058_s2 = inlined_call_operand.vmem [shape: f32[8,4,24], index: 2, kind: input, shape index: {}]   ;;  %s1059_s3 = inlined_call_operand.vmem [shape: f32[1,24], index: 3, kind: input, shape index: {}]   ;;  %s1060_s4 = inlined_call_operand.vmem [shape: f32[2,33,24], index: 4, kind: output, shape index: {}]  }
   0x1 LB: > { %s793_s16 = sadd.s32 4294967295, %s874_s15   ;;  %p797_p0 = scmp.ge.s32.totalorder %s874_s15, 1  ;;  %s874_s15 = sphi %s901_s15, %s14_s15  }
   0x2   : > { %p172_p1 = scmp.lt.s32.totalorder %s874_s15, 3 }
   0x4   : > { %p173_p2 = pnand %p797_p0, %p172_p1 }
   0x5   : > { %p203_p3 = scmp.lt.s32.totalorder (!%p173_p2), %s793_s16, 1 }
   0x6   : > { %176 = sbr.rel (%p173_p2) target bundleno = 232 (0xe8), region = 36 }
   0xb   : > { %v801_v0 = vld [vmem:[%s1058_s2 + $0x4] sm:$0xf]  ;;  %vm247_vm0 = vcmask 1043456   ;;  %v814_v1 = vld [vmem:[%s1058_s2 + $0x8] sm:$0xf]  ;;  %s1062_s16 = smov (!%p203_p3, %s793_s16), 1 }
   0xc   : > { %802 = vmatpush.msk.msra.mxu0 %vm247_vm0, %v801_v0  ;;  %815 = vmatpush.msk.msra.mxu2 %vm247_vm0, %v814_v1  ;;  %v842_v2 = vld [vmem:[%s1058_s2 + $0x18] sm:$0xf]  ;;  %v223_v3 = vld [vmem:[%s1058_s2] sm:$0xf]  ;;  %v821_v4 = vld [vmem:[%s1058_s2 + $0xc] sm:$0xf] }
   0xd   : > { %808 = vmatpush.msk.msra.mxu1 %vm247_vm0, %v223_v3  ;;  %v828_v5 = vld [vmem:[%s1058_s2 + $0x10] sm:$0xf]  ;;  %822 = vmatpush.msk.msra.mxu3 %vm247_vm0, %v821_v4  ;;  %v849_v6 = vld [vmem:[%s1058_s2 + $0x1c] sm:$0xf]  ;;  %v835_v7 = vld [vmem:[%s1058_s2 + $0x14] sm:$0xf] }
   0xe   : > { %843 = vmatpush.msk.msrb.mxu2 %vm247_vm0, %v842_v2  ;;  %829 = vmatpush.msk.msrb.mxu0 %vm247_vm0, %v828_v5  ;;  %s939_s7 = smul.u32 40, %s1062_s16  ;;  %vm231_vm1 = vcmask 31744   ;;  %vm719_vm2 = vcmask 195584   ;;  %vm724_vm3 = vcmask 188416  }
   0xf   : > { %850 = vmatpush.msk.msrb.mxu3 %vm247_vm0, %v849_v6  ;;  %836 = vmatpush.msk.msrb.mxu1 %vm247_vm0, %v835_v7 }
  0x10   : > { %s947_s10 = scalar_lea.vmem %s1057_s1, %s939_s7  ;;  %s953_s13 = scalar_lea.vmem %s1056_s0, %s939_s7 }
  0x11   : > { %v224_v8 = vld [vmem:[%s947_s10] sm:$0xff]  ;;  %v225_v12 = vld [vmem:[%s947_s10 + $0x8] sm:$0xff]  ;;  %v226_v16 = vld [vmem:[%s947_s10 + $0x10] sm:$0xff]  ;;  %s1042_s19 = scalar_lea.vmem %s1060_s4, %s939_s7 }
  0x12   : > { %v333_v9 = vld [vmem:[%s953_s13 + $0x1] sm:$0xff]  ;;  %803 = vmatmul.msk.f32.vlgmr.msra.gmra.mxu0 %vm231_vm1, %v224_v8  ;;  %v334_v13 = vld [vmem:[%s953_s13 + $0x9] sm:$0xff]  ;;  %v335_v17 = vld [vmem:[%s953_s13 + $0x11] sm:$0xff] }
  0x13   : > { %v218_v10 = vld [vmem:[%s953_s13] sm:$0xff]  ;;  %816 = vmatmul.msk.f32.vlgmr.msra.gmra.mxu2 %vm231_vm1, %v333_v9  ;;  %v219_v14 = vld [vmem:[%s953_s13 + $0x8] sm:$0xff]  ;;  %v220_v18 = vld [vmem:[%s953_s13 + $0x10] sm:$0xff] }
  0x14   : > { %v395_v11 = vld [vmem:[%s947_s10 + $0x1] sm:$0xff]  ;;  %809 = vmatmul.msk.f32.vlgmr.msra.gmra.mxu1 %vm231_vm1, %v218_v10  ;;  %v396_v15 = vld [vmem:[%s947_s10 + $0x9] sm:$0xff]  ;;  %v397_v19 = vld [vmem:[%s947_s10 + $0x11] sm:$0xff] }
  0x15   : > { %823 = vmatmul.msk.f32.vlgmr.msra.gmra.mxu3 %vm231_vm1, %v395_v11  ;;  %v227_v20 = vld [vmem:[%s947_s10 + $0x18] sm:$0xff]  ;;  %v228_v24 = vld [vmem:[%s947_s10 + $0x20] sm:$0x1]  ;;  %v337_v25 = vld [vmem:[%s953_s13 + $0x21] sm:$0x1] }
  0x16   : > { %v336_v21 = vld [vmem:[%s953_s13 + $0x19] sm:$0xff]  ;;  %v399_v27 = vld [vmem:[%s947_s10 + $0x21] sm:$0x1]  ;;  %v457_v28 = vld [vmem:[%s953_s13 + $0x2] sm:$0xff] }
  0x17   : > { %v221_v22 = vld [vmem:[%s953_s13 + $0x18] sm:$0xff]  ;;  %v222_v26 = vld [vmem:[%s953_s13 + $0x20] sm:$0x1]  ;;  %v581_v29 = vld [vmem:[%s953_s13 + $0x3] sm:$0xff] }
  0x18   : > { %v398_v23 = vld [vmem:[%s947_s10 + $0x19] sm:$0xff]  ;;  %v519_v30 = vld [vmem:[%s947_s10 + $0x2] sm:$0xff]  ;;  %v458_v32 = vld [vmem:[%s953_s13 + $0xa] sm:$0xff] }
  0x19   : > { %v643_v31 = vld [vmem:[%s947_s10 + $0x3] sm:$0xff]  ;;  %v582_v33 = vld [vmem:[%s953_s13 + $0xb] sm:$0xff]  ;;  %v583_v37 = vld [vmem:[%s953_s13 + $0x13] sm:$0xff] }
  0x1a   : > { %804 = vmatmul.msk.f32.gmra.mxu0 %vm231_vm1, %v225_v12  ;;  %v520_v34 = vld [vmem:[%s947_s10 + $0xa] sm:$0xff]  ;;  %v459_v36 = vld [vmem:[%s953_s13 + $0x12] sm:$0xff]  ;;  %v460_v40 = vld [vmem:[%s953_s13 + $0x1a] sm:$0xff] }
  0x1b   : > { %817 = vmatmul.msk.f32.gmra.mxu2 %vm231_vm1, %v334_v13  ;;  %v644_v35 = vld [vmem:[%s947_s10 + $0xb] sm:$0xff]  ;;  %v645_v39 = vld [vmem:[%s947_s10 + $0x13] sm:$0xff]  ;;  %v584_v41 = vld [vmem:[%s953_s13 + $0x1b] sm:$0xff] }
  0x1c   : > { %810 = vmatmul.msk.f32.gmra.mxu1 %vm231_vm1, %v219_v14  ;;  %v521_v38 = vld [vmem:[%s947_s10 + $0x12] sm:$0xff]  ;;  %v522_v42 = vld [vmem:[%s947_s10 + $0x1a] sm:$0xff]  ;;  %v461_v44 = vld [vmem:[%s953_s13 + $0x22] sm:$0x1] }
  0x1d   : > { %824 = vmatmul.msk.f32.gmra.mxu3 %vm231_vm1, %v396_v15  ;;  %v646_v43 = vld [vmem:[%s947_s10 + $0x1b] sm:$0xff]  ;;  %v585_v45 = vld [vmem:[%s953_s13 + $0x23] sm:$0x1] }
  0x1e   : > { %v523_v46 = vld [vmem:[%s947_s10 + $0x22] sm:$0x1]  ;;  %v647_v47 = vld [vmem:[%s947_s10 + $0x23] sm:$0x1] }
  0x22   : > { %805 = vmatmul.msk.f32.gmra.mxu0 %vm231_vm1, %v226_v16 }
  0x23   : > { %818 = vmatmul.msk.f32.gmra.mxu2 %vm231_vm1, %v335_v17  ;;  %v867_v17 = vld [vmem:[%s1059_s3] ss:$0 sm:$0xff] }
  0x24   : > { %811 = vmatmul.msk.f32.gmra.mxu1 %vm231_vm1, %v220_v18 }
  0x25   : > { %825 = vmatmul.msk.f32.gmra.mxu3 %vm231_vm1, %v397_v19 }
  0x2a   : > { %806 = vmatmul.msk.f32.gmra.mxu0 %vm231_vm1, %v227_v20 }
  0x2b   : > { %819 = vmatmul.msk.f32.gmra.mxu2 %vm231_vm1, %v336_v21 }
  0x2c   : > { %812 = vmatmul.msk.f32.gmra.mxu1 %vm231_vm1, %v221_v22 }
  0x2d   : > { %826 = vmatmul.msk.f32.gmra.mxu3 %vm231_vm1, %v398_v23 }
  0x32   : > { %807 = vmatmul.msk.f32.gmra.mxu0 %vm231_vm1, %v228_v24 }
  0x33   : > { %820 = vmatmul.msk.f32.gmra.mxu2 %vm231_vm1, %v337_v25 }
  0x34   : > { %813 = vmatmul.msk.f32.gmra.mxu1 %vm231_vm1, %v222_v26 }
  0x35   : > { %827 = vmatmul.msk.f32.gmra.mxu3 %vm231_vm1, %v399_v27 }
  0x3a   : > { %830 = vmatmul.msk.f32.vlgmr.msrb.gmra.mxu0 %vm231_vm1, %v457_v28 }
  0x3b   : > { %844 = vmatmul.msk.f32.vlgmr.msrb.gmra.mxu2 %vm231_vm1, %v581_v29 }
  0x3c   : > { %837 = vmatmul.msk.f32.vlgmr.msrb.gmra.mxu1 %vm231_vm1, %v519_v30 }
  0x3d   : > { %851 = vmatmul.msk.f32.vlgmr.msrb.gmra.mxu3 %vm231_vm1, %v643_v31 }
  0x42   : > { %831 = vmatmul.msk.f32.gmra.mxu0 %vm231_vm1, %v458_v32 }
  0x43   : > { %845 = vmatmul.msk.f32.gmra.mxu2 %vm231_vm1, %v582_v33 }
  0x44   : > { %838 = vmatmul.msk.f32.gmra.mxu1 %vm231_vm1, %v520_v34 }
  0x45   : > { %852 = vmatmul.msk.f32.gmra.mxu3 %vm231_vm1, %v644_v35 }
  0x4a   : > { %832 = vmatmul.msk.f32.gmra.mxu0 %vm231_vm1, %v459_v36 }
  0x4b   : > { %846 = vmatmul.msk.f32.gmra.mxu2 %vm231_vm1, %v583_v37 }
  0x4c   : > { %839 = vmatmul.msk.f32.gmra.mxu1 %vm231_vm1, %v521_v38 }
  0x4d   : > { %853 = vmatmul.msk.f32.gmra.mxu3 %vm231_vm1, %v645_v39 }
  0x52   : > { %833 = vmatmul.msk.f32.gmra.mxu0 %vm231_vm1, %v460_v40 }
  0x53   : > { %847 = vmatmul.msk.f32.gmra.mxu2 %vm231_vm1, %v584_v41 }
  0x54   : > { %840 = vmatmul.msk.f32.gmra.mxu1 %vm231_vm1, %v522_v42 }
  0x55   : > { %854 = vmatmul.msk.f32.gmra.mxu3 %vm231_vm1, %v646_v43 }
  0x5a   : > { %834 = vmatmul.msk.f32.gmra.mxu0 %vm231_vm1, %v461_v44 }
  0x5b   : > { %848 = vmatmul.msk.f32.gmra.mxu2 %vm231_vm1, %v585_v45 }
  0x5c   : > { %841 = vmatmul.msk.f32.gmra.mxu1 %vm231_vm1, %v523_v46 }
  0x5d   : > { %855 = vmatmul.msk.f32.gmra.mxu3 %vm231_vm1, %v647_v47 }
  0x8f   : > { %v268_v48 = vpop.f32.mrf.mxu0 }
  0x91   : > { %v318_v49 = vpop.f32.mrf.mxu1 }
  0x92   : > { %v319_v1 = vadd.f32 %v318_v49, %v268_v48 }
  0x96   : > { %v375_v50 = vpop.f32.mrf.mxu2 }
  0x97   : > { %v271_v52 = vpop.f32.mrf.mxu0  ;;  %v390_v3 = vadd.f32 %v375_v50, %v319_v1 }
  0x98   : > { %v437_v51 = vpop.f32.mrf.mxu3 }
  0x99   : > { %v321_v53 = vpop.f32.mrf.mxu1  ;;  %v452_v5 = vadd.f32 %v437_v51, %v390_v3 }
  0x9a   : > { %v322_v8 = vadd.f32 %v321_v53, %v271_v52 }
  0x9e   : > { %v378_v54 = vpop.f32.mrf.mxu2 }
  0x9f   : > { %v274_v56 = vpop.f32.mrf.mxu0  ;;  %v391_v11 = vadd.f32 %v378_v54, %v322_v8 }
  0xa0   : > { %v440_v55 = vpop.f32.mrf.mxu3 }
  0xa1   : > { %v324_v57 = vpop.f32.mrf.mxu1  ;;  %v453_v14 = vadd.f32 %v440_v55, %v391_v11 }
  0xa2   : > { %v325_v19 = vadd.f32 %v324_v57, %v274_v56 }
  0xa6   : > { %v381_v58 = vpop.f32.mrf.mxu2 }
  0xa7   : > { %v277_v60 = vpop.f32.mrf.mxu0  ;;  %v392_v23 = vadd.f32 %v381_v58, %v325_v19 }
  0xa8   : > { %v443_v59 = vpop.f32.mrf.mxu3 }
  0xa9   : > { %v327_v61 = vpop.f32.mrf.mxu1  ;;  %v454_v28 = vadd.f32 %v443_v59, %v392_v23 }
  0xaa   : > { %v328_v32 = vadd.f32 %v327_v61, %v277_v60 }
  0xae   : > { %v384_v62 = vpop.f32.mrf.mxu2 }
  0xaf   : > { %v280_v0 = vpop.f32.mrf.mxu0  ;;  %v393_v36 = vadd.f32 %v384_v62, %v328_v32 }
  0xb0   : > { %v446_v63 = vpop.f32.mrf.mxu3 }
  0xb1   : > { %v330_v2 = vpop.f32.mrf.mxu1  ;;  %v455_v41 = vadd.f32 %v446_v63, %v393_v36 }
  0xb2   : > { %v331_v45 = vadd.f32 %v330_v2, %v280_v0 }
  0xb6   : > { %v387_v4 = vpop.f32.mrf.mxu2 }
  0xb7   : > { %v499_v7 = vpop.f32.mrf.mxu0  ;;  %v394_v49 = vadd.f32 %v387_v4, %v331_v45 }
  0xb8   : > { %v449_v6 = vpop.f32.mrf.mxu3  ;;  %v514_v9 = vadd.f32 %v499_v7, %v452_v5 }
  0xb9   : > { %v561_v10 = vpop.f32.mrf.mxu1  ;;  %v456_v54 = vadd.f32 %v449_v6, %v394_v49 }
  0xba   : > { %v576_v12 = vadd.f32 %v561_v10, %v514_v9 }
  0xbe   : > { %v623_v13 = vpop.f32.mrf.mxu2 }
  0xbf   : > { %v638_v15 = vadd.f32 %v623_v13, %v576_v12  ;;  %v502_v18 = vpop.f32.mrf.mxu0 }
  0xc0   : > { %v685_v16 = vpop.f32.mrf.mxu3  ;;  %v515_v20 = vadd.f32 %v502_v18, %v453_v14 }
  0xc1   : > { %v700_v21 = vadd.f32 %v685_v16, %v638_v15  ;;  %v564_v22 = vpop.f32.mrf.mxu1 }
  0xc2   : > { %v577_v26 = vadd.f32 %v564_v22, %v515_v20 }
  0xc3   : > { %v709_v24 = vadd.f32 %v867_v17, %v700_v21 }
  0xc5   : > { %v714_v25 = vmax.f32 %v709_v24, 0.0 }
  0xc6   : > { %v626_v27 = vpop.f32.mrf.mxu2 }
  0xc7   : > { %720 = vst.msk [vmem:[%s1042_s19] sm:$0xff] %vm719_vm2, %v714_v25  ;;  %v639_v29 = vadd.f32 %v626_v27, %v577_v26  ;;  %v505_v31 = vpop.f32.mrf.mxu0 }
  0xc8   : > { %v688_v30 = vpop.f32.mrf.mxu3  ;;  %v516_v33 = vadd.f32 %v505_v31, %v454_v28 }
  0xc9   : > { %v701_v34 = vadd.f32 %v688_v30, %v639_v29  ;;  %v567_v35 = vpop.f32.mrf.mxu1 }
  0xca   : > { %v578_v39 = vadd.f32 %v567_v35, %v516_v33 }
  0xcb   : > { %v710_v37 = vadd.f32 %v867_v17, %v701_v34 }
  0xcd   : > { %v715_v38 = vmax.f32 %v710_v37, 0.0 }
  0xce   : > { %v629_v40 = vpop.f32.mrf.mxu2 }
  0xcf   : > { %721 = vst.msk [vmem:[%s1042_s19 + $0x8] sm:$0xff] %vm719_vm2, %v715_v38  ;;  %v640_v42 = vadd.f32 %v629_v40, %v578_v39  ;;  %v508_v44 = vpop.f32.mrf.mxu0 }
  0xd0   : > { %v691_v43 = vpop.f32.mrf.mxu3  ;;  %v517_v46 = vadd.f32 %v508_v44, %v455_v41 }
  0xd1   : > { %v702_v47 = vadd.f32 %v691_v43, %v640_v42  ;;  %v570_v48 = vpop.f32.mrf.mxu1 }
  0xd2   : > { %v579_v52 = vadd.f32 %v570_v48, %v517_v46 }
  0xd3   : > { %v711_v50 = vadd.f32 %v867_v17, %v702_v47 }
  0xd5   : > { %v716_v51 = vmax.f32 %v711_v50, 0.0 }
  0xd6   : > { %v632_v53 = vpop.f32.mrf.mxu2 }
  0xd7   : > { %722 = vst.msk [vmem:[%s1042_s19 + $0x10] sm:$0xff] %vm719_vm2, %v716_v51  ;;  %v641_v55 = vadd.f32 %v632_v53, %v579_v52  ;;  %v511_v57 = vpop.f32.mrf.mxu0 }
  0xd8   : > { %v694_v56 = vpop.f32.mrf.mxu3  ;;  %v518_v58 = vadd.f32 %v511_v57, %v456_v54 }
  0xd9   : > { %v703_v59 = vadd.f32 %v694_v56, %v641_v55  ;;  %v573_v60 = vpop.f32.mrf.mxu1 }
  0xda   : > { %v580_v63 = vadd.f32 %v573_v60, %v518_v58 }
  0xdb   : > { %v712_v61 = vadd.f32 %v867_v17, %v703_v59 }
  0xdd   : > { %v717_v62 = vmax.f32 %v712_v61, 0.0 }
  0xde   : > { %v635_v0 = vpop.f32.mrf.mxu2 }
  0xdf   : > { %723 = vst.msk [vmem:[%s1042_s19 + $0x18] sm:$0xff] %vm719_vm2, %v717_v62  ;;  %v642_v1 = vadd.f32 %v635_v0, %v580_v63 }
  0xe0   : > { %v697_v2 = vpop.f32.mrf.mxu3 }
  0xe1   : > { %v704_v3 = vadd.f32 %v697_v2, %v642_v1 }
  0xe3   : > { %v713_v4 = vadd.f32 %v867_v17, %v704_v3 }
  0xe5   : > { %v718_v5 = vmax.f32 %v713_v4, 0.0 }
  0xe7   : > { %725 = vst.msk [vmem:[%s1042_s19 + $0x20] sm:$0x1] %vm724_vm3, %v718_v5 }
  0xe8 PF: > { %s14_s15 = sadd.s32 1, %s874_s15  }
  0xe9   : > { %p11_p4 = scmp.ge.s32.totalorder %s14_s15, 4  }
  0xeb   :  { %13 = sbr.rel (!%p11_p4) target bundleno = 1 (0x1), region = 76 }

// kernel: chrononet_forward.17
= control target key start
LH: loop header
LB: loop body
LE: loop exit
PB: predicated region body
PF: predicated region fallthrough
CT: control target
= control target key end

     0   :  { %s751_s15 = smov 0   ;;  %s905_s0 = inlined_call_operand.vmem [shape: f32[2,21,24], index: 0, kind: input, shape index: {}]   ;;  %s906_s1 = inlined_call_operand.vmem [shape: f32[2,21,24], index: 1, kind: input, shape index: {}]   ;;  %s907_s2 = inlined_call_operand.vmem [shape: f32[8,24,24], index: 2, kind: input, shape index: {}]   ;;  %s908_s3 = inlined_call_operand.vmem [shape: f32[1,24], index: 3, kind: input, shape index: {}]   ;;  %s909_s4 = inlined_call_operand.vmem [shape: f32[2,17,24], index: 4, kind: output, shape index: {}]  }
   0x1 LB: > { %s653_s16 = sadd.s32 4294967295, %s724_s15   ;;  %p657_p0 = scmp.ge.s32.totalorder %s724_s15, 1  ;;  %s724_s15 = sphi %s751_s15, %s14_s15  }
   0x2   : > { %p172_p1 = scmp.lt.s32.totalorder %s724_s15, 3 }
   0x4   : > { %p173_p2 = pnand %p657_p0, %p172_p1 }
   0x5   : > { %p203_p3 = scmp.lt.s32.totalorder (!%p173_p2), %s653_s16, 1 }
   0x6   : > { %176 = sbr.rel (%p173_p2) target bundleno = 201 (0xc9), region = 36 }
   0xb   : > { %v663_v0 = vld [vmem:[%s907_s2 + $0x28] sm:$0xff]  ;;  %v672_v1 = vld [vmem:[%s907_s2 + $0x40] sm:$0xff]  ;;  %v223_v3 = vld [vmem:[%s907_s2 + $0x10] sm:$0xff]  ;;  %s911_s16 = smov (!%p203_p3, %s653_s16), 1  ;;  %vm231_vm0 = vcmask 195584   ;;  %vm584_vm1 = vcmask 188416  }
   0xc   : > { %v662_v2 = vld [vmem:[%s907_s2 + $0x20] sm:$0xff]  ;;  %254 = vmatpush.msra.mxu0 %v663_v0  ;;  %331 = vmatpush.msra.mxu2 %v672_v1  ;;  %v671_v4 = vld [vmem:[%s907_s2 + $0x38] sm:$0xff]  ;;  %v222_v7 = vld [vmem:[%s907_s2 + $0x8] sm:$0xff]  ;;  %s795_s17 = smul.u32 24, %s911_s16 }
   0xd   : > { %v678_v5 = vld [vmem:[%s907_s2 + $0x58] sm:$0xff]  ;;  %289 = vmatpush.msra.mxu1 %v223_v3  ;;  %v670_v8 = vld [vmem:[%s907_s2 + $0x30] sm:$0xff]  ;;  %v696_v10 = vld [vmem:[%s907_s2 + $0xa0] sm:$0xff] }
   0xe   : > { %376 = vmatpush.msra.mxu3 %v678_v5  ;;  %v661_v6 = vld [vmem:[%s907_s2 + $0x18] sm:$0xff]  ;;  %255 = vmatpush.msra.mxu0 %v662_v2  ;;  %v677_v9 = vld [vmem:[%s907_s2 + $0x50] sm:$0xff]  ;;  %v221_v11 = vld [vmem:[%s907_s2] sm:$0xff]  ;;  %s807_s24 = scalar_lea.vmem %s906_s1, %s795_s17  ;;  %s813_s26 = scalar_lea.vmem %s905_s0, %s795_s17 }
   0xf   : > { %332 = vmatpush.msra.mxu2 %v671_v4  ;;  %290 = vmatpush.msra.mxu1 %v222_v7  ;;  %v676_v12 = vld [vmem:[%s907_s2 + $0x48] sm:$0xff]  ;;  %v684_v13 = vld [vmem:[%s907_s2 + $0x70] sm:$0xff]  ;;  %v702_v14 = vld [vmem:[%s907_s2 + $0xb8] sm:$0xff]  ;;  %s217_s27 = scalar_lea.vmem %s909_s4, %s795_s17 }
  0x10   : > { %377 = vmatpush.msra.mxu3 %v677_v9  ;;  %256 = vmatpush.msra.mxu0 %v661_v6  ;;  %v690_v15 = vld [vmem:[%s907_s2 + $0x88] sm:$0xff]  ;;  %v224_v16 = vld [vmem:[%s807_s24] sm:$0xff]  ;;  %v695_v20 = vld [vmem:[%s907_s2 + $0x98] sm:$0xff] }
  0x11   : > { %333 = vmatpush.msra.mxu2 %v670_v8  ;;  %291 = vmatpush.msra.mxu1 %v221_v11  ;;  %v302_v17 = vld [vmem:[%s813_s26 + $0x1] sm:$0xff]  ;;  %v701_v22 = vld [vmem:[%s907_s2 + $0xb0] sm:$0xff]  ;;  %v688_v27 = vld [vmem:[%s907_s2 + $0x78] sm:$0xff] }
  0x12   : > { %378 = vmatpush.msra.mxu3 %v676_v12  ;;  %v218_v18 = vld [vmem:[%s813_s26] sm:$0xff]  ;;  %421 = vmatpush.msrb.mxu0 %v684_v13  ;;  %v683_v21 = vld [vmem:[%s907_s2 + $0x68] sm:$0xff]  ;;  %v694_v24 = vld [vmem:[%s907_s2 + $0x90] sm:$0xff] }
  0x13   : > { %511 = vmatpush.msrb.mxu2 %v696_v10  ;;  %664 = vmatmul.msk.f32.vlgmr.msra.gmra.mxu0 %vm231_vm0, %v224_v16  ;;  %v347_v19 = vld [vmem:[%s807_s24 + $0x1] sm:$0xff]  ;;  %v303_v29 = vld [vmem:[%s813_s26 + $0x9] sm:$0xff]  ;;  %v304_v33 = vld [vmem:[%s813_s26 + $0x11] sm:$0x1] }
  0x14   : > { %673 = vmatmul.msk.f32.vlgmr.msra.gmra.mxu2 %vm231_vm0, %v302_v17  ;;  %667 = vmatmul.msk.f32.vlgmr.msra.gmra.mxu1 %vm231_vm0, %v218_v18  ;;  %v689_v23 = vld [vmem:[%s907_s2 + $0x80] sm:$0xff]  ;;  %v700_v26 = vld [vmem:[%s907_s2 + $0xa8] sm:$0xff]  ;;  %v226_v32 = vld [vmem:[%s807_s24 + $0x10] sm:$0x1] }
  0x15   : > { %679 = vmatmul.msk.f32.vlgmr.msra.gmra.mxu3 %vm231_vm0, %v347_v19  ;;  %466 = vmatpush.msrb.mxu1 %v690_v15  ;;  %v682_v25 = vld [vmem:[%s907_s2 + $0x60] sm:$0xff]  ;;  %v225_v28 = vld [vmem:[%s807_s24 + $0x8] sm:$0xff]  ;;  %v220_v34 = vld [vmem:[%s813_s26 + $0x10] sm:$0x1] }
  0x16   : > { %556 = vmatpush.msrb.mxu3 %v702_v14  ;;  %512 = vmatpush.msrb.mxu2 %v695_v20  ;;  %v219_v30 = vld [vmem:[%s813_s26 + $0x8] sm:$0xff]  ;;  %v349_v35 = vld [vmem:[%s807_s24 + $0x11] sm:$0x1]  ;;  %v394_v44 = vld [vmem:[%s813_s26 + $0x12] sm:$0x1] }
  0x17   : > { %422 = vmatpush.msrb.mxu0 %v683_v21  ;;  %467 = vmatpush.msrb.mxu1 %v689_v23  ;;  %v348_v31 = vld [vmem:[%s807_s24 + $0x9] sm:$0xff]  ;;  %v484_v45 = vld [vmem:[%s813_s26 + $0x13] sm:$0x1]  ;;  %v439_v46 = vld [vmem:[%s807_s24 + $0x12] sm:$0x1] }
  0x18   : > { %557 = vmatpush.msrb.mxu3 %v701_v22  ;;  %513 = vmatpush.msrb.mxu2 %v694_v24  ;;  %v392_v36 = vld [vmem:[%s813_s26 + $0x2] sm:$0xff]  ;;  %v393_v40 = vld [vmem:[%s813_s26 + $0xa] sm:$0xff]  ;;  %v529_v47 = vld [vmem:[%s807_s24 + $0x13] sm:$0x1] }
  0x19   : > { %423 = vmatpush.msrb.mxu0 %v682_v25  ;;  %468 = vmatpush.msrb.mxu1 %v688_v27  ;;  %v482_v37 = vld [vmem:[%s813_s26 + $0x3] sm:$0xff]  ;;  %v483_v41 = vld [vmem:[%s813_s26 + $0xb] sm:$0xff]  ;;  %v717_v9 = vld [vmem:[%s908_s3] ss:$0 sm:$0xff] }
  0x1a   : > { %558 = vmatpush.msrb.mxu3 %v700_v26  ;;  %v437_v38 = vld [vmem:[%s807_s24 + $0x2] sm:$0xff]  ;;  %v438_v42 = vld [vmem:[%s807_s24 + $0xa] sm:$0xff] }
  0x1b   : > { %665 = vmatmul.msk.f32.gmra.mxu0 %vm231_vm0, %v225_v28  ;;  %v527_v39 = vld [vmem:[%s807_s24 + $0x3] sm:$0xff]  ;;  %v528_v43 = vld [vmem:[%s807_s24 + $0xb] sm:$0xff] }
  0x1c   : > { %674 = vmatmul.msk.f32.gmra.mxu2 %vm231_vm0, %v303_v29  ;;  %668 = vmatmul.msk.f32.gmra.mxu1 %vm231_vm0, %v219_v30 }
  0x1d   : > { %680 = vmatmul.msk.f32.gmra.mxu3 %vm231_vm0, %v348_v31 }
  0x23   : > { %666 = vmatmul.msk.f32.gmra.mxu0 %vm231_vm0, %v226_v32 }
  0x24   : > { %675 = vmatmul.msk.f32.gmra.mxu2 %vm231_vm0, %v304_v33  ;;  %669 = vmatmul.msk.f32.gmra.mxu1 %vm231_vm0, %v220_v34 }
  0x25   : > { %681 = vmatmul.msk.f32.gmra.mxu3 %vm231_vm0, %v349_v35 }
  0x2b   : > { %685 = vmatmul.msk.f32.vlgmr.msrb.gmra.mxu0 %vm231_vm0, %v392_v36 }
  0x2c   : > { %697 = vmatmul.msk.f32.vlgmr.msrb.gmra.mxu2 %vm231_vm0, %v482_v37  ;;  %691 = vmatmul.msk.f32.vlgmr.msrb.gmra.mxu1 %vm231_vm0, %v437_v38 }
  0x2d   : > { %703 = vmatmul.msk.f32.vlgmr.msrb.gmra.mxu3 %vm231_vm0, %v527_v39 }
  0x33   : > { %686 = vmatmul.msk.f32.gmra.mxu0 %vm231_vm0, %v393_v40 }
  0x34   : > { %698 = vmatmul.msk.f32.gmra.mxu2 %vm231_vm0, %v483_v41  ;;  %692 = vmatmul.msk.f32.gmra.mxu1 %vm231_vm0, %v438_v42 }
  0x35   : > { %704 = vmatmul.msk.f32.gmra.mxu3 %vm231_vm0, %v528_v43 }
  0x3b   : > { %687 = vmatmul.msk.f32.gmra.mxu0 %vm231_vm0, %v394_v44 }
  0x3c   : > { %699 = vmatmul.msk.f32.gmra.mxu2 %vm231_vm0, %v484_v45  ;;  %693 = vmatmul.msk.f32.gmra.mxu1 %vm231_vm0, %v439_v46 }
  0x3d   : > { %705 = vmatmul.msk.f32.gmra.mxu3 %vm231_vm0, %v529_v47 }
  0x90   : > { %v258_v48 = vpop.f32.mrf.mxu0 }
  0x91   : > { %v293_v49 = vpop.f32.mrf.mxu1 }
  0x92   : > { %v294_v57 = vadd.f32 %v293_v49, %v258_v48 }
  0x97   : > { %v335_v50 = vpop.f32.mrf.mxu2 }
  0x98   : > { %v380_v51 = vpop.f32.mrf.mxu3  ;;  %v261_v52 = vpop.f32.mrf.mxu0  ;;  %v344_v59 = vadd.f32 %v335_v50, %v294_v57 }
  0x99   : > { %v296_v53 = vpop.f32.mrf.mxu1 }
  0x9a   : > { %v389_v61 = vadd.f32 %v380_v51, %v344_v59  ;;  %v297_v0 = vadd.f32 %v296_v53, %v261_v52 }
  0x9f   : > { %v338_v54 = vpop.f32.mrf.mxu2 }
  0xa0   : > { %v383_v55 = vpop.f32.mrf.mxu3  ;;  %v264_v56 = vpop.f32.mrf.mxu0  ;;  %v345_v3 = vadd.f32 %v338_v54, %v297_v0 }
  0xa1   : > { %v299_v58 = vpop.f32.mrf.mxu1 }
  0xa2   : > { %v390_v6 = vadd.f32 %v383_v55, %v345_v3  ;;  %v300_v11 = vadd.f32 %v299_v58, %v264_v56 }
  0xa7   : > { %v341_v60 = vpop.f32.mrf.mxu2 }
  0xa8   : > { %v386_v62 = vpop.f32.mrf.mxu3  ;;  %v425_v63 = vpop.f32.mrf.mxu0  ;;  %v346_v15 = vadd.f32 %v341_v60, %v300_v11 }
  0xa9   : > { %v434_v1 = vadd.f32 %v425_v63, %v389_v61  ;;  %v470_v2 = vpop.f32.mrf.mxu1 }
  0xaa   : > { %v391_v20 = vadd.f32 %v386_v62, %v346_v15 }
  0xab   : > { %v479_v4 = vadd.f32 %v470_v2, %v434_v1 }
  0xaf   : > { %v515_v5 = vpop.f32.mrf.mxu2 }
  0xb0   : > { %v524_v7 = vadd.f32 %v515_v5, %v479_v4  ;;  %v560_v8 = vpop.f32.mrf.mxu3  ;;  %v428_v10 = vpop.f32.mrf.mxu0 }
  0xb1   : > { %v435_v12 = vadd.f32 %v428_v10, %v390_v6  ;;  %v473_v14 = vpop.f32.mrf.mxu1 }
  0xb2   : > { %v569_v13 = vadd.f32 %v560_v8, %v524_v7 }
  0xb3   : > { %v480_v18 = vadd.f32 %v473_v14, %v435_v12 }
  0xb4   : > { %v576_v16 = vadd.f32 %v717_v9, %v569_v13 }
  0xb6   : > { %v579_v17 = vmax.f32 %v576_v16, 0.0 }
  0xb7   : > { %v518_v19 = vpop.f32.mrf.mxu2 }
  0xb8   : > { %582 = vst.msk [vmem:[%s217_s27] sm:$0xff] %vm231_vm0, %v579_v17  ;;  %v525_v21 = vadd.f32 %v518_v19, %v480_v18  ;;  %v563_v22 = vpop.f32.mrf.mxu3  ;;  %v431_v23 = vpop.f32.mrf.mxu0 }
  0xb9   : > { %v436_v24 = vadd.f32 %v431_v23, %v391_v20  ;;  %v476_v26 = vpop.f32.mrf.mxu1 }
  0xba   : > { %v570_v25 = vadd.f32 %v563_v22, %v525_v21 }
  0xbb   : > { %v481_v29 = vadd.f32 %v476_v26, %v436_v24 }
  0xbc   : > { %v577_v27 = vadd.f32 %v717_v9, %v570_v25 }
  0xbe   : > { %v580_v28 = vmax.f32 %v577_v27, 0.0 }
  0xbf   : > { %v521_v30 = vpop.f32.mrf.mxu2 }
  0xc0   : > { %583 = vst.msk [vmem:[%s217_s27 + $0x8] sm:$0xff] %vm231_vm0, %v580_v28  ;;  %v526_v31 = vadd.f32 %v521_v30, %v481_v29  ;;  %v566_v32 = vpop.f32.mrf.mxu3 }
  0xc2   : > { %v571_v33 = vadd.f32 %v566_v32, %v526_v31 }
  0xc4   : > { %v578_v34 = vadd.f32 %v717_v9, %v571_v33 }
  0xc6   : > { %v581_v35 = vmax.f32 %v578_v34, 0.0 }
  0xc8   : > { %585 = vst.msk [vmem:[%s217_s27 + $0x10] sm:$0x1] %vm584_vm1, %v581_v35 }
  0xc9 PF: > { %s14_s15 = sadd.s32 1, %s724_s15  }
  0xca   : > { %p11_p4 = scmp.ge.s32.totalorder %s14_s15, 4  }
  0xcc   :  { %13 = sbr.rel (!%p11_p4) target bundleno = 1 (0x1), region = 76 }

// kernel: chrononet_forward.18
= control target key start
LH: loop header
LB: loop body
LE: loop exit
PB: predicated region body
PF: predicated region fallthrough
CT: control target
= control target key end

     0   :  { %s683_s15 = smov 0   ;;  %s820_s0 = inlined_call_operand.vmem [shape: f32[2,13,24], index: 0, kind: input, shape index: {}]   ;;  %s821_s1 = inlined_call_operand.vmem [shape: f32[2,13,24], index: 1, kind: input, shape index: {}]   ;;  %s822_s2 = inlined_call_operand.vmem [shape: f32[8,24,24], index: 2, kind: input, shape index: {}]   ;;  %s823_s3 = inlined_call_operand.vmem [shape: f32[1,24], index: 3, kind: input, shape index: {}]   ;;  %s824_s4 = inlined_call_operand.vmem [shape: f32[2,9,24], index: 4, kind: output, shape index: {}]  }
   0x1 LB: > { %s588_s16 = sadd.s32 4294967295, %s656_s15   ;;  %p592_p0 = scmp.ge.s32.totalorder %s656_s15, 1  ;;  %s656_s15 = sphi %s683_s15, %s14_s15  }
   0x2   : > { %p172_p1 = scmp.lt.s32.totalorder %s656_s15, 3 }
   0x4   : > { %p173_p2 = pnand %p592_p0, %p172_p1 }
   0x5   : > { %p203_p3 = scmp.lt.s32.totalorder (!%p173_p2), %s588_s16, 1 }
   0x6   : > { %176 = sbr.rel (%p173_p2) target bundleno = 184 (0xb8), region = 36 }
   0xb   : > { %v601_v0 = vld [vmem:[%s822_s2 + $0x28] sm:$0xff]  ;;  %v608_v1 = vld [vmem:[%s822_s2 + $0x40] sm:$0xff]  ;;  %v222_v3 = vld [vmem:[%s822_s2 + $0x10] sm:$0xff]  ;;  %s826_s16 = smov (!%p203_p3, %s588_s16), 1  ;;  %vm229_vm0 = vcmask 195584   ;;  %vm519_vm1 = vcmask 188416  }
   0xc   : > { %v600_v2 = vld [vmem:[%s822_s2 + $0x20] sm:$0xff]  ;;  %249 = vmatpush.msra.mxu0 %v601_v0  ;;  %313 = vmatpush.msra.mxu2 %v608_v1  ;;  %v607_v4 = vld [vmem:[%s822_s2 + $0x38] sm:$0xff]  ;;  %v221_v7 = vld [vmem:[%s822_s2 + $0x8] sm:$0xff]  ;;  %s727_s17 = sshll.u32 %s826_s16, 4 }
   0xd   : > { %v613_v5 = vld [vmem:[%s822_s2 + $0x58] sm:$0xff]  ;;  %278 = vmatpush.msra.mxu1 %v222_v3  ;;  %v606_v8 = vld [vmem:[%s822_s2 + $0x30] sm:$0xff]  ;;  %v628_v10 = vld [vmem:[%s822_s2 + $0xa0] sm:$0xff]  ;;  %s733_s20 = scalar_lea.vmem %s821_s1, %s727_s17  ;;  %s739_s23 = scalar_lea.vmem %s820_s0, %s727_s17 }
   0xe   : > { %350 = vmatpush.msra.mxu3 %v613_v5  ;;  %v599_v6 = vld [vmem:[%s822_s2 + $0x18] sm:$0xff]  ;;  %250 = vmatpush.msra.mxu0 %v600_v2  ;;  %v612_v9 = vld [vmem:[%s822_s2 + $0x50] sm:$0xff]  ;;  %v220_v11 = vld [vmem:[%s822_s2] sm:$0xff]  ;;  %s217_s27 = scalar_lea.vmem %s824_s4, %s727_s17 }
   0xf   : > { %314 = vmatpush.msra.mxu2 %v607_v4  ;;  %279 = vmatpush.msra.mxu1 %v221_v7  ;;  %v611_v12 = vld [vmem:[%s822_s2 + $0x48] sm:$0xff]  ;;  %v618_v13 = vld [vmem:[%s822_s2 + $0x70] sm:$0xff]  ;;  %v223_v14 = vld [vmem:[%s733_s20] sm:$0xff] }
  0x10   : > { %351 = vmatpush.msra.mxu3 %v612_v9  ;;  %251 = vmatpush.msra.mxu0 %v599_v6  ;;  %v288_v15 = vld [vmem:[%s739_s23 + $0x1] sm:$0xff]  ;;  %v633_v18 = vld [vmem:[%s822_s2 + $0xb8] sm:$0xff]  ;;  %v632_v22 = vld [vmem:[%s822_s2 + $0xb0] sm:$0xff] }
  0x11   : > { %315 = vmatpush.msra.mxu2 %v606_v8  ;;  %280 = vmatpush.msra.mxu1 %v220_v11  ;;  %v218_v16 = vld [vmem:[%s739_s23] sm:$0xff]  ;;  %v623_v19 = vld [vmem:[%s822_s2 + $0x88] sm:$0xff]  ;;  %v627_v20 = vld [vmem:[%s822_s2 + $0x98] sm:$0xff] }
  0x12   : > { %602 = vmatmul.msk.f32.vlgmr.msra.gmra.mxu0 %vm229_vm0, %v223_v14  ;;  %609 = vmatmul.msk.f32.vlgmr.msra.gmra.mxu2 %vm229_vm0, %v288_v15  ;;  %v325_v17 = vld [vmem:[%s733_s20 + $0x1] sm:$0xff]  ;;  %v626_v24 = vld [vmem:[%s822_s2 + $0x90] sm:$0xff]  ;;  %v621_v27 = vld [vmem:[%s822_s2 + $0x78] sm:$0xff] }
  0x13   : > { %461 = vmatpush.msrb.mxu2 %v628_v10  ;;  %352 = vmatpush.msra.mxu3 %v611_v12  ;;  %v617_v21 = vld [vmem:[%s822_s2 + $0x68] sm:$0xff]  ;;  %v622_v23 = vld [vmem:[%s822_s2 + $0x80] sm:$0xff] }
  0x14   : > { %604 = vmatmul.msk.f32.vlgmr.msra.gmra.mxu1 %vm229_vm0, %v218_v16  ;;  %614 = vmatmul.msk.f32.vlgmr.msra.gmra.mxu3 %vm229_vm0, %v325_v17  ;;  %v616_v25 = vld [vmem:[%s822_s2 + $0x60] sm:$0xff]  ;;  %v631_v26 = vld [vmem:[%s822_s2 + $0xa8] sm:$0xff] }
  0x15   : > { %387 = vmatpush.msrb.mxu0 %v618_v13  ;;  %498 = vmatpush.msrb.mxu3 %v633_v18  ;;  %v224_v28 = vld [vmem:[%s733_s20 + $0x8] sm:$0x1]  ;;  %v289_v29 = vld [vmem:[%s739_s23 + $0x9] sm:$0x1]  ;;  %v363_v36 = vld [vmem:[%s739_s23 + $0xa] sm:$0x1] }
  0x16   : > { %424 = vmatpush.msrb.mxu1 %v623_v19  ;;  %462 = vmatpush.msrb.mxu2 %v627_v20  ;;  %v219_v30 = vld [vmem:[%s739_s23 + $0x8] sm:$0x1]  ;;  %v326_v31 = vld [vmem:[%s733_s20 + $0x9] sm:$0x1]  ;;  %v437_v37 = vld [vmem:[%s739_s23 + $0xb] sm:$0x1] }
  0x17   : > { %388 = vmatpush.msrb.mxu0 %v617_v21  ;;  %499 = vmatpush.msrb.mxu3 %v632_v22  ;;  %v362_v32 = vld [vmem:[%s739_s23 + $0x2] sm:$0xff]  ;;  %v400_v38 = vld [vmem:[%s733_s20 + $0xa] sm:$0x1]  ;;  %v474_v39 = vld [vmem:[%s733_s20 + $0xb] sm:$0x1] }
  0x18   : > { %425 = vmatpush.msrb.mxu1 %v622_v23  ;;  %463 = vmatpush.msrb.mxu2 %v626_v24  ;;  %v436_v33 = vld [vmem:[%s739_s23 + $0x3] sm:$0xff]  ;;  %v649_v60 = vld [vmem:[%s823_s3] ss:$0 sm:$0xff] }
  0x19   : > { %389 = vmatpush.msrb.mxu0 %v616_v25  ;;  %500 = vmatpush.msrb.mxu3 %v631_v26  ;;  %v399_v34 = vld [vmem:[%s733_s20 + $0x2] sm:$0xff] }
  0x1a   : > { %426 = vmatpush.msrb.mxu1 %v621_v27  ;;  %603 = vmatmul.msk.f32.gmra.mxu0 %vm229_vm0, %v224_v28  ;;  %v473_v35 = vld [vmem:[%s733_s20 + $0x3] sm:$0xff] }
  0x1b   : > { %610 = vmatmul.msk.f32.gmra.mxu2 %vm229_vm0, %v289_v29 }
  0x1c   : > { %605 = vmatmul.msk.f32.gmra.mxu1 %vm229_vm0, %v219_v30  ;;  %615 = vmatmul.msk.f32.gmra.mxu3 %vm229_vm0, %v326_v31 }
  0x22   : > { %619 = vmatmul.msk.f32.vlgmr.msrb.gmra.mxu0 %vm229_vm0, %v362_v32 }
  0x23   : > { %629 = vmatmul.msk.f32.vlgmr.msrb.gmra.mxu2 %vm229_vm0, %v436_v33 }
  0x24   : > { %624 = vmatmul.msk.f32.vlgmr.msrb.gmra.mxu1 %vm229_vm0, %v399_v34  ;;  %634 = vmatmul.msk.f32.vlgmr.msrb.gmra.mxu3 %vm229_vm0, %v473_v35 }
  0x2a   : > { %620 = vmatmul.msk.f32.gmra.mxu0 %vm229_vm0, %v363_v36 }
  0x2b   : > { %630 = vmatmul.msk.f32.gmra.mxu2 %vm229_vm0, %v437_v37 }
  0x2c   : > { %625 = vmatmul.msk.f32.gmra.mxu1 %vm229_vm0, %v400_v38  ;;  %635 = vmatmul.msk.f32.gmra.mxu3 %vm229_vm0, %v474_v39 }
  0x8f   : > { %v253_v40 = vpop.f32.mrf.mxu0 }
  0x91   : > { %v282_v41 = vpop.f32.mrf.mxu1 }
  0x92   : > { %v283_v45 = vadd.f32 %v282_v41, %v253_v40 }
  0x95   : > { %v317_v42 = vpop.f32.mrf.mxu2 }
  0x96   : > { %v323_v47 = vadd.f32 %v317_v42, %v283_v45 }
  0x97   : > { %v256_v43 = vpop.f32.mrf.mxu0  ;;  %v354_v44 = vpop.f32.mrf.mxu3 }
  0x98   : > { %v360_v49 = vadd.f32 %v354_v44, %v323_v47 }
  0x99   : > { %v285_v46 = vpop.f32.mrf.mxu1 }
  0x9a   : > { %v286_v52 = vadd.f32 %v285_v46, %v256_v43 }
  0x9e   : > { %v320_v48 = vpop.f32.mrf.mxu2 }
  0x9f   : > { %v357_v50 = vpop.f32.mrf.mxu3  ;;  %v391_v51 = vpop.f32.mrf.mxu0  ;;  %v324_v55 = vadd.f32 %v320_v48, %v286_v52 }
  0xa0   : > { %v397_v53 = vadd.f32 %v391_v51, %v360_v49 }
  0xa1   : > { %v428_v54 = vpop.f32.mrf.mxu1  ;;  %v361_v58 = vadd.f32 %v357_v50, %v324_v55 }
  0xa2   : > { %v434_v56 = vadd.f32 %v428_v54, %v397_v53 }
  0xa6   : > { %v465_v57 = vpop.f32.mrf.mxu2 }
  0xa7   : > { %v471_v59 = vadd.f32 %v465_v57, %v434_v56  ;;  %v394_v61 = vpop.f32.mrf.mxu0  ;;  %v502_v62 = vpop.f32.mrf.mxu3 }
  0xa8   : > { %v398_v63 = vadd.f32 %v394_v61, %v361_v58 }
  0xa9   : > { %v508_v0 = vadd.f32 %v502_v62, %v471_v59  ;;  %v431_v1 = vpop.f32.mrf.mxu1 }
  0xaa   : > { %v435_v4 = vadd.f32 %v431_v1, %v398_v63 }
  0xab   : > { %v514_v2 = vadd.f32 %v649_v60, %v508_v0 }
  0xad   : > { %v516_v3 = vmax.f32 %v514_v2, 0.0 }
  0xae   : > { %v468_v5 = vpop.f32.mrf.mxu2 }
  0xaf   : > { %518 = vst.msk [vmem:[%s217_s27] sm:$0xff] %vm229_vm0, %v516_v3  ;;  %v472_v6 = vadd.f32 %v468_v5, %v435_v4  ;;  %v505_v7 = vpop.f32.mrf.mxu3 }
  0xb1   : > { %v509_v8 = vadd.f32 %v505_v7, %v472_v6 }
  0xb3   : > { %v515_v9 = vadd.f32 %v649_v60, %v509_v8 }
  0xb5   : > { %v517_v10 = vmax.f32 %v515_v9, 0.0 }
  0xb7   : > { %520 = vst.msk [vmem:[%s217_s27 + $0x8] sm:$0x1] %vm519_vm1, %v517_v10 }
  0xb8 PF: > { %s14_s15 = sadd.s32 1, %s656_s15  }
  0xb9   : > { %p11_p4 = scmp.ge.s32.totalorder %s14_s15, 4  }
  0xbb   :  { %13 = sbr.rel (!%p11_p4) target bundleno = 1 (0x1), region = 76 }

// kernel: chrononet_forward.19
= control target key start
LH: loop header
LB: loop body
LE: loop exit
PB: predicated region body
PF: predicated region fallthrough
CT: control target
= control target key end

     0   :  { %s604_s15 = smov 0   ;;  %s723_s0 = inlined_call_operand.vmem [shape: f32[2,9,24], index: 0, kind: input, shape index: {}]   ;;  %s724_s1 = inlined_call_operand.vmem [shape: f32[2,9,24], index: 1, kind: input, shape index: {}]   ;;  %s725_s2 = inlined_call_operand.vmem [shape: f32[8,24,24], index: 2, kind: input, shape index: {}]   ;;  %s726_s3 = inlined_call_operand.vmem [shape: f32[1,24], index: 3, kind: input, shape index: {}]   ;;  %s727_s4 = inlined_call_operand.vmem [shape: f32[2,5,24], index: 4, kind: output, shape index: {}]  }
   0x1 LB: > { %s519_s16 = sadd.s32 4294967295, %s577_s15   ;;  %p523_p0 = scmp.ge.s32.totalorder %s577_s15, 1  ;;  %s577_s15 = sphi %s604_s15, %s14_s15  }
   0x2   : > { %p172_p1 = scmp.lt.s32.totalorder %s577_s15, 3 }
   0x4   : > { %p173_p2 = pnand %p523_p0, %p172_p1 }
   0x5   : > { %p202_p3 = scmp.lt.s32.totalorder (!%p173_p2), %s519_s16, 1 }
   0x6   : > { %176 = sbr.rel (%p173_p2) target bundleno = 168 (0xa8), region = 36 }
   0xb   : > { %v536_v0 = vld [vmem:[%s725_s2 + $0x40] sm:$0xff]  ;;  %v531_v1 = vld [vmem:[%s725_s2 + $0x28] sm:$0xff]  ;;  %v219_v2 = vld [vmem:[%s725_s2 + $0x10] sm:$0xff]  ;;  %s729_s16 = smov (!%p202_p3, %s519_s16), 1  ;;  %vm225_vm0 = vcmask 195584   ;;  %vm452_vm1 = vcmask 192512  }
   0xc   : > { %293 = vmatpush.msra.mxu2 %v536_v0  ;;  %242 = vmatpush.msra.mxu0 %v531_v1  ;;  %v535_v3 = vld [vmem:[%s725_s2 + $0x38] sm:$0xff]  ;;  %v530_v5 = vld [vmem:[%s725_s2 + $0x20] sm:$0xff]  ;;  %v218_v6 = vld [vmem:[%s725_s2 + $0x8] sm:$0xff]  ;;  %s560_s17 = sshll.u32 %s729_s16, 4  ;;  %s528_s26 = sshll.u32 %s729_s16, 3 }
   0xd   : > { %v540_v4 = vld [vmem:[%s725_s2 + $0x58] sm:$0xff]  ;;  %265 = vmatpush.msra.mxu1 %v219_v2  ;;  %v534_v7 = vld [vmem:[%s725_s2 + $0x30] sm:$0xff]  ;;  %v552_v9 = vld [vmem:[%s725_s2 + $0xa0] sm:$0xff]  ;;  %s657_s22 = scalar_lea.vmem %s723_s0, %s560_s17  ;;  %s662_s25 = scalar_lea.vmem %s724_s1, %s560_s17 }
   0xe   : > { %322 = vmatpush.msra.mxu3 %v540_v4  ;;  %v539_v8 = vld [vmem:[%s725_s2 + $0x50] sm:$0xff]  ;;  %294 = vmatpush.msra.mxu2 %v535_v3  ;;  %v529_v10 = vld [vmem:[%s725_s2 + $0x18] sm:$0xff]  ;;  %v217_v11 = vld [vmem:[%s725_s2] sm:$0xff]  ;;  %s215_s29 = scalar_lea.vmem %s727_s4, %s528_s26 }
   0xf   : > { %243 = vmatpush.msra.mxu0 %v530_v5  ;;  %266 = vmatpush.msra.mxu1 %v218_v6  ;;  %v538_v12 = vld [vmem:[%s725_s2 + $0x48] sm:$0xff]  ;;  %v544_v13 = vld [vmem:[%s725_s2 + $0x70] sm:$0xff]  ;;  %v272_v14 = vld [vmem:[%s657_s22 + $0x1] sm:$0x1f] }
  0x10   : > { %323 = vmatpush.msra.mxu3 %v539_v8  ;;  %295 = vmatpush.msra.mxu2 %v534_v7  ;;  %v220_v15 = vld [vmem:[%s662_s25] sm:$0x1f]  ;;  %v556_v18 = vld [vmem:[%s725_s2 + $0xb8] sm:$0xff]  ;;  %v548_v20 = vld [vmem:[%s725_s2 + $0x88] sm:$0xff] }
  0x11   : > { %244 = vmatpush.msra.mxu0 %v529_v10  ;;  %267 = vmatpush.msra.mxu1 %v217_v11  ;;  %v216_v16 = vld [vmem:[%s657_s22] sm:$0x1f]  ;;  %v551_v19 = vld [vmem:[%s725_s2 + $0x98] sm:$0xff]  ;;  %v543_v21 = vld [vmem:[%s725_s2 + $0x68] sm:$0xff] }
  0x12   : > { %409 = vmatpush.msrb.mxu2 %v552_v9  ;;  %324 = vmatpush.msra.mxu3 %v538_v12  ;;  %v301_v17 = vld [vmem:[%s662_s25 + $0x1] sm:$0x1f]  ;;  %v555_v22 = vld [vmem:[%s725_s2 + $0xb0] sm:$0xff]  ;;  %v554_v26 = vld [vmem:[%s725_s2 + $0xa8] sm:$0xff] }
  0x13   : > { %537 = vmatmul.msk.f32.vlgmr.msra.gmra.mxu2 %vm225_vm0, %v272_v14  ;;  %532 = vmatmul.msk.f32.vlgmr.msra.gmra.mxu0 %vm225_vm0, %v220_v15  ;;  %v550_v23 = vld [vmem:[%s725_s2 + $0x90] sm:$0xff]  ;;  %v547_v24 = vld [vmem:[%s725_s2 + $0x80] sm:$0xff]  ;;  %v546_v28 = vld [vmem:[%s725_s2 + $0x78] sm:$0xff] }
  0x14   : > { %533 = vmatmul.msk.f32.vlgmr.msra.gmra.mxu1 %vm225_vm0, %v216_v16  ;;  %541 = vmatmul.msk.f32.vlgmr.msra.gmra.mxu3 %vm225_vm0, %v301_v17  ;;  %v542_v25 = vld [vmem:[%s725_s2 + $0x60] sm:$0xff] }
  0x15   : > { %351 = vmatpush.msrb.mxu0 %v544_v13  ;;  %438 = vmatpush.msrb.mxu3 %v556_v18  ;;  %v388_v27 = vld [vmem:[%s657_s22 + $0x3] sm:$0x1f]  ;;  %v570_v45 = vld [vmem:[%s726_s3] ss:$0 sm:$0xff] }
  0x16   : > { %410 = vmatpush.msrb.mxu2 %v551_v19  ;;  %380 = vmatpush.msrb.mxu1 %v548_v20  ;;  %v330_v29 = vld [vmem:[%s657_s22 + $0x2] sm:$0x1f] }
  0x17   : > { %352 = vmatpush.msrb.mxu0 %v543_v21  ;;  %439 = vmatpush.msrb.mxu3 %v555_v22  ;;  %v359_v30 = vld [vmem:[%s662_s25 + $0x2] sm:$0x1f] }
  0x18   : > { %411 = vmatpush.msrb.mxu2 %v550_v23  ;;  %381 = vmatpush.msrb.mxu1 %v547_v24  ;;  %v417_v31 = vld [vmem:[%s662_s25 + $0x3] sm:$0x1f] }
  0x19   : > { %353 = vmatpush.msrb.mxu0 %v542_v25  ;;  %440 = vmatpush.msrb.mxu3 %v554_v26 }
  0x1a   : > { %382 = vmatpush.msrb.mxu1 %v546_v28 }
  0x1b   : > { %553 = vmatmul.msk.f32.vlgmr.msrb.gmra.mxu2 %vm225_vm0, %v388_v27  ;;  %545 = vmatmul.msk.f32.vlgmr.msrb.gmra.mxu0 %vm225_vm0, %v330_v29 }
  0x1c   : > { %549 = vmatmul.msk.f32.vlgmr.msrb.gmra.mxu1 %vm225_vm0, %v359_v30  ;;  %557 = vmatmul.msk.f32.vlgmr.msrb.gmra.mxu3 %vm225_vm0, %v417_v31 }
  0x90   : > { %v246_v32 = vpop.f32.mrf.mxu0 }
  0x91   : > { %v269_v33 = vpop.f32.mrf.mxu1 }
  0x92   : > { %v270_v34 = vadd.f32 %v269_v33, %v246_v32 }
  0x96   : > { %v297_v35 = vpop.f32.mrf.mxu2 }
  0x97   : > { %v300_v36 = vadd.f32 %v297_v35, %v270_v34  ;;  %v326_v37 = vpop.f32.mrf.mxu3 }
  0x98   : > { %v355_v39 = vpop.f32.mrf.mxu0 }
  0x99   : > { %v329_v38 = vadd.f32 %v326_v37, %v300_v36  ;;  %v384_v40 = vpop.f32.mrf.mxu1 }
  0x9b   : > { %v358_v41 = vadd.f32 %v355_v39, %v329_v38 }
  0x9d   : > { %v387_v42 = vadd.f32 %v384_v40, %v358_v41 }
  0x9e   : > { %v413_v43 = vpop.f32.mrf.mxu2 }
  0x9f   : > { %v416_v44 = vadd.f32 %v413_v43, %v387_v42  ;;  %v442_v46 = vpop.f32.mrf.mxu3 }
  0xa1   : > { %v445_v47 = vadd.f32 %v442_v46, %v416_v44 }
  0xa3   : > { %v450_v48 = vadd.f32 %v570_v45, %v445_v47 }
  0xa5   : > { %v451_v49 = vmax.f32 %v450_v48, 0.0 }
  0xa7   : > { %453 = vst.msk [vmem:[%s215_s29] sm:$0x1f] %vm452_vm1, %v451_v49 }
  0xa8 PF: > { %s14_s15 = sadd.s32 1, %s577_s15  }
  0xa9   : > { %p11_p4 = scmp.ge.s32.totalorder %s14_s15, 4  }
  0xab   :  { %13 = sbr.rel (!%p11_p4) target bundleno = 1 (0x1), region = 76 }

// kernel: chrononet_forward.20
= control target key start
LH: loop header
LB: loop body
LE: loop exit
PB: predicated region body
PF: predicated region fallthrough
CT: control target
= control target key end

     0   :  { %s594_s15 = smov 0   ;;  %s713_s0 = inlined_call_operand.vmem [shape: f32[2,7,24], index: 0, kind: input, shape index: {}]   ;;  %s714_s1 = inlined_call_operand.vmem [shape: f32[2,7,24], index: 1, kind: input, shape index: {}]   ;;  %s715_s2 = inlined_call_operand.vmem [shape: f32[8,24,24], index: 2, kind: input, shape index: {}]   ;;  %s716_s3 = inlined_call_operand.vmem [shape: f32[1,24], index: 3, kind: input, shape index: {}]   ;;  %s717_s4 = inlined_call_operand.vmem [shape: f32[2,3,24], index: 4, kind: output, shape index: {}]  }
   0x1 LB: > { %s513_s16 = sadd.s32 4294967295, %s567_s15   ;;  %p517_p0 = scmp.ge.s32.totalorder %s567_s15, 1  ;;  %s567_s15 = sphi %s594_s15, %s14_s15  }
   0x2   : > { %p170_p1 = scmp.lt.s32.totalorder %s567_s15, 3 }
   0x4   : > { %p171_p2 = pnand %p517_p0, %p170_p1 }
   0x5   : > { %p198_p3 = scmp.lt.s32.totalorder (!%p171_p2), %s513_s16, 1 }
   0x6   : > { %174 = sbr.rel (%p171_p2) target bundleno = 168 (0xa8), region = 36 }
   0xb   : > { %v528_v0 = vld [vmem:[%s715_s2 + $0x40] sm:$0xff]  ;;  %v523_v1 = vld [vmem:[%s715_s2 + $0x28] sm:$0xff]  ;;  %v213_v2 = vld [vmem:[%s715_s2 + $0x10] sm:$0xff]  ;;  %s719_s16 = smov (!%p198_p3, %s513_s16), 1  ;;  %vm219_vm0 = vcmask 195584   ;;  %vm446_vm1 = vcmask 190464  }
   0xc   : > { %287 = vmatpush.msra.mxu2 %v528_v0  ;;  %236 = vmatpush.msra.mxu0 %v523_v1  ;;  %v527_v3 = vld [vmem:[%s715_s2 + $0x38] sm:$0xff]  ;;  %v522_v5 = vld [vmem:[%s715_s2 + $0x20] sm:$0xff]  ;;  %v212_v6 = vld [vmem:[%s715_s2 + $0x8] sm:$0xff]  ;;  %s518_s17 = sshll.u32 %s719_s16, 3  ;;  %s520_s26 = sshll.u32 %s719_s16, 2 }
   0xd   : > { %v532_v4 = vld [vmem:[%s715_s2 + $0x58] sm:$0xff]  ;;  %259 = vmatpush.msra.mxu1 %v213_v2  ;;  %v526_v7 = vld [vmem:[%s715_s2 + $0x30] sm:$0xff]  ;;  %v544_v9 = vld [vmem:[%s715_s2 + $0xa0] sm:$0xff]  ;;  %s647_s22 = scalar_lea.vmem %s713_s0, %s518_s17  ;;  %s652_s25 = scalar_lea.vmem %s714_s1, %s518_s17 }
   0xe   : > { %316 = vmatpush.msra.mxu3 %v532_v4  ;;  %v531_v8 = vld [vmem:[%s715_s2 + $0x50] sm:$0xff]  ;;  %288 = vmatpush.msra.mxu2 %v527_v3  ;;  %v521_v10 = vld [vmem:[%s715_s2 + $0x18] sm:$0xff]  ;;  %v211_v11 = vld [vmem:[%s715_s2] sm:$0xff]  ;;  %s209_s29 = scalar_lea.vmem %s717_s4, %s520_s26 }
   0xf   : > { %237 = vmatpush.msra.mxu0 %v522_v5  ;;  %260 = vmatpush.msra.mxu1 %v212_v6  ;;  %v530_v12 = vld [vmem:[%s715_s2 + $0x48] sm:$0xff]  ;;  %v536_v13 = vld [vmem:[%s715_s2 + $0x70] sm:$0xff]  ;;  %v266_v14 = vld [vmem:[%s647_s22 + $0x1] sm:$0x7] }
  0x10   : > { %317 = vmatpush.msra.mxu3 %v531_v8  ;;  %289 = vmatpush.msra.mxu2 %v526_v7  ;;  %v214_v15 = vld [vmem:[%s652_s25] sm:$0x7]  ;;  %v548_v18 = vld [vmem:[%s715_s2 + $0xb8] sm:$0xff]  ;;  %v540_v20 = vld [vmem:[%s715_s2 + $0x88] sm:$0xff] }
  0x11   : > { %238 = vmatpush.msra.mxu0 %v521_v10  ;;  %261 = vmatpush.msra.mxu1 %v211_v11  ;;  %v210_v16 = vld [vmem:[%s647_s22] sm:$0x7]  ;;  %v543_v19 = vld [vmem:[%s715_s2 + $0x98] sm:$0xff]  ;;  %v535_v21 = vld [vmem:[%s715_s2 + $0x68] sm:$0xff] }
  0x12   : > { %403 = vmatpush.msrb.mxu2 %v544_v9  ;;  %318 = vmatpush.msra.mxu3 %v530_v12  ;;  %v295_v17 = vld [vmem:[%s652_s25 + $0x1] sm:$0x7]  ;;  %v547_v22 = vld [vmem:[%s715_s2 + $0xb0] sm:$0xff]  ;;  %v546_v26 = vld [vmem:[%s715_s2 + $0xa8] sm:$0xff] }
  0x13   : > { %529 = vmatmul.msk.f32.vlgmr.msra.gmra.mxu2 %vm219_vm0, %v266_v14  ;;  %524 = vmatmul.msk.f32.vlgmr.msra.gmra.mxu0 %vm219_vm0, %v214_v15  ;;  %v542_v23 = vld [vmem:[%s715_s2 + $0x90] sm:$0xff]  ;;  %v539_v24 = vld [vmem:[%s715_s2 + $0x80] sm:$0xff]  ;;  %v538_v28 = vld [vmem:[%s715_s2 + $0x78] sm:$0xff] }
  0x14   : > { %525 = vmatmul.msk.f32.vlgmr.msra.gmra.mxu1 %vm219_vm0, %v210_v16  ;;  %533 = vmatmul.msk.f32.vlgmr.msra.gmra.mxu3 %vm219_vm0, %v295_v17  ;;  %v534_v25 = vld [vmem:[%s715_s2 + $0x60] sm:$0xff] }
  0x15   : > { %345 = vmatpush.msrb.mxu0 %v536_v13  ;;  %432 = vmatpush.msrb.mxu3 %v548_v18  ;;  %v382_v27 = vld [vmem:[%s647_s22 + $0x3] sm:$0x7]  ;;  %v560_v45 = vld [vmem:[%s716_s3] ss:$0 sm:$0xff] }
  0x16   : > { %404 = vmatpush.msrb.mxu2 %v543_v19  ;;  %374 = vmatpush.msrb.mxu1 %v540_v20  ;;  %v324_v29 = vld [vmem:[%s647_s22 + $0x2] sm:$0x7] }
  0x17   : > { %346 = vmatpush.msrb.mxu0 %v535_v21  ;;  %433 = vmatpush.msrb.mxu3 %v547_v22  ;;  %v353_v30 = vld [vmem:[%s652_s25 + $0x2] sm:$0x7] }
  0x18   : > { %405 = vmatpush.msrb.mxu2 %v542_v23  ;;  %375 = vmatpush.msrb.mxu1 %v539_v24  ;;  %v411_v31 = vld [vmem:[%s652_s25 + $0x3] sm:$0x7] }
  0x19   : > { %347 = vmatpush.msrb.mxu0 %v534_v25  ;;  %434 = vmatpush.msrb.mxu3 %v546_v26 }
  0x1a   : > { %376 = vmatpush.msrb.mxu1 %v538_v28 }
  0x1b   : > { %545 = vmatmul.msk.f32.vlgmr.msrb.gmra.mxu2 %vm219_vm0, %v382_v27  ;;  %537 = vmatmul.msk.f32.vlgmr.msrb.gmra.mxu0 %vm219_vm0, %v324_v29 }
  0x1c   : > { %541 = vmatmul.msk.f32.vlgmr.msrb.gmra.mxu1 %vm219_vm0, %v353_v30  ;;  %549 = vmatmul.msk.f32.vlgmr.msrb.gmra.mxu3 %vm219_vm0, %v411_v31 }
  0x90   : > { %v240_v32 = vpop.f32.mrf.mxu0 }
  0x91   : > { %v263_v33 = vpop.f32.mrf.mxu1 }
  0x92   : > { %v264_v34 = vadd.f32 %v263_v33, %v240_v32 }
  0x96   : > { %v291_v35 = vpop.f32.mrf.mxu2 }
  0x97   : > { %v294_v36 = vadd.f32 %v291_v35, %v264_v34  ;;  %v320_v37 = vpop.f32.mrf.mxu3 }
  0x98   : > { %v349_v39 = vpop.f32.mrf.mxu0 }
  0x99   : > { %v323_v38 = vadd.f32 %v320_v37, %v294_v36  ;;  %v378_v40 = vpop.f32.mrf.mxu1 }
  0x9b   : > { %v352_v41 = vadd.f32 %v349_v39, %v323_v38 }
  0x9d   : > { %v381_v42 = vadd.f32 %v378_v40, %v352_v41 }
  0x9e   : > { %v407_v43 = vpop.f32.mrf.mxu2 }
  0x9f   : > { %v410_v44 = vadd.f32 %v407_v43, %v381_v42  ;;  %v436_v46 = vpop.f32.mrf.mxu3 }
  0xa1   : > { %v439_v47 = vadd.f32 %v436_v46, %v410_v44 }
  0xa3   : > { %v444_v48 = vadd.f32 %v560_v45, %v439_v47 }
  0xa5   : > { %v445_v49 = vmax.f32 %v444_v48, 0.0 }
  0xa7   : > { %447 = vst.msk [vmem:[%s209_s29] sm:$0x7] %vm446_vm1, %v445_v49 }
  0xa8 PF: > { %s14_s15 = sadd.s32 1, %s567_s15  }
  0xa9   : > { %p11_p4 = scmp.ge.s32.totalorder %s14_s15, 4  }
  0xab   :  { %13 = sbr.rel (!%p11_p4) target bundleno = 1 (0x1), region = 76 }

// kernel: chrononet_forward.21
= control target key start
LH: loop header
LB: loop body
LE: loop exit
PB: predicated region body
PF: predicated region fallthrough
CT: control target
= control target key end

     0   :  { %vm22_vm0 = vcmask 195584   ;;  %vm46_vm1 = vcmask 785408   ;;  %s92_s1 = inlined_call_operand.vmem [shape: f32[24,96], index: 1, kind: input, shape index: {}]   ;;  %s93_s0 = inlined_call_operand.vmem [shape: f32[8,24], index: 0, kind: input, shape index: {}]   ;;  %s94_s2 = inlined_call_operand.vmem [shape: f32[1,96], index: 2, kind: input, shape index: {}]   ;;  %s95_s3 = inlined_call_operand.vmem [shape: f32[8,96], index: 3, kind: output, shape index: {}]  }
   0x1   :  { %v17_v0 = vld [vmem:[%s92_s1 + $0x10] sm:$0xff]  ;;  %v16_v1 = vld [vmem:[%s92_s1 + $0x8] sm:$0xff]  ;;  %v15_v2 = vld [vmem:[%s92_s1] sm:$0xff] }
   0x2   :  { %39 = vmatpush.msra.mxu0 %v17_v0  ;;  %v14_v3 = vld [vmem:[%s93_s0] sm:$0xff] }
   0x3   :  { %v53_v4 = vld [vmem:[%s94_s2] ss:$0 sm:$0xff] }
   0x4   :  { %40 = vmatpush.msra.mxu0 %v16_v1 }
   0x6   :  { %41 = vmatpush.msra.mxu0 %v15_v2 }
   0x7   :  { %52 = vmatmul.msk.f32.vlgmr.msra.gmra.mxu0 %vm22_vm0, %v14_v3 }
  0x84   :  { %v43_v5 = vpop.f32.mrf.mxu0 }
  0x85   :  { %v44_v6 = vadd.f32 %v53_v4, %v43_v5 }
  0x87   :  { %47 = vst.msk [vmem:[%s95_s3] sm:$0xff] %vm46_vm1, %v44_v6 }

// kernel: chrononet_forward.23
= control target key start
LH: loop header
LB: loop body
LE: loop exit
PB: predicated region body
PF: predicated region fallthrough
CT: control target
= control target key end

     0   :  { %vm23_vm0 = vcmask 261120   ;;  %vm47_vm1 = vcmask 785408   ;;  %s96_s1 = inlined_call_operand.vmem [shape: f32[32,96], index: 1, kind: input, shape index: {}]   ;;  %s97_s2 = inlined_call_operand.vmem [shape: f32[1,96], index: 2, kind: input, shape index: {}]   ;;  %s98_s0 = inlined_call_operand.vmem [shape: f32[8,32], index: 0, kind: input, shape index: {}]   ;;  %s99_s3 = inlined_call_operand.vmem [shape: f32[8,96], index: 3, kind: output, shape index: {}]  }
   0x1   :  { %v18_v0 = vld [vmem:[%s96_s1 + $0x18] sm:$0xff]  ;;  %v17_v1 = vld [vmem:[%s96_s1 + $0x10] sm:$0xff]  ;;  %v16_v2 = vld [vmem:[%s96_s1 + $0x8] sm:$0xff] }
   0x2   :  { %39 = vmatpush.msra.mxu0 %v18_v0  ;;  %v15_v3 = vld [vmem:[%s96_s1] sm:$0xff] }
   0x3   :  { %v14_v4 = vld [vmem:[%s98_s0] sm:$0xff] }
   0x4   :  { %40 = vmatpush.msra.mxu0 %v17_v1  ;;  %v54_v5 = vld [vmem:[%s97_s2] ss:$0 sm:$0xff] }
   0x6   :  { %41 = vmatpush.msra.mxu0 %v16_v2 }
   0x8   :  { %42 = vmatpush.msra.mxu0 %v15_v3 }
   0x9   :  { %53 = vmatmul.msk.f32.vlgmr.msra.gmra.mxu0 %vm23_vm0, %v14_v4 }
  0x86   :  { %v44_v6 = vpop.f32.mrf.mxu0 }
  0x87   :  { %v45_v7 = vadd.f32 %v54_v5, %v44_v6 }
  0x89   :  { %48 = vst.msk [vmem:[%s99_s3] sm:$0xff] %vm47_vm1, %v45_v7 }

// kernel: chrononet_forward.22
= control target key start
LH: loop header
LB: loop body
LE: loop exit
PB: predicated region body
PF: predicated region fallthrough
CT: control target
= control target key end

     0   :  { %vm18_vm0 = vcmask 254976   ;;  %v283_v2 = vmov 0.0   ;;  %s284_s20 = smov 64   ;;  %vm27_vm1 = vcmask 261120   ;;  %s286_s24 = smov 96   ;;  %s366_s1 = inlined_call_operand.vmem [shape: f32[32,96], index: 1, kind: input, shape index: {}]   ;;  %s367_s2 = inlined_call_operand.vmem [shape: f32[1,32], index: 2, kind: input, shape index: {}]   ;;  %s368_s0 = inlined_call_operand.vmem [shape: f32[3,2,96], index: 0, kind: input, shape index: {}]   ;;  %s369_s3 = inlined_call_operand.vmem [shape: f32[3,2,32], index: 3, kind: output, shape index: {}]  }
   0x1   :  { %v23_v0 = vld [vmem:[%s366_s1 + $0x18] sm:$0xff]  ;;  %v22_v1 = vld [vmem:[%s366_s1 + $0x10] sm:$0xff]  ;;  %19 = vst.msk [vmem:[#allocation2] sm:$0x3] %vm18_vm0, %v283_v2  ;;  %v264_v3 = vld [vmem:[%s367_s2] ss:$0 sm:$0xff] }
   0x2   :  { %43 = vmatpush.msra.mxu0 %v23_v0  ;;  %121 = vmatpush.msra.mxu1 %v23_v0  ;;  %v21_v4 = vld [vmem:[%s366_s1 + $0x8] sm:$0xff]  ;;  %v20_v5 = vld [vmem:[%s366_s1] sm:$0xff]  ;;  %s285_s2 = smov 32  }
   0x3   :  { %191 = vmatpush.msra.mxu2 %v23_v0  ;;  %73 = vrot.lane.b32.xlu0 %v264_v3, %s284_s20  ;;  %v26_v10 = vld [vmem:[%s368_s0] sm:$0x3]  ;;  %v252_v39 = vld [vmem:[%s368_s0 + $0x2] sm:$0x3]  ;;  %v256_v3 = vld [vmem:[%s368_s0 + $0x4] sm:$0x3] }
   0x4   :  { %44 = vmatpush.msra.mxu0 %v22_v1  ;;  %122 = vmatpush.msra.mxu1 %v22_v1 }
   0x5   :  { %192 = vmatpush.msra.mxu2 %v22_v1 }
   0x6   :  { %45 = vmatpush.msra.mxu0 %v21_v4  ;;  %123 = vmatpush.msra.mxu1 %v21_v4 }
   0x7   :  { %193 = vmatpush.msra.mxu2 %v21_v4 }
   0x8   :  { %46 = vmatpush.msra.mxu0 %v20_v5  ;;  %v25_v6 = vld [vmem:[#allocation2] sm:$0x3]  ;;  %124 = vmatpush.msra.mxu1 %v20_v5 }
   0x9   :  { %250 = vmatmul.msk.f32.vlgmr.msra.gmra.mxu0 %vm27_vm1, %v25_v6  ;;  %94 = vrot.lane.b32.xlu2 %v25_v6, %s285_s2 }
   0xa   :  { %194 = vmatpush.msra.mxu2 %v20_v5 }
  0x63   :  { %v95_v30 = vpop.permute.xlu2 %94 }
  0x75   :  { %v325_v7 = vpop.permute.xlu0 %73 }
  0x86   :  { %v48_v8 = vpop.f32.mrf.mxu0 }
  0x87   :  { %v76_v9 = vadd.f32 %v325_v7, %v48_v8  ;;  %v51_v11 = vadd.f32 %v48_v8, %v26_v10 }
  0x89   :  { %78 = vrot.lane.b32.xlu0 %v76_v9, %s284_s20  ;;  %v251_v12 = vmul.f32 -1.442695, %v51_v11 }
  0x8b   :  { %265 = vpow2.f32 %v251_v12 }
  0x91   :  { %v266_v13 = vpop.eup %265 }
  0x92   :  { %v55_v14 = vadd.f32 1.0, %v266_v13 }
  0x94   :  { %267 = vrcp.f32 %v55_v14  ;;  %v67_v20 = vand.u32 2147483648, %v55_v14  ;;  %vm61_vm3 = vweird.f32 %v55_v14  ;;  %v65_v21 = vand.u32 2147483647, %v55_v14 }
  0x96   :  { %v68_v23 = vor.u32 1.1754944e-38, %v67_v20  ;;  %vm66_vm5 = vcmp.eq.f32.partialorder %v65_v21, 8.507059e+37 }
  0x9a   :  { %v268_v15 = vpop.eup %267 }
  0x9b   :  { %v57_v16 = vmul.f32 %v268_v15, %v55_v14  ;;  %vm62_vm2 = vweird.f32 %v268_v15 }
  0x9c   :  { %vm63_vm4 = vmor %vm61_vm3, %vm62_vm2 }
  0x9d   :  { %v58_v17 = vsub.f32 1.0, %v57_v16 }
  0x9f   :  { %v59_v18 = vmul.f32 %v268_v15, %v58_v17 }
  0xa1   :  { %v60_v19 = vadd.f32 %v268_v15, %v59_v18 }
  0xa3   :  { %v64_v22 = vsel %vm63_vm4, %v268_v15, %v60_v19 }
  0xa4   :  { %v69_v24 = vsel %vm66_vm5, %v68_v23, %v64_v22 }
  0xa5   :  { %v88_v31 = vsub.f32 1.0, %v69_v24  ;;  %v97_v33 = vmul.f32 %v95_v30, %v69_v24 }
  0xfb   :  { %v79_v25 = vpop.permute.xlu0 %78 }
  0xfc   :  { %v81_v26 = vmul.f32 %v79_v25, %v69_v24 }
  0xfe   :  { %83 = vrot.lane.b32.xlu1 %v81_v26, %s284_s20 }
 0x170   :  { %v84_v27 = vpop.permute.xlu1 %83 }
 0x171   :  { %v86_v28 = vadd.f32 %v84_v27, %v26_v10 }
 0x173   :  { %269 = vtanh.f32 %v86_v28 }
 0x179   :  { %v270_v29 = vpop.eup %269 }
 0x17a   :  { %90 = vrot.lane.b32.xlu1 %v270_v29, %s286_s24 }
 0x1ec   :  { %v91_v32 = vpop.permute.xlu1 %90 }
 0x1ed   :  { %v93_v34 = vmul.f32 %v91_v32, %v88_v31 }
 0x1ef   :  { %v98_v35 = vadd.f32 %v97_v33, %v93_v34 }
 0x1f1   :  { %100 = vrot.lane.b32.xlu2 %v98_v35, %s286_s24 }
 0x24b   :  { %v101_v36 = vpop.permute.xlu2 %100 }
 0x24c   :  { %104 = vst.msk [vmem:[%s369_s3] sm:$0x3] %vm18_vm0, %v101_v36  ;;  %253 = vmatmul.msk.f32.vlgmr.msra.gmra.mxu1 %vm27_vm1, %v101_v36 }
 0x2c9   :  { %v126_v37 = vpop.f32.mrf.mxu1 }
 0x2ca   :  { %v149_v38 = vadd.f32 %v126_v37, %v325_v7  ;;  %v129_v40 = vadd.f32 %v252_v39, %v126_v37 }
 0x2cc   :  { %151 = vrot.lane.b32.xlu0 %v149_v38, %s284_s20  ;;  %v254_v41 = vmul.f32 -1.442695, %v129_v40 }
 0x2ce   :  { %271 = vpow2.f32 %v254_v41 }
 0x2d4   :  { %v272_v42 = vpop.eup %271 }
 0x2d5   :  { %v133_v43 = vadd.f32 1.0, %v272_v42 }
 0x2d7   :  { %273 = vrcp.f32 %v133_v43  ;;  %v145_v49 = vand.u32 2147483648, %v133_v43  ;;  %vm139_vm7 = vweird.f32 %v133_v43  ;;  %v143_v50 = vand.u32 2147483647, %v133_v43 }
 0x2d9   :  { %v146_v52 = vor.u32 1.1754944e-38, %v145_v49  ;;  %vm144_vm9 = vcmp.eq.f32.partialorder %v143_v50, 8.507059e+37 }
 0x2dd   :  { %v274_v44 = vpop.eup %273 }
 0x2de   :  { %v135_v45 = vmul.f32 %v274_v44, %v133_v43  ;;  %vm140_vm6 = vweird.f32 %v274_v44 }
 0x2df   :  { %vm141_vm8 = vmor %vm139_vm7, %vm140_vm6 }
 0x2e0   :  { %v136_v46 = vsub.f32 1.0, %v135_v45 }
 0x2e2   :  { %v137_v47 = vmul.f32 %v274_v44, %v136_v46 }
 0x2e4   :  { %v138_v48 = vadd.f32 %v274_v44, %v137_v47 }
 0x2e6   :  { %v142_v51 = vsel %vm141_vm8, %v274_v44, %v138_v48 }
 0x2e7   :  { %v147_v54 = vsel %vm144_vm9, %v146_v52, %v142_v51 }
 0x2e8   :  { %v161_v59 = vsub.f32 1.0, %v147_v54  ;;  %v167_v61 = vmul.f32 %v147_v54, %v98_v35 }
 0x33e   :  { %v152_v53 = vpop.permute.xlu0 %151 }
 0x33f   :  { %v154_v55 = vmul.f32 %v152_v53, %v147_v54 }
 0x341   :  { %156 = vrot.lane.b32.xlu1 %v154_v55, %s284_s20 }
 0x3b3   :  { %v157_v56 = vpop.permute.xlu1 %156 }
 0x3b4   :  { %v159_v57 = vadd.f32 %v252_v39, %v157_v56 }
 0x3b6   :  { %275 = vtanh.f32 %v159_v57 }
 0x3bc   :  { %v276_v58 = vpop.eup %275 }
 0x3bd   :  { %163 = vrot.lane.b32.xlu2 %v276_v58, %s286_s24 }
 0x417   :  { %v164_v60 = vpop.permute.xlu2 %163 }
 0x418   :  { %v166_v62 = vmul.f32 %v164_v60, %v161_v59 }
 0x41a   :  { %v168_v63 = vadd.f32 %v167_v61, %v166_v62 }
 0x41c   :  { %170 = vrot.lane.b32.xlu0 %v168_v63, %s286_s24 }
 0x48e   :  { %v171_v0 = vpop.permute.xlu0 %170 }
 0x48f   :  { %255 = vst.msk [vmem:[%s369_s3 + $0x2] sm:$0x3] %vm18_vm0, %v171_v0  ;;  %257 = vmatmul.msk.f32.vlgmr.msra.gmra.mxu2 %vm27_vm1, %v171_v0 }
 0x512   :  { %v196_v1 = vpop.f32.mrf.mxu2 }
 0x513   :  { %v219_v2 = vadd.f32 %v196_v1, %v325_v7  ;;  %v199_v4 = vadd.f32 %v256_v3, %v196_v1 }
 0x515   :  { %221 = vrot.lane.b32.xlu1 %v219_v2, %s284_s20  ;;  %v258_v5 = vmul.f32 -1.442695, %v199_v4 }
 0x517   :  { %277 = vpow2.f32 %v258_v5 }
 0x51d   :  { %v278_v6 = vpop.eup %277 }
 0x51e   :  { %v203_v8 = vadd.f32 1.0, %v278_v6 }
 0x520   :  { %279 = vrcp.f32 %v203_v8  ;;  %v215_v14 = vand.u32 2147483648, %v203_v8  ;;  %vm209_vm11 = vweird.f32 %v203_v8  ;;  %v213_v7 = vand.u32 2147483647, %v203_v8 }
 0x522   :  { %v216_v16 = vor.u32 1.1754944e-38, %v215_v14  ;;  %vm214_vm13 = vcmp.eq.f32.partialorder %v213_v7, 8.507059e+37 }
 0x526   :  { %v280_v9 = vpop.eup %279 }
 0x527   :  { %v205_v10 = vmul.f32 %v280_v9, %v203_v8  ;;  %vm210_vm10 = vweird.f32 %v280_v9 }
 0x528   :  { %vm211_vm12 = vmor %vm209_vm11, %vm210_vm10 }
 0x529   :  { %v206_v11 = vsub.f32 1.0, %v205_v10 }
 0x52b   :  { %v207_v12 = vmul.f32 %v280_v9, %v206_v11 }
 0x52d   :  { %v208_v13 = vadd.f32 %v280_v9, %v207_v12 }
 0x52f   :  { %v212_v15 = vsel %vm211_vm12, %v280_v9, %v208_v13 }
 0x530   :  { %v217_v18 = vsel %vm214_vm13, %v216_v16, %v212_v15 }
 0x531   :  { %v231_v23 = vsub.f32 1.0, %v217_v18  ;;  %v237_v25 = vmul.f32 %v217_v18, %v168_v63 }
 0x587   :  { %v222_v17 = vpop.permute.xlu1 %221 }
 0x588   :  { %v224_v19 = vmul.f32 %v222_v17, %v217_v18 }
 0x58a   :  { %226 = vrot.lane.b32.xlu2 %v224_v19, %s284_s20 }
 0x5e4   :  { %v227_v20 = vpop.permute.xlu2 %226 }
 0x5e5   :  { %v229_v21 = vadd.f32 %v256_v3, %v227_v20 }
 0x5e7   :  { %281 = vtanh.f32 %v229_v21 }
 0x5ed   :  { %v282_v22 = vpop.eup %281 }
 0x5ee   :  { %233 = vrot.lane.b32.xlu0 %v282_v22, %s286_s24 }
 0x660   :  { %v234_v24 = vpop.permute.xlu0 %233 }
 0x661   :  { %v236_v26 = vmul.f32 %v234_v24, %v231_v23 }
 0x663   :  { %v238_v27 = vadd.f32 %v237_v25, %v236_v26 }
 0x665   :  { %240 = vrot.lane.b32.xlu1 %v238_v27, %s286_s24 }
 0x6d7   :  { %v241_v28 = vpop.permute.xlu1 %240 }
 0x6d8   :  { %259 = vst.msk [vmem:[%s369_s3 + $0x4] sm:$0x3] %vm18_vm0, %v241_v28 }
 0x6d9   :  { %245 = vst.msk [vmem:[#allocation2] sm:$0x3] %vm18_vm0, %v241_v28 }

// kernel: chrononet_forward.25
= control target key start
LH: loop header
LB: loop body
LE: loop exit
PB: predicated region body
PF: predicated region fallthrough
CT: control target
= control target key end

     0   :  { %vm38_vm0 = vcmask 261120   ;;  %vm134_vm1 = vcmask 523264   ;;  %s241_s2 = inlined_call_operand.vmem [shape: f32[32,192], index: 2, kind: input, shape index: {}]   ;;  %s242_s3 = inlined_call_operand.vmem [shape: f32[32,192], index: 3, kind: input, shape index: {}]   ;;  %s243_s0 = inlined_call_operand.vmem [shape: f32[8,32], index: 0, kind: input, shape index: {}]   ;;  %s244_s1 = inlined_call_operand.vmem [shape: f32[8,32], index: 1, kind: input, shape index: {}]   ;;  %s245_s4 = inlined_call_operand.vmem [shape: f32[1,192], index: 4, kind: input, shape index: {}]   ;;  %s246_s5 = inlined_call_operand.vmem [shape: f32[8,192], index: 5, kind: output, shape index: {}]  }
   0x1   :  { %v27_v0 = vld [vmem:[%s241_s2 + $0x30] sm:$0xff]  ;;  %v28_v1 = vld [vmem:[%s241_s2 + $0x38] sm:$0xff]  ;;  %v25_v2 = vld [vmem:[%s241_s2 + $0x20] sm:$0xff] }
   0x2   :  { %97 = vmatpush.msra.mxu2 %v27_v0  ;;  %117 = vmatpush.msra.mxu3 %v28_v1  ;;  %v26_v3 = vld [vmem:[%s241_s2 + $0x28] sm:$0xff]  ;;  %v23_v4 = vld [vmem:[%s241_s2 + $0x10] sm:$0xff]  ;;  %v24_v5 = vld [vmem:[%s241_s2 + $0x18] sm:$0xff] }
   0x3   :  { %v36_v6 = vld [vmem:[%s242_s3 + $0x30] sm:$0xff]  ;;  %v37_v7 = vld [vmem:[%s242_s3 + $0x38] sm:$0xff]  ;;  %v34_v8 = vld [vmem:[%s242_s3 + $0x20] sm:$0xff] }
   0x4   :  { %98 = vmatpush.msra.mxu2 %v25_v2  ;;  %118 = vmatpush.msra.mxu3 %v26_v3  ;;  %v21_v9 = vld [vmem:[%s241_s2] sm:$0xff]  ;;  %v22_v10 = vld [vmem:[%s241_s2 + $0x8] sm:$0xff]  ;;  %v32_v13 = vld [vmem:[%s242_s3 + $0x10] sm:$0xff] }
   0x5   :  { %54 = vmatpush.msra.mxu0 %v36_v6  ;;  %74 = vmatpush.msra.mxu1 %v37_v7  ;;  %v35_v11 = vld [vmem:[%s242_s3 + $0x28] sm:$0xff]  ;;  %v20_v12 = vld [vmem:[%s243_s0] sm:$0xff]  ;;  %v33_v14 = vld [vmem:[%s242_s3 + $0x18] sm:$0xff] }
   0x6   :  { %99 = vmatpush.msra.mxu2 %v23_v4  ;;  %119 = vmatpush.msra.mxu3 %v24_v5  ;;  %v30_v15 = vld [vmem:[%s242_s3] sm:$0xff]  ;;  %v31_v16 = vld [vmem:[%s242_s3 + $0x8] sm:$0xff] }
   0x7   :  { %55 = vmatpush.msra.mxu0 %v34_v8  ;;  %75 = vmatpush.msra.mxu1 %v35_v11  ;;  %v29_v17 = vld [vmem:[%s244_s1] sm:$0xff] }
   0x8   :  { %100 = vmatpush.msra.mxu2 %v21_v9  ;;  %120 = vmatpush.msra.mxu3 %v22_v10  ;;  %v125_v18 = vld [vmem:[%s245_s4] sm:$0x3] }
   0x9   :  { %142 = vmatmul.msk.f32.vlgmr.msra.gmra.mxu2 %vm38_vm0, %v20_v12  ;;  %143 = vmatmul.msk.f32.vlgmr.msra.gmra.mxu3 %vm38_vm0, %v20_v12  ;;  %v127_v21 = vperm.slane %v125_v18, 0  ;;  %v128_v22 = vperm.slane %v125_v18, 1 }
   0xa   :  { %56 = vmatpush.msra.mxu0 %v32_v13  ;;  %76 = vmatpush.msra.mxu1 %v33_v14 }
   0xc   :  { %57 = vmatpush.msra.mxu0 %v30_v15  ;;  %77 = vmatpush.msra.mxu1 %v31_v16 }
   0xd   :  { %140 = vmatmul.msk.f32.vlgmr.msra.gmra.mxu0 %vm38_vm0, %v29_v17  ;;  %141 = vmatmul.msk.f32.vlgmr.msra.gmra.mxu1 %vm38_vm0, %v29_v17 }
  0x8a   :  { %v59_v19 = vpop.f32.mrf.mxu0  ;;  %v79_v20 = vpop.f32.mrf.mxu1 }
  0x8c   :  { %v102_v23 = vpop.f32.mrf.mxu2  ;;  %v122_v24 = vpop.f32.mrf.mxu3 }
  0x8d   :  { %v103_v25 = vadd.f32 %v102_v23, %v59_v19  ;;  %v123_v26 = vadd.f32 %v122_v24, %v79_v20 }
  0x8f   :  { %v131_v27 = vadd.f32 %v127_v21, %v103_v25  ;;  %v132_v28 = vadd.f32 %v128_v22, %v123_v26 }
  0x91   :  { %133 = vst [vmem:[%s246_s5] sm:$0xff] %v131_v27 }
  0x92   :  { %135 = vst.msk [vmem:[%s246_s5 + $0x8] sm:$0xff] %vm134_vm1, %v132_v28 }

// kernel: chrononet_forward.27
= control target key start
LH: loop header
LB: loop body
LE: loop exit
PB: predicated region body
PF: predicated region fallthrough
CT: control target
= control target key end

     0   :  { %vm50_vm0 = vcmask 261120   ;;  %vm254_vm1 = vcmask 523264   ;;  %s443_s5 = inlined_call_operand.vmem [shape: f32[32,192], index: 5, kind: input, shape index: {}]   ;;  %s444_s4 = inlined_call_operand.vmem [shape: f32[32,192], index: 4, kind: input, shape index: {}]   ;;  %s445_s1 = inlined_call_operand.vmem [shape: f32[8,32], index: 1, kind: input, shape index: {}]   ;;  %s446_s0 = inlined_call_operand.vmem [shape: f32[8,32], index: 0, kind: input, shape index: {}]   ;;  %s447_s7 = inlined_call_operand.vmem [shape: f32[32,192], index: 7, kind: input, shape index: {}]   ;;  %s448_s6 = inlined_call_operand.vmem [shape: f32[32,192], index: 6, kind: input, shape index: {}]   ;;  %s449_s2 = inlined_call_operand.vmem [shape: f32[8,32], index: 2, kind: input, shape index: {}]   ;;  %s450_s3 = inlined_call_operand.vmem [shape: f32[8,32], index: 3, kind: input, shape index: {}]   ;;  %s451_s8 = inlined_call_operand.vmem [shape: f32[1,192], index: 8, kind: input, shape index: {}]   ;;  %s452_s9 = inlined_call_operand.vmem [shape: f32[8,192], index: 9, kind: output, shape index: {}]  }
   0x1   :  { %v48_v0 = vld [vmem:[%s443_s5 + $0x30] sm:$0xff]  ;;  %v49_v1 = vld [vmem:[%s443_s5 + $0x38] sm:$0xff]  ;;  %v46_v4 = vld [vmem:[%s443_s5 + $0x20] sm:$0xff] }
   0x2   :  { %v39_v2 = vld [vmem:[%s444_s4 + $0x30] sm:$0xff]  ;;  %66 = vmatpush.msra.mxu0 %v48_v0  ;;  %86 = vmatpush.msra.mxu1 %v49_v1  ;;  %v40_v3 = vld [vmem:[%s444_s4 + $0x38] sm:$0xff]  ;;  %v47_v5 = vld [vmem:[%s443_s5 + $0x28] sm:$0xff] }
   0x3   :  { %109 = vmatpush.msra.mxu2 %v39_v2  ;;  %129 = vmatpush.msra.mxu3 %v40_v3  ;;  %v37_v6 = vld [vmem:[%s444_s4 + $0x20] sm:$0xff]  ;;  %v38_v7 = vld [vmem:[%s444_s4 + $0x28] sm:$0xff]  ;;  %v44_v8 = vld [vmem:[%s443_s5 + $0x10] sm:$0xff] }
   0x4   :  { %67 = vmatpush.msra.mxu0 %v46_v4  ;;  %87 = vmatpush.msra.mxu1 %v47_v5  ;;  %v45_v9 = vld [vmem:[%s443_s5 + $0x18] sm:$0xff]  ;;  %v35_v10 = vld [vmem:[%s444_s4 + $0x10] sm:$0xff]  ;;  %v42_v12 = vld [vmem:[%s443_s5] sm:$0xff] }
   0x5   :  { %v36_v11 = vld [vmem:[%s444_s4 + $0x18] sm:$0xff]  ;;  %110 = vmatpush.msra.mxu2 %v37_v6  ;;  %130 = vmatpush.msra.mxu3 %v38_v7  ;;  %v43_v13 = vld [vmem:[%s443_s5 + $0x8] sm:$0xff]  ;;  %v33_v14 = vld [vmem:[%s444_s4] sm:$0xff] }
   0x6   :  { %68 = vmatpush.msra.mxu0 %v44_v8  ;;  %88 = vmatpush.msra.mxu1 %v45_v9  ;;  %v34_v15 = vld [vmem:[%s444_s4 + $0x8] sm:$0xff]  ;;  %v41_v16 = vld [vmem:[%s445_s1] sm:$0xff]  ;;  %v198_v18 = vld [vmem:[%s447_s7 + $0x30] sm:$0xff] }
   0x7   :  { %111 = vmatpush.msra.mxu2 %v35_v10  ;;  %131 = vmatpush.msra.mxu3 %v36_v11  ;;  %v32_v17 = vld [vmem:[%s446_s0] sm:$0xff]  ;;  %v199_v19 = vld [vmem:[%s447_s7 + $0x38] sm:$0xff]  ;;  %v144_v20 = vld [vmem:[%s448_s6 + $0x30] sm:$0xff] }
   0x8   :  { %69 = vmatpush.msra.mxu0 %v42_v12  ;;  %89 = vmatpush.msra.mxu1 %v43_v13  ;;  %v145_v21 = vld [vmem:[%s448_s6 + $0x38] sm:$0xff]  ;;  %v196_v22 = vld [vmem:[%s447_s7 + $0x20] sm:$0xff]  ;;  %v197_v23 = vld [vmem:[%s447_s7 + $0x28] sm:$0xff] }
   0x9   :  { %112 = vmatpush.msra.mxu2 %v33_v14  ;;  %132 = vmatpush.msra.mxu3 %v34_v15  ;;  %v142_v24 = vld [vmem:[%s448_s6 + $0x20] sm:$0xff]  ;;  %v143_v25 = vld [vmem:[%s448_s6 + $0x28] sm:$0xff]  ;;  %v194_v26 = vld [vmem:[%s447_s7 + $0x10] sm:$0xff] }
   0xa   :  { %260 = vmatmul.msk.f32.vlgmr.msra.gmra.mxu0 %vm50_vm0, %v41_v16  ;;  %261 = vmatmul.msk.f32.vlgmr.msra.gmra.mxu1 %vm50_vm0, %v41_v16  ;;  %v195_v27 = vld [vmem:[%s447_s7 + $0x18] sm:$0xff]  ;;  %v140_v28 = vld [vmem:[%s448_s6 + $0x10] sm:$0xff]  ;;  %v192_v30 = vld [vmem:[%s447_s7] sm:$0xff] }
   0xb   :  { %262 = vmatmul.msk.f32.vlgmr.msra.gmra.mxu2 %vm50_vm0, %v32_v17  ;;  %263 = vmatmul.msk.f32.vlgmr.msra.gmra.mxu3 %vm50_vm0, %v32_v17  ;;  %v141_v29 = vld [vmem:[%s448_s6 + $0x18] sm:$0xff]  ;;  %v193_v31 = vld [vmem:[%s447_s7 + $0x8] sm:$0xff]  ;;  %v138_v32 = vld [vmem:[%s448_s6] sm:$0xff] }
   0xc   :  { %215 = vmatpush.msrb.mxu2 %v198_v18  ;;  %235 = vmatpush.msrb.mxu3 %v199_v19  ;;  %v139_v33 = vld [vmem:[%s448_s6 + $0x8] sm:$0xff]  ;;  %v137_v34 = vld [vmem:[%s449_s2] sm:$0xff] }
   0xd   :  { %161 = vmatpush.msrb.mxu0 %v144_v20  ;;  %181 = vmatpush.msrb.mxu1 %v145_v21  ;;  %v191_v35 = vld [vmem:[%s450_s3] sm:$0xff] }
   0xe   :  { %216 = vmatpush.msrb.mxu2 %v196_v22  ;;  %236 = vmatpush.msrb.mxu3 %v197_v23  ;;  %v245_v44 = vld [vmem:[%s451_s8] sm:$0x3] }
   0xf   :  { %162 = vmatpush.msrb.mxu0 %v142_v24  ;;  %182 = vmatpush.msrb.mxu1 %v143_v25  ;;  %v247_v47 = vperm.slane %v245_v44, 0  ;;  %v248_v48 = vperm.slane %v245_v44, 1 }
  0x10   :  { %217 = vmatpush.msrb.mxu2 %v194_v26  ;;  %237 = vmatpush.msrb.mxu3 %v195_v27 }
  0x11   :  { %163 = vmatpush.msrb.mxu0 %v140_v28  ;;  %183 = vmatpush.msrb.mxu1 %v141_v29 }
  0x12   :  { %218 = vmatpush.msrb.mxu2 %v192_v30  ;;  %238 = vmatpush.msrb.mxu3 %v193_v31 }
  0x13   :  { %164 = vmatpush.msrb.mxu0 %v138_v32  ;;  %184 = vmatpush.msrb.mxu1 %v139_v33 }
  0x14   :  { %264 = vmatmul.msk.f32.vlgmr.msrb.gmra.mxu0 %vm50_vm0, %v137_v34  ;;  %265 = vmatmul.msk.f32.vlgmr.msrb.gmra.mxu1 %vm50_vm0, %v137_v34 }
  0x15   :  { %266 = vmatmul.msk.f32.vlgmr.msrb.gmra.mxu2 %vm50_vm0, %v191_v35  ;;  %267 = vmatmul.msk.f32.vlgmr.msrb.gmra.mxu3 %vm50_vm0, %v191_v35 }
  0x87   :  { %v71_v36 = vpop.f32.mrf.mxu0  ;;  %v91_v37 = vpop.f32.mrf.mxu1 }
  0x8e   :  { %v114_v38 = vpop.f32.mrf.mxu2  ;;  %v134_v39 = vpop.f32.mrf.mxu3 }
  0x8f   :  { %v115_v40 = vadd.f32 %v114_v38, %v71_v36  ;;  %v135_v41 = vadd.f32 %v134_v39, %v91_v37 }
  0x91   :  { %v166_v42 = vpop.f32.mrf.mxu0  ;;  %v186_v43 = vpop.f32.mrf.mxu1 }
  0x92   :  { %v189_v45 = vadd.f32 %v166_v42, %v115_v40  ;;  %v190_v46 = vadd.f32 %v186_v43, %v135_v41 }
  0x98   :  { %v220_v49 = vpop.f32.mrf.mxu2  ;;  %v240_v50 = vpop.f32.mrf.mxu3 }
  0x99   :  { %v243_v51 = vadd.f32 %v220_v49, %v189_v45  ;;  %v244_v52 = vadd.f32 %v240_v50, %v190_v46 }
  0x9b   :  { %v251_v53 = vadd.f32 %v247_v47, %v243_v51  ;;  %v252_v54 = vadd.f32 %v248_v48, %v244_v52 }
  0x9d   :  { %253 = vst [vmem:[%s452_s9] sm:$0xff] %v251_v53 }
  0x9e   :  { %255 = vst.msk [vmem:[%s452_s9 + $0x8] sm:$0xff] %vm254_vm1, %v252_v54 }

// kernel: chrononet_forward.26
= control target key start
LH: loop header
LB: loop body
LE: loop exit
PB: predicated region body
PF: predicated region fallthrough
CT: control target
= control target key end

     0   :  { %vm62_vm0 = vcmask 254976   ;;  %v665_v0 = vmov 0.0   ;;  %s666_s13 = smov 32   ;;  %s667_s28 = smov 64   ;;  %vm91_vm1 = vcmask 261120   ;;  %vm93_vm2 = vcmask 523264   ;;  %s875_s2 = inlined_call_operand.vmem [shape: f32[64,192], index: 2, kind: input, shape index: {}]   ;;  %s876_s3 = inlined_call_operand.vmem [shape: f32[1,64], index: 3, kind: input, shape index: {}]   ;;  %s877_s0 = inlined_call_operand.vmem [shape: f32[3,2,192], index: 0, kind: input, shape index: {}, may-alias: {0,1}]   ;;  %s878_s1 = inlined_call_operand.vmem [shape: f32[3,2,192], index: 1, kind: input, shape index: {}, may-alias: {0,1}]   ;;  %s879_s5 = inlined_call_operand.vmem [shape: f32[3,2,32], index: 5, kind: output, shape index: {1}]   ;;  %s880_s4 = inlined_call_operand.vmem [shape: f32[3,2,32], index: 4, kind: output, shape index: {0}]  }
   0x1   :  { %64 = vst.msk [vmem:[#allocation3] sm:$0x3] %vm62_vm0, %v665_v0  ;;  %v79_v1 = vld [vmem:[%s875_s2 + $0x70] sm:$0xff]  ;;  %v80_v2 = vld [vmem:[%s875_s2 + $0x78] sm:$0xff]  ;;  %v77_v3 = vld [vmem:[%s875_s2 + $0x60] sm:$0xff]  ;;  %s668_s6 = smov 96  }
   0x2   :  { %63 = vst.msk [vmem:[#allocation2] sm:$0x3] %vm62_vm0, %v665_v0  ;;  %105 = vmatpush.msra.mxu0 %v79_v1  ;;  %125 = vmatpush.msra.mxu1 %v80_v2  ;;  %v78_v4 = vld [vmem:[%s875_s2 + $0x68] sm:$0xff]  ;;  %v75_v5 = vld [vmem:[%s875_s2 + $0x50] sm:$0xff]  ;;  %v76_v6 = vld [vmem:[%s875_s2 + $0x58] sm:$0xff]  ;;  %vm189_vm7 = vcmask 1041408  }
   0x3   :  { %274 = vmatpush.msra.mxu2 %v79_v1  ;;  %294 = vmatpush.msra.mxu3 %v80_v2  ;;  %v73_v7 = vld [vmem:[%s875_s2 + $0x40] sm:$0xff]  ;;  %v74_v8 = vld [vmem:[%s875_s2 + $0x48] sm:$0xff]  ;;  %v71_v9 = vld [vmem:[%s875_s2 + $0x30] sm:$0xff] }
   0x4   :  { %106 = vmatpush.msra.mxu0 %v77_v3  ;;  %126 = vmatpush.msra.mxu1 %v78_v4  ;;  %v72_v10 = vld [vmem:[%s875_s2 + $0x38] sm:$0xff]  ;;  %v69_v12 = vld [vmem:[%s875_s2 + $0x20] sm:$0xff]  ;;  %v70_v13 = vld [vmem:[%s875_s2 + $0x28] sm:$0xff] }
   0x5   :  { %275 = vmatpush.msra.mxu2 %v77_v3  ;;  %295 = vmatpush.msra.mxu3 %v78_v4  ;;  %v67_v14 = vld [vmem:[%s875_s2 + $0x10] sm:$0xff]  ;;  %v68_v15 = vld [vmem:[%s875_s2 + $0x18] sm:$0xff]  ;;  %v65_v16 = vld [vmem:[%s875_s2] sm:$0xff] }
   0x6   :  { %107 = vmatpush.msra.mxu0 %v75_v5  ;;  %127 = vmatpush.msra.mxu1 %v76_v6  ;;  %v66_v17 = vld [vmem:[%s875_s2 + $0x8] sm:$0xff]  ;;  %v756_v18 = vld [vmem:[%s876_s3] ss:$0 sm:$0xff] }
   0x7   :  { %276 = vmatpush.msra.mxu2 %v75_v5  ;;  %296 = vmatpush.msra.mxu3 %v76_v6  ;;  %v84_v27 = vld [vmem:[%s877_s0] sm:$0xf]  ;;  %v604_v44 = vld [vmem:[%s878_s1 + $0x8] sm:$0xf] }
   0x8   :  { %v731_v11 = vld [vmem:[#allocation3] sm:$0x3]  ;;  %108 = vmatpush.msra.mxu0 %v73_v7  ;;  %128 = vmatpush.msra.mxu1 %v74_v8 }
   0x9   :  { %88 = vrot.lane.b32.xlu0 %v731_v11, %s666_s13  ;;  %277 = vmatpush.msra.mxu2 %v73_v7  ;;  %v82_v19 = vld [vmem:[#allocation2] sm:$0x3] }
   0xa   :  { %109 = vmatpush.msra.mxu0 %v71_v9  ;;  %129 = vmatpush.msra.mxu1 %v72_v10 }
   0xb   :  { %297 = vmatpush.msra.mxu3 %v74_v8  ;;  %278 = vmatpush.msra.mxu2 %v71_v9 }
   0xc   :  { %110 = vmatpush.msra.mxu0 %v69_v12  ;;  %130 = vmatpush.msra.mxu1 %v70_v13 }
   0xd   :  { %298 = vmatpush.msra.mxu3 %v72_v10  ;;  %279 = vmatpush.msra.mxu2 %v69_v12 }
   0xe   :  { %111 = vmatpush.msra.mxu0 %v67_v14  ;;  %131 = vmatpush.msra.mxu1 %v68_v15 }
   0xf   :  { %299 = vmatpush.msra.mxu3 %v70_v13  ;;  %280 = vmatpush.msra.mxu2 %v67_v14 }
  0x10   :  { %112 = vmatpush.msra.mxu0 %v65_v16  ;;  %132 = vmatpush.msra.mxu1 %v66_v17 }
  0x11   :  { %300 = vmatpush.msra.mxu3 %v68_v15  ;;  %281 = vmatpush.msra.mxu2 %v65_v16 }
  0x12   :  { %431 = vmatpush.msrb.mxu0 %v79_v1  ;;  %451 = vmatpush.msrb.mxu1 %v80_v2 }
  0x13   :  { %301 = vmatpush.msra.mxu3 %v66_v17  ;;  %159 = vrot.lane.b32.xlu0 %v756_v18, %s667_s28 }
  0x14   :  { %432 = vmatpush.msrb.mxu0 %v77_v3  ;;  %452 = vmatpush.msrb.mxu1 %v78_v4 }
  0x16   :  { %433 = vmatpush.msrb.mxu0 %v75_v5  ;;  %453 = vmatpush.msrb.mxu1 %v76_v6 }
  0x18   :  { %434 = vmatpush.msrb.mxu0 %v73_v7  ;;  %454 = vmatpush.msrb.mxu1 %v74_v8 }
  0x1a   :  { %435 = vmatpush.msrb.mxu0 %v71_v9  ;;  %455 = vmatpush.msrb.mxu1 %v72_v10 }
  0x1b   :  { %181 = vrot.lane.b32.xlu0 %v82_v19, %s666_s13 }
  0x1c   :  { %436 = vmatpush.msrb.mxu0 %v69_v12  ;;  %456 = vmatpush.msrb.mxu1 %v70_v13 }
  0x1e   :  { %437 = vmatpush.msrb.mxu0 %v67_v14  ;;  %457 = vmatpush.msrb.mxu1 %v68_v15 }
  0x20   :  { %438 = vmatpush.msrb.mxu0 %v65_v16  ;;  %458 = vmatpush.msrb.mxu1 %v66_v17 }
  0x7b   :  { %v89_v20 = vpop.permute.xlu0 %88 }
  0x7c   :  { %v92_v21 = vsel %vm91_vm1, %v82_v19, %v89_v20 }
  0x7d   :  { %605 = vmatmul.msk.f32.vlgmr.msra.gmra.mxu0 %vm93_vm2, %v92_v21  ;;  %606 = vmatmul.msk.f32.vlgmr.msra.gmra.mxu1 %vm93_vm2, %v92_v21 }
  0x85   :  { %v764_v22 = vpop.permute.xlu0 %159 }
  0x8d   :  { %v182_v2 = vpop.permute.xlu0 %181 }
  0xfa   :  { %v114_v23 = vpop.f32.mrf.mxu0  ;;  %v134_v24 = vpop.f32.mrf.mxu1 }
  0xfb   :  { %v213_v25 = vadd.f32 %v756_v18, %v134_v24  ;;  %v162_v26 = vadd.f32 %v764_v22, %v114_v23  ;;  %v137_v28 = vadd.f32 %v114_v23, %v84_v27  ;;  %v188_v45 = vrot.slane %v134_v24, 6 }
  0xfd   :  { %215 = vrot.lane.b32.xlu2 %v213_v25, %s667_s28  ;;  %164 = vrot.lane.b32.xlu1 %v162_v26, %s667_s28  ;;  %v607_v29 = vmul.f32 -1.442695, %v137_v28  ;;  %v190_v46 = vsel %vm189_vm7, %v114_v23, %v188_v45 }
  0xfe   :  { %v192_v47 = vadd.f32 %v604_v44, %v190_v46 }
  0xff   :  { %629 = vpow2.f32 %v607_v29 }
 0x100   :  { %v608_v48 = vmul.f32 -1.442695, %v192_v47 }
 0x105   :  { %v630_v30 = vpop.eup %629 }
 0x106   :  { %v141_v31 = vadd.f32 1.0, %v630_v30 }
 0x108   :  { %631 = vrcp.f32 %v141_v31  ;;  %v153_v37 = vand.u32 2147483648, %v141_v31  ;;  %vm147_vm4 = vweird.f32 %v141_v31  ;;  %v151_v38 = vand.u32 2147483647, %v141_v31 }
 0x109   :  { %633 = vpow2.f32 %v608_v48 }
 0x10a   :  { %v154_v40 = vor.u32 1.1754944e-38, %v153_v37  ;;  %vm152_vm6 = vcmp.eq.f32.partialorder %v151_v38, 8.507059e+37  ;;  %v611_v37 = vld [vmem:[%s878_s1 + $0x4] sm:$0xf] }
 0x10e   :  { %v632_v32 = vpop.eup %631 }
 0x10f   :  { %v143_v33 = vmul.f32 %v632_v32, %v141_v31  ;;  %vm148_vm3 = vweird.f32 %v632_v32  ;;  %v634_v49 = vpop.eup %633 }
 0x110   :  { %vm149_vm5 = vmor %vm147_vm4, %vm148_vm3  ;;  %v196_v50 = vadd.f32 1.0, %v634_v49 }
 0x111   :  { %v144_v34 = vsub.f32 1.0, %v143_v33 }
 0x112   :  { %635 = vrcp.f32 %v196_v50  ;;  %v208_v59 = vand.u32 2147483648, %v196_v50  ;;  %vm202_vm9 = vweird.f32 %v196_v50  ;;  %v206_v60 = vand.u32 2147483647, %v196_v50 }
 0x113   :  { %v145_v35 = vmul.f32 %v632_v32, %v144_v34 }
 0x114   :  { %v209_v63 = vor.u32 1.1754944e-38, %v208_v59  ;;  %vm207_vm11 = vcmp.eq.f32.partialorder %v206_v60, 8.507059e+37 }
 0x115   :  { %v146_v36 = vadd.f32 %v632_v32, %v145_v35 }
 0x117   :  { %v150_v39 = vsel %vm149_vm5, %v632_v32, %v146_v36  ;;  %v610_v32 = vld [vmem:[%s877_s0 + $0x4] sm:$0xf] }
 0x118   :  { %v155_v41 = vsel %vm152_vm6, %v154_v40, %v150_v39  ;;  %v636_v51 = vpop.eup %635 }
 0x119   :  { %v198_v52 = vmul.f32 %v636_v51, %v196_v50  ;;  %vm203_vm8 = vweird.f32 %v636_v51  ;;  %v174_v3 = vsub.f32 1.0, %v155_v41  ;;  %v184_v5 = vmul.f32 %v182_v2, %v155_v41 }
 0x11a   :  { %vm204_vm10 = vmor %vm202_vm9, %vm203_vm8 }
 0x11b   :  { %v199_v53 = vsub.f32 1.0, %v198_v52 }
 0x11d   :  { %v200_v56 = vmul.f32 %v636_v51, %v199_v53 }
 0x11f   :  { %v201_v57 = vadd.f32 %v636_v51, %v200_v56 }
 0x121   :  { %v205_v61 = vsel %vm204_vm10, %v636_v51, %v201_v57 }
 0x122   :  { %v210_v0 = vsel %vm207_vm11, %v209_v63, %v205_v61 }
 0x123   :  { %v231_v13 = vrot.slane %v210_v0, 2 }
 0x125   :  { %v233_v15 = vsub.f32 1.0, %v231_v13  ;;  %v235_v17 = vmul.f32 %v231_v13, %v731_v11 }
 0x157   :  { %v216_v62 = vpop.permute.xlu2 %215 }
 0x158   :  { %v218_v1 = vmul.f32 %v216_v62, %v210_v0 }
 0x16f   :  { %v165_v42 = vpop.permute.xlu1 %164 }
 0x170   :  { %v167_v43 = vmul.f32 %v165_v42, %v155_v41 }
 0x172   :  { %169 = vrot.lane.b32.xlu1 %v167_v43, %s667_s28 }
 0x17a   :  { %220 = vrot.lane.b32.xlu1 %v604_v44, %s668_s6 }
 0x1e4   :  { %v170_v54 = vpop.permute.xlu1 %169 }
 0x1e5   :  { %v172_v55 = vadd.f32 %v170_v54, %v84_v27 }
 0x1e7   :  { %637 = vtanh.f32 %v172_v55 }
 0x1ec   :  { %v221_v7 = vpop.permute.xlu1 %220 }
 0x1ed   :  { %v638_v58 = vpop.eup %637  ;;  %v222_v9 = vrot.slane %v221_v7, 2 }
 0x1ee   :  { %176 = vrot.lane.b32.xlu2 %v638_v58, %s668_s6 }
 0x1f6   :  { %225 = vrot.lane.b32.xlu2 %v218_v1, %s666_s13 }
 0x248   :  { %v177_v4 = vpop.permute.xlu2 %176 }
 0x249   :  { %v179_v6 = vmul.f32 %v177_v4, %v174_v3 }
 0x24b   :  { %v781_v8 = vadd.f32 %v184_v5, %v179_v6 }
 0x24d   :  { %238 = vst [vmem:[#allocation1] ss:$4 sm:$0xff] %v781_v8 }
 0x250   :  { %v226_v10 = vpop.permute.xlu2 %225 }
 0x251   :  { %v228_v12 = vadd.f32 %v226_v10, %v222_v9 }
 0x253   :  { %639 = vtanh.f32 %v228_v12 }
 0x254   :  { %v784_v14 = vld.sshfl [vmem:[#allocation1] sm:$0xff pattern:$0x73625140] }
 0x255   :  { %251 = vst [vmem:[#allocation1] ss:$4 sm:$0xff] %v781_v8 }
 0x259   :  { %v640_v16 = vpop.eup %639 }
 0x25a   :  { %v234_v19 = vmul.f32 %v640_v16, %v233_v15 }
 0x25c   :  { %v788_v20 = vadd.f32 %v235_v17, %v234_v19  ;;  %v252_v21 = vld.sshfl [vmem:[#allocation1] sm:$0xff pattern:$0x73625140] }
 0x25d   :  { %253 = vrot.lane.b32.xlu0 %v252_v21, %s668_s6 }
 0x25e   :  { %609 = vst.msk [vmem:[%s879_s5 + $0x4] sm:$0x3] %vm62_vm0, %v788_v20 }
 0x25f   :  { %257 = vst [vmem:[#allocation1] ss:$4 sm:$0xff] %v788_v20 }
 0x266   :  { %v258_v23 = vld.sshfl [vmem:[#allocation1] sm:$0xff pattern:$0x73625140] }
 0x267   :  { %259 = vrot.lane.b32.xlu1 %v258_v23, %s666_s13 }
 0x2cf   :  { %v254_v24 = vpop.permute.xlu0 %253 }
 0x2d9   :  { %v260_v25 = vpop.permute.xlu1 %259 }
 0x2da   :  { %v262_v11 = vsel %vm91_vm1, %v254_v24, %v260_v25 }
 0x2db   :  { %612 = vmatmul.msk.f32.vlgmr.msra.gmra.mxu2 %vm93_vm2, %v262_v11  ;;  %613 = vmatmul.msk.f32.vlgmr.msra.gmra.mxu3 %vm93_vm2, %v262_v11 }
 0x35e   :  { %v283_v26 = vpop.f32.mrf.mxu2  ;;  %v303_v27 = vpop.f32.mrf.mxu3 }
 0x35f   :  { %v326_v28 = vadd.f32 %v283_v26, %v764_v22  ;;  %v348_v29 = vrot.slane %v303_v27, 6  ;;  %v371_v30 = vadd.f32 %v756_v18, %v303_v27  ;;  %v306_v33 = vadd.f32 %v610_v32, %v283_v26 }
 0x361   :  { %v349_v31 = vsel %vm189_vm7, %v283_v26, %v348_v29  ;;  %373 = vrot.lane.b32.xlu1 %v371_v30, %s667_s28  ;;  %328 = vrot.lane.b32.xlu2 %v326_v28, %s667_s28  ;;  %v614_v34 = vmul.f32 -1.442695, %v306_v33 }
 0x362   :  { %v351_v38 = vadd.f32 %v611_v37, %v349_v31 }
 0x363   :  { %641 = vpow2.f32 %v614_v34 }
 0x364   :  { %v615_v40 = vmul.f32 -1.442695, %v351_v38 }
 0x369   :  { %v642_v35 = vpop.eup %641 }
 0x36a   :  { %v310_v36 = vadd.f32 1.0, %v642_v35  ;;  %v618_v35 = vld [vmem:[%s877_s0 + $0x8] sm:$0xf] }
 0x36c   :  { %643 = vrcp.f32 %v310_v36  ;;  %v322_v47 = vand.u32 2147483648, %v310_v36  ;;  %vm316_vm13 = vweird.f32 %v310_v36  ;;  %v320_v48 = vand.u32 2147483647, %v310_v36 }
 0x36d   :  { %645 = vpow2.f32 %v615_v40 }
 0x36e   :  { %v323_v50 = vor.u32 1.1754944e-38, %v322_v47  ;;  %vm321_vm15 = vcmp.eq.f32.partialorder %v320_v48, 8.507059e+37 }
 0x372   :  { %v644_v39 = vpop.eup %643 }
 0x373   :  { %v312_v41 = vmul.f32 %v644_v39, %v310_v36  ;;  %v646_v43 = vpop.eup %645  ;;  %vm317_vm12 = vweird.f32 %v644_v39 }
 0x374   :  { %v355_v45 = vadd.f32 1.0, %v646_v43  ;;  %vm318_vm14 = vmor %vm316_vm13, %vm317_vm12 }
 0x375   :  { %v313_v42 = vsub.f32 1.0, %v312_v41 }
 0x376   :  { %647 = vrcp.f32 %v355_v45  ;;  %v367_v59 = vand.u32 2147483648, %v355_v45  ;;  %vm361_vm4 = vweird.f32 %v355_v45  ;;  %v365_v60 = vand.u32 2147483647, %v355_v45 }
 0x377   :  { %v314_v44 = vmul.f32 %v644_v39, %v313_v42 }
 0x378   :  { %v368_v62 = vor.u32 1.1754944e-38, %v367_v59  ;;  %vm366_vm6 = vcmp.eq.f32.partialorder %v365_v60, 8.507059e+37 }
 0x379   :  { %v315_v46 = vadd.f32 %v644_v39, %v314_v44 }
 0x37b   :  { %v319_v49 = vsel %vm318_vm14, %v644_v39, %v315_v46 }
 0x37c   :  { %v324_v52 = vsel %vm321_vm15, %v323_v50, %v319_v49  ;;  %v648_v54 = vpop.eup %647  ;;  %v407_v50 = vld [vmem:[%s878_s1] sm:$0xf] }
 0x37d   :  { %v357_v55 = vmul.f32 %v648_v54, %v355_v45  ;;  %vm362_vm3 = vweird.f32 %v648_v54  ;;  %v338_v19 = vsub.f32 1.0, %v324_v52  ;;  %v344_v23 = vmul.f32 %v324_v52, %v781_v8 }
 0x37e   :  { %vm363_vm5 = vmor %vm361_vm4, %vm362_vm3 }
 0x37f   :  { %v358_v56 = vsub.f32 1.0, %v357_v55 }
 0x381   :  { %v359_v57 = vmul.f32 %v648_v54, %v358_v56 }
 0x383   :  { %v360_v58 = vadd.f32 %v648_v54, %v359_v57 }
 0x385   :  { %v364_v61 = vsel %vm363_vm5, %v648_v54, %v360_v58 }
 0x386   :  { %v369_v0 = vsel %vm366_vm6, %v368_v62, %v364_v61 }
 0x387   :  { %v389_v10 = vrot.slane %v369_v0, 2 }
 0x389   :  { %v391_v12 = vsub.f32 1.0, %v389_v10  ;;  %v393_v15 = vmul.f32 %v389_v10, %v788_v20 }
 0x3bb   :  { %v329_v51 = vpop.permute.xlu2 %328 }
 0x3bc   :  { %v331_v53 = vmul.f32 %v329_v51, %v324_v52 }
 0x3be   :  { %333 = vrot.lane.b32.xlu0 %v331_v53, %s667_s28 }
 0x3c6   :  { %378 = vrot.lane.b32.xlu0 %v611_v37, %s668_s6 }
 0x3d3   :  { %v374_v63 = vpop.permute.xlu1 %373 }
 0x3d4   :  { %v376_v1 = vmul.f32 %v374_v63, %v369_v0 }
 0x3d6   :  { %383 = vrot.lane.b32.xlu1 %v376_v1, %s666_s13 }
 0x430   :  { %v334_v2 = vpop.permute.xlu0 %333 }
 0x431   :  { %v336_v3 = vadd.f32 %v610_v32, %v334_v2 }
 0x433   :  { %649 = vtanh.f32 %v336_v3 }
 0x438   :  { %v379_v5 = vpop.permute.xlu0 %378 }
 0x439   :  { %v650_v4 = vpop.eup %649  ;;  %v380_v6 = vrot.slane %v379_v5, 2 }
 0x43a   :  { %340 = vrot.lane.b32.xlu2 %v650_v4, %s668_s6 }
 0x448   :  { %v384_v7 = vpop.permute.xlu1 %383 }
 0x449   :  { %v386_v9 = vadd.f32 %v384_v7, %v380_v6 }
 0x44b   :  { %651 = vtanh.f32 %v386_v9 }
 0x451   :  { %v652_v13 = vpop.eup %651 }
 0x452   :  { %v392_v16 = vmul.f32 %v652_v13, %v391_v12 }
 0x454   :  { %v817_v17 = vadd.f32 %v393_v15, %v392_v16 }
 0x456   :  { %617 = vst.msk [vmem:[%s879_s5 + $0x2] sm:$0x3] %vm62_vm0, %v817_v17 }
 0x494   :  { %v341_v21 = vpop.permute.xlu2 %340 }
 0x495   :  { %v343_v24 = vmul.f32 %v341_v21, %v338_v19 }
 0x497   :  { %v825_v25 = vadd.f32 %v344_v23, %v343_v24 }
 0x499   :  { %396 = vst [vmem:[#allocation1] ss:$4 sm:$0xff] %v825_v25 }
 0x4a0   :  { %v397_v11 = vld.sshfl [vmem:[#allocation1] sm:$0xff pattern:$0x73625140] }
 0x4a1   :  { %408 = vst [vmem:[#allocation1] ss:$4 sm:$0xff] %v825_v25 }
 0x4a8   :  { %v409_v20 = vld.sshfl [vmem:[#allocation1] sm:$0xff pattern:$0x73625140] }
 0x4a9   :  { %410 = vrot.lane.b32.xlu2 %v409_v20, %s668_s6  ;;  %414 = vst [vmem:[#allocation1] ss:$4 sm:$0xff] %v817_v17 }
 0x4b0   :  { %v415_v26 = vld.sshfl [vmem:[#allocation1] sm:$0xff pattern:$0x73625140] }
 0x4b1   :  { %416 = vrot.lane.b32.xlu0 %v415_v26, %s666_s13 }
 0x503   :  { %v411_v27 = vpop.permute.xlu2 %410 }
 0x523   :  { %v417_v28 = vpop.permute.xlu0 %416 }
 0x524   :  { %v419_v8 = vsel %vm91_vm1, %v411_v27, %v417_v28 }
 0x525   :  { %619 = vmatmul.msk.f32.vlgmr.msrb.gmra.mxu0 %vm93_vm2, %v419_v8  ;;  %620 = vmatmul.msk.f32.vlgmr.msrb.gmra.mxu1 %vm93_vm2, %v419_v8 }
 0x5a2   :  { %v440_v29 = vpop.f32.mrf.mxu0  ;;  %v460_v30 = vpop.f32.mrf.mxu1 }
 0x5a3   :  { %v483_v31 = vadd.f32 %v440_v29, %v764_v22  ;;  %v505_v32 = vrot.slane %v460_v30, 6  ;;  %v528_v34 = vadd.f32 %v756_v18, %v460_v30  ;;  %v463_v36 = vadd.f32 %v618_v35, %v440_v29 }
 0x5a5   :  { %v506_v33 = vsel %vm189_vm7, %v440_v29, %v505_v32  ;;  %485 = vrot.lane.b32.xlu1 %v483_v31, %s667_s28  ;;  %v621_v37 = vmul.f32 -1.442695, %v463_v36 }
 0x5a6   :  { %v508_v52 = vadd.f32 %v506_v33, %v407_v50 }
 0x5a7   :  { %653 = vpow2.f32 %v621_v37 }
 0x5a8   :  { %v622_v53 = vmul.f32 -1.442695, %v508_v52 }
 0x5ad   :  { %530 = vrot.lane.b32.xlu1 %v528_v34, %s667_s28  ;;  %v654_v22 = vpop.eup %653 }
 0x5ae   :  { %v467_v38 = vadd.f32 1.0, %v654_v22 }
 0x5b0   :  { %655 = vrcp.f32 %v467_v38  ;;  %v479_v43 = vand.u32 2147483648, %v467_v38  ;;  %vm473_vm2 = vweird.f32 %v467_v38  ;;  %v477_v44 = vand.u32 2147483647, %v467_v38 }
 0x5b1   :  { %657 = vpow2.f32 %v622_v53 }
 0x5b2   :  { %v480_v45 = vor.u32 1.1754944e-38, %v479_v43  ;;  %vm478_vm8 = vcmp.eq.f32.partialorder %v477_v44, 8.507059e+37 }
 0x5b5   :  { %240 = vrot.lane.b32.xlu1 %v784_v14, %s668_s6 }
 0x5b6   :  { %v656_v39 = vpop.eup %655 }
 0x5b7   :  { %v469_v40 = vmul.f32 %v656_v39, %v467_v38  ;;  %vm474_vm1 = vweird.f32 %v656_v39  ;;  %v658_v54 = vpop.eup %657 }
 0x5b8   :  { %vm475_vm7 = vmor %vm473_vm2, %vm474_vm1  ;;  %v512_v55 = vadd.f32 1.0, %v658_v54 }
 0x5b9   :  { %v470_v41 = vsub.f32 1.0, %v469_v40 }
 0x5ba   :  { %659 = vrcp.f32 %v512_v55  ;;  %v524_v1 = vand.u32 2147483648, %v512_v55  ;;  %vm518_vm10 = vweird.f32 %v512_v55  ;;  %v522_v2 = vand.u32 2147483647, %v512_v55 }
 0x5bb   :  { %v471_v42 = vmul.f32 %v656_v39, %v470_v41 }
 0x5bc   :  { %v525_v4 = vor.u32 1.1754944e-38, %v524_v1  ;;  %vm523_vm12 = vcmp.eq.f32.partialorder %v522_v2, 8.507059e+37 }
 0x5bd   :  { %v472_v18 = vadd.f32 %v656_v39, %v471_v42 }
 0x5bf   :  { %v476_v14 = vsel %vm475_vm7, %v656_v39, %v472_v18 }
 0x5c0   :  { %v481_v47 = vsel %vm478_vm8, %v480_v45, %v476_v14  ;;  %v660_v56 = vpop.eup %659 }
 0x5c1   :  { %v514_v57 = vmul.f32 %v660_v56, %v512_v55  ;;  %vm519_vm9 = vweird.f32 %v660_v56  ;;  %v495_v9 = vsub.f32 1.0, %v481_v47  ;;  %v501_v12 = vmul.f32 %v481_v47, %v825_v25 }
 0x5c2   :  { %vm520_vm11 = vmor %vm518_vm10, %vm519_vm9 }
 0x5c3   :  { %v515_v58 = vsub.f32 1.0, %v514_v57 }
 0x5c5   :  { %v516_v61 = vmul.f32 %v660_v56, %v515_v58 }
 0x5c7   :  { %v517_v62 = vadd.f32 %v660_v56, %v516_v61 }
 0x5c9   :  { %v521_v3 = vsel %vm520_vm11, %v660_v56, %v517_v62 }
 0x5ca   :  { %v526_v5 = vsel %vm523_vm12, %v525_v4, %v521_v3 }
 0x5cb   :  { %v546_v23 = vrot.slane %v526_v5, 2 }
 0x5cd   :  { %v550_v26 = vmul.f32 %v546_v23, %v817_v17 }
 0x617   :  { %v486_v46 = vpop.permute.xlu1 %485 }
 0x618   :  { %v488_v48 = vmul.f32 %v486_v46, %v481_v47 }
 0x61a   :  { %490 = vrot.lane.b32.xlu2 %v488_v48, %s667_s28 }
 0x61f   :  { %v531_v49 = vpop.permute.xlu1 %530 }
 0x620   :  { %v533_v6 = vmul.f32 %v531_v49, %v526_v5 }
 0x622   :  { %535 = vrot.lane.b32.xlu2 %v407_v50, %s668_s6 }
 0x627   :  { %v241_v51 = vpop.permute.xlu1 %240 }
 0x628   :  { %244 = vst.msk [vmem:[%s880_s4] sm:$0x3] %vm62_vm0, %v241_v51 }
 0x62a   :  { %398 = vrot.lane.b32.xlu2 %v397_v11, %s668_s6  ;;  %v548_v11 = vsub.f32 1.0, %v546_v23 }
 0x674   :  { %v491_v59 = vpop.permute.xlu2 %490 }
 0x675   :  { %v493_v60 = vadd.f32 %v618_v35, %v491_v59 }
 0x677   :  { %661 = vtanh.f32 %v493_v60 }
 0x67c   :  { %v536_v63 = vpop.permute.xlu2 %535 }
 0x67d   :  { %v662_v0 = vpop.eup %661  ;;  %v537_v16 = vrot.slane %v536_v63, 2 }
 0x67e   :  { %497 = vrot.lane.b32.xlu0 %v662_v0, %s668_s6 }
 0x684   :  { %v399_v7 = vpop.permute.xlu2 %398 }
 0x685   :  { %616 = vst.msk [vmem:[%s880_s4 + $0x2] sm:$0x3] %vm62_vm0, %v399_v7 }
 0x686   :  { %540 = vrot.lane.b32.xlu0 %v533_v6, %s666_s13 }
 0x6f0   :  { %v498_v10 = vpop.permute.xlu0 %497 }
 0x6f1   :  { %v500_v13 = vmul.f32 %v498_v10, %v495_v9 }
 0x6f3   :  { %v502_v15 = vadd.f32 %v501_v12, %v500_v13 }
 0x6f5   :  { %553 = vst [vmem:[#allocation1] ss:$4 sm:$0xff] %v502_v15 }
 0x6f8   :  { %v541_v19 = vpop.permute.xlu0 %540 }
 0x6f9   :  { %v543_v21 = vadd.f32 %v541_v19, %v537_v16 }
 0x6fb   :  { %663 = vtanh.f32 %v543_v21 }
 0x6fc   :  { %v554_v24 = vld.sshfl [vmem:[#allocation1] sm:$0xff pattern:$0x73625140] }
 0x6fd   :  { %555 = vrot.lane.b32.xlu0 %v554_v24, %s668_s6  ;;  %561 = vst [vmem:[#allocation1] ss:$4 sm:$0xff] %v502_v15 }
 0x701   :  { %v664_v20 = vpop.eup %663 }
 0x702   :  { %v549_v27 = vmul.f32 %v664_v20, %v548_v11 }
 0x704   :  { %v551_v28 = vadd.f32 %v550_v26, %v549_v27  ;;  %v562_v8 = vld.sshfl [vmem:[#allocation1] sm:$0xff pattern:$0x73625140] }
 0x705   :  { %563 = vrot.lane.b32.xlu1 %v562_v8, %s668_s6 }
 0x706   :  { %560 = vst.msk [vmem:[%s879_s5] sm:$0x3] %vm62_vm0, %v551_v28 }
 0x707   :  { %567 = vst.msk [vmem:[#allocation3] sm:$0x3] %vm62_vm0, %v551_v28 }
 0x76f   :  { %v556_v25 = vpop.permute.xlu0 %555 }
 0x770   :  { %623 = vst.msk [vmem:[%s880_s4 + $0x4] sm:$0x3] %vm62_vm0, %v556_v25 }
 0x777   :  { %v564_v29 = vpop.permute.xlu1 %563 }
 0x778   :  { %566 = vst.msk [vmem:[#allocation2] sm:$0x3] %vm62_vm0, %v564_v29 }

// kernel: chrononet_forward.29
= control target key start
LH: loop header
LB: loop body
LE: loop exit
PB: predicated region body
PF: predicated region fallthrough
CT: control target
= control target key end

     0   :  { %vm62_vm0 = vcmask 261120   ;;  %vm374_vm1 = vcmask 523264   ;;  %s645_s7 = inlined_call_operand.vmem [shape: f32[32,192], index: 7, kind: input, shape index: {}]   ;;  %s646_s6 = inlined_call_operand.vmem [shape: f32[32,192], index: 6, kind: input, shape index: {}]   ;;  %s647_s1 = inlined_call_operand.vmem [shape: f32[8,32], index: 1, kind: input, shape index: {}]   ;;  %s648_s0 = inlined_call_operand.vmem [shape: f32[8,32], index: 0, kind: input, shape index: {}]   ;;  %s649_s9 = inlined_call_operand.vmem [shape: f32[32,192], index: 9, kind: input, shape index: {}]   ;;  %s650_s8 = inlined_call_operand.vmem [shape: f32[32,192], index: 8, kind: input, shape index: {}]   ;;  %s651_s2 = inlined_call_operand.vmem [shape: f32[8,32], index: 2, kind: input, shape index: {}]   ;;  %s652_s3 = inlined_call_operand.vmem [shape: f32[8,32], index: 3, kind: input, shape index: {}]   ;;  %s653_s11 = inlined_call_operand.vmem [shape: f32[32,192], index: 11, kind: input, shape index: {}]   ;;  %s654_s10 = inlined_call_operand.vmem [shape: f32[32,192], index: 10, kind: input, shape index: {}]   ;;  %s655_s4 = inlined_call_operand.vmem [shape: f32[8,32], index: 4, kind: input, shape index: {}]   ;;  %s656_s5 = inlined_call_operand.vmem [shape: f32[8,32], index: 5, kind: input, shape index: {}]   ;;  %s657_s12 = inlined_call_operand.vmem [shape: f32[1,192], index: 12, kind: input, shape index: {}]   ;;  %s658_s13 = inlined_call_operand.vmem [shape: f32[8,192], index: 13, kind: output, shape index: {}]  }
   0x1   :  { %v60_v0 = vld [vmem:[%s645_s7 + $0x30] sm:$0xff]  ;;  %v61_v1 = vld [vmem:[%s645_s7 + $0x38] sm:$0xff]  ;;  %v58_v4 = vld [vmem:[%s645_s7 + $0x20] sm:$0xff] }
   0x2   :  { %v51_v2 = vld [vmem:[%s646_s6 + $0x30] sm:$0xff]  ;;  %78 = vmatpush.msra.mxu0 %v60_v0  ;;  %98 = vmatpush.msra.mxu1 %v61_v1  ;;  %v52_v3 = vld [vmem:[%s646_s6 + $0x38] sm:$0xff]  ;;  %v59_v5 = vld [vmem:[%s645_s7 + $0x28] sm:$0xff] }
   0x3   :  { %121 = vmatpush.msra.mxu2 %v51_v2  ;;  %141 = vmatpush.msra.mxu3 %v52_v3  ;;  %v49_v6 = vld [vmem:[%s646_s6 + $0x20] sm:$0xff]  ;;  %v50_v7 = vld [vmem:[%s646_s6 + $0x28] sm:$0xff]  ;;  %v56_v8 = vld [vmem:[%s645_s7 + $0x10] sm:$0xff] }
   0x4   :  { %79 = vmatpush.msra.mxu0 %v58_v4  ;;  %99 = vmatpush.msra.mxu1 %v59_v5  ;;  %v57_v9 = vld [vmem:[%s645_s7 + $0x18] sm:$0xff]  ;;  %v47_v10 = vld [vmem:[%s646_s6 + $0x10] sm:$0xff]  ;;  %v54_v12 = vld [vmem:[%s645_s7] sm:$0xff] }
   0x5   :  { %v48_v11 = vld [vmem:[%s646_s6 + $0x18] sm:$0xff]  ;;  %122 = vmatpush.msra.mxu2 %v49_v6  ;;  %142 = vmatpush.msra.mxu3 %v50_v7  ;;  %v55_v13 = vld [vmem:[%s645_s7 + $0x8] sm:$0xff]  ;;  %v45_v14 = vld [vmem:[%s646_s6] sm:$0xff] }
   0x6   :  { %80 = vmatpush.msra.mxu0 %v56_v8  ;;  %100 = vmatpush.msra.mxu1 %v57_v9  ;;  %v46_v15 = vld [vmem:[%s646_s6 + $0x8] sm:$0xff]  ;;  %v53_v16 = vld [vmem:[%s647_s1] sm:$0xff]  ;;  %v210_v18 = vld [vmem:[%s649_s9 + $0x30] sm:$0xff] }
   0x7   :  { %123 = vmatpush.msra.mxu2 %v47_v10  ;;  %143 = vmatpush.msra.mxu3 %v48_v11  ;;  %v44_v17 = vld [vmem:[%s648_s0] sm:$0xff]  ;;  %v211_v19 = vld [vmem:[%s649_s9 + $0x38] sm:$0xff]  ;;  %v156_v20 = vld [vmem:[%s650_s8 + $0x30] sm:$0xff] }
   0x8   :  { %81 = vmatpush.msra.mxu0 %v54_v12  ;;  %101 = vmatpush.msra.mxu1 %v55_v13  ;;  %v157_v21 = vld [vmem:[%s650_s8 + $0x38] sm:$0xff]  ;;  %v208_v22 = vld [vmem:[%s649_s9 + $0x20] sm:$0xff]  ;;  %v209_v23 = vld [vmem:[%s649_s9 + $0x28] sm:$0xff] }
   0x9   :  { %124 = vmatpush.msra.mxu2 %v45_v14  ;;  %144 = vmatpush.msra.mxu3 %v46_v15  ;;  %v154_v24 = vld [vmem:[%s650_s8 + $0x20] sm:$0xff]  ;;  %v155_v25 = vld [vmem:[%s650_s8 + $0x28] sm:$0xff]  ;;  %v206_v26 = vld [vmem:[%s649_s9 + $0x10] sm:$0xff] }
   0xa   :  { %380 = vmatmul.msk.f32.vlgmr.msra.gmra.mxu0 %vm62_vm0, %v53_v16  ;;  %381 = vmatmul.msk.f32.vlgmr.msra.gmra.mxu1 %vm62_vm0, %v53_v16  ;;  %v207_v27 = vld [vmem:[%s649_s9 + $0x18] sm:$0xff]  ;;  %v152_v28 = vld [vmem:[%s650_s8 + $0x10] sm:$0xff]  ;;  %v204_v30 = vld [vmem:[%s649_s9] sm:$0xff] }
   0xb   :  { %382 = vmatmul.msk.f32.vlgmr.msra.gmra.mxu2 %vm62_vm0, %v44_v17  ;;  %383 = vmatmul.msk.f32.vlgmr.msra.gmra.mxu3 %vm62_vm0, %v44_v17  ;;  %v153_v29 = vld [vmem:[%s650_s8 + $0x18] sm:$0xff]  ;;  %v205_v31 = vld [vmem:[%s649_s9 + $0x8] sm:$0xff]  ;;  %v150_v32 = vld [vmem:[%s650_s8] sm:$0xff] }
   0xc   :  { %227 = vmatpush.msrb.mxu2 %v210_v18  ;;  %247 = vmatpush.msrb.mxu3 %v211_v19  ;;  %v151_v33 = vld [vmem:[%s650_s8 + $0x8] sm:$0xff]  ;;  %v149_v34 = vld [vmem:[%s651_s2] sm:$0xff]  ;;  %v318_v36 = vld [vmem:[%s653_s11 + $0x30] sm:$0xff] }
   0xd   :  { %173 = vmatpush.msrb.mxu0 %v156_v20  ;;  %193 = vmatpush.msrb.mxu1 %v157_v21  ;;  %v203_v35 = vld [vmem:[%s652_s3] sm:$0xff]  ;;  %v319_v37 = vld [vmem:[%s653_s11 + $0x38] sm:$0xff]  ;;  %v264_v38 = vld [vmem:[%s654_s10 + $0x30] sm:$0xff] }
   0xe   :  { %228 = vmatpush.msrb.mxu2 %v208_v22  ;;  %248 = vmatpush.msrb.mxu3 %v209_v23  ;;  %v265_v39 = vld [vmem:[%s654_s10 + $0x38] sm:$0xff]  ;;  %v316_v40 = vld [vmem:[%s653_s11 + $0x20] sm:$0xff]  ;;  %v317_v41 = vld [vmem:[%s653_s11 + $0x28] sm:$0xff] }
   0xf   :  { %174 = vmatpush.msrb.mxu0 %v154_v24  ;;  %194 = vmatpush.msrb.mxu1 %v155_v25  ;;  %v262_v42 = vld [vmem:[%s654_s10 + $0x20] sm:$0xff]  ;;  %v263_v43 = vld [vmem:[%s654_s10 + $0x28] sm:$0xff]  ;;  %v314_v44 = vld [vmem:[%s653_s11 + $0x10] sm:$0xff] }
  0x10   :  { %229 = vmatpush.msrb.mxu2 %v206_v26  ;;  %249 = vmatpush.msrb.mxu3 %v207_v27  ;;  %v315_v45 = vld [vmem:[%s653_s11 + $0x18] sm:$0xff]  ;;  %v260_v46 = vld [vmem:[%s654_s10 + $0x10] sm:$0xff]  ;;  %v312_v48 = vld [vmem:[%s653_s11] sm:$0xff] }
  0x11   :  { %175 = vmatpush.msrb.mxu0 %v152_v28  ;;  %195 = vmatpush.msrb.mxu1 %v153_v29  ;;  %v261_v47 = vld [vmem:[%s654_s10 + $0x18] sm:$0xff]  ;;  %v313_v49 = vld [vmem:[%s653_s11 + $0x8] sm:$0xff]  ;;  %v258_v50 = vld [vmem:[%s654_s10] sm:$0xff] }
  0x12   :  { %230 = vmatpush.msrb.mxu2 %v204_v30  ;;  %250 = vmatpush.msrb.mxu3 %v205_v31  ;;  %v259_v51 = vld [vmem:[%s654_s10 + $0x8] sm:$0xff]  ;;  %v257_v52 = vld [vmem:[%s655_s4] sm:$0xff] }
  0x13   :  { %176 = vmatpush.msrb.mxu0 %v150_v32  ;;  %196 = vmatpush.msrb.mxu1 %v151_v33  ;;  %v311_v53 = vld [vmem:[%s656_s5] sm:$0xff] }
  0x14   :  { %384 = vmatmul.msk.f32.vlgmr.msrb.gmra.mxu0 %vm62_vm0, %v149_v34  ;;  %385 = vmatmul.msk.f32.vlgmr.msrb.gmra.mxu1 %vm62_vm0, %v149_v34  ;;  %v365_v6 = vld [vmem:[%s657_s12] sm:$0x3] }
  0x15   :  { %386 = vmatmul.msk.f32.vlgmr.msrb.gmra.mxu2 %vm62_vm0, %v203_v35  ;;  %387 = vmatmul.msk.f32.vlgmr.msrb.gmra.mxu3 %vm62_vm0, %v203_v35  ;;  %v367_v9 = vperm.slane %v365_v6, 0  ;;  %v368_v10 = vperm.slane %v365_v6, 1 }
  0x16   :  { %335 = vmatpush.msra.mxu2 %v318_v36  ;;  %355 = vmatpush.msra.mxu3 %v319_v37 }
  0x17   :  { %281 = vmatpush.msra.mxu0 %v264_v38  ;;  %301 = vmatpush.msra.mxu1 %v265_v39 }
  0x18   :  { %336 = vmatpush.msra.mxu2 %v316_v40  ;;  %356 = vmatpush.msra.mxu3 %v317_v41 }
  0x19   :  { %282 = vmatpush.msra.mxu0 %v262_v42  ;;  %302 = vmatpush.msra.mxu1 %v263_v43 }
  0x1a   :  { %337 = vmatpush.msra.mxu2 %v314_v44  ;;  %357 = vmatpush.msra.mxu3 %v315_v45 }
  0x1b   :  { %283 = vmatpush.msra.mxu0 %v260_v46  ;;  %303 = vmatpush.msra.mxu1 %v261_v47 }
  0x1c   :  { %338 = vmatpush.msra.mxu2 %v312_v48  ;;  %358 = vmatpush.msra.mxu3 %v313_v49 }
  0x1d   :  { %284 = vmatpush.msra.mxu0 %v258_v50  ;;  %304 = vmatpush.msra.mxu1 %v259_v51 }
  0x1e   :  { %388 = vmatmul.msk.f32.vlgmr.msra.gmra.mxu0 %vm62_vm0, %v257_v52  ;;  %389 = vmatmul.msk.f32.vlgmr.msra.gmra.mxu1 %vm62_vm0, %v257_v52 }
  0x1f   :  { %390 = vmatmul.msk.f32.vlgmr.msra.gmra.mxu2 %vm62_vm0, %v311_v53  ;;  %391 = vmatmul.msk.f32.vlgmr.msra.gmra.mxu3 %vm62_vm0, %v311_v53 }
  0x87   :  { %v83_v54 = vpop.f32.mrf.mxu0  ;;  %v103_v55 = vpop.f32.mrf.mxu1 }
  0x8e   :  { %v126_v56 = vpop.f32.mrf.mxu2  ;;  %v146_v57 = vpop.f32.mrf.mxu3 }
  0x8f   :  { %v127_v60 = vadd.f32 %v126_v56, %v83_v54  ;;  %v147_v61 = vadd.f32 %v146_v57, %v103_v55 }
  0x91   :  { %v178_v58 = vpop.f32.mrf.mxu0  ;;  %v198_v59 = vpop.f32.mrf.mxu1 }
  0x92   :  { %v201_v0 = vadd.f32 %v178_v58, %v127_v60  ;;  %v202_v1 = vadd.f32 %v198_v59, %v147_v61 }
  0x98   :  { %v232_v62 = vpop.f32.mrf.mxu2  ;;  %v252_v63 = vpop.f32.mrf.mxu3 }
  0x99   :  { %v255_v2 = vadd.f32 %v232_v62, %v201_v0  ;;  %v256_v3 = vadd.f32 %v252_v63, %v202_v1 }
  0x9b   :  { %v286_v4 = vpop.f32.mrf.mxu0  ;;  %v306_v5 = vpop.f32.mrf.mxu1 }
  0x9c   :  { %v309_v7 = vadd.f32 %v286_v4, %v255_v2  ;;  %v310_v8 = vadd.f32 %v306_v5, %v256_v3 }
  0xa2   :  { %v340_v11 = vpop.f32.mrf.mxu2  ;;  %v360_v12 = vpop.f32.mrf.mxu3 }
  0xa3   :  { %v363_v13 = vadd.f32 %v340_v11, %v309_v7  ;;  %v364_v14 = vadd.f32 %v360_v12, %v310_v8 }
  0xa5   :  { %v371_v15 = vadd.f32 %v367_v9, %v363_v13  ;;  %v372_v16 = vadd.f32 %v368_v10, %v364_v14 }
  0xa7   :  { %373 = vst [vmem:[%s658_s13] sm:$0xff] %v371_v15 }
  0xa8   :  { %375 = vst.msk [vmem:[%s658_s13 + $0x8] sm:$0xff] %vm374_vm1, %v372_v16 }

// kernel: chrononet_forward.30
= control target key start
LH: loop header
LB: loop body
LE: loop exit
PB: predicated region body
PF: predicated region fallthrough
CT: control target
= control target key end

     0   :  { %vm46_vm0 = vcmask 254976   ;;  %v620_v0 = vmov 0.0   ;;  %s621_s9 = smov 32   ;;  %s622_s24 = smov 64   ;;  %vm78_vm1 = vcmask 261120   ;;  %vm80_vm2 = vcmask 523264   ;;  %s811_s2 = inlined_call_operand.vmem [shape: f32[64,192], index: 2, kind: input, shape index: {}]   ;;  %s812_s3 = inlined_call_operand.vmem [shape: f32[1,64], index: 3, kind: input, shape index: {}]   ;;  %s813_s1 = inlined_call_operand.vmem [shape: f32[3,2,192], index: 1, kind: input, shape index: {}, may-alias: {0,1}]   ;;  %s814_s0 = inlined_call_operand.vmem [shape: f32[3,2,192], index: 0, kind: input, shape index: {}, may-alias: {0,1}]   ;;  %s815_s4 = inlined_call_operand.vmem [shape: f32[2,64], index: 4, kind: output, shape index: {}]  }
   0x1   :  { %48 = vst.msk [vmem:[#allocation3] sm:$0x3] %vm46_vm0, %v620_v0  ;;  %v65_v1 = vld [vmem:[%s811_s2 + $0x70] sm:$0xff]  ;;  %v66_v2 = vld [vmem:[%s811_s2 + $0x78] sm:$0xff]  ;;  %v63_v3 = vld [vmem:[%s811_s2 + $0x60] sm:$0xff]  ;;  %s623_s25 = smov 96  }
   0x2   :  { %47 = vst.msk [vmem:[#allocation2] sm:$0x3] %vm46_vm0, %v620_v0  ;;  %92 = vmatpush.msra.mxu0 %v65_v1  ;;  %112 = vmatpush.msra.mxu1 %v66_v2  ;;  %v64_v4 = vld [vmem:[%s811_s2 + $0x68] sm:$0xff]  ;;  %v61_v5 = vld [vmem:[%s811_s2 + $0x50] sm:$0xff]  ;;  %v62_v6 = vld [vmem:[%s811_s2 + $0x58] sm:$0xff]  ;;  %vm176_vm3 = vcmask 1041408  }
   0x3   :  { %253 = vmatpush.msra.mxu2 %v65_v1  ;;  %273 = vmatpush.msra.mxu3 %v66_v2  ;;  %v59_v7 = vld [vmem:[%s811_s2 + $0x40] sm:$0xff]  ;;  %v60_v8 = vld [vmem:[%s811_s2 + $0x48] sm:$0xff]  ;;  %v57_v9 = vld [vmem:[%s811_s2 + $0x30] sm:$0xff]  ;;  %vm49_vm12 = vcmask 517120  }
   0x4   :  { %93 = vmatpush.msra.mxu0 %v63_v3  ;;  %113 = vmatpush.msra.mxu1 %v64_v4  ;;  %v58_v10 = vld [vmem:[%s811_s2 + $0x38] sm:$0xff]  ;;  %v55_v12 = vld [vmem:[%s811_s2 + $0x20] sm:$0xff]  ;;  %v56_v13 = vld [vmem:[%s811_s2 + $0x28] sm:$0xff]  ;;  %50 = vst.msk [vmem:[#allocation4] sm:$0x3] %vm49_vm12, %v620_v0 }
   0x5   :  { %254 = vmatpush.msra.mxu2 %v63_v3  ;;  %274 = vmatpush.msra.mxu3 %v64_v4  ;;  %v53_v14 = vld [vmem:[%s811_s2 + $0x10] sm:$0xff]  ;;  %v54_v15 = vld [vmem:[%s811_s2 + $0x18] sm:$0xff]  ;;  %v51_v16 = vld [vmem:[%s811_s2] sm:$0xff] }
   0x6   :  { %94 = vmatpush.msra.mxu0 %v61_v5  ;;  %114 = vmatpush.msra.mxu1 %v62_v6  ;;  %v52_v17 = vld [vmem:[%s811_s2 + $0x8] sm:$0xff]  ;;  %v708_v18 = vld [vmem:[%s812_s3] ss:$0 sm:$0xff] }
   0x7   :  { %255 = vmatpush.msra.mxu2 %v61_v5  ;;  %275 = vmatpush.msra.mxu3 %v62_v6  ;;  %v563_v27 = vld [vmem:[%s813_s1 + $0x8] sm:$0xf]  ;;  %v71_v34 = vld [vmem:[%s814_s0] sm:$0xf] }
   0x8   :  { %v683_v11 = vld [vmem:[#allocation3] sm:$0x3]  ;;  %95 = vmatpush.msra.mxu0 %v59_v7  ;;  %115 = vmatpush.msra.mxu1 %v60_v8 }
   0x9   :  { %75 = vrot.lane.b32.xlu0 %v683_v11, %s621_s9  ;;  %256 = vmatpush.msra.mxu2 %v59_v7  ;;  %v68_v19 = vld [vmem:[#allocation2] sm:$0x3] }
   0xa   :  { %96 = vmatpush.msra.mxu0 %v57_v9  ;;  %116 = vmatpush.msra.mxu1 %v58_v10 }
   0xb   :  { %276 = vmatpush.msra.mxu3 %v60_v8  ;;  %257 = vmatpush.msra.mxu2 %v57_v9 }
   0xc   :  { %97 = vmatpush.msra.mxu0 %v55_v12  ;;  %117 = vmatpush.msra.mxu1 %v56_v13 }
   0xd   :  { %277 = vmatpush.msra.mxu3 %v58_v10  ;;  %258 = vmatpush.msra.mxu2 %v55_v12 }
   0xe   :  { %98 = vmatpush.msra.mxu0 %v53_v14  ;;  %118 = vmatpush.msra.mxu1 %v54_v15 }
   0xf   :  { %278 = vmatpush.msra.mxu3 %v56_v13  ;;  %259 = vmatpush.msra.mxu2 %v53_v14 }
  0x10   :  { %99 = vmatpush.msra.mxu0 %v51_v16  ;;  %119 = vmatpush.msra.mxu1 %v52_v17 }
  0x11   :  { %279 = vmatpush.msra.mxu3 %v54_v15  ;;  %260 = vmatpush.msra.mxu2 %v51_v16 }
  0x12   :  { %402 = vmatpush.msrb.mxu0 %v65_v1  ;;  %422 = vmatpush.msrb.mxu1 %v66_v2 }
  0x13   :  { %280 = vmatpush.msra.mxu3 %v52_v17  ;;  %146 = vrot.lane.b32.xlu0 %v708_v18, %s622_s24 }
  0x14   :  { %403 = vmatpush.msrb.mxu0 %v63_v3  ;;  %423 = vmatpush.msrb.mxu1 %v64_v4 }
  0x16   :  { %404 = vmatpush.msrb.mxu0 %v61_v5  ;;  %424 = vmatpush.msrb.mxu1 %v62_v6 }
  0x18   :  { %405 = vmatpush.msrb.mxu0 %v59_v7  ;;  %425 = vmatpush.msrb.mxu1 %v60_v8 }
  0x1a   :  { %406 = vmatpush.msrb.mxu0 %v57_v9  ;;  %426 = vmatpush.msrb.mxu1 %v58_v10 }
  0x1c   :  { %407 = vmatpush.msrb.mxu0 %v55_v12  ;;  %427 = vmatpush.msrb.mxu1 %v56_v13 }
  0x1e   :  { %408 = vmatpush.msrb.mxu0 %v53_v14  ;;  %428 = vmatpush.msrb.mxu1 %v54_v15 }
  0x20   :  { %409 = vmatpush.msrb.mxu0 %v51_v16  ;;  %429 = vmatpush.msrb.mxu1 %v52_v17 }
  0x7b   :  { %v76_v20 = vpop.permute.xlu0 %75 }
  0x7c   :  { %v79_v21 = vsel %vm78_vm1, %v68_v19, %v76_v20 }
  0x7d   :  { %564 = vmatmul.msk.f32.vlgmr.msra.gmra.mxu0 %vm80_vm2, %v79_v21  ;;  %565 = vmatmul.msk.f32.vlgmr.msra.gmra.mxu1 %vm80_vm2, %v79_v21 }
  0x85   :  { %v715_v22 = vpop.permute.xlu0 %146 }
  0xfa   :  { %v101_v23 = vpop.f32.mrf.mxu0  ;;  %v121_v24 = vpop.f32.mrf.mxu1 }
  0xfb   :  { %v200_v25 = vadd.f32 %v708_v18, %v121_v24  ;;  %v149_v26 = vadd.f32 %v715_v22, %v101_v23  ;;  %v175_v28 = vrot.slane %v121_v24, 6  ;;  %v124_v35 = vadd.f32 %v101_v23, %v71_v34 }
  0xfd   :  { %202 = vrot.lane.b32.xlu2 %v200_v25, %s622_s24  ;;  %151 = vrot.lane.b32.xlu1 %v149_v26, %s622_s24  ;;  %v177_v29 = vsel %vm176_vm3, %v101_v23, %v175_v28  ;;  %v566_v37 = vmul.f32 -1.442695, %v124_v35  ;;  %v569_v28 = vld [vmem:[%s813_s1 + $0x4] sm:$0xf] }
  0xfe   :  { %v179_v30 = vadd.f32 %v563_v27, %v177_v29 }
 0x100   :  { %v567_v31 = vmul.f32 -1.442695, %v179_v30 }
 0x102   :  { %584 = vpow2.f32 %v567_v31 }
 0x105   :  { %207 = vrot.lane.b32.xlu2 %v563_v27, %s623_s25 }
 0x108   :  { %v585_v32 = vpop.eup %584 }
 0x109   :  { %v183_v33 = vadd.f32 1.0, %v585_v32 }
 0x10b   :  { %586 = vrcp.f32 %v183_v33  ;;  %v195_v44 = vand.u32 2147483648, %v183_v33  ;;  %vm189_vm5 = vweird.f32 %v183_v33  ;;  %v193_v45 = vand.u32 2147483647, %v183_v33 }
 0x10c   :  { %588 = vpow2.f32 %v566_v37 }
 0x10d   :  { %168 = vrot.lane.b32.xlu2 %v68_v19, %s621_s9  ;;  %v196_v47 = vor.u32 1.1754944e-38, %v195_v44  ;;  %vm194_vm7 = vcmp.eq.f32.partialorder %v193_v45, 8.507059e+37 }
 0x111   :  { %v587_v36 = vpop.eup %586 }
 0x112   :  { %v185_v38 = vmul.f32 %v587_v36, %v183_v33  ;;  %v589_v40 = vpop.eup %588  ;;  %vm190_vm4 = vweird.f32 %v587_v36  ;;  %v568_v33 = vld [vmem:[%s814_s0 + $0x4] sm:$0xf] }
 0x113   :  { %v128_v42 = vadd.f32 1.0, %v589_v40  ;;  %vm191_vm6 = vmor %vm189_vm5, %vm190_vm4 }
 0x114   :  { %v186_v39 = vsub.f32 1.0, %v185_v38 }
 0x115   :  { %590 = vrcp.f32 %v128_v42  ;;  %v140_v56 = vand.u32 2147483648, %v128_v42  ;;  %vm134_vm9 = vweird.f32 %v128_v42  ;;  %v138_v57 = vand.u32 2147483647, %v128_v42 }
 0x116   :  { %v187_v41 = vmul.f32 %v587_v36, %v186_v39 }
 0x117   :  { %v141_v59 = vor.u32 1.1754944e-38, %v140_v56  ;;  %vm139_vm11 = vcmp.eq.f32.partialorder %v138_v57, 8.507059e+37 }
 0x118   :  { %v188_v43 = vadd.f32 %v587_v36, %v187_v41 }
 0x11a   :  { %v192_v46 = vsel %vm191_vm6, %v587_v36, %v188_v43 }
 0x11b   :  { %v197_v49 = vsel %vm194_vm7, %v196_v47, %v192_v46  ;;  %v591_v51 = vpop.eup %590 }
 0x11c   :  { %v130_v52 = vmul.f32 %v591_v51, %v128_v42  ;;  %vm135_vm8 = vweird.f32 %v591_v51  ;;  %v218_v10 = vrot.slane %v197_v49, 2 }
 0x11d   :  { %vm136_vm10 = vmor %vm134_vm9, %vm135_vm8 }
 0x11e   :  { %v131_v53 = vsub.f32 1.0, %v130_v52  ;;  %v220_v16 = vsub.f32 1.0, %v218_v10  ;;  %v222_v19 = vmul.f32 %v218_v10, %v683_v11 }
 0x120   :  { %v132_v54 = vmul.f32 %v591_v51, %v131_v53 }
 0x122   :  { %v133_v55 = vadd.f32 %v591_v51, %v132_v54 }
 0x124   :  { %v137_v58 = vsel %vm136_vm10, %v591_v51, %v133_v55 }
 0x125   :  { %v142_v60 = vsel %vm139_vm11, %v141_v59, %v137_v58 }
 0x126   :  { %v161_v8 = vsub.f32 1.0, %v142_v60 }
 0x157   :  { %v203_v48 = vpop.permute.xlu2 %202 }
 0x158   :  { %v205_v50 = vmul.f32 %v203_v48, %v197_v49 }
 0x15a   :  { %212 = vrot.lane.b32.xlu0 %v205_v50, %s621_s9 }
 0x15f   :  { %v208_v3 = vpop.permute.xlu2 %207 }
 0x160   :  { %v209_v4 = vrot.slane %v208_v3, 2 }
 0x167   :  { %v169_v7 = vpop.permute.xlu2 %168 }
 0x168   :  { %v171_v12 = vmul.f32 %v169_v7, %v142_v60 }
 0x16f   :  { %v152_v61 = vpop.permute.xlu1 %151 }
 0x170   :  { %v154_v62 = vmul.f32 %v152_v61, %v142_v60 }
 0x172   :  { %156 = vrot.lane.b32.xlu1 %v154_v62, %s622_s24 }
 0x1cc   :  { %v213_v5 = vpop.permute.xlu0 %212 }
 0x1cd   :  { %v215_v6 = vadd.f32 %v213_v5, %v209_v4 }
 0x1e4   :  { %v157_v63 = vpop.permute.xlu1 %156 }
 0x1e5   :  { %v159_v1 = vadd.f32 %v157_v63, %v71_v34 }
 0x1e7   :  { %592 = vtanh.f32 %v159_v1 }
 0x1e8   :  { %594 = vtanh.f32 %v215_v6 }
 0x1ed   :  { %v593_v2 = vpop.eup %592 }
 0x1ee   :  { %163 = vrot.lane.b32.xlu1 %v593_v2, %s623_s25  ;;  %v595_v15 = vpop.eup %594 }
 0x1ef   :  { %v221_v17 = vmul.f32 %v595_v15, %v220_v16 }
 0x1f1   :  { %v737_v20 = vadd.f32 %v222_v19, %v221_v17 }
 0x260   :  { %v164_v9 = vpop.permute.xlu1 %163 }
 0x261   :  { %v166_v13 = vmul.f32 %v164_v9, %v161_v8 }
 0x263   :  { %v733_v14 = vadd.f32 %v171_v12, %v166_v13 }
 0x265   :  { %225 = vst [vmem:[#allocation1] ss:$4 sm:$0xff] %v733_v14 }
 0x26c   :  { %v226_v21 = vld.sshfl [vmem:[#allocation1] sm:$0xff pattern:$0x73625140] }
 0x26d   :  { %231 = vst [vmem:[#allocation1] ss:$4 sm:$0xff] %v737_v20  ;;  %227 = vrot.lane.b32.xlu0 %v226_v21, %s623_s25 }
 0x274   :  { %v232_v23 = vld.sshfl [vmem:[#allocation1] sm:$0xff pattern:$0x73625140] }
 0x275   :  { %233 = vrot.lane.b32.xlu1 %v232_v23, %s621_s9 }
 0x2df   :  { %v228_v24 = vpop.permute.xlu0 %227 }
 0x2e7   :  { %v234_v25 = vpop.permute.xlu1 %233 }
 0x2e8   :  { %v745_v26 = vsel %vm78_vm1, %v228_v24, %v234_v25 }
 0x2e9   :  { %570 = vmatmul.msk.f32.vlgmr.msra.gmra.mxu2 %vm80_vm2, %v745_v26  ;;  %571 = vmatmul.msk.f32.vlgmr.msra.gmra.mxu3 %vm80_vm2, %v745_v26 }
 0x36c   :  { %v262_v11 = vpop.f32.mrf.mxu2  ;;  %v282_v27 = vpop.f32.mrf.mxu3 }
 0x36d   :  { %v305_v29 = vadd.f32 %v262_v11, %v715_v22  ;;  %v327_v0 = vrot.slane %v282_v27, 6  ;;  %v350_v30 = vadd.f32 %v708_v18, %v282_v27  ;;  %v285_v34 = vadd.f32 %v568_v33, %v262_v11 }
 0x36f   :  { %v328_v31 = vsel %vm176_vm3, %v262_v11, %v327_v0  ;;  %352 = vrot.lane.b32.xlu1 %v350_v30, %s622_s24  ;;  %307 = vrot.lane.b32.xlu2 %v305_v29, %s622_s24  ;;  %v572_v35 = vmul.f32 -1.442695, %v285_v34 }
 0x370   :  { %v330_v32 = vadd.f32 %v569_v28, %v328_v31 }
 0x371   :  { %596 = vpow2.f32 %v572_v35 }
 0x372   :  { %v573_v39 = vmul.f32 -1.442695, %v330_v32 }
 0x377   :  { %357 = vrot.lane.b32.xlu2 %v569_v28, %s623_s25  ;;  %v597_v36 = vpop.eup %596 }
 0x378   :  { %v289_v37 = vadd.f32 1.0, %v597_v36 }
 0x37a   :  { %598 = vrcp.f32 %v289_v37  ;;  %v301_v46 = vand.u32 2147483648, %v289_v37  ;;  %vm295_vm14 = vweird.f32 %v289_v37  ;;  %v299_v47 = vand.u32 2147483647, %v289_v37 }
 0x37b   :  { %600 = vpow2.f32 %v573_v39 }
 0x37c   :  { %v302_v49 = vor.u32 1.1754944e-38, %v301_v46  ;;  %vm300_vm4 = vcmp.eq.f32.partialorder %v299_v47, 8.507059e+37 }
 0x380   :  { %v599_v38 = vpop.eup %598 }
 0x381   :  { %v291_v40 = vmul.f32 %v599_v38, %v289_v37  ;;  %v601_v42 = vpop.eup %600  ;;  %vm296_vm13 = vweird.f32 %v599_v38 }
 0x382   :  { %v334_v44 = vadd.f32 1.0, %v601_v42  ;;  %vm297_vm15 = vmor %vm295_vm14, %vm296_vm13 }
 0x383   :  { %v292_v41 = vsub.f32 1.0, %v291_v40 }
 0x384   :  { %602 = vrcp.f32 %v334_v44  ;;  %v346_v58 = vand.u32 2147483648, %v334_v44  ;;  %vm340_vm6 = vweird.f32 %v334_v44  ;;  %v344_v59 = vand.u32 2147483647, %v334_v44 }
 0x385   :  { %v293_v43 = vmul.f32 %v599_v38, %v292_v41 }
 0x386   :  { %v347_v61 = vor.u32 1.1754944e-38, %v346_v58  ;;  %vm345_vm8 = vcmp.eq.f32.partialorder %v344_v59, 8.507059e+37 }
 0x387   :  { %v294_v45 = vadd.f32 %v599_v38, %v293_v43 }
 0x389   :  { %v298_v48 = vsel %vm297_vm15, %v599_v38, %v294_v45 }
 0x38a   :  { %v303_v51 = vsel %vm300_vm4, %v302_v49, %v298_v48  ;;  %v603_v53 = vpop.eup %602 }
 0x38b   :  { %v336_v54 = vmul.f32 %v603_v53, %v334_v44  ;;  %vm341_vm5 = vweird.f32 %v603_v53  ;;  %v317_v9 = vsub.f32 1.0, %v303_v51  ;;  %v323_v13 = vmul.f32 %v303_v51, %v733_v14  ;;  %v70_v14 = vld [vmem:[#allocation4] sm:$0x3] }
 0x38c   :  { %vm342_vm7 = vmor %vm340_vm6, %vm341_vm5  ;;  %v237_v27 = vadd.f32 %v745_v26, %v70_v14  ;;  %v390_v26 = vld [vmem:[%s813_s1] sm:$0xf] }
 0x38d   :  { %v337_v55 = vsub.f32 1.0, %v336_v54 }
 0x38f   :  { %v338_v56 = vmul.f32 %v603_v53, %v337_v55 }
 0x391   :  { %v339_v57 = vadd.f32 %v603_v53, %v338_v56 }
 0x393   :  { %v343_v60 = vsel %vm342_vm7, %v603_v53, %v339_v57 }
 0x394   :  { %v348_v63 = vsel %vm345_vm8, %v347_v61, %v343_v60 }
 0x395   :  { %v368_v12 = vrot.slane %v348_v63, 2 }
 0x397   :  { %v370_v19 = vsub.f32 1.0, %v368_v12  ;;  %v372_v23 = vmul.f32 %v368_v12, %v737_v20 }
 0x3c9   :  { %v308_v50 = vpop.permute.xlu2 %307 }
 0x3ca   :  { %v310_v52 = vmul.f32 %v308_v50, %v303_v51 }
 0x3cc   :  { %312 = vrot.lane.b32.xlu0 %v310_v52, %s622_s24 }
 0x3d1   :  { %v358_v5 = vpop.permute.xlu2 %357 }
 0x3d2   :  { %v359_v6 = vrot.slane %v358_v5, 2 }
 0x3e1   :  { %v353_v62 = vpop.permute.xlu1 %352 }
 0x3e2   :  { %v355_v1 = vmul.f32 %v353_v62, %v348_v63 }
 0x3e4   :  { %362 = vrot.lane.b32.xlu0 %v355_v1, %s621_s9 }
 0x43e   :  { %v313_v2 = vpop.permute.xlu0 %312 }
 0x43f   :  { %v315_v3 = vadd.f32 %v568_v33, %v313_v2 }
 0x441   :  { %604 = vtanh.f32 %v315_v3 }
 0x447   :  { %v605_v4 = vpop.eup %604 }
 0x448   :  { %319 = vrot.lane.b32.xlu1 %v605_v4, %s623_s25 }
 0x456   :  { %v363_v7 = vpop.permute.xlu0 %362 }
 0x457   :  { %v365_v8 = vadd.f32 %v363_v7, %v359_v6 }
 0x459   :  { %606 = vtanh.f32 %v365_v8 }
 0x45f   :  { %v607_v17 = vpop.eup %606 }
 0x460   :  { %v371_v21 = vmul.f32 %v607_v17, %v370_v19 }
 0x462   :  { %v771_v24 = vadd.f32 %v372_v23, %v371_v21 }
 0x4ba   :  { %v320_v10 = vpop.permute.xlu1 %319 }
 0x4bb   :  { %v322_v15 = vmul.f32 %v320_v10, %v317_v9 }
 0x4bd   :  { %v767_v16 = vadd.f32 %v323_v13, %v322_v15 }
 0x4bf   :  { %375 = vst [vmem:[#allocation1] ss:$4 sm:$0xff] %v767_v16 }
 0x4c6   :  { %v376_v25 = vld.sshfl [vmem:[#allocation1] sm:$0xff pattern:$0x73625140] }
 0x4c7   :  { %377 = vrot.lane.b32.xlu2 %v376_v25, %s623_s25  ;;  %381 = vst [vmem:[#allocation1] ss:$4 sm:$0xff] %v771_v24 }
 0x4ce   :  { %v382_v11 = vld.sshfl [vmem:[#allocation1] sm:$0xff pattern:$0x73625140] }
 0x4cf   :  { %383 = vrot.lane.b32.xlu0 %v382_v11, %s621_s9 }
 0x521   :  { %v378_v28 = vpop.permute.xlu2 %377 }
 0x541   :  { %v384_v29 = vpop.permute.xlu0 %383 }
 0x542   :  { %v386_v0 = vsel %vm78_vm1, %v378_v28, %v384_v29 }
 0x543   :  { %v778_v30 = vadd.f32 %v386_v0, %v237_v27  ;;  %575 = vmatmul.msk.f32.vlgmr.msrb.gmra.mxu0 %vm80_vm2, %v386_v0  ;;  %576 = vmatmul.msk.f32.vlgmr.msrb.gmra.mxu1 %vm80_vm2, %v386_v0 }
 0x5c0   :  { %v411_v20 = vpop.f32.mrf.mxu0  ;;  %v431_v31 = vpop.f32.mrf.mxu1 }
 0x5c1   :  { %v454_v32 = vadd.f32 %v411_v20, %v715_v22  ;;  %v476_v33 = vrot.slane %v431_v31, 6  ;;  %v499_v34 = vadd.f32 %v708_v18, %v431_v31  ;;  %v574_v22 = vld [vmem:[%s814_s0 + $0x8] sm:$0xf] }
 0x5c2   :  { %v434_v37 = vadd.f32 %v574_v22, %v411_v20 }
 0x5c3   :  { %501 = vrot.lane.b32.xlu0 %v499_v34, %s622_s24  ;;  %456 = vrot.lane.b32.xlu1 %v454_v32, %s622_s24  ;;  %v477_v35 = vsel %vm176_vm3, %v411_v20, %v476_v33 }
 0x5c4   :  { %v479_v36 = vadd.f32 %v477_v35, %v390_v26  ;;  %v577_v38 = vmul.f32 -1.442695, %v434_v37 }
 0x5c6   :  { %608 = vpow2.f32 %v577_v38  ;;  %v578_v18 = vmul.f32 -1.442695, %v479_v36 }
 0x5c8   :  { %610 = vpow2.f32 %v578_v18 }
 0x5cb   :  { %506 = vrot.lane.b32.xlu1 %v390_v26, %s623_s25 }
 0x5cc   :  { %v609_v39 = vpop.eup %608 }
 0x5cd   :  { %v438_v40 = vadd.f32 1.0, %v609_v39 }
 0x5ce   :  { %v611_v41 = vpop.eup %610 }
 0x5cf   :  { %612 = vrcp.f32 %v438_v40  ;;  %v483_v42 = vadd.f32 1.0, %v611_v41  ;;  %v450_v51 = vand.u32 2147483648, %v438_v40  ;;  %vm444_vm3 = vweird.f32 %v438_v40 }
 0x5d0   :  { %v448_v52 = vand.u32 2147483647, %v438_v40 }
 0x5d1   :  { %614 = vrcp.f32 %v483_v42  ;;  %v451_v55 = vor.u32 1.1754944e-38, %v450_v51  ;;  %v495_v60 = vand.u32 2147483648, %v483_v42  ;;  %vm489_vm13 = vweird.f32 %v483_v42 }
 0x5d2   :  { %vm449_vm10 = vcmp.eq.f32.partialorder %v448_v52, 8.507059e+37  ;;  %v493_v61 = vand.u32 2147483647, %v483_v42 }
 0x5d3   :  { %v496_v1 = vor.u32 1.1754944e-38, %v495_v60 }
 0x5d4   :  { %vm494_vm15 = vcmp.eq.f32.partialorder %v493_v61, 8.507059e+37 }
 0x5d5   :  { %v613_v43 = vpop.eup %612 }
 0x5d6   :  { %v440_v44 = vmul.f32 %v613_v43, %v438_v40  ;;  %vm445_vm2 = vweird.f32 %v613_v43 }
 0x5d7   :  { %v615_v46 = vpop.eup %614  ;;  %vm446_vm9 = vmor %vm444_vm3, %vm445_vm2 }
 0x5d8   :  { %v441_v45 = vsub.f32 1.0, %v440_v44  ;;  %v485_v47 = vmul.f32 %v615_v46, %v483_v42  ;;  %vm490_vm11 = vweird.f32 %v615_v46 }
 0x5d9   :  { %vm491_vm14 = vmor %vm489_vm13, %vm490_vm11 }
 0x5da   :  { %v442_v48 = vmul.f32 %v613_v43, %v441_v45  ;;  %v486_v49 = vsub.f32 1.0, %v485_v47 }
 0x5dc   :  { %v443_v50 = vadd.f32 %v613_v43, %v442_v48  ;;  %v487_v53 = vmul.f32 %v615_v46, %v486_v49 }
 0x5de   :  { %v447_v54 = vsel %vm446_vm9, %v613_v43, %v443_v50  ;;  %v488_v58 = vadd.f32 %v615_v46, %v487_v53 }
 0x5df   :  { %v452_v57 = vsel %vm449_vm10, %v451_v55, %v447_v54 }
 0x5e0   :  { %v492_v62 = vsel %vm491_vm14, %v615_v46, %v488_v58  ;;  %v466_v23 = vsub.f32 1.0, %v452_v57  ;;  %v472_v11 = vmul.f32 %v452_v57, %v767_v16 }
 0x5e1   :  { %v497_v2 = vsel %vm494_vm15, %v496_v1, %v492_v62 }
 0x5e2   :  { %v517_v12 = vrot.slane %v497_v2, 2 }
 0x5e4   :  { %v519_v13 = vsub.f32 1.0, %v517_v12  ;;  %v521_v17 = vmul.f32 %v517_v12, %v771_v24 }
 0x635   :  { %v457_v56 = vpop.permute.xlu1 %456  ;;  %v502_v63 = vpop.permute.xlu0 %501 }
 0x636   :  { %v459_v59 = vmul.f32 %v457_v56, %v452_v57  ;;  %v504_v3 = vmul.f32 %v502_v63, %v497_v2 }
 0x638   :  { %461 = vrot.lane.b32.xlu2 %v459_v59, %s622_s24 }
 0x63d   :  { %v507_v6 = vpop.permute.xlu1 %506 }
 0x63e   :  { %v508_v7 = vrot.slane %v507_v6, 2 }
 0x640   :  { %511 = vrot.lane.b32.xlu2 %v504_v3, %s621_s9 }
 0x692   :  { %v462_v4 = vpop.permute.xlu2 %461 }
 0x693   :  { %v464_v5 = vadd.f32 %v574_v22, %v462_v4 }
 0x695   :  { %616 = vtanh.f32 %v464_v5 }
 0x69a   :  { %v512_v8 = vpop.permute.xlu2 %511 }
 0x69b   :  { %v617_v9 = vpop.eup %616  ;;  %v514_v10 = vadd.f32 %v512_v8, %v508_v7 }
 0x69c   :  { %468 = vrot.lane.b32.xlu0 %v617_v9, %s623_s25 }
 0x69d   :  { %618 = vtanh.f32 %v514_v10 }
 0x6a3   :  { %v619_v15 = vpop.eup %618 }
 0x6a4   :  { %v520_v19 = vmul.f32 %v619_v15, %v519_v13 }
 0x6a6   :  { %v522_v21 = vadd.f32 %v521_v17, %v520_v19 }
 0x6a8   :  { %544 = vst.msk [vmem:[#allocation3] sm:$0x3] %vm46_vm0, %v522_v21 }
 0x70e   :  { %v469_v25 = vpop.permute.xlu0 %468 }
 0x70f   :  { %v471_v14 = vmul.f32 %v469_v25, %v466_v23 }
 0x711   :  { %v473_v27 = vadd.f32 %v472_v11, %v471_v14 }
 0x713   :  { %524 = vst [vmem:[#allocation1] ss:$4 sm:$0xff] %v473_v27 }
 0x71a   :  { %v525_v28 = vld.sshfl [vmem:[#allocation1] sm:$0xff pattern:$0x73625140] }
 0x71b   :  { %526 = vrot.lane.b32.xlu1 %v525_v28, %s623_s25  ;;  %530 = vst [vmem:[#allocation1] ss:$4 sm:$0xff] %v522_v21 }
 0x722   :  { %v531_v29 = vld.sshfl [vmem:[#allocation1] sm:$0xff pattern:$0x73625140] }
 0x723   :  { %532 = vrot.lane.b32.xlu2 %v531_v29, %s621_s9  ;;  %537 = vst [vmem:[#allocation1] ss:$4 sm:$0xff] %v473_v27 }
 0x72a   :  { %v538_v24 = vld.sshfl [vmem:[#allocation1] sm:$0xff pattern:$0x73625140] }
 0x72b   :  { %539 = vrot.lane.b32.xlu0 %v538_v24, %s623_s25 }
 0x77d   :  { %v533_v0 = vpop.permute.xlu2 %532 }
 0x78d   :  { %v527_v20 = vpop.permute.xlu1 %526 }
 0x78e   :  { %v535_v31 = vsel %vm78_vm1, %v527_v20, %v533_v0 }
 0x78f   :  { %v536_v16 = vadd.f32 %v535_v31, %v778_v30 }
 0x791   :  { %546 = vst.msk [vmem:[#allocation4] sm:$0x3] %vm49_vm12, %v536_v16 }
 0x798   :  { %v550_v32 = vld [vmem:[#allocation4] sm:$0x3] }
 0x799   :  { %v551_v33 = vmul.f32 0.33333334, %v550_v32 }
 0x79b   :  { %552 = vst.msk [vmem:[%s815_s4] sm:$0x3] %vm49_vm12, %v551_v33 }
 0x79d   :  { %v540_v34 = vpop.permute.xlu0 %539 }
 0x79e   :  { %543 = vst.msk [vmem:[#allocation2] sm:$0x3] %vm46_vm0, %v540_v34 }

// kernel: chrononet_forward.31
= control target key start
LH: loop header
LB: loop body
LE: loop exit
PB: predicated region body
PF: predicated region fallthrough
CT: control target
= control target key end

     0   :  { %s412_s0 = inlined_call_operand.vmem [shape: f32[2,64], index: 0, kind: input, shape index: {}]   ;;  %s413_s1 = inlined_call_operand.vmem [shape: f32[64,128], index: 1, kind: input, shape index: {}]   ;;  %s414_s2 = inlined_call_operand.vmem [shape: f32[1,128], index: 2, kind: input, shape index: {}]   ;;  %s415_s3 = inlined_call_operand.vmem [shape: f32[128,64], index: 3, kind: input, shape index: {}]   ;;  %s416_s4 = inlined_call_operand.vmem [shape: f32[1,64], index: 4, kind: input, shape index: {}]   ;;  %s417_s5 = inlined_call_operand.vmem [shape: f32[64,20], index: 5, kind: input, shape index: {}]   ;;  %s418_s6 = inlined_call_operand.vmem [shape: f32[1,20], index: 6, kind: input, shape index: {}]   ;;  %s419_s7 = inlined_call_operand.vmem [shape: f32[20,4], index: 7, kind: input, shape index: {}]   ;;  %s420_s8 = inlined_call_operand.vmem [shape: f32[1,4], index: 8, kind: input, shape index: {}]   ;;  %s421_s9 = inlined_call_operand.hbm [shape: f32[2,4], index: 9, kind: output, shape index: {}]  }
   0x1   :  { %v41_v0 = vld [vmem:[%s413_s1 + $0x38] sm:$0xff]  ;;  %v40_v1 = vld [vmem:[%s413_s1 + $0x30] sm:$0xff]  ;;  %v39_v2 = vld [vmem:[%s413_s1 + $0x28] sm:$0xff] }
   0x2   :  { %58 = vmatpush.msra.mxu0 %v41_v0  ;;  %v86_v3 = vld [vmem:[%s415_s3 + $0x78] sm:$0xff]  ;;  %v85_v4 = vld [vmem:[%s415_s3 + $0x70] sm:$0xff]  ;;  %v38_v5 = vld [vmem:[%s413_s1 + $0x20] sm:$0xff] }
   0x3   :  { %91 = vmatpush.msra.mxu1 %v86_v3  ;;  %v84_v6 = vld [vmem:[%s415_s3 + $0x68] sm:$0xff]  ;;  %v37_v7 = vld [vmem:[%s413_s1 + $0x18] sm:$0xff]  ;;  %v36_v8 = vld [vmem:[%s413_s1 + $0x10] sm:$0xff] }
   0x4   :  { %59 = vmatpush.msra.mxu0 %v40_v1  ;;  %v83_v9 = vld [vmem:[%s415_s3 + $0x60] sm:$0xff]  ;;  %v82_v10 = vld [vmem:[%s415_s3 + $0x58] sm:$0xff] }
   0x5   :  { %92 = vmatpush.msra.mxu1 %v85_v4 }
   0x6   :  { %60 = vmatpush.msra.mxu0 %v39_v2 }
   0x7   :  { %93 = vmatpush.msra.mxu1 %v84_v6 }
   0x8   :  { %61 = vmatpush.msra.mxu0 %v38_v5 }
   0xa   :  { %62 = vmatpush.msra.mxu0 %v37_v7 }
   0xb   :  { %14 = vsyncpa [#allocation3], 0  ;;  %v35_v11 = vld [vmem:[%s413_s1 + $0x8] sm:$0xff]  ;;  %94 = vmatpush.msra.mxu1 %v83_v9  ;;  %v81_v12 = vld [vmem:[%s415_s3 + $0x50] sm:$0xff]  ;;  %vm46_vm0 = vcmask 523264   ;;  %vm159_vm1 = vcmask 1043456  }
   0xc   :  { %63 = vmatpush.msra.mxu0 %v36_v8  ;;  %v34_v13 = vld [vmem:[%s413_s1] sm:$0xff]  ;;  %v80_v15 = vld [vmem:[%s415_s3 + $0x48] sm:$0xff]  ;;  %v78_v17 = vld [vmem:[%s415_s3 + $0x38] sm:$0xff]  ;;  %vm155_vm2 = vcmask 162816   ;;  %s236_s18 = smov [#allocation2]   ;;  %vm183_vm3 = vcmask 25600  }
   0xd   :  { %95 = vmatpush.msra.mxu1 %v82_v10  ;;  %v33_v14 = vld [vmem:[%s412_s0] sm:$0x3]  ;;  %v77_v18 = vld [vmem:[%s415_s3 + $0x30] sm:$0xff]  ;;  %v76_v19 = vld [vmem:[%s415_s3 + $0x28] sm:$0xff]  ;;  %s190_s19 = sshll.u32 %s236_s18, 4  ;;  %s191_s19 = int_to_ptr.vmem [resolvable:$true] %s190_s19 }
   0xe   :  { %64 = vmatpush.msra.mxu0 %v35_v11  ;;  %v79_v16 = vld [vmem:[%s415_s3 + $0x40] sm:$0xff]  ;;  %v74_v21 = vld [vmem:[%s415_s3 + $0x18] sm:$0xff]  ;;  %v73_v22 = vld [vmem:[%s415_s3 + $0x10] sm:$0xff] }
   0xf   :  { %96 = vmatpush.msra.mxu1 %v81_v12  ;;  %v75_v20 = vld [vmem:[%s415_s3 + $0x20] sm:$0xff]  ;;  %v72_v23 = vld [vmem:[%s415_s3 + $0x8] sm:$0xff]  ;;  %v119_v25 = vld [vmem:[%s417_s5 + $0x38] sm:$0xff] }
  0x10   :  { %65 = vmatpush.msra.mxu0 %v34_v13  ;;  %v71_v24 = vld [vmem:[%s415_s3] sm:$0xff]  ;;  %v118_v26 = vld [vmem:[%s417_s5 + $0x30] sm:$0xff]  ;;  %135 = vmatpush.msra.mxu2 %v119_v25  ;;  %v117_v27 = vld [vmem:[%s417_s5 + $0x28] sm:$0xff] }
  0x11   :  { %201 = vmatmul.msk.f32.vlgmr.msra.gmra.mxu0 %vm46_vm0, %v33_v14  ;;  %97 = vmatpush.msra.mxu1 %v80_v15  ;;  %v116_v28 = vld [vmem:[%s417_s5 + $0x20] sm:$0xff]  ;;  %v115_v29 = vld [vmem:[%s417_s5 + $0x18] sm:$0xff]  ;;  %v114_v34 = vld [vmem:[%s417_s5 + $0x10] sm:$0xff] }
  0x12   :  { %136 = vmatpush.msra.mxu2 %v118_v26  ;;  %v206_v30 = vld [vmem:[%s414_s2] ss:$0 sm:$0xff]  ;;  %v113_v35 = vld [vmem:[%s417_s5 + $0x8] sm:$0xff]  ;;  %v150_v41 = vld [vmem:[%s419_s7 + $0x10] sm:$0xf] }
  0x13   :  { %98 = vmatpush.msra.mxu1 %v79_v16  ;;  %v112_v36 = vld [vmem:[%s417_s5] sm:$0xff]  ;;  %203 = vmatpush.msk.msra.mxu3 %vm159_vm1, %v150_v41  ;;  %v149_v42 = vld [vmem:[%s419_s7 + $0x8] sm:$0xff] }
  0x14   :  { %137 = vmatpush.msra.mxu2 %v117_v27  ;;  %v207_v37 = vld [vmem:[%s416_s4] ss:$0 sm:$0xff] }
  0x15   :  { %99 = vmatpush.msra.mxu1 %v78_v17  ;;  %177 = vmatpush.msra.mxu3 %v149_v42  ;;  %v148_v43 = vld [vmem:[%s419_s7] sm:$0xff]  ;;  %s192_s7 = sshll.u32 %s421_s9, 4  ;;  %s193_s7 = int_to_ptr.hbm [resolvable:$true] %s192_s7 }
  0x16   :  { %138 = vmatpush.msra.mxu2 %v116_v28  ;;  %v208_v44 = vld [vmem:[%s418_s6] ss:$0 sm:$0xff] }
  0x17   :  { %100 = vmatpush.msra.mxu1 %v77_v18  ;;  %178 = vmatpush.msra.mxu3 %v148_v43  ;;  %v209_v48 = vld [vmem:[%s420_s8] ss:$0 sm:$0xff] }
  0x18   :  { %139 = vmatpush.msra.mxu2 %v115_v29 }
  0x19   :  { %101 = vmatpush.msra.mxu1 %v76_v19 }
  0x1a   :  { %140 = vmatpush.msra.mxu2 %v114_v34 }
  0x1b   :  { %102 = vmatpush.msra.mxu1 %v75_v20 }
  0x1c   :  { %141 = vmatpush.msra.mxu2 %v113_v35 }
  0x1d   :  { %103 = vmatpush.msra.mxu1 %v74_v21 }
  0x1e   :  { %142 = vmatpush.msra.mxu2 %v112_v36 }
  0x1f   :  { %104 = vmatpush.msra.mxu1 %v73_v22 }
  0x21   :  { %105 = vmatpush.msra.mxu1 %v72_v23 }
  0x23   :  { %106 = vmatpush.msra.mxu1 %v71_v24 }
  0x8e   :  { %v67_v31 = vpop.f32.mrf.mxu0 }
  0x8f   :  { %v68_v32 = vadd.f32 %v206_v30, %v67_v31 }
  0x91   :  { %v70_v33 = vmax.f32 %v68_v32, 0.0 }
  0x93   :  { %107 = vmatmul.f32.vlgmr.msra.gmra.mxu1 %v70_v33 }
 0x110   :  { %v108_v38 = vpop.f32.mrf.mxu1 }
 0x111   :  { %v109_v39 = vadd.f32 %v207_v37, %v108_v38 }
 0x113   :  { %v111_v40 = vmax.f32 %v109_v39, 0.0 }
 0x115   :  { %202 = vmatmul.msk.f32.vlgmr.msra.gmra.mxu2 %vm46_vm0, %v111_v40 }
 0x198   :  { %v144_v45 = vpop.f32.mrf.mxu2 }
 0x199   :  { %v145_v46 = vadd.f32 %v208_v44, %v144_v45 }
 0x19b   :  { %v147_v47 = vmax.f32 %v145_v46, 0.0 }
 0x19d   :  { %204 = vmatmul.msk.f32.vlgmr.msra.gmra.mxu3 %vm155_vm2, %v147_v47 }
 0x220   :  { %v180_v49 = vpop.f32.mrf.mxu3 }
 0x221   :  { %v181_v50 = vadd.f32 %v209_v48, %v180_v49 }
 0x223   :  { %184 = vst.msk [vmem:[#allocation2] sm:$0x3] %vm183_vm3, %v181_v50 }
 0x224   :  { %195 = dma.vmem_to_hbm [thread:$0]  %s191_s19, 32, %s193_s7, [#allocation3]  }
 0x225   :  { %234 = dma.done.wait [#allocation3], 32  }
 0x226   :  { %235 = vsyncadd [#allocation3], 4294967264 }
 0x227   :  { %200 = vsyncpa [#allocation3], 1 }

</bundles_post_ra>
